<compile_context>
chip_gen: v7x
topology: tpu7x:2x2x1
jax: 0.10.0
libtpu: 0.0.40
codegen_flags: <defaults>
</compile_context>

<pallas_src>
import functools
import numpy as np
import jax
import jax.numpy as jnp
from jax.experimental import pallas as pl
from jax.experimental.pallas import tpu as pltpu  # noqa: F401  (TPU backend)


# ----------------------------- in-kernel helpers ----------------------------

def _layer_norm(x, g, b, eps=1e-6):
    # matches nn.LayerNorm(d_model, eps=1e-06); statistics kept in f32
    mu = jnp.mean(x, axis=-1, keepdims=True)
    var = jnp.mean(jnp.square(x - mu), axis=-1, keepdims=True)
    return (x - mu) * jax.lax.rsqrt(var + eps) * g + b


def _mha_proj(q2, k2, v2, wo, bias, B, Lq, Lk, H, d_k, d_v, d_model, cdt):
    """Multi-head attention with the output projection folded in.

    q2: (B*Lq, H*d_k)  k2: (B*Lk, H*d_k)  v2: (B*Lk, H*d_v)  wo: (H*d_v, d_model)
    bias: additive mask broadcastable to (B, Lq, Lk) (0 = keep, -1e9 = masked).
    1/sqrt(d_k) is already folded into the Q projection weights.
    Each head's context is accumulated directly through its Wo row-slice, so no lane-axis
    concatenate or per-head scratch store is ever materialised.
    """
    out = jnp.zeros((B * Lq, d_model), jnp.float32)
    for h in range(H):                                   # static unroll over heads
        qh = q2[:, h * d_k:(h + 1) * d_k].reshape(B, Lq, d_k).astype(cdt)
        kh = k2[:, h * d_k:(h + 1) * d_k].reshape(B, Lk, d_k).astype(cdt)
        vh = v2[:, h * d_v:(h + 1) * d_v].reshape(B, Lk, d_v).astype(cdt)
        s = jnp.einsum('bqd,bkd->bqk', qh, kh,
                       preferred_element_type=jnp.float32) + bias
        s = s - jnp.max(s, axis=-1, keepdims=True)
        p = jnp.exp(s)
        p = p * pl.reciprocal(jnp.sum(p, axis=-1, keepdims=True), approx=True)
        oh = jnp.einsum('bqk,bkd->bqd', p.astype(cdt), vh,
                        preferred_element_type=jnp.float32)
        out = out + jnp.dot(oh.reshape(B * Lq, d_v).astype(cdt),
                            wo[h * d_v:(h + 1) * d_v, :],
                            preferred_element_type=jnp.float32)
    return out


# ------------------------------ fused forward kernel --------------------------------

def _transformer_kernel(src_seq_ref, trg_seq_ref, kw_ref, src_x_ref, trg_x_ref,
                        ln0_ref,
                        e_wqkv_ref, e_wo_ref, e_w1_ref, e_b1_ref, e_w2_ref, e_dvec_ref,
                        d_s_wqkv_ref, d_s_wo_ref,
                        d_c_wq_ref, d_c_wkv_ref, d_c_wo_ref,
                        d_w1_ref, d_b1_ref, d_w2_ref, d_dvec_ref,
                        embT_ref, logits_ref,
                        *, n_layers, n_head, d_k, d_v, B, Ls, Lt, d_model,
                        src_pad_idx, trg_pad_idx, logit_scale):
    cdt = e_wqkv_ref.dtype                    # matmul input dtype (bf16 on v6e/v7x, else f32)
    Dqk = n_head * d_k
    Dv = n_head * d_v
    neg = jnp.float32(-1e9)

    # --- attention biases built in-kernel from raw token ids (no (B,L,L) wrapper DMAs) ---
    src_keep = src_seq_ref[...] != src_pad_idx                     # (B, Ls) bool
    trg_keep = trg_seq_ref[...] != trg_pad_idx                     # (B, Lt) bool
    src_bias = jnp.where(src_keep[:, None, :], 0.0, neg)           # (B, 1, Ls), bcast over q
    row = jax.lax.broadcasted_iota(jnp.int32, (Lt, Lt), 0)
    col = jax.lax.broadcasted_iota(jnp.int32, (Lt, Lt), 1)
    trg_bias = jnp.where(trg_keep[:, None, :] & (row >= col)[None, :, :],
                         0.0, neg)                                 # (B, Lt, Lt)

    ln0 = ln0_ref[...]                                             # (4, D)

    # ------------------------------- encoder ---------------------------------
    x = _layer_norm(src_x_ref[...], ln0[0:1], ln0[1:2])            # (B*Ls, D)
    for l in range(n_layers):                                      # static unroll
        dv = e_dvec_ref[l]                                         # (5, D): ln1_g,ln1_b,ln2_g,ln2_b,b2
        residual = x
        qkv = jnp.dot(x.astype(cdt), e_wqkv_ref[l], preferred_element_type=jnp.float32)
        attn = _mha_proj(qkv[:, :Dqk], qkv[:, Dqk:2 * Dqk], qkv[:, 2 * Dqk:],
                         e_wo_ref[l], src_bias, B, Ls, Ls, n_head, d_k, d_v, d_model, cdt)
        x = _layer_norm(attn + residual, dv[0:1], dv[1:2])
        h = jnp.maximum(jnp.dot(x.astype(cdt), e_w1_ref[l],
                                preferred_element_type=jnp.float32) + e_b1_ref[l], 0.0)
        y = jnp.dot(h.astype(cdt), e_w2_ref[l], preferred_element_type=jnp.float32) + dv[4:5]
        x = _layer_norm(y + x, dv[2:3], dv[3:4])

    # keyword re-scaling of enc_output, fused (enc_output never leaves VMEM)
    enc2 = x * kw_ref[...]                                         # (B*Ls, D)
    # cross-attention K/V projections hoisted out of the decoder loop (enc2 loop-invariant)
    kv_all = jnp.dot(enc2.astype(cdt), d_c_wkv_ref[...],
                     preferred_element_type=jnp.float32)           # (B*Ls, n_layers*(Dqk+Dv))

    # ------------------------------- decoder ---------------------------------
    x = _layer_norm(trg_x_ref[...], ln0[2:3], ln0[3:4])            # (B*Lt, D)
    for l in range(n_layers):                                      # static unroll
        dv = d_dvec_ref[l]                                         # (7, D)
        # --- masked self attention ---
        residual = x
        qkv = jnp.dot(x.astype(cdt), d_s_wqkv_ref[l], preferred_element_type=jnp.float32)
        attn = _mha_proj(qkv[:, :Dqk], qkv[:, Dqk:2 * Dqk], qkv[:, 2 * Dqk:],
                         d_s_wo_ref[l], trg_bias, B, Lt, Lt, n_head, d_k, d_v, d_model, cdt)
        x = _layer_norm(attn + residual, dv[0:1], dv[1:2])
        # --- encoder-decoder cross attention ---
        residual = x
        q2 = jnp.dot(x.astype(cdt), d_c_wq_ref[l], preferred_element_type=jnp.float32)
        base = l * (Dqk + Dv)
        attn = _mha_proj(q2, kv_all[:, base:base + Dqk],
                         kv_all[:, base + Dqk:base + Dqk + Dv],
                         d_c_wo_ref[l], src_bias, B, Lt, Ls, n_head, d_k, d_v, d_model, cdt)
        x = _layer_norm(attn + residual, dv[2:3], dv[3:4])
        # --- position-wise FFN ---
        h = jnp.maximum(jnp.dot(x.astype(cdt), d_w1_ref[l],
                                preferred_element_type=jnp.float32) + d_b1_ref[l], 0.0)
        y = jnp.dot(h.astype(cdt), d_w2_ref[l], preferred_element_type=jnp.float32) + dv[6:7]
        x = _layer_norm(y + x, dv[4:5], dv[5:6])

    # shared-embedding logit projection (emb pre-transposed, zero-padded to 128 lanes so the
    # final store is an unmasked lane-dense vst; x_logit_scale = d_model**-0.5)
    logits_ref[...] = jnp.dot(x.astype(cdt), embT_ref[...],
                              preferred_element_type=jnp.float32) * logit_scale


# ---------------------------- full model forward ------------------------------

def compute_keyword_scale(keyword, src_pad_idx, src_len):
    """Vectorised (jnp) replica of the reference keyword re-scaling loop.

    The j-th non-pad keyword score of row i is normalised to (x-min)/max(x-min) (or 1.0 if
    only one keyword) and multiplies enc_output[i, j+1].  Degenerate max==0 is guarded to
    1.0 (reference would divide by zero) -- documented deviation.
    """
    kw = jnp.asarray(keyword).astype(jnp.float32)
    B, K = kw.shape
    pad = jnp.float32(src_pad_idx)
    big = jnp.float32(1e30)
    mask = kw != pad                                                   # (B, K)
    cnt = jnp.sum(mask, axis=1, keepdims=True)                         # (B, 1)
    mn = jnp.min(jnp.where(mask, kw, big), axis=1, keepdims=True)
    shifted = kw - mn
    mx = jnp.max(jnp.where(mask, shifted, -big), axis=1, keepdims=True)
    normed = shifted / jnp.where(mx > 0, mx, 1.0)
    vals = jnp.where(cnt == 1, 1.0, normed)                            # (B, K)
    # compact non-pad entries: j-th kept value -> column j+1 of the (B, src_len) scale
    pos = jnp.cumsum(mask.astype(jnp.int32), axis=1) - 1               # (B, K)
    tgt = jnp.arange(K, dtype=jnp.int32)[None, None, :]                # (1, 1, K)
    onehot = mask[:, :, None] & (pos[:, :, None] == tgt)               # (B, Ksrc, Ktgt)
    gathered = jnp.sum(jnp.where(onehot, vals[:, :, None], 0.0), axis=1)
    has = jnp.any(onehot, axis=1)
    inner = jnp.where(has, gathered, 1.0)                              # (B, K)
    scale = jnp.ones((B, src_len), jnp.float32)
    scale = scale.at[:, 1:1 + K].set(inner)
    return scale


def transformer_forward(packed, cfg, src_seq, trg_seq, keyword):
    B, Ls = src_seq.shape
    _, Lt = trg_seq.shape
    D = cfg['d_model']
    V = cfg['n_vocab']
    V_pad = packed['emb_T_pad'].shape[1]

    # keyword normalisation fully in-jit (no host loop / host sync on the latency path)
    kw_scale = compute_keyword_scale(keyword, cfg['src_pad_idx'], Ls)      # (B, Ls)

    # shared token embedding + sinusoidal positional encoding (single XLA gather + add)
    src_x = jnp.take(packed['emb'], src_seq, axis=0) + packed['pos_table'][:Ls][None, :, :]
    trg_x = jnp.take(packed['emb'], trg_seq, axis=0) + packed['pos_table'][:Lt][None, :, :]

    kernel = functools.partial(
        _transformer_kernel,
        n_layers=cfg['n_layers'], n_head=cfg['n_head'], d_k=cfg['d_k'], d_v=cfg['d_v'],
        B=B, Ls=Ls, Lt=Lt, d_model=D,
        src_pad_idx=cfg['src_pad_idx'], trg_pad_idx=cfg['trg_pad_idx'],
        logit_scale=float(cfg['d_model']) ** -0.5)

    logits_pad = pl.pallas_call(
        kernel,
        out_shape=jax.ShapeDtypeStruct((B * Lt, V_pad), jnp.float32),
    )(src_seq.astype(jnp.int32), trg_seq.astype(jnp.int32),
      kw_scale.reshape(B * Ls, 1),
      src_x.reshape(B * Ls, D), trg_x.reshape(B * Lt, D),
      packed['ln0'],
      packed['enc_wqkv'], packed['enc_wo'], packed['enc_w1'], packed['enc_b1'],
      packed['enc_w2'], packed['enc_dvec'],
      packed['dec_s_wqkv'], packed['dec_s_wo'],
      packed['dec_c_wq'], packed['dec_c_wkv'], packed['dec_c_wo'],
      packed['dec_w1'], packed['dec_b1'], packed['dec_w2'], packed['dec_dvec'],
      packed['emb_T_pad'])

    return logits_pad[:, :V].reshape(B, Lt, V)


# ------------------------------ parameter init --------------------------------

def _xavier(key, shape):
    limit = float(np.sqrt(6.0 / (shape[0] + shape[1])))
    return jax.random.uniform(key, shape, jnp.float32, -limit, limit)


def _sinusoid_table(n_position, d_hid):
    pos = np.arange(n_position)[:, None].astype(np.float64)
    j = np.arange(d_hid)[None, :]
    angle = pos / np.power(10000, 2 * (j // 2) / d_hid)
    table = np.zeros((n_position, d_hid), dtype=np.float64)
    table[:, 0::2] = np.sin(angle[:, 0::2])
    table[:, 1::2] = np.cos(angle[:, 1::2])
    return jnp.asarray(table.astype(np.float32))


def init_params(key, cfg):
    D, H, d_k, d_v = cfg['d_model'], cfg['n_head'], cfg['d_k'], cfg['d_v']
    d_inner, V = cfg['d_inner'], cfg['n_vocab']
    keys = iter(jax.random.split(key, 256))

    def mha_params():
        return {
            'wq': _xavier(next(keys), (D, H * d_k)),
            'wk': _xavier(next(keys), (D, H * d_k)),
            'wv': _xavier(next(keys), (D, H * d_v)),
            'wo': _xavier(next(keys), (H * d_v, D)),
            'ln_g': jnp.ones((1, D), jnp.float32),
            'ln_b': jnp.zeros((1, D), jnp.float32),
        }

    def ffn_params():
        return {
            'w1': _xavier(next(keys), (D, d_inner)),
            'b1': 0.01 * jax.random.normal(next(keys), (1, d_inner), jnp.float32),
            'w2': _xavier(next(keys), (d_inner, D)),
            'b2': 0.01 * jax.random.normal(next(keys), (1, D), jnp.float32),
            'ln_g': jnp.ones((1, D), jnp.float32),
            'ln_b': jnp.zeros((1, D), jnp.float32),
        }

    return {
        'emb': _xavier(next(keys), (V, D)),      # shared src/trg emb + output projection
        'pos_table': _sinusoid_table(cfg['n_position'], D),
        'enc_ln_g': jnp.ones((1, D), jnp.float32),
        'enc_ln_b': jnp.zeros((1, D), jnp.float32),
        'dec_ln_g': jnp.ones((1, D), jnp.float32),
        'dec_ln_b': jnp.zeros((1, D), jnp.float32),
        'enc_layers': [{'slf': mha_params(), 'ffn': ffn_params()}
                       for _ in range(cfg['n_layers'])],
        'dec_layers': [{'slf': mha_params(), 'enc': mha_params(), 'ffn': ffn_params()}
                       for _ in range(cfg['n_layers'])],
    }


def select_compute_dtype():
    """bf16 MXU inputs on v6e/v7x (f32 accumulation); f32 on v5e/older or if unknown."""
    try:
        kind = jax.devices()[0].device_kind.lower()
    except Exception:
        return jnp.float32
    return jnp.bfloat16 if ('v6' in kind or 'v7' in kind) else jnp.float32


def pack_params(params, cfg, compute_dtype=jnp.float32):
    """Stack per-layer weights, fuse QKV (folding 1/sqrt(d_k) into Wq), hoist+concat the
    cross-attention K/V weights across layers, stack LN/bias vectors into per-layer slabs,
    and pre-transpose + lane-pad the shared embedding for the logit projection."""
    D, V = cfg['d_model'], cfg['n_vocab']
    scale = float(cfg['d_k']) ** -0.5
    cdt = compute_dtype

    def stack(layers, fn):
        return jnp.stack([fn(l) for l in layers], axis=0)

    def fused_qkv(p):
        return jnp.concatenate([p['wq'] * scale, p['wk'], p['wv']], axis=1).astype(cdt)

    def dvec_enc(l):      # (5, D): attn ln_g, ln_b, ffn ln_g, ln_b, ffn b2
        return jnp.concatenate([l['slf']['ln_g'], l['slf']['ln_b'],
                                l['ffn']['ln_g'], l['ffn']['ln_b'],
                                l['ffn']['b2']], axis=0)

    def dvec_dec(l):      # (7, D): slf ln, cross ln, ffn ln, ffn b2
        return jnp.concatenate([l['slf']['ln_g'], l['slf']['ln_b'],
                                l['enc']['ln_g'], l['enc']['ln_b'],
                                l['ffn']['ln_g'], l['ffn']['ln_b'],
                                l['ffn']['b2']], axis=0)

    enc, dec = params['enc_layers'], params['dec_layers']
    V_pad = ((V + 127) // 128) * 128
    emb_T_pad = jnp.pad(params['emb'].T, ((0, 0), (0, V_pad - V))).astype(cdt)

    return {
        'emb': params['emb'],
        'emb_T_pad': emb_T_pad,                       # (D, V_pad), lane-dense logits store
        'pos_table': params['pos_table'],
        'ln0': jnp.concatenate([params['enc_ln_g'], params['enc_ln_b'],
                                params['dec_ln_g'], params['dec_ln_b']], axis=0),  # (4, D)
        # encoder
        'enc_wqkv': stack(enc, lambda l: fused_qkv(l['slf'])),
        'enc_wo':   stack(enc, lambda l: l['slf']['wo'].astype(cdt)),
        'enc_w1':   stack(enc, lambda l: l['ffn']['w1'].astype(cdt)),
        'enc_b1':   stack(enc, lambda l: l['ffn']['b1']),
        'enc_w2':   stack(enc, lambda l: l['ffn']['w2'].astype(cdt)),
        'enc_dvec': stack(enc, dvec_enc),
        # decoder self-attention
        'dec_s_wqkv': stack(dec, lambda l: fused_qkv(l['slf'])),
        'dec_s_wo':   stack(dec, lambda l: l['slf']['wo'].astype(cdt)),
        # decoder cross-attention: Q per layer, K/V hoisted+concatenated across layers
        'dec_c_wq':  stack(dec, lambda l: (l['enc']['wq'] * scale).astype(cdt)),
        'dec_c_wkv': jnp.concatenate(
            [jnp.concatenate([l['enc']['wk'], l['enc']['wv']], axis=1) for l in dec],
            axis=1).astype(cdt),                      # (D, n_layers * 2 * H*d_k)
        'dec_c_wo':  stack(dec, lambda l: l['enc']['wo'].astype(cdt)),
        # decoder FFN
        'dec_w1':   stack(dec, lambda l: l['ffn']['w1'].astype(cdt)),
        'dec_b1':   stack(dec, lambda l: l['ffn']['b1']),
        'dec_w2':   stack(dec, lambda l: l['ffn']['w2'].astype(cdt)),
        'dec_dvec': stack(dec, dvec_dec),
    }


# ----------------------------------- main --------------------------------------

if __name__ == "__main__":
    cfg = dict(
        n_vocab=64, d_model=32, d_inner=64, n_layers=2, n_head=4, d_k=8, d_v=8,
        n_position=200, src_pad_idx=0, trg_pad_idx=0,
    )
    key = jax.random.PRNGKey(0)
    params = init_params(key, cfg)
    packed = pack_params(params, cfg, compute_dtype=select_compute_dtype())

    B, Ls, Lt = 2, 8, 8
    src_seq = jnp.array([[5, 9, 12, 3, 7, 0, 0, 0],
                         [4, 4, 8, 20, 11, 6, 2, 0]], dtype=jnp.int32)
    trg_seq = jnp.array([[1, 6, 9, 2, 0, 0, 0, 0],
                         [3, 15, 7, 8, 9, 10, 0, 0]], dtype=jnp.int32)
    keyword = jnp.array([[3, 7, 0, 5],
                         [2, 2, 4, 0]], dtype=jnp.int32)

    @jax.jit
    def run(packed, src_seq, trg_seq, keyword):
        return transformer_forward(packed, cfg, src_seq, trg_seq, keyword)

    logits = jax.block_until_ready(run(packed, src_seq, trg_seq, keyword))
    assert logits.shape == (B, Lt, cfg['n_vocab'])
    assert bool(jnp.all(jnp.isfinite(logits)))
    print("KERNEL_OK")
</pallas_src>

<mosaic_0001>
module attributes {stable_mosaic.version = 11 : i64} {
  func.func @_transformer_kernel(%arg0: memref<2x8xi32, #tpu.memory_space<vmem>>, %arg1: memref<2x8xi32, #tpu.memory_space<vmem>>, %arg2: memref<16x1xf32, #tpu.memory_space<vmem>>, %arg3: memref<16x32xf32, #tpu.memory_space<vmem>>, %arg4: memref<16x32xf32, #tpu.memory_space<vmem>>, %arg5: memref<4x32xf32, #tpu.memory_space<vmem>>, %arg6: memref<2x32x96xf32, #tpu.memory_space<vmem>>, %arg7: memref<2x32x32xf32, #tpu.memory_space<vmem>>, %arg8: memref<2x32x64xf32, #tpu.memory_space<vmem>>, %arg9: memref<2x1x64xf32, #tpu.memory_space<vmem>>, %arg10: memref<2x64x32xf32, #tpu.memory_space<vmem>>, %arg11: memref<2x5x32xf32, #tpu.memory_space<vmem>>, %arg12: memref<2x32x96xf32, #tpu.memory_space<vmem>>, %arg13: memref<2x32x32xf32, #tpu.memory_space<vmem>>, %arg14: memref<2x32x32xf32, #tpu.memory_space<vmem>>, %arg15: memref<32x128xf32, #tpu.memory_space<vmem>>, %arg16: memref<2x32x32xf32, #tpu.memory_space<vmem>>, %arg17: memref<2x32x64xf32, #tpu.memory_space<vmem>>, %arg18: memref<2x1x64xf32, #tpu.memory_space<vmem>>, %arg19: memref<2x64x32xf32, #tpu.memory_space<vmem>>, %arg20: memref<2x7x32xf32, #tpu.memory_space<vmem>>, %arg21: memref<32x128xf32, #tpu.memory_space<vmem>>, %arg22: memref<16x128xf32, #tpu.memory_space<vmem>>) attributes {dimension_semantics = [], scalar_prefetch = 0 : i64, scratch_operands = 0 : i64, tpu.core_type = #tpu.core_type<tc>} {
    %c0 = arith.constant 0 : index
    %c0_0 = arith.constant 0 : index
    %0 = vector.load %arg0[%c0, %c0_0] : memref<2x8xi32, #tpu.memory_space<vmem>>, vector<2x8xi32>
    %c0_i32 = arith.constant 0 : i32
    %1 = vector.broadcast %c0_i32 : i32 to vector<2x8xi32>
    %2 = arith.cmpi ne, %0, %1 : vector<2x8xi32>
    %c0_1 = arith.constant 0 : index
    %c0_2 = arith.constant 0 : index
    %3 = vector.load %arg1[%c0_1, %c0_2] : memref<2x8xi32, #tpu.memory_space<vmem>>, vector<2x8xi32>
    %c0_i32_3 = arith.constant 0 : i32
    %4 = vector.broadcast %c0_i32_3 : i32 to vector<2x8xi32>
    %5 = arith.cmpi ne, %3, %4 : vector<2x8xi32>
    %6 = vector.shape_cast %2 : vector<2x8xi1> to vector<2x1x8xi1>
    %cst = arith.constant 0.000000e+00 : f32
    %cst_4 = arith.constant -1.000000e+09 : f32
    %7 = vector.broadcast %cst : f32 to vector<2x1x8xf32>
    %8 = vector.broadcast %cst_4 : f32 to vector<2x1x8xf32>
    %9 = arith.select %6, %7, %8 : vector<2x1x8xi1>, vector<2x1x8xf32>
    %10 = tpu.iota {dimensions = array<i32: 0>} : vector<8x8xi32>
    %11 = tpu.iota {dimensions = array<i32: 1>} : vector<8x8xi32>
    %12 = vector.shape_cast %5 : vector<2x8xi1> to vector<2x1x8xi1>
    %13 = arith.cmpi sge, %10, %11 : vector<8x8xi32>
    %14 = vector.shape_cast %13 : vector<8x8xi1> to vector<1x8x8xi1>
    %15 = vector.broadcast %12 : vector<2x1x8xi1> to vector<2x8x8xi1>
    %16 = vector.broadcast %14 : vector<1x8x8xi1> to vector<2x8x8xi1>
    %17 = arith.andi %15, %16 : vector<2x8x8xi1>
    %cst_5 = arith.constant 0.000000e+00 : f32
    %cst_6 = arith.constant -1.000000e+09 : f32
    %18 = vector.broadcast %cst_5 : f32 to vector<2x8x8xf32>
    %19 = vector.broadcast %cst_6 : f32 to vector<2x8x8xf32>
    %20 = arith.select %17, %18, %19 : vector<2x8x8xi1>, vector<2x8x8xf32>
    %c0_7 = arith.constant 0 : index
    %c0_8 = arith.constant 0 : index
    %21 = vector.load %arg5[%c0_7, %c0_8] : memref<4x32xf32, #tpu.memory_space<vmem>>, vector<4x32xf32>
    %c0_9 = arith.constant 0 : index
    %c0_10 = arith.constant 0 : index
    %22 = vector.load %arg3[%c0_9, %c0_10] : memref<16x32xf32, #tpu.memory_space<vmem>>, vector<16x32xf32>
    %23 = vector.extract_strided_slice %21 {offsets = [0, 0], sizes = [1, 32], strides = [1, 1]} : vector<4x32xf32> to vector<1x32xf32>
    %24 = vector.extract_strided_slice %21 {offsets = [1, 0], sizes = [1, 32], strides = [1, 1]} : vector<4x32xf32> to vector<1x32xf32>
    %cst_11 = arith.constant dense<0.000000e+00> : vector<16xf32>
    %25 = vector.multi_reduction <add>, %22, %cst_11 [1] : vector<16x32xf32> to vector<16xf32>
    %26 = vector.shape_cast %25 : vector<16xf32> to vector<16x1xf32>
    %cst_12 = arith.constant 3.200000e+01 : f32
    %27 = vector.broadcast %cst_12 : f32 to vector<16x1xf32>
    %28 = arith.divf %26, %27 : vector<16x1xf32>
    %29 = vector.broadcast %28 : vector<16x1xf32> to vector<16x32xf32>
    %30 = arith.subf %22, %29 : vector<16x32xf32>
    %31 = arith.mulf %30, %30 : vector<16x32xf32>
    %cst_13 = arith.constant dense<0.000000e+00> : vector<16xf32>
    %32 = vector.multi_reduction <add>, %31, %cst_13 [1] : vector<16x32xf32> to vector<16xf32>
    %33 = vector.shape_cast %32 : vector<16xf32> to vector<16x1xf32>
    %cst_14 = arith.constant 3.200000e+01 : f32
    %34 = vector.broadcast %cst_14 : f32 to vector<16x1xf32>
    %35 = arith.divf %33, %34 : vector<16x1xf32>
    %36 = vector.broadcast %28 : vector<16x1xf32> to vector<16x32xf32>
    %37 = arith.subf %22, %36 : vector<16x32xf32>
    %cst_15 = arith.constant 9.99999997E-7 : f32
    %38 = vector.broadcast %cst_15 : f32 to vector<16x1xf32>
    %39 = arith.addf %35, %38 : vector<16x1xf32>
    %40 = math.rsqrt %39 : vector<16x1xf32>
    %41 = vector.broadcast %40 : vector<16x1xf32> to vector<16x32xf32>
    %42 = arith.mulf %37, %41 : vector<16x32xf32>
    %43 = vector.broadcast %23 : vector<1x32xf32> to vector<16x32xf32>
    %44 = arith.mulf %42, %43 : vector<16x32xf32>
    %45 = vector.broadcast %24 : vector<1x32xf32> to vector<16x32xf32>
    %46 = arith.addf %44, %45 : vector<16x32xf32>
    %c0_16 = arith.constant 0 : index
    %c0_17 = arith.constant 0 : index
    %c0_18 = arith.constant 0 : index
    %47 = vector.load %arg11[%c0_16, %c0_17, %c0_18] : memref<2x5x32xf32, #tpu.memory_space<vmem>>, vector<1x5x32xf32>
    %48 = vector.shape_cast %47 : vector<1x5x32xf32> to vector<5x32xf32>
    %c0_19 = arith.constant 0 : index
    %c0_20 = arith.constant 0 : index
    %c0_21 = arith.constant 0 : index
    %49 = vector.load %arg6[%c0_19, %c0_20, %c0_21] : memref<2x32x96xf32, #tpu.memory_space<vmem>>, vector<1x32x96xf32>
    %50 = vector.shape_cast %49 : vector<1x32x96xf32> to vector<32x96xf32>
    %cst_22 = arith.constant dense<0.000000e+00> : vector<16x96xf32>
    %51 = tpu.matmul %46, %50, %cst_22 {dimension_numbers = #tpu.dot_dimension_numbers<[1], [0], [0], [1], [0, 0, 1, 1], [], []>} : vector<16x32xf32>, vector<32x96xf32>, vector<16x96xf32> -> vector<16x96xf32>
    %52 = vector.extract_strided_slice %51 {offsets = [0, 0], sizes = [16, 32], strides = [1, 1]} : vector<16x96xf32> to vector<16x32xf32>
    %53 = vector.extract_strided_slice %51 {offsets = [0, 32], sizes = [16, 32], strides = [1, 1]} : vector<16x96xf32> to vector<16x32xf32>
    %54 = vector.extract_strided_slice %51 {offsets = [0, 64], sizes = [16, 32], strides = [1, 1]} : vector<16x96xf32> to vector<16x32xf32>
    %c0_23 = arith.constant 0 : index
    %c0_24 = arith.constant 0 : index
    %c0_25 = arith.constant 0 : index
    %55 = vector.load %arg7[%c0_23, %c0_24, %c0_25] : memref<2x32x32xf32, #tpu.memory_space<vmem>>, vector<1x32x32xf32>
    %56 = vector.shape_cast %55 : vector<1x32x32xf32> to vector<32x32xf32>
    %cst_26 = arith.constant 0.000000e+00 : f32
    %57 = vector.broadcast %cst_26 : f32 to vector<16x32xf32>
    %58 = vector.extract_strided_slice %52 {offsets = [0, 0], sizes = [16, 8], strides = [1, 1]} : vector<16x32xf32> to vector<16x8xf32>
    %59 = vector.shape_cast %58 : vector<16x8xf32> to vector<2x8x8xf32>
    %60 = vector.extract_strided_slice %53 {offsets = [0, 0], sizes = [16, 8], strides = [1, 1]} : vector<16x32xf32> to vector<16x8xf32>
    %61 = vector.shape_cast %60 : vector<16x8xf32> to vector<2x8x8xf32>
    %62 = vector.extract_strided_slice %54 {offsets = [0, 0], sizes = [16, 8], strides = [1, 1]} : vector<16x32xf32> to vector<16x8xf32>
    %63 = vector.shape_cast %62 : vector<16x8xf32> to vector<2x8x8xf32>
    "tpu.trace_start"() <{level = 10 : i32, message = "bqd,bkd->bqk"}> : () -> ()
    %cst_27 = arith.constant dense<0.000000e+00> : vector<2x8x8xf32>
    %64 = tpu.matmul %59, %61, %cst_27 {dimension_numbers = #tpu.dot_dimension_numbers<[2], [2], [1], [1], [0, 0, 0, 1, 1, 1], [0], [0]>} : vector<2x8x8xf32>, vector<2x8x8xf32>, vector<2x8x8xf32> -> vector<2x8x8xf32>
    "tpu.trace_stop"() : () -> ()
    %65 = vector.broadcast %9 : vector<2x1x8xf32> to vector<2x8x8xf32>
    %66 = arith.addf %64, %65 : vector<2x8x8xf32>
    %cst_28 = arith.constant dense<0xFF800000> : vector<2x8xf32>
    %67 = vector.multi_reduction <maximumf>, %66, %cst_28 [2] : vector<2x8x8xf32> to vector<2x8xf32>
    %68 = vector.shape_cast %67 : vector<2x8xf32> to vector<2x8x1xf32>
    %69 = vector.broadcast %68 : vector<2x8x1xf32> to vector<2x8x8xf32>
    %70 = arith.subf %66, %69 : vector<2x8x8xf32>
    %71 = math.exp %70 : vector<2x8x8xf32>
    %cst_29 = arith.constant dense<0.000000e+00> : vector<2x8xf32>
    %72 = vector.multi_reduction <add>, %71, %cst_29 [2] : vector<2x8x8xf32> to vector<2x8xf32>
    %73 = vector.shape_cast %72 : vector<2x8xf32> to vector<2x8x1xf32>
    %74 = tpu.reciprocal %73 {approx = true} : vector<2x8x1xf32> -> vector<2x8x1xf32>
    %75 = vector.broadcast %74 : vector<2x8x1xf32> to vector<2x8x8xf32>
    %76 = arith.mulf %71, %75 : vector<2x8x8xf32>
    "tpu.trace_start"() <{level = 10 : i32, message = "bqk,bkd->bqd"}> : () -> ()
    %cst_30 = arith.constant dense<0.000000e+00> : vector<2x8x8xf32>
    %77 = tpu.matmul %76, %63, %cst_30 {dimension_numbers = #tpu.dot_dimension_numbers<[2], [1], [1], [2], [0, 0, 0, 1, 1, 2], [0], [0]>} : vector<2x8x8xf32>, vector<2x8x8xf32>, vector<2x8x8xf32> -> vector<2x8x8xf32>
    "tpu.trace_stop"() : () -> ()
    %78 = vector.shape_cast %77 : vector<2x8x8xf32> to vector<16x8xf32>
    %79 = vector.extract_strided_slice %56 {offsets = [0, 0], sizes = [8, 32], strides = [1, 1]} : vector<32x32xf32> to vector<8x32xf32>
    %cst_31 = arith.constant dense<0.000000e+00> : vector<16x32xf32>
    %80 = tpu.matmul %78, %79, %cst_31 {dimension_numbers = #tpu.dot_dimension_numbers<[1], [0], [0], [1], [0, 0, 1, 1], [], []>} : vector<16x8xf32>, vector<8x32xf32>, vector<16x32xf32> -> vector<16x32xf32>
    %81 = arith.addf %57, %80 : vector<16x32xf32>
    %82 = vector.extract_strided_slice %52 {offsets = [0, 8], sizes = [16, 8], strides = [1, 1]} : vector<16x32xf32> to vector<16x8xf32>
    %83 = vector.shape_cast %82 : vector<16x8xf32> to vector<2x8x8xf32>
    %84 = vector.extract_strided_slice %53 {offsets = [0, 8], sizes = [16, 8], strides = [1, 1]} : vector<16x32xf32> to vector<16x8xf32>
    %85 = vector.shape_cast %84 : vector<16x8xf32> to vector<2x8x8xf32>
    %86 = vector.extract_strided_slice %54 {offsets = [0, 8], sizes = [16, 8], strides = [1, 1]} : vector<16x32xf32> to vector<16x8xf32>
    %87 = vector.shape_cast %86 : vector<16x8xf32> to vector<2x8x8xf32>
    "tpu.trace_start"() <{level = 10 : i32, message = "bqd,bkd->bqk"}> : () -> ()
    %cst_32 = arith.constant dense<0.000000e+00> : vector<2x8x8xf32>
    %88 = tpu.matmul %83, %85, %cst_32 {dimension_numbers = #tpu.dot_dimension_numbers<[2], [2], [1], [1], [0, 0, 0, 1, 1, 1], [0], [0]>} : vector<2x8x8xf32>, vector<2x8x8xf32>, vector<2x8x8xf32> -> vector<2x8x8xf32>
    "tpu.trace_stop"() : () -> ()
    %89 = vector.broadcast %9 : vector<2x1x8xf32> to vector<2x8x8xf32>
    %90 = arith.addf %88, %89 : vector<2x8x8xf32>
    %cst_33 = arith.constant dense<0xFF800000> : vector<2x8xf32>
    %91 = vector.multi_reduction <maximumf>, %90, %cst_33 [2] : vector<2x8x8xf32> to vector<2x8xf32>
    %92 = vector.shape_cast %91 : vector<2x8xf32> to vector<2x8x1xf32>
    %93 = vector.broadcast %92 : vector<2x8x1xf32> to vector<2x8x8xf32>
    %94 = arith.subf %90, %93 : vector<2x8x8xf32>
    %95 = math.exp %94 : vector<2x8x8xf32>
    %cst_34 = arith.constant dense<0.000000e+00> : vector<2x8xf32>
    %96 = vector.multi_reduction <add>, %95, %cst_34 [2] : vector<2x8x8xf32> to vector<2x8xf32>
    %97 = vector.shape_cast %96 : vector<2x8xf32> to vector<2x8x1xf32>
    %98 = tpu.reciprocal %97 {approx = true} : vector<2x8x1xf32> -> vector<2x8x1xf32>
    %99 = vector.broadcast %98 : vector<2x8x1xf32> to vector<2x8x8xf32>
    %100 = arith.mulf %95, %99 : vector<2x8x8xf32>
    "tpu.trace_start"() <{level = 10 : i32, message = "bqk,bkd->bqd"}> : () -> ()
    %cst_35 = arith.constant dense<0.000000e+00> : vector<2x8x8xf32>
    %101 = tpu.matmul %100, %87, %cst_35 {dimension_numbers = #tpu.dot_dimension_numbers<[2], [1], [1], [2], [0, 0, 0, 1, 1, 2], [0], [0]>} : vector<2x8x8xf32>, vector<2x8x8xf32>, vector<2x8x8xf32> -> vector<2x8x8xf32>
    "tpu.trace_stop"() : () -> ()
    %102 = vector.shape_cast %101 : vector<2x8x8xf32> to vector<16x8xf32>
    %103 = vector.extract_strided_slice %56 {offsets = [8, 0], sizes = [8, 32], strides = [1, 1]} : vector<32x32xf32> to vector<8x32xf32>
    %cst_36 = arith.constant dense<0.000000e+00> : vector<16x32xf32>
    %104 = tpu.matmul %102, %103, %cst_36 {dimension_numbers = #tpu.dot_dimension_numbers<[1], [0], [0], [1], [0, 0, 1, 1], [], []>} : vector<16x8xf32>, vector<8x32xf32>, vector<16x32xf32> -> vector<16x32xf32>
    %105 = arith.addf %81, %104 : vector<16x32xf32>
    %106 = vector.extract_strided_slice %52 {offsets = [0, 16], sizes = [16, 8], strides = [1, 1]} : vector<16x32xf32> to vector<16x8xf32>
    %107 = vector.shape_cast %106 : vector<16x8xf32> to vector<2x8x8xf32>
    %108 = vector.extract_strided_slice %53 {offsets = [0, 16], sizes = [16, 8], strides = [1, 1]} : vector<16x32xf32> to vector<16x8xf32>
    %109 = vector.shape_cast %108 : vector<16x8xf32> to vector<2x8x8xf32>
    %110 = vector.extract_strided_slice %54 {offsets = [0, 16], sizes = [16, 8], strides = [1, 1]} : vector<16x32xf32> to vector<16x8xf32>
    %111 = vector.shape_cast %110 : vector<16x8xf32> to vector<2x8x8xf32>
    "tpu.trace_start"() <{level = 10 : i32, message = "bqd,bkd->bqk"}> : () -> ()
    %cst_37 = arith.constant dense<0.000000e+00> : vector<2x8x8xf32>
    %112 = tpu.matmul %107, %109, %cst_37 {dimension_numbers = #tpu.dot_dimension_numbers<[2], [2], [1], [1], [0, 0, 0, 1, 1, 1], [0], [0]>} : vector<2x8x8xf32>, vector<2x8x8xf32>, vector<2x8x8xf32> -> vector<2x8x8xf32>
    "tpu.trace_stop"() : () -> ()
    %113 = vector.broadcast %9 : vector<2x1x8xf32> to vector<2x8x8xf32>
    %114 = arith.addf %112, %113 : vector<2x8x8xf32>
    %cst_38 = arith.constant dense<0xFF800000> : vector<2x8xf32>
    %115 = vector.multi_reduction <maximumf>, %114, %cst_38 [2] : vector<2x8x8xf32> to vector<2x8xf32>
    %116 = vector.shape_cast %115 : vector<2x8xf32> to vector<2x8x1xf32>
    %117 = vector.broadcast %116 : vector<2x8x1xf32> to vector<2x8x8xf32>
    %118 = arith.subf %114, %117 : vector<2x8x8xf32>
    %119 = math.exp %118 : vector<2x8x8xf32>
    %cst_39 = arith.constant dense<0.000000e+00> : vector<2x8xf32>
    %120 = vector.multi_reduction <add>, %119, %cst_39 [2] : vector<2x8x8xf32> to vector<2x8xf32>
    %121 = vector.shape_cast %120 : vector<2x8xf32> to vector<2x8x1xf32>
    %122 = tpu.reciprocal %121 {approx = true} : vector<2x8x1xf32> -> vector<2x8x1xf32>
    %123 = vector.broadcast %122 : vector<2x8x1xf32> to vector<2x8x8xf32>
    %124 = arith.mulf %119, %123 : vector<2x8x8xf32>
    "tpu.trace_start"() <{level = 10 : i32, message = "bqk,bkd->bqd"}> : () -> ()
    %cst_40 = arith.constant dense<0.000000e+00> : vector<2x8x8xf32>
    %125 = tpu.matmul %124, %111, %cst_40 {dimension_numbers = #tpu.dot_dimension_numbers<[2], [1], [1], [2], [0, 0, 0, 1, 1, 2], [0], [0]>} : vector<2x8x8xf32>, vector<2x8x8xf32>, vector<2x8x8xf32> -> vector<2x8x8xf32>
    "tpu.trace_stop"() : () -> ()
    %126 = vector.shape_cast %125 : vector<2x8x8xf32> to vector<16x8xf32>
    %127 = vector.extract_strided_slice %56 {offsets = [16, 0], sizes = [8, 32], strides = [1, 1]} : vector<32x32xf32> to vector<8x32xf32>
    %cst_41 = arith.constant dense<0.000000e+00> : vector<16x32xf32>
    %128 = tpu.matmul %126, %127, %cst_41 {dimension_numbers = #tpu.dot_dimension_numbers<[1], [0], [0], [1], [0, 0, 1, 1], [], []>} : vector<16x8xf32>, vector<8x32xf32>, vector<16x32xf32> -> vector<16x32xf32>
    %129 = arith.addf %105, %128 : vector<16x32xf32>
    %130 = vector.extract_strided_slice %52 {offsets = [0, 24], sizes = [16, 8], strides = [1, 1]} : vector<16x32xf32> to vector<16x8xf32>
    %131 = vector.shape_cast %130 : vector<16x8xf32> to vector<2x8x8xf32>
    %132 = vector.extract_strided_slice %53 {offsets = [0, 24], sizes = [16, 8], strides = [1, 1]} : vector<16x32xf32> to vector<16x8xf32>
    %133 = vector.shape_cast %132 : vector<16x8xf32> to vector<2x8x8xf32>
    %134 = vector.extract_strided_slice %54 {offsets = [0, 24], sizes = [16, 8], strides = [1, 1]} : vector<16x32xf32> to vector<16x8xf32>
    %135 = vector.shape_cast %134 : vector<16x8xf32> to vector<2x8x8xf32>
    "tpu.trace_start"() <{level = 10 : i32, message = "bqd,bkd->bqk"}> : () -> ()
    %cst_42 = arith.constant dense<0.000000e+00> : vector<2x8x8xf32>
    %136 = tpu.matmul %131, %133, %cst_42 {dimension_numbers = #tpu.dot_dimension_numbers<[2], [2], [1], [1], [0, 0, 0, 1, 1, 1], [0], [0]>} : vector<2x8x8xf32>, vector<2x8x8xf32>, vector<2x8x8xf32> -> vector<2x8x8xf32>
    "tpu.trace_stop"() : () -> ()
    %137 = vector.broadcast %9 : vector<2x1x8xf32> to vector<2x8x8xf32>
    %138 = arith.addf %136, %137 : vector<2x8x8xf32>
    %cst_43 = arith.constant dense<0xFF800000> : vector<2x8xf32>
    %139 = vector.multi_reduction <maximumf>, %138, %cst_43 [2] : vector<2x8x8xf32> to vector<2x8xf32>
    %140 = vector.shape_cast %139 : vector<2x8xf32> to vector<2x8x1xf32>
    %141 = vector.broadcast %140 : vector<2x8x1xf32> to vector<2x8x8xf32>
    %142 = arith.subf %138, %141 : vector<2x8x8xf32>
    %143 = math.exp %142 : vector<2x8x8xf32>
    %cst_44 = arith.constant dense<0.000000e+00> : vector<2x8xf32>
    %144 = vector.multi_reduction <add>, %143, %cst_44 [2] : vector<2x8x8xf32> to vector<2x8xf32>
    %145 = vector.shape_cast %144 : vector<2x8xf32> to vector<2x8x1xf32>
    %146 = tpu.reciprocal %145 {approx = true} : vector<2x8x1xf32> -> vector<2x8x1xf32>
    %147 = vector.broadcast %146 : vector<2x8x1xf32> to vector<2x8x8xf32>
    %148 = arith.mulf %143, %147 : vector<2x8x8xf32>
    "tpu.trace_start"() <{level = 10 : i32, message = "bqk,bkd->bqd"}> : () -> ()
    %cst_45 = arith.constant dense<0.000000e+00> : vector<2x8x8xf32>
    %149 = tpu.matmul %148, %135, %cst_45 {dimension_numbers = #tpu.dot_dimension_numbers<[2], [1], [1], [2], [0, 0, 0, 1, 1, 2], [0], [0]>} : vector<2x8x8xf32>, vector<2x8x8xf32>, vector<2x8x8xf32> -> vector<2x8x8xf32>
    "tpu.trace_stop"() : () -> ()
    %150 = vector.shape_cast %149 : vector<2x8x8xf32> to vector<16x8xf32>
    %151 = vector.extract_strided_slice %56 {offsets = [24, 0], sizes = [8, 32], strides = [1, 1]} : vector<32x32xf32> to vector<8x32xf32>
    %cst_46 = arith.constant dense<0.000000e+00> : vector<16x32xf32>
    %152 = tpu.matmul %150, %151, %cst_46 {dimension_numbers = #tpu.dot_dimension_numbers<[1], [0], [0], [1], [0, 0, 1, 1], [], []>} : vector<16x8xf32>, vector<8x32xf32>, vector<16x32xf32> -> vector<16x32xf32>
    %153 = arith.addf %129, %152 : vector<16x32xf32>
    %154 = arith.addf %153, %46 : vector<16x32xf32>
    %155 = vector.extract_strided_slice %48 {offsets = [0, 0], sizes = [1, 32], strides = [1, 1]} : vector<5x32xf32> to vector<1x32xf32>
    %156 = vector.extract_strided_slice %48 {offsets = [1, 0], sizes = [1, 32], strides = [1, 1]} : vector<5x32xf32> to vector<1x32xf32>
    %cst_47 = arith.constant dense<0.000000e+00> : vector<16xf32>
    %157 = vector.multi_reduction <add>, %154, %cst_47 [1] : vector<16x32xf32> to vector<16xf32>
    %158 = vector.shape_cast %157 : vector<16xf32> to vector<16x1xf32>
    %cst_48 = arith.constant 3.200000e+01 : f32
    %159 = vector.broadcast %cst_48 : f32 to vector<16x1xf32>
    %160 = arith.divf %158, %159 : vector<16x1xf32>
    %161 = vector.broadcast %160 : vector<16x1xf32> to vector<16x32xf32>
    %162 = arith.subf %154, %161 : vector<16x32xf32>
    %163 = arith.mulf %162, %162 : vector<16x32xf32>
    %cst_49 = arith.constant dense<0.000000e+00> : vector<16xf32>
    %164 = vector.multi_reduction <add>, %163, %cst_49 [1] : vector<16x32xf32> to vector<16xf32>
    %165 = vector.shape_cast %164 : vector<16xf32> to vector<16x1xf32>
    %cst_50 = arith.constant 3.200000e+01 : f32
    %166 = vector.broadcast %cst_50 : f32 to vector<16x1xf32>
    %167 = arith.divf %165, %166 : vector<16x1xf32>
    %168 = vector.broadcast %160 : vector<16x1xf32> to vector<16x32xf32>
    %169 = arith.subf %154, %168 : vector<16x32xf32>
    %cst_51 = arith.constant 9.99999997E-7 : f32
    %170 = vector.broadcast %cst_51 : f32 to vector<16x1xf32>
    %171 = arith.addf %167, %170 : vector<16x1xf32>
    %172 = math.rsqrt %171 : vector<16x1xf32>
    %173 = vector.broadcast %172 : vector<16x1xf32> to vector<16x32xf32>
    %174 = arith.mulf %169, %173 : vector<16x32xf32>
    %175 = vector.broadcast %155 : vector<1x32xf32> to vector<16x32xf32>
    %176 = arith.mulf %174, %175 : vector<16x32xf32>
    %177 = vector.broadcast %156 : vector<1x32xf32> to vector<16x32xf32>
    %178 = arith.addf %176, %177 : vector<16x32xf32>
    %c0_52 = arith.constant 0 : index
    %c0_53 = arith.constant 0 : index
    %c0_54 = arith.constant 0 : index
    %179 = vector.load %arg8[%c0_52, %c0_53, %c0_54] : memref<2x32x64xf32, #tpu.memory_space<vmem>>, vector<1x32x64xf32>
    %180 = vector.shape_cast %179 : vector<1x32x64xf32> to vector<32x64xf32>
    %cst_55 = arith.constant dense<0.000000e+00> : vector<16x64xf32>
    %181 = tpu.matmul %178, %180, %cst_55 {dimension_numbers = #tpu.dot_dimension_numbers<[1], [0], [0], [1], [0, 0, 1, 1], [], []>} : vector<16x32xf32>, vector<32x64xf32>, vector<16x64xf32> -> vector<16x64xf32>
    %c0_56 = arith.constant 0 : index
    %c0_57 = arith.constant 0 : index
    %c0_58 = arith.constant 0 : index
    %182 = vector.load %arg9[%c0_56, %c0_57, %c0_58] : memref<2x1x64xf32, #tpu.memory_space<vmem>>, vector<1x1x64xf32>
    %183 = vector.shape_cast %182 : vector<1x1x64xf32> to vector<1x64xf32>
    %184 = vector.broadcast %183 : vector<1x64xf32> to vector<16x64xf32>
    %185 = arith.addf %181, %184 : vector<16x64xf32>
    %cst_59 = arith.constant 0.000000e+00 : f32
    %186 = vector.broadcast %cst_59 : f32 to vector<16x64xf32>
    %187 = arith.maximumf %185, %186 : vector<16x64xf32>
    %c0_60 = arith.constant 0 : index
    %c0_61 = arith.constant 0 : index
    %c0_62 = arith.constant 0 : index
    %188 = vector.load %arg10[%c0_60, %c0_61, %c0_62] : memref<2x64x32xf32, #tpu.memory_space<vmem>>, vector<1x64x32xf32>
    %189 = vector.shape_cast %188 : vector<1x64x32xf32> to vector<64x32xf32>
    %cst_63 = arith.constant dense<0.000000e+00> : vector<16x32xf32>
    %190 = tpu.matmul %187, %189, %cst_63 {dimension_numbers = #tpu.dot_dimension_numbers<[1], [0], [0], [1], [0, 0, 1, 1], [], []>} : vector<16x64xf32>, vector<64x32xf32>, vector<16x32xf32> -> vector<16x32xf32>
    %191 = vector.extract_strided_slice %48 {offsets = [4, 0], sizes = [1, 32], strides = [1, 1]} : vector<5x32xf32> to vector<1x32xf32>
    %192 = vector.broadcast %191 : vector<1x32xf32> to vector<16x32xf32>
    %193 = arith.addf %190, %192 : vector<16x32xf32>
    %194 = arith.addf %193, %178 : vector<16x32xf32>
    %195 = vector.extract_strided_slice %48 {offsets = [2, 0], sizes = [1, 32], strides = [1, 1]} : vector<5x32xf32> to vector<1x32xf32>
    %196 = vector.extract_strided_slice %48 {offsets = [3, 0], sizes = [1, 32], strides = [1, 1]} : vector<5x32xf32> to vector<1x32xf32>
    %cst_64 = arith.constant dense<0.000000e+00> : vector<16xf32>
    %197 = vector.multi_reduction <add>, %194, %cst_64 [1] : vector<16x32xf32> to vector<16xf32>
    %198 = vector.shape_cast %197 : vector<16xf32> to vector<16x1xf32>
    %cst_65 = arith.constant 3.200000e+01 : f32
    %199 = vector.broadcast %cst_65 : f32 to vector<16x1xf32>
    %200 = arith.divf %198, %199 : vector<16x1xf32>
    %201 = vector.broadcast %200 : vector<16x1xf32> to vector<16x32xf32>
    %202 = arith.subf %194, %201 : vector<16x32xf32>
    %203 = arith.mulf %202, %202 : vector<16x32xf32>
    %cst_66 = arith.constant dense<0.000000e+00> : vector<16xf32>
    %204 = vector.multi_reduction <add>, %203, %cst_66 [1] : vector<16x32xf32> to vector<16xf32>
    %205 = vector.shape_cast %204 : vector<16xf32> to vector<16x1xf32>
    %cst_67 = arith.constant 3.200000e+01 : f32
    %206 = vector.broadcast %cst_67 : f32 to vector<16x1xf32>
    %207 = arith.divf %205, %206 : vector<16x1xf32>
    %208 = vector.broadcast %200 : vector<16x1xf32> to vector<16x32xf32>
    %209 = arith.subf %194, %208 : vector<16x32xf32>
    %cst_68 = arith.constant 9.99999997E-7 : f32
    %210 = vector.broadcast %cst_68 : f32 to vector<16x1xf32>
    %211 = arith.addf %207, %210 : vector<16x1xf32>
    %212 = math.rsqrt %211 : vector<16x1xf32>
    %213 = vector.broadcast %212 : vector<16x1xf32> to vector<16x32xf32>
    %214 = arith.mulf %209, %213 : vector<16x32xf32>
    %215 = vector.broadcast %195 : vector<1x32xf32> to vector<16x32xf32>
    %216 = arith.mulf %214, %215 : vector<16x32xf32>
    %217 = vector.broadcast %196 : vector<1x32xf32> to vector<16x32xf32>
    %218 = arith.addf %216, %217 : vector<16x32xf32>
    %c1 = arith.constant 1 : index
    %c0_69 = arith.constant 0 : index
    %c0_70 = arith.constant 0 : index
    %219 = vector.load %arg11[%c1, %c0_69, %c0_70] : memref<2x5x32xf32, #tpu.memory_space<vmem>>, vector<1x5x32xf32>
    %220 = vector.shape_cast %219 : vector<1x5x32xf32> to vector<5x32xf32>
    %c1_71 = arith.constant 1 : index
    %c0_72 = arith.constant 0 : index
    %c0_73 = arith.constant 0 : index
    %221 = vector.load %arg6[%c1_71, %c0_72, %c0_73] : memref<2x32x96xf32, #tpu.memory_space<vmem>>, vector<1x32x96xf32>
    %222 = vector.shape_cast %221 : vector<1x32x96xf32> to vector<32x96xf32>
    %cst_74 = arith.constant dense<0.000000e+00> : vector<16x96xf32>
    %223 = tpu.matmul %218, %222, %cst_74 {dimension_numbers = #tpu.dot_dimension_numbers<[1], [0], [0], [1], [0, 0, 1, 1], [], []>} : vector<16x32xf32>, vector<32x96xf32>, vector<16x96xf32> -> vector<16x96xf32>
    %224 = vector.extract_strided_slice %223 {offsets = [0, 0], sizes = [16, 32], strides = [1, 1]} : vector<16x96xf32> to vector<16x32xf32>
    %225 = vector.extract_strided_slice %223 {offsets = [0, 32], sizes = [16, 32], strides = [1, 1]} : vector<16x96xf32> to vector<16x32xf32>
    %226 = vector.extract_strided_slice %223 {offsets = [0, 64], sizes = [16, 32], strides = [1, 1]} : vector<16x96xf32> to vector<16x32xf32>
    %c1_75 = arith.constant 1 : index
    %c0_76 = arith.constant 0 : index
    %c0_77 = arith.constant 0 : index
    %227 = vector.load %arg7[%c1_75, %c0_76, %c0_77] : memref<2x32x32xf32, #tpu.memory_space<vmem>>, vector<1x32x32xf32>
    %228 = vector.shape_cast %227 : vector<1x32x32xf32> to vector<32x32xf32>
    %cst_78 = arith.constant 0.000000e+00 : f32
    %229 = vector.broadcast %cst_78 : f32 to vector<16x32xf32>
    %230 = vector.extract_strided_slice %224 {offsets = [0, 0], sizes = [16, 8], strides = [1, 1]} : vector<16x32xf32> to vector<16x8xf32>
    %231 = vector.shape_cast %230 : vector<16x8xf32> to vector<2x8x8xf32>
    %232 = vector.extract_strided_slice %225 {offsets = [0, 0], sizes = [16, 8], strides = [1, 1]} : vector<16x32xf32> to vector<16x8xf32>
    %233 = vector.shape_cast %232 : vector<16x8xf32> to vector<2x8x8xf32>
    %234 = vector.extract_strided_slice %226 {offsets = [0, 0], sizes = [16, 8], strides = [1, 1]} : vector<16x32xf32> to vector<16x8xf32>
    %235 = vector.shape_cast %234 : vector<16x8xf32> to vector<2x8x8xf32>
    "tpu.trace_start"() <{level = 10 : i32, message = "bqd,bkd->bqk"}> : () -> ()
    %cst_79 = arith.constant dense<0.000000e+00> : vector<2x8x8xf32>
    %236 = tpu.matmul %231, %233, %cst_79 {dimension_numbers = #tpu.dot_dimension_numbers<[2], [2], [1], [1], [0, 0, 0, 1, 1, 1], [0], [0]>} : vector<2x8x8xf32>, vector<2x8x8xf32>, vector<2x8x8xf32> -> vector<2x8x8xf32>
    "tpu.trace_stop"() : () -> ()
    %237 = vector.broadcast %9 : vector<2x1x8xf32> to vector<2x8x8xf32>
    %238 = arith.addf %236, %237 : vector<2x8x8xf32>
    %cst_80 = arith.constant dense<0xFF800000> : vector<2x8xf32>
    %239 = vector.multi_reduction <maximumf>, %238, %cst_80 [2] : vector<2x8x8xf32> to vector<2x8xf32>
    %240 = vector.shape_cast %239 : vector<2x8xf32> to vector<2x8x1xf32>
    %241 = vector.broadcast %240 : vector<2x8x1xf32> to vector<2x8x8xf32>
    %242 = arith.subf %238, %241 : vector<2x8x8xf32>
    %243 = math.exp %242 : vector<2x8x8xf32>
    %cst_81 = arith.constant dense<0.000000e+00> : vector<2x8xf32>
    %244 = vector.multi_reduction <add>, %243, %cst_81 [2] : vector<2x8x8xf32> to vector<2x8xf32>
    %245 = vector.shape_cast %244 : vector<2x8xf32> to vector<2x8x1xf32>
    %246 = tpu.reciprocal %245 {approx = true} : vector<2x8x1xf32> -> vector<2x8x1xf32>
    %247 = vector.broadcast %246 : vector<2x8x1xf32> to vector<2x8x8xf32>
    %248 = arith.mulf %243, %247 : vector<2x8x8xf32>
    "tpu.trace_start"() <{level = 10 : i32, message = "bqk,bkd->bqd"}> : () -> ()
    %cst_82 = arith.constant dense<0.000000e+00> : vector<2x8x8xf32>
    %249 = tpu.matmul %248, %235, %cst_82 {dimension_numbers = #tpu.dot_dimension_numbers<[2], [1], [1], [2], [0, 0, 0, 1, 1, 2], [0], [0]>} : vector<2x8x8xf32>, vector<2x8x8xf32>, vector<2x8x8xf32> -> vector<2x8x8xf32>
    "tpu.trace_stop"() : () -> ()
    %250 = vector.shape_cast %249 : vector<2x8x8xf32> to vector<16x8xf32>
    %251 = vector.extract_strided_slice %228 {offsets = [0, 0], sizes = [8, 32], strides = [1, 1]} : vector<32x32xf32> to vector<8x32xf32>
    %cst_83 = arith.constant dense<0.000000e+00> : vector<16x32xf32>
    %252 = tpu.matmul %250, %251, %cst_83 {dimension_numbers = #tpu.dot_dimension_numbers<[1], [0], [0], [1], [0, 0, 1, 1], [], []>} : vector<16x8xf32>, vector<8x32xf32>, vector<16x32xf32> -> vector<16x32xf32>
    %253 = arith.addf %229, %252 : vector<16x32xf32>
    %254 = vector.extract_strided_slice %224 {offsets = [0, 8], sizes = [16, 8], strides = [1, 1]} : vector<16x32xf32> to vector<16x8xf32>
    %255 = vector.shape_cast %254 : vector<16x8xf32> to vector<2x8x8xf32>
    %256 = vector.extract_strided_slice %225 {offsets = [0, 8], sizes = [16, 8], strides = [1, 1]} : vector<16x32xf32> to vector<16x8xf32>
    %257 = vector.shape_cast %256 : vector<16x8xf32> to vector<2x8x8xf32>
    %258 = vector.extract_strided_slice %226 {offsets = [0, 8], sizes = [16, 8], strides = [1, 1]} : vector<16x32xf32> to vector<16x8xf32>
    %259 = vector.shape_cast %258 : vector<16x8xf32> to vector<2x8x8xf32>
    "tpu.trace_start"() <{level = 10 : i32, message = "bqd,bkd->bqk"}> : () -> ()
    %cst_84 = arith.constant dense<0.000000e+00> : vector<2x8x8xf32>
    %260 = tpu.matmul %255, %257, %cst_84 {dimension_numbers = #tpu.dot_dimension_numbers<[2], [2], [1], [1], [0, 0, 0, 1, 1, 1], [0], [0]>} : vector<2x8x8xf32>, vector<2x8x8xf32>, vector<2x8x8xf32> -> vector<2x8x8xf32>
    "tpu.trace_stop"() : () -> ()
    %261 = vector.broadcast %9 : vector<2x1x8xf32> to vector<2x8x8xf32>
    %262 = arith.addf %260, %261 : vector<2x8x8xf32>
    %cst_85 = arith.constant dense<0xFF800000> : vector<2x8xf32>
    %263 = vector.multi_reduction <maximumf>, %262, %cst_85 [2] : vector<2x8x8xf32> to vector<2x8xf32>
    %264 = vector.shape_cast %263 : vector<2x8xf32> to vector<2x8x1xf32>
    %265 = vector.broadcast %264 : vector<2x8x1xf32> to vector<2x8x8xf32>
    %266 = arith.subf %262, %265 : vector<2x8x8xf32>
    %267 = math.exp %266 : vector<2x8x8xf32>
    %cst_86 = arith.constant dense<0.000000e+00> : vector<2x8xf32>
    %268 = vector.multi_reduction <add>, %267, %cst_86 [2] : vector<2x8x8xf32> to vector<2x8xf32>
    %269 = vector.shape_cast %268 : vector<2x8xf32> to vector<2x8x1xf32>
    %270 = tpu.reciprocal %269 {approx = true} : vector<2x8x1xf32> -> vector<2x8x1xf32>
    %271 = vector.broadcast %270 : vector<2x8x1xf32> to vector<2x8x8xf32>
    %272 = arith.mulf %267, %271 : vector<2x8x8xf32>
    "tpu.trace_start"() <{level = 10 : i32, message = "bqk,bkd->bqd"}> : () -> ()
    %cst_87 = arith.constant dense<0.000000e+00> : vector<2x8x8xf32>
    %273 = tpu.matmul %272, %259, %cst_87 {dimension_numbers = #tpu.dot_dimension_numbers<[2], [1], [1], [2], [0, 0, 0, 1, 1, 2], [0], [0]>} : vector<2x8x8xf32>, vector<2x8x8xf32>, vector<2x8x8xf32> -> vector<2x8x8xf32>
    "tpu.trace_stop"() : () -> ()
    %274 = vector.shape_cast %273 : vector<2x8x8xf32> to vector<16x8xf32>
    %275 = vector.extract_strided_slice %228 {offsets = [8, 0], sizes = [8, 32], strides = [1, 1]} : vector<32x32xf32> to vector<8x32xf32>
    %cst_88 = arith.constant dense<0.000000e+00> : vector<16x32xf32>
    %276 = tpu.matmul %274, %275, %cst_88 {dimension_numbers = #tpu.dot_dimension_numbers<[1], [0], [0], [1], [0, 0, 1, 1], [], []>} : vector<16x8xf32>, vector<8x32xf32>, vector<16x32xf32> -> vector<16x32xf32>
    %277 = arith.addf %253, %276 : vector<16x32xf32>
    %278 = vector.extract_strided_slice %224 {offsets = [0, 16], sizes = [16, 8], strides = [1, 1]} : vector<16x32xf32> to vector<16x8xf32>
    %279 = vector.shape_cast %278 : vector<16x8xf32> to vector<2x8x8xf32>
    %280 = vector.extract_strided_slice %225 {offsets = [0, 16], sizes = [16, 8], strides = [1, 1]} : vector<16x32xf32> to vector<16x8xf32>
    %281 = vector.shape_cast %280 : vector<16x8xf32> to vector<2x8x8xf32>
    %282 = vector.extract_strided_slice %226 {offsets = [0, 16], sizes = [16, 8], strides = [1, 1]} : vector<16x32xf32> to vector<16x8xf32>
    %283 = vector.shape_cast %282 : vector<16x8xf32> to vector<2x8x8xf32>
    "tpu.trace_start"() <{level = 10 : i32, message = "bqd,bkd->bqk"}> : () -> ()
    %cst_89 = arith.constant dense<0.000000e+00> : vector<2x8x8xf32>
    %284 = tpu.matmul %279, %281, %cst_89 {dimension_numbers = #tpu.dot_dimension_numbers<[2], [2], [1], [1], [0, 0, 0, 1, 1, 1], [0], [0]>} : vector<2x8x8xf32>, vector<2x8x8xf32>, vector<2x8x8xf32> -> vector<2x8x8xf32>
    "tpu.trace_stop"() : () -> ()
    %285 = vector.broadcast %9 : vector<2x1x8xf32> to vector<2x8x8xf32>
    %286 = arith.addf %284, %285 : vector<2x8x8xf32>
    %cst_90 = arith.constant dense<0xFF800000> : vector<2x8xf32>
    %287 = vector.multi_reduction <maximumf>, %286, %cst_90 [2] : vector<2x8x8xf32> to vector<2x8xf32>
    %288 = vector.shape_cast %287 : vector<2x8xf32> to vector<2x8x1xf32>
    %289 = vector.broadcast %288 : vector<2x8x1xf32> to vector<2x8x8xf32>
    %290 = arith.subf %286, %289 : vector<2x8x8xf32>
    %291 = math.exp %290 : vector<2x8x8xf32>
    %cst_91 = arith.constant dense<0.000000e+00> : vector<2x8xf32>
    %292 = vector.multi_reduction <add>, %291, %cst_91 [2] : vector<2x8x8xf32> to vector<2x8xf32>
    %293 = vector.shape_cast %292 : vector<2x8xf32> to vector<2x8x1xf32>
    %294 = tpu.reciprocal %293 {approx = true} : vector<2x8x1xf32> -> vector<2x8x1xf32>
    %295 = vector.broadcast %294 : vector<2x8x1xf32> to vector<2x8x8xf32>
    %296 = arith.mulf %291, %295 : vector<2x8x8xf32>
    "tpu.trace_start"() <{level = 10 : i32, message = "bqk,bkd->bqd"}> : () -> ()
    %cst_92 = arith.constant dense<0.000000e+00> : vector<2x8x8xf32>
    %297 = tpu.matmul %296, %283, %cst_92 {dimension_numbers = #tpu.dot_dimension_numbers<[2], [1], [1], [2], [0, 0, 0, 1, 1, 2], [0], [0]>} : vector<2x8x8xf32>, vector<2x8x8xf32>, vector<2x8x8xf32> -> vector<2x8x8xf32>
    "tpu.trace_stop"() : () -> ()
    %298 = vector.shape_cast %297 : vector<2x8x8xf32> to vector<16x8xf32>
    %299 = vector.extract_strided_slice %228 {offsets = [16, 0], sizes = [8, 32], strides = [1, 1]} : vector<32x32xf32> to vector<8x32xf32>
    %cst_93 = arith.constant dense<0.000000e+00> : vector<16x32xf32>
    %300 = tpu.matmul %298, %299, %cst_93 {dimension_numbers = #tpu.dot_dimension_numbers<[1], [0], [0], [1], [0, 0, 1, 1], [], []>} : vector<16x8xf32>, vector<8x32xf32>, vector<16x32xf32> -> vector<16x32xf32>
    %301 = arith.addf %277, %300 : vector<16x32xf32>
    %302 = vector.extract_strided_slice %224 {offsets = [0, 24], sizes = [16, 8], strides = [1, 1]} : vector<16x32xf32> to vector<16x8xf32>
    %303 = vector.shape_cast %302 : vector<16x8xf32> to vector<2x8x8xf32>
    %304 = vector.extract_strided_slice %225 {offsets = [0, 24], sizes = [16, 8], strides = [1, 1]} : vector<16x32xf32> to vector<16x8xf32>
    %305 = vector.shape_cast %304 : vector<16x8xf32> to vector<2x8x8xf32>
    %306 = vector.extract_strided_slice %226 {offsets = [0, 24], sizes = [16, 8], strides = [1, 1]} : vector<16x32xf32> to vector<16x8xf32>
    %307 = vector.shape_cast %306 : vector<16x8xf32> to vector<2x8x8xf32>
    "tpu.trace_start"() <{level = 10 : i32, message = "bqd,bkd->bqk"}> : () -> ()
    %cst_94 = arith.constant dense<0.000000e+00> : vector<2x8x8xf32>
    %308 = tpu.matmul %303, %305, %cst_94 {dimension_numbers = #tpu.dot_dimension_numbers<[2], [2], [1], [1], [0, 0, 0, 1, 1, 1], [0], [0]>} : vector<2x8x8xf32>, vector<2x8x8xf32>, vector<2x8x8xf32> -> vector<2x8x8xf32>
    "tpu.trace_stop"() : () -> ()
    %309 = vector.broadcast %9 : vector<2x1x8xf32> to vector<2x8x8xf32>
    %310 = arith.addf %308, %309 : vector<2x8x8xf32>
    %cst_95 = arith.constant dense<0xFF800000> : vector<2x8xf32>
    %311 = vector.multi_reduction <maximumf>, %310, %cst_95 [2] : vector<2x8x8xf32> to vector<2x8xf32>
    %312 = vector.shape_cast %311 : vector<2x8xf32> to vector<2x8x1xf32>
    %313 = vector.broadcast %312 : vector<2x8x1xf32> to vector<2x8x8xf32>
    %314 = arith.subf %310, %313 : vector<2x8x8xf32>
    %315 = math.exp %314 : vector<2x8x8xf32>
    %cst_96 = arith.constant dense<0.000000e+00> : vector<2x8xf32>
    %316 = vector.multi_reduction <add>, %315, %cst_96 [2] : vector<2x8x8xf32> to vector<2x8xf32>
    %317 = vector.shape_cast %316 : vector<2x8xf32> to vector<2x8x1xf32>
    %318 = tpu.reciprocal %317 {approx = true} : vector<2x8x1xf32> -> vector<2x8x1xf32>
    %319 = vector.broadcast %318 : vector<2x8x1xf32> to vector<2x8x8xf32>
    %320 = arith.mulf %315, %319 : vector<2x8x8xf32>
    "tpu.trace_start"() <{level = 10 : i32, message = "bqk,bkd->bqd"}> : () -> ()
    %cst_97 = arith.constant dense<0.000000e+00> : vector<2x8x8xf32>
    %321 = tpu.matmul %320, %307, %cst_97 {dimension_numbers = #tpu.dot_dimension_numbers<[2], [1], [1], [2], [0, 0, 0, 1, 1, 2], [0], [0]>} : vector<2x8x8xf32>, vector<2x8x8xf32>, vector<2x8x8xf32> -> vector<2x8x8xf32>
    "tpu.trace_stop"() : () -> ()
    %322 = vector.shape_cast %321 : vector<2x8x8xf32> to vector<16x8xf32>
    %323 = vector.extract_strided_slice %228 {offsets = [24, 0], sizes = [8, 32], strides = [1, 1]} : vector<32x32xf32> to vector<8x32xf32>
    %cst_98 = arith.constant dense<0.000000e+00> : vector<16x32xf32>
    %324 = tpu.matmul %322, %323, %cst_98 {dimension_numbers = #tpu.dot_dimension_numbers<[1], [0], [0], [1], [0, 0, 1, 1], [], []>} : vector<16x8xf32>, vector<8x32xf32>, vector<16x32xf32> -> vector<16x32xf32>
    %325 = arith.addf %301, %324 : vector<16x32xf32>
    %326 = arith.addf %325, %218 : vector<16x32xf32>
    %327 = vector.extract_strided_slice %220 {offsets = [0, 0], sizes = [1, 32], strides = [1, 1]} : vector<5x32xf32> to vector<1x32xf32>
    %328 = vector.extract_strided_slice %220 {offsets = [1, 0], sizes = [1, 32], strides = [1, 1]} : vector<5x32xf32> to vector<1x32xf32>
    %cst_99 = arith.constant dense<0.000000e+00> : vector<16xf32>
    %329 = vector.multi_reduction <add>, %326, %cst_99 [1] : vector<16x32xf32> to vector<16xf32>
    %330 = vector.shape_cast %329 : vector<16xf32> to vector<16x1xf32>
    %cst_100 = arith.constant 3.200000e+01 : f32
    %331 = vector.broadcast %cst_100 : f32 to vector<16x1xf32>
    %332 = arith.divf %330, %331 : vector<16x1xf32>
    %333 = vector.broadcast %332 : vector<16x1xf32> to vector<16x32xf32>
    %334 = arith.subf %326, %333 : vector<16x32xf32>
    %335 = arith.mulf %334, %334 : vector<16x32xf32>
    %cst_101 = arith.constant dense<0.000000e+00> : vector<16xf32>
    %336 = vector.multi_reduction <add>, %335, %cst_101 [1] : vector<16x32xf32> to vector<16xf32>
    %337 = vector.shape_cast %336 : vector<16xf32> to vector<16x1xf32>
    %cst_102 = arith.constant 3.200000e+01 : f32
    %338 = vector.broadcast %cst_102 : f32 to vector<16x1xf32>
    %339 = arith.divf %337, %338 : vector<16x1xf32>
    %340 = vector.broadcast %332 : vector<16x1xf32> to vector<16x32xf32>
    %341 = arith.subf %326, %340 : vector<16x32xf32>
    %cst_103 = arith.constant 9.99999997E-7 : f32
    %342 = vector.broadcast %cst_103 : f32 to vector<16x1xf32>
    %343 = arith.addf %339, %342 : vector<16x1xf32>
    %344 = math.rsqrt %343 : vector<16x1xf32>
    %345 = vector.broadcast %344 : vector<16x1xf32> to vector<16x32xf32>
    %346 = arith.mulf %341, %345 : vector<16x32xf32>
    %347 = vector.broadcast %327 : vector<1x32xf32> to vector<16x32xf32>
    %348 = arith.mulf %346, %347 : vector<16x32xf32>
    %349 = vector.broadcast %328 : vector<1x32xf32> to vector<16x32xf32>
    %350 = arith.addf %348, %349 : vector<16x32xf32>
    %c1_104 = arith.constant 1 : index
    %c0_105 = arith.constant 0 : index
    %c0_106 = arith.constant 0 : index
    %351 = vector.load %arg8[%c1_104, %c0_105, %c0_106] : memref<2x32x64xf32, #tpu.memory_space<vmem>>, vector<1x32x64xf32>
    %352 = vector.shape_cast %351 : vector<1x32x64xf32> to vector<32x64xf32>
    %cst_107 = arith.constant dense<0.000000e+00> : vector<16x64xf32>
    %353 = tpu.matmul %350, %352, %cst_107 {dimension_numbers = #tpu.dot_dimension_numbers<[1], [0], [0], [1], [0, 0, 1, 1], [], []>} : vector<16x32xf32>, vector<32x64xf32>, vector<16x64xf32> -> vector<16x64xf32>
    %c1_108 = arith.constant 1 : index
    %c0_109 = arith.constant 0 : index
    %c0_110 = arith.constant 0 : index
    %354 = vector.load %arg9[%c1_108, %c0_109, %c0_110] : memref<2x1x64xf32, #tpu.memory_space<vmem>>, vector<1x1x64xf32>
    %355 = vector.shape_cast %354 : vector<1x1x64xf32> to vector<1x64xf32>
    %356 = vector.broadcast %355 : vector<1x64xf32> to vector<16x64xf32>
    %357 = arith.addf %353, %356 : vector<16x64xf32>
    %cst_111 = arith.constant 0.000000e+00 : f32
    %358 = vector.broadcast %cst_111 : f32 to vector<16x64xf32>
    %359 = arith.maximumf %357, %358 : vector<16x64xf32>
    %c1_112 = arith.constant 1 : index
    %c0_113 = arith.constant 0 : index
    %c0_114 = arith.constant 0 : index
    %360 = vector.load %arg10[%c1_112, %c0_113, %c0_114] : memref<2x64x32xf32, #tpu.memory_space<vmem>>, vector<1x64x32xf32>
    %361 = vector.shape_cast %360 : vector<1x64x32xf32> to vector<64x32xf32>
    %cst_115 = arith.constant dense<0.000000e+00> : vector<16x32xf32>
    %362 = tpu.matmul %359, %361, %cst_115 {dimension_numbers = #tpu.dot_dimension_numbers<[1], [0], [0], [1], [0, 0, 1, 1], [], []>} : vector<16x64xf32>, vector<64x32xf32>, vector<16x32xf32> -> vector<16x32xf32>
    %363 = vector.extract_strided_slice %220 {offsets = [4, 0], sizes = [1, 32], strides = [1, 1]} : vector<5x32xf32> to vector<1x32xf32>
    %364 = vector.broadcast %363 : vector<1x32xf32> to vector<16x32xf32>
    %365 = arith.addf %362, %364 : vector<16x32xf32>
    %366 = arith.addf %365, %350 : vector<16x32xf32>
    %367 = vector.extract_strided_slice %220 {offsets = [2, 0], sizes = [1, 32], strides = [1, 1]} : vector<5x32xf32> to vector<1x32xf32>
    %368 = vector.extract_strided_slice %220 {offsets = [3, 0], sizes = [1, 32], strides = [1, 1]} : vector<5x32xf32> to vector<1x32xf32>
    %cst_116 = arith.constant dense<0.000000e+00> : vector<16xf32>
    %369 = vector.multi_reduction <add>, %366, %cst_116 [1] : vector<16x32xf32> to vector<16xf32>
    %370 = vector.shape_cast %369 : vector<16xf32> to vector<16x1xf32>
    %cst_117 = arith.constant 3.200000e+01 : f32
    %371 = vector.broadcast %cst_117 : f32 to vector<16x1xf32>
    %372 = arith.divf %370, %371 : vector<16x1xf32>
    %373 = vector.broadcast %372 : vector<16x1xf32> to vector<16x32xf32>
    %374 = arith.subf %366, %373 : vector<16x32xf32>
    %375 = arith.mulf %374, %374 : vector<16x32xf32>
    %cst_118 = arith.constant dense<0.000000e+00> : vector<16xf32>
    %376 = vector.multi_reduction <add>, %375, %cst_118 [1] : vector<16x32xf32> to vector<16xf32>
    %377 = vector.shape_cast %376 : vector<16xf32> to vector<16x1xf32>
    %cst_119 = arith.constant 3.200000e+01 : f32
    %378 = vector.broadcast %cst_119 : f32 to vector<16x1xf32>
    %379 = arith.divf %377, %378 : vector<16x1xf32>
    %380 = vector.broadcast %372 : vector<16x1xf32> to vector<16x32xf32>
    %381 = arith.subf %366, %380 : vector<16x32xf32>
    %cst_120 = arith.constant 9.99999997E-7 : f32
    %382 = vector.broadcast %cst_120 : f32 to vector<16x1xf32>
    %383 = arith.addf %379, %382 : vector<16x1xf32>
    %384 = math.rsqrt %383 : vector<16x1xf32>
    %385 = vector.broadcast %384 : vector<16x1xf32> to vector<16x32xf32>
    %386 = arith.mulf %381, %385 : vector<16x32xf32>
    %387 = vector.broadcast %367 : vector<1x32xf32> to vector<16x32xf32>
    %388 = arith.mulf %386, %387 : vector<16x32xf32>
    %389 = vector.broadcast %368 : vector<1x32xf32> to vector<16x32xf32>
    %390 = arith.addf %388, %389 : vector<16x32xf32>
    %c0_121 = arith.constant 0 : index
    %c0_122 = arith.constant 0 : index
    %391 = vector.load %arg2[%c0_121, %c0_122] : memref<16x1xf32, #tpu.memory_space<vmem>>, vector<16x1xf32>
    %392 = vector.broadcast %391 : vector<16x1xf32> to vector<16x32xf32>
    %393 = arith.mulf %390, %392 : vector<16x32xf32>
    %c0_123 = arith.constant 0 : index
    %c0_124 = arith.constant 0 : index
    %394 = vector.load %arg15[%c0_123, %c0_124] : memref<32x128xf32, #tpu.memory_space<vmem>>, vector<32x128xf32>
    %cst_125 = arith.constant dense<0.000000e+00> : vector<16x128xf32>
    %395 = tpu.matmul %393, %394, %cst_125 {dimension_numbers = #tpu.dot_dimension_numbers<[1], [0], [0], [1], [0, 0, 1, 1], [], []>} : vector<16x32xf32>, vector<32x128xf32>, vector<16x128xf32> -> vector<16x128xf32>
    %c0_126 = arith.constant 0 : index
    %c0_127 = arith.constant 0 : index
    %396 = vector.load %arg4[%c0_126, %c0_127] : memref<16x32xf32, #tpu.memory_space<vmem>>, vector<16x32xf32>
    %397 = vector.extract_strided_slice %21 {offsets = [2, 0], sizes = [1, 32], strides = [1, 1]} : vector<4x32xf32> to vector<1x32xf32>
    %398 = vector.extract_strided_slice %21 {offsets = [3, 0], sizes = [1, 32], strides = [1, 1]} : vector<4x32xf32> to vector<1x32xf32>
    %cst_128 = arith.constant dense<0.000000e+00> : vector<16xf32>
    %399 = vector.multi_reduction <add>, %396, %cst_128 [1] : vector<16x32xf32> to vector<16xf32>
    %400 = vector.shape_cast %399 : vector<16xf32> to vector<16x1xf32>
    %cst_129 = arith.constant 3.200000e+01 : f32
    %401 = vector.broadcast %cst_129 : f32 to vector<16x1xf32>
    %402 = arith.divf %400, %401 : vector<16x1xf32>
    %403 = vector.broadcast %402 : vector<16x1xf32> to vector<16x32xf32>
    %404 = arith.subf %396, %403 : vector<16x32xf32>
    %405 = arith.mulf %404, %404 : vector<16x32xf32>
    %cst_130 = arith.constant dense<0.000000e+00> : vector<16xf32>
    %406 = vector.multi_reduction <add>, %405, %cst_130 [1] : vector<16x32xf32> to vector<16xf32>
    %407 = vector.shape_cast %406 : vector<16xf32> to vector<16x1xf32>
    %cst_131 = arith.constant 3.200000e+01 : f32
    %408 = vector.broadcast %cst_131 : f32 to vector<16x1xf32>
    %409 = arith.divf %407, %408 : vector<16x1xf32>
    %410 = vector.broadcast %402 : vector<16x1xf32> to vector<16x32xf32>
    %411 = arith.subf %396, %410 : vector<16x32xf32>
    %cst_132 = arith.constant 9.99999997E-7 : f32
    %412 = vector.broadcast %cst_132 : f32 to vector<16x1xf32>
    %413 = arith.addf %409, %412 : vector<16x1xf32>
    %414 = math.rsqrt %413 : vector<16x1xf32>
    %415 = vector.broadcast %414 : vector<16x1xf32> to vector<16x32xf32>
    %416 = arith.mulf %411, %415 : vector<16x32xf32>
    %417 = vector.broadcast %397 : vector<1x32xf32> to vector<16x32xf32>
    %418 = arith.mulf %416, %417 : vector<16x32xf32>
    %419 = vector.broadcast %398 : vector<1x32xf32> to vector<16x32xf32>
    %420 = arith.addf %418, %419 : vector<16x32xf32>
    %c0_133 = arith.constant 0 : index
    %c0_134 = arith.constant 0 : index
    %c0_135 = arith.constant 0 : index
    %421 = vector.load %arg20[%c0_133, %c0_134, %c0_135] : memref<2x7x32xf32, #tpu.memory_space<vmem>>, vector<1x7x32xf32>
    %422 = vector.shape_cast %421 : vector<1x7x32xf32> to vector<7x32xf32>
    %c0_136 = arith.constant 0 : index
    %c0_137 = arith.constant 0 : index
    %c0_138 = arith.constant 0 : index
    %423 = vector.load %arg12[%c0_136, %c0_137, %c0_138] : memref<2x32x96xf32, #tpu.memory_space<vmem>>, vector<1x32x96xf32>
    %424 = vector.shape_cast %423 : vector<1x32x96xf32> to vector<32x96xf32>
    %cst_139 = arith.constant dense<0.000000e+00> : vector<16x96xf32>
    %425 = tpu.matmul %420, %424, %cst_139 {dimension_numbers = #tpu.dot_dimension_numbers<[1], [0], [0], [1], [0, 0, 1, 1], [], []>} : vector<16x32xf32>, vector<32x96xf32>, vector<16x96xf32> -> vector<16x96xf32>
    %426 = vector.extract_strided_slice %425 {offsets = [0, 0], sizes = [16, 32], strides = [1, 1]} : vector<16x96xf32> to vector<16x32xf32>
    %427 = vector.extract_strided_slice %425 {offsets = [0, 32], sizes = [16, 32], strides = [1, 1]} : vector<16x96xf32> to vector<16x32xf32>
    %428 = vector.extract_strided_slice %425 {offsets = [0, 64], sizes = [16, 32], strides = [1, 1]} : vector<16x96xf32> to vector<16x32xf32>
    %c0_140 = arith.constant 0 : index
    %c0_141 = arith.constant 0 : index
    %c0_142 = arith.constant 0 : index
    %429 = vector.load %arg13[%c0_140, %c0_141, %c0_142] : memref<2x32x32xf32, #tpu.memory_space<vmem>>, vector<1x32x32xf32>
    %430 = vector.shape_cast %429 : vector<1x32x32xf32> to vector<32x32xf32>
    %cst_143 = arith.constant 0.000000e+00 : f32
    %431 = vector.broadcast %cst_143 : f32 to vector<16x32xf32>
    %432 = vector.extract_strided_slice %426 {offsets = [0, 0], sizes = [16, 8], strides = [1, 1]} : vector<16x32xf32> to vector<16x8xf32>
    %433 = vector.shape_cast %432 : vector<16x8xf32> to vector<2x8x8xf32>
    %434 = vector.extract_strided_slice %427 {offsets = [0, 0], sizes = [16, 8], strides = [1, 1]} : vector<16x32xf32> to vector<16x8xf32>
    %435 = vector.shape_cast %434 : vector<16x8xf32> to vector<2x8x8xf32>
    %436 = vector.extract_strided_slice %428 {offsets = [0, 0], sizes = [16, 8], strides = [1, 1]} : vector<16x32xf32> to vector<16x8xf32>
    %437 = vector.shape_cast %436 : vector<16x8xf32> to vector<2x8x8xf32>
    "tpu.trace_start"() <{level = 10 : i32, message = "bqd,bkd->bqk"}> : () -> ()
    %cst_144 = arith.constant dense<0.000000e+00> : vector<2x8x8xf32>
    %438 = tpu.matmul %433, %435, %cst_144 {dimension_numbers = #tpu.dot_dimension_numbers<[2], [2], [1], [1], [0, 0, 0, 1, 1, 1], [0], [0]>} : vector<2x8x8xf32>, vector<2x8x8xf32>, vector<2x8x8xf32> -> vector<2x8x8xf32>
    "tpu.trace_stop"() : () -> ()
    %439 = arith.addf %438, %20 : vector<2x8x8xf32>
    %cst_145 = arith.constant dense<0xFF800000> : vector<2x8xf32>
    %440 = vector.multi_reduction <maximumf>, %439, %cst_145 [2] : vector<2x8x8xf32> to vector<2x8xf32>
    %441 = vector.shape_cast %440 : vector<2x8xf32> to vector<2x8x1xf32>
    %442 = vector.broadcast %441 : vector<2x8x1xf32> to vector<2x8x8xf32>
    %443 = arith.subf %439, %442 : vector<2x8x8xf32>
    %444 = math.exp %443 : vector<2x8x8xf32>
    %cst_146 = arith.constant dense<0.000000e+00> : vector<2x8xf32>
    %445 = vector.multi_reduction <add>, %444, %cst_146 [2] : vector<2x8x8xf32> to vector<2x8xf32>
    %446 = vector.shape_cast %445 : vector<2x8xf32> to vector<2x8x1xf32>
    %447 = tpu.reciprocal %446 {approx = true} : vector<2x8x1xf32> -> vector<2x8x1xf32>
    %448 = vector.broadcast %447 : vector<2x8x1xf32> to vector<2x8x8xf32>
    %449 = arith.mulf %444, %448 : vector<2x8x8xf32>
    "tpu.trace_start"() <{level = 10 : i32, message = "bqk,bkd->bqd"}> : () -> ()
    %cst_147 = arith.constant dense<0.000000e+00> : vector<2x8x8xf32>
    %450 = tpu.matmul %449, %437, %cst_147 {dimension_numbers = #tpu.dot_dimension_numbers<[2], [1], [1], [2], [0, 0, 0, 1, 1, 2], [0], [0]>} : vector<2x8x8xf32>, vector<2x8x8xf32>, vector<2x8x8xf32> -> vector<2x8x8xf32>
    "tpu.trace_stop"() : () -> ()
    %451 = vector.shape_cast %450 : vector<2x8x8xf32> to vector<16x8xf32>
    %452 = vector.extract_strided_slice %430 {offsets = [0, 0], sizes = [8, 32], strides = [1, 1]} : vector<32x32xf32> to vector<8x32xf32>
    %cst_148 = arith.constant dense<0.000000e+00> : vector<16x32xf32>
    %453 = tpu.matmul %451, %452, %cst_148 {dimension_numbers = #tpu.dot_dimension_numbers<[1], [0], [0], [1], [0, 0, 1, 1], [], []>} : vector<16x8xf32>, vector<8x32xf32>, vector<16x32xf32> -> vector<16x32xf32>
    %454 = arith.addf %431, %453 : vector<16x32xf32>
    %455 = vector.extract_strided_slice %426 {offsets = [0, 8], sizes = [16, 8], strides = [1, 1]} : vector<16x32xf32> to vector<16x8xf32>
    %456 = vector.shape_cast %455 : vector<16x8xf32> to vector<2x8x8xf32>
    %457 = vector.extract_strided_slice %427 {offsets = [0, 8], sizes = [16, 8], strides = [1, 1]} : vector<16x32xf32> to vector<16x8xf32>
    %458 = vector.shape_cast %457 : vector<16x8xf32> to vector<2x8x8xf32>
    %459 = vector.extract_strided_slice %428 {offsets = [0, 8], sizes = [16, 8], strides = [1, 1]} : vector<16x32xf32> to vector<16x8xf32>
    %460 = vector.shape_cast %459 : vector<16x8xf32> to vector<2x8x8xf32>
    "tpu.trace_start"() <{level = 10 : i32, message = "bqd,bkd->bqk"}> : () -> ()
    %cst_149 = arith.constant dense<0.000000e+00> : vector<2x8x8xf32>
    %461 = tpu.matmul %456, %458, %cst_149 {dimension_numbers = #tpu.dot_dimension_numbers<[2], [2], [1], [1], [0, 0, 0, 1, 1, 1], [0], [0]>} : vector<2x8x8xf32>, vector<2x8x8xf32>, vector<2x8x8xf32> -> vector<2x8x8xf32>
    "tpu.trace_stop"() : () -> ()
    %462 = arith.addf %461, %20 : vector<2x8x8xf32>
    %cst_150 = arith.constant dense<0xFF800000> : vector<2x8xf32>
    %463 = vector.multi_reduction <maximumf>, %462, %cst_150 [2] : vector<2x8x8xf32> to vector<2x8xf32>
    %464 = vector.shape_cast %463 : vector<2x8xf32> to vector<2x8x1xf32>
    %465 = vector.broadcast %464 : vector<2x8x1xf32> to vector<2x8x8xf32>
    %466 = arith.subf %462, %465 : vector<2x8x8xf32>
    %467 = math.exp %466 : vector<2x8x8xf32>
    %cst_151 = arith.constant dense<0.000000e+00> : vector<2x8xf32>
    %468 = vector.multi_reduction <add>, %467, %cst_151 [2] : vector<2x8x8xf32> to vector<2x8xf32>
    %469 = vector.shape_cast %468 : vector<2x8xf32> to vector<2x8x1xf32>
    %470 = tpu.reciprocal %469 {approx = true} : vector<2x8x1xf32> -> vector<2x8x1xf32>
    %471 = vector.broadcast %470 : vector<2x8x1xf32> to vector<2x8x8xf32>
    %472 = arith.mulf %467, %471 : vector<2x8x8xf32>
    "tpu.trace_start"() <{level = 10 : i32, message = "bqk,bkd->bqd"}> : () -> ()
    %cst_152 = arith.constant dense<0.000000e+00> : vector<2x8x8xf32>
    %473 = tpu.matmul %472, %460, %cst_152 {dimension_numbers = #tpu.dot_dimension_numbers<[2], [1], [1], [2], [0, 0, 0, 1, 1, 2], [0], [0]>} : vector<2x8x8xf32>, vector<2x8x8xf32>, vector<2x8x8xf32> -> vector<2x8x8xf32>
    "tpu.trace_stop"() : () -> ()
    %474 = vector.shape_cast %473 : vector<2x8x8xf32> to vector<16x8xf32>
    %475 = vector.extract_strided_slice %430 {offsets = [8, 0], sizes = [8, 32], strides = [1, 1]} : vector<32x32xf32> to vector<8x32xf32>
    %cst_153 = arith.constant dense<0.000000e+00> : vector<16x32xf32>
    %476 = tpu.matmul %474, %475, %cst_153 {dimension_numbers = #tpu.dot_dimension_numbers<[1], [0], [0], [1], [0, 0, 1, 1], [], []>} : vector<16x8xf32>, vector<8x32xf32>, vector<16x32xf32> -> vector<16x32xf32>
    %477 = arith.addf %454, %476 : vector<16x32xf32>
    %478 = vector.extract_strided_slice %426 {offsets = [0, 16], sizes = [16, 8], strides = [1, 1]} : vector<16x32xf32> to vector<16x8xf32>
    %479 = vector.shape_cast %478 : vector<16x8xf32> to vector<2x8x8xf32>
    %480 = vector.extract_strided_slice %427 {offsets = [0, 16], sizes = [16, 8], strides = [1, 1]} : vector<16x32xf32> to vector<16x8xf32>
    %481 = vector.shape_cast %480 : vector<16x8xf32> to vector<2x8x8xf32>
    %482 = vector.extract_strided_slice %428 {offsets = [0, 16], sizes = [16, 8], strides = [1, 1]} : vector<16x32xf32> to vector<16x8xf32>
    %483 = vector.shape_cast %482 : vector<16x8xf32> to vector<2x8x8xf32>
    "tpu.trace_start"() <{level = 10 : i32, message = "bqd,bkd->bqk"}> : () -> ()
    %cst_154 = arith.constant dense<0.000000e+00> : vector<2x8x8xf32>
    %484 = tpu.matmul %479, %481, %cst_154 {dimension_numbers = #tpu.dot_dimension_numbers<[2], [2], [1], [1], [0, 0, 0, 1, 1, 1], [0], [0]>} : vector<2x8x8xf32>, vector<2x8x8xf32>, vector<2x8x8xf32> -> vector<2x8x8xf32>
    "tpu.trace_stop"() : () -> ()
    %485 = arith.addf %484, %20 : vector<2x8x8xf32>
    %cst_155 = arith.constant dense<0xFF800000> : vector<2x8xf32>
    %486 = vector.multi_reduction <maximumf>, %485, %cst_155 [2] : vector<2x8x8xf32> to vector<2x8xf32>
    %487 = vector.shape_cast %486 : vector<2x8xf32> to vector<2x8x1xf32>
    %488 = vector.broadcast %487 : vector<2x8x1xf32> to vector<2x8x8xf32>
    %489 = arith.subf %485, %488 : vector<2x8x8xf32>
    %490 = math.exp %489 : vector<2x8x8xf32>
    %cst_156 = arith.constant dense<0.000000e+00> : vector<2x8xf32>
    %491 = vector.multi_reduction <add>, %490, %cst_156 [2] : vector<2x8x8xf32> to vector<2x8xf32>
    %492 = vector.shape_cast %491 : vector<2x8xf32> to vector<2x8x1xf32>
    %493 = tpu.reciprocal %492 {approx = true} : vector<2x8x1xf32> -> vector<2x8x1xf32>
    %494 = vector.broadcast %493 : vector<2x8x1xf32> to vector<2x8x8xf32>
    %495 = arith.mulf %490, %494 : vector<2x8x8xf32>
    "tpu.trace_start"() <{level = 10 : i32, message = "bqk,bkd->bqd"}> : () -> ()
    %cst_157 = arith.constant dense<0.000000e+00> : vector<2x8x8xf32>
    %496 = tpu.matmul %495, %483, %cst_157 {dimension_numbers = #tpu.dot_dimension_numbers<[2], [1], [1], [2], [0, 0, 0, 1, 1, 2], [0], [0]>} : vector<2x8x8xf32>, vector<2x8x8xf32>, vector<2x8x8xf32> -> vector<2x8x8xf32>
    "tpu.trace_stop"() : () -> ()
    %497 = vector.shape_cast %496 : vector<2x8x8xf32> to vector<16x8xf32>
    %498 = vector.extract_strided_slice %430 {offsets = [16, 0], sizes = [8, 32], strides = [1, 1]} : vector<32x32xf32> to vector<8x32xf32>
    %cst_158 = arith.constant dense<0.000000e+00> : vector<16x32xf32>
    %499 = tpu.matmul %497, %498, %cst_158 {dimension_numbers = #tpu.dot_dimension_numbers<[1], [0], [0], [1], [0, 0, 1, 1], [], []>} : vector<16x8xf32>, vector<8x32xf32>, vector<16x32xf32> -> vector<16x32xf32>
    %500 = arith.addf %477, %499 : vector<16x32xf32>
    %501 = vector.extract_strided_slice %426 {offsets = [0, 24], sizes = [16, 8], strides = [1, 1]} : vector<16x32xf32> to vector<16x8xf32>
    %502 = vector.shape_cast %501 : vector<16x8xf32> to vector<2x8x8xf32>
    %503 = vector.extract_strided_slice %427 {offsets = [0, 24], sizes = [16, 8], strides = [1, 1]} : vector<16x32xf32> to vector<16x8xf32>
    %504 = vector.shape_cast %503 : vector<16x8xf32> to vector<2x8x8xf32>
    %505 = vector.extract_strided_slice %428 {offsets = [0, 24], sizes = [16, 8], strides = [1, 1]} : vector<16x32xf32> to vector<16x8xf32>
    %506 = vector.shape_cast %505 : vector<16x8xf32> to vector<2x8x8xf32>
    "tpu.trace_start"() <{level = 10 : i32, message = "bqd,bkd->bqk"}> : () -> ()
    %cst_159 = arith.constant dense<0.000000e+00> : vector<2x8x8xf32>
    %507 = tpu.matmul %502, %504, %cst_159 {dimension_numbers = #tpu.dot_dimension_numbers<[2], [2], [1], [1], [0, 0, 0, 1, 1, 1], [0], [0]>} : vector<2x8x8xf32>, vector<2x8x8xf32>, vector<2x8x8xf32> -> vector<2x8x8xf32>
    "tpu.trace_stop"() : () -> ()
    %508 = arith.addf %507, %20 : vector<2x8x8xf32>
    %cst_160 = arith.constant dense<0xFF800000> : vector<2x8xf32>
    %509 = vector.multi_reduction <maximumf>, %508, %cst_160 [2] : vector<2x8x8xf32> to vector<2x8xf32>
    %510 = vector.shape_cast %509 : vector<2x8xf32> to vector<2x8x1xf32>
    %511 = vector.broadcast %510 : vector<2x8x1xf32> to vector<2x8x8xf32>
    %512 = arith.subf %508, %511 : vector<2x8x8xf32>
    %513 = math.exp %512 : vector<2x8x8xf32>
    %cst_161 = arith.constant dense<0.000000e+00> : vector<2x8xf32>
    %514 = vector.multi_reduction <add>, %513, %cst_161 [2] : vector<2x8x8xf32> to vector<2x8xf32>
    %515 = vector.shape_cast %514 : vector<2x8xf32> to vector<2x8x1xf32>
    %516 = tpu.reciprocal %515 {approx = true} : vector<2x8x1xf32> -> vector<2x8x1xf32>
    %517 = vector.broadcast %516 : vector<2x8x1xf32> to vector<2x8x8xf32>
    %518 = arith.mulf %513, %517 : vector<2x8x8xf32>
    "tpu.trace_start"() <{level = 10 : i32, message = "bqk,bkd->bqd"}> : () -> ()
    %cst_162 = arith.constant dense<0.000000e+00> : vector<2x8x8xf32>
    %519 = tpu.matmul %518, %506, %cst_162 {dimension_numbers = #tpu.dot_dimension_numbers<[2], [1], [1], [2], [0, 0, 0, 1, 1, 2], [0], [0]>} : vector<2x8x8xf32>, vector<2x8x8xf32>, vector<2x8x8xf32> -> vector<2x8x8xf32>
    "tpu.trace_stop"() : () -> ()
    %520 = vector.shape_cast %519 : vector<2x8x8xf32> to vector<16x8xf32>
    %521 = vector.extract_strided_slice %430 {offsets = [24, 0], sizes = [8, 32], strides = [1, 1]} : vector<32x32xf32> to vector<8x32xf32>
    %cst_163 = arith.constant dense<0.000000e+00> : vector<16x32xf32>
    %522 = tpu.matmul %520, %521, %cst_163 {dimension_numbers = #tpu.dot_dimension_numbers<[1], [0], [0], [1], [0, 0, 1, 1], [], []>} : vector<16x8xf32>, vector<8x32xf32>, vector<16x32xf32> -> vector<16x32xf32>
    %523 = arith.addf %500, %522 : vector<16x32xf32>
    %524 = arith.addf %523, %420 : vector<16x32xf32>
    %525 = vector.extract_strided_slice %422 {offsets = [0, 0], sizes = [1, 32], strides = [1, 1]} : vector<7x32xf32> to vector<1x32xf32>
    %526 = vector.extract_strided_slice %422 {offsets = [1, 0], sizes = [1, 32], strides = [1, 1]} : vector<7x32xf32> to vector<1x32xf32>
    %cst_164 = arith.constant dense<0.000000e+00> : vector<16xf32>
    %527 = vector.multi_reduction <add>, %524, %cst_164 [1] : vector<16x32xf32> to vector<16xf32>
    %528 = vector.shape_cast %527 : vector<16xf32> to vector<16x1xf32>
    %cst_165 = arith.constant 3.200000e+01 : f32
    %529 = vector.broadcast %cst_165 : f32 to vector<16x1xf32>
    %530 = arith.divf %528, %529 : vector<16x1xf32>
    %531 = vector.broadcast %530 : vector<16x1xf32> to vector<16x32xf32>
    %532 = arith.subf %524, %531 : vector<16x32xf32>
    %533 = arith.mulf %532, %532 : vector<16x32xf32>
    %cst_166 = arith.constant dense<0.000000e+00> : vector<16xf32>
    %534 = vector.multi_reduction <add>, %533, %cst_166 [1] : vector<16x32xf32> to vector<16xf32>
    %535 = vector.shape_cast %534 : vector<16xf32> to vector<16x1xf32>
    %cst_167 = arith.constant 3.200000e+01 : f32
    %536 = vector.broadcast %cst_167 : f32 to vector<16x1xf32>
    %537 = arith.divf %535, %536 : vector<16x1xf32>
    %538 = vector.broadcast %530 : vector<16x1xf32> to vector<16x32xf32>
    %539 = arith.subf %524, %538 : vector<16x32xf32>
    %cst_168 = arith.constant 9.99999997E-7 : f32
    %540 = vector.broadcast %cst_168 : f32 to vector<16x1xf32>
    %541 = arith.addf %537, %540 : vector<16x1xf32>
    %542 = math.rsqrt %541 : vector<16x1xf32>
    %543 = vector.broadcast %542 : vector<16x1xf32> to vector<16x32xf32>
    %544 = arith.mulf %539, %543 : vector<16x32xf32>
    %545 = vector.broadcast %525 : vector<1x32xf32> to vector<16x32xf32>
    %546 = arith.mulf %544, %545 : vector<16x32xf32>
    %547 = vector.broadcast %526 : vector<1x32xf32> to vector<16x32xf32>
    %548 = arith.addf %546, %547 : vector<16x32xf32>
    %c0_169 = arith.constant 0 : index
    %c0_170 = arith.constant 0 : index
    %c0_171 = arith.constant 0 : index
    %549 = vector.load %arg14[%c0_169, %c0_170, %c0_171] : memref<2x32x32xf32, #tpu.memory_space<vmem>>, vector<1x32x32xf32>
    %550 = vector.shape_cast %549 : vector<1x32x32xf32> to vector<32x32xf32>
    %cst_172 = arith.constant dense<0.000000e+00> : vector<16x32xf32>
    %551 = tpu.matmul %548, %550, %cst_172 {dimension_numbers = #tpu.dot_dimension_numbers<[1], [0], [0], [1], [0, 0, 1, 1], [], []>} : vector<16x32xf32>, vector<32x32xf32>, vector<16x32xf32> -> vector<16x32xf32>
    %552 = vector.extract_strided_slice %395 {offsets = [0, 0], sizes = [16, 32], strides = [1, 1]} : vector<16x128xf32> to vector<16x32xf32>
    %553 = vector.extract_strided_slice %395 {offsets = [0, 32], sizes = [16, 32], strides = [1, 1]} : vector<16x128xf32> to vector<16x32xf32>
    %c0_173 = arith.constant 0 : index
    %c0_174 = arith.constant 0 : index
    %c0_175 = arith.constant 0 : index
    %554 = vector.load %arg16[%c0_173, %c0_174, %c0_175] : memref<2x32x32xf32, #tpu.memory_space<vmem>>, vector<1x32x32xf32>
    %555 = vector.shape_cast %554 : vector<1x32x32xf32> to vector<32x32xf32>
    %cst_176 = arith.constant 0.000000e+00 : f32
    %556 = vector.broadcast %cst_176 : f32 to vector<16x32xf32>
    %557 = vector.extract_strided_slice %551 {offsets = [0, 0], sizes = [16, 8], strides = [1, 1]} : vector<16x32xf32> to vector<16x8xf32>
    %558 = vector.shape_cast %557 : vector<16x8xf32> to vector<2x8x8xf32>
    %559 = vector.extract_strided_slice %552 {offsets = [0, 0], sizes = [16, 8], strides = [1, 1]} : vector<16x32xf32> to vector<16x8xf32>
    %560 = vector.shape_cast %559 : vector<16x8xf32> to vector<2x8x8xf32>
    %561 = vector.extract_strided_slice %553 {offsets = [0, 0], sizes = [16, 8], strides = [1, 1]} : vector<16x32xf32> to vector<16x8xf32>
    %562 = vector.shape_cast %561 : vector<16x8xf32> to vector<2x8x8xf32>
    "tpu.trace_start"() <{level = 10 : i32, message = "bqd,bkd->bqk"}> : () -> ()
    %cst_177 = arith.constant dense<0.000000e+00> : vector<2x8x8xf32>
    %563 = tpu.matmul %558, %560, %cst_177 {dimension_numbers = #tpu.dot_dimension_numbers<[2], [2], [1], [1], [0, 0, 0, 1, 1, 1], [0], [0]>} : vector<2x8x8xf32>, vector<2x8x8xf32>, vector<2x8x8xf32> -> vector<2x8x8xf32>
    "tpu.trace_stop"() : () -> ()
    %564 = vector.broadcast %9 : vector<2x1x8xf32> to vector<2x8x8xf32>
    %565 = arith.addf %563, %564 : vector<2x8x8xf32>
    %cst_178 = arith.constant dense<0xFF800000> : vector<2x8xf32>
    %566 = vector.multi_reduction <maximumf>, %565, %cst_178 [2] : vector<2x8x8xf32> to vector<2x8xf32>
    %567 = vector.shape_cast %566 : vector<2x8xf32> to vector<2x8x1xf32>
    %568 = vector.broadcast %567 : vector<2x8x1xf32> to vector<2x8x8xf32>
    %569 = arith.subf %565, %568 : vector<2x8x8xf32>
    %570 = math.exp %569 : vector<2x8x8xf32>
    %cst_179 = arith.constant dense<0.000000e+00> : vector<2x8xf32>
    %571 = vector.multi_reduction <add>, %570, %cst_179 [2] : vector<2x8x8xf32> to vector<2x8xf32>
    %572 = vector.shape_cast %571 : vector<2x8xf32> to vector<2x8x1xf32>
    %573 = tpu.reciprocal %572 {approx = true} : vector<2x8x1xf32> -> vector<2x8x1xf32>
    %574 = vector.broadcast %573 : vector<2x8x1xf32> to vector<2x8x8xf32>
    %575 = arith.mulf %570, %574 : vector<2x8x8xf32>
    "tpu.trace_start"() <{level = 10 : i32, message = "bqk,bkd->bqd"}> : () -> ()
    %cst_180 = arith.constant dense<0.000000e+00> : vector<2x8x8xf32>
    %576 = tpu.matmul %575, %562, %cst_180 {dimension_numbers = #tpu.dot_dimension_numbers<[2], [1], [1], [2], [0, 0, 0, 1, 1, 2], [0], [0]>} : vector<2x8x8xf32>, vector<2x8x8xf32>, vector<2x8x8xf32> -> vector<2x8x8xf32>
    "tpu.trace_stop"() : () -> ()
    %577 = vector.shape_cast %576 : vector<2x8x8xf32> to vector<16x8xf32>
    %578 = vector.extract_strided_slice %555 {offsets = [0, 0], sizes = [8, 32], strides = [1, 1]} : vector<32x32xf32> to vector<8x32xf32>
    %cst_181 = arith.constant dense<0.000000e+00> : vector<16x32xf32>
    %579 = tpu.matmul %577, %578, %cst_181 {dimension_numbers = #tpu.dot_dimension_numbers<[1], [0], [0], [1], [0, 0, 1, 1], [], []>} : vector<16x8xf32>, vector<8x32xf32>, vector<16x32xf32> -> vector<16x32xf32>
    %580 = arith.addf %556, %579 : vector<16x32xf32>
    %581 = vector.extract_strided_slice %551 {offsets = [0, 8], sizes = [16, 8], strides = [1, 1]} : vector<16x32xf32> to vector<16x8xf32>
    %582 = vector.shape_cast %581 : vector<16x8xf32> to vector<2x8x8xf32>
    %583 = vector.extract_strided_slice %552 {offsets = [0, 8], sizes = [16, 8], strides = [1, 1]} : vector<16x32xf32> to vector<16x8xf32>
    %584 = vector.shape_cast %583 : vector<16x8xf32> to vector<2x8x8xf32>
    %585 = vector.extract_strided_slice %553 {offsets = [0, 8], sizes = [16, 8], strides = [1, 1]} : vector<16x32xf32> to vector<16x8xf32>
    %586 = vector.shape_cast %585 : vector<16x8xf32> to vector<2x8x8xf32>
    "tpu.trace_start"() <{level = 10 : i32, message = "bqd,bkd->bqk"}> : () -> ()
    %cst_182 = arith.constant dense<0.000000e+00> : vector<2x8x8xf32>
    %587 = tpu.matmul %582, %584, %cst_182 {dimension_numbers = #tpu.dot_dimension_numbers<[2], [2], [1], [1], [0, 0, 0, 1, 1, 1], [0], [0]>} : vector<2x8x8xf32>, vector<2x8x8xf32>, vector<2x8x8xf32> -> vector<2x8x8xf32>
    "tpu.trace_stop"() : () -> ()
    %588 = vector.broadcast %9 : vector<2x1x8xf32> to vector<2x8x8xf32>
    %589 = arith.addf %587, %588 : vector<2x8x8xf32>
    %cst_183 = arith.constant dense<0xFF800000> : vector<2x8xf32>
    %590 = vector.multi_reduction <maximumf>, %589, %cst_183 [2] : vector<2x8x8xf32> to vector<2x8xf32>
    %591 = vector.shape_cast %590 : vector<2x8xf32> to vector<2x8x1xf32>
    %592 = vector.broadcast %591 : vector<2x8x1xf32> to vector<2x8x8xf32>
    %593 = arith.subf %589, %592 : vector<2x8x8xf32>
    %594 = math.exp %593 : vector<2x8x8xf32>
    %cst_184 = arith.constant dense<0.000000e+00> : vector<2x8xf32>
    %595 = vector.multi_reduction <add>, %594, %cst_184 [2] : vector<2x8x8xf32> to vector<2x8xf32>
    %596 = vector.shape_cast %595 : vector<2x8xf32> to vector<2x8x1xf32>
    %597 = tpu.reciprocal %596 {approx = true} : vector<2x8x1xf32> -> vector<2x8x1xf32>
    %598 = vector.broadcast %597 : vector<2x8x1xf32> to vector<2x8x8xf32>
    %599 = arith.mulf %594, %598 : vector<2x8x8xf32>
    "tpu.trace_start"() <{level = 10 : i32, message = "bqk,bkd->bqd"}> : () -> ()
    %cst_185 = arith.constant dense<0.000000e+00> : vector<2x8x8xf32>
    %600 = tpu.matmul %599, %586, %cst_185 {dimension_numbers = #tpu.dot_dimension_numbers<[2], [1], [1], [2], [0, 0, 0, 1, 1, 2], [0], [0]>} : vector<2x8x8xf32>, vector<2x8x8xf32>, vector<2x8x8xf32> -> vector<2x8x8xf32>
    "tpu.trace_stop"() : () -> ()
    %601 = vector.shape_cast %600 : vector<2x8x8xf32> to vector<16x8xf32>
    %602 = vector.extract_strided_slice %555 {offsets = [8, 0], sizes = [8, 32], strides = [1, 1]} : vector<32x32xf32> to vector<8x32xf32>
    %cst_186 = arith.constant dense<0.000000e+00> : vector<16x32xf32>
    %603 = tpu.matmul %601, %602, %cst_186 {dimension_numbers = #tpu.dot_dimension_numbers<[1], [0], [0], [1], [0, 0, 1, 1], [], []>} : vector<16x8xf32>, vector<8x32xf32>, vector<16x32xf32> -> vector<16x32xf32>
    %604 = arith.addf %580, %603 : vector<16x32xf32>
    %605 = vector.extract_strided_slice %551 {offsets = [0, 16], sizes = [16, 8], strides = [1, 1]} : vector<16x32xf32> to vector<16x8xf32>
    %606 = vector.shape_cast %605 : vector<16x8xf32> to vector<2x8x8xf32>
    %607 = vector.extract_strided_slice %552 {offsets = [0, 16], sizes = [16, 8], strides = [1, 1]} : vector<16x32xf32> to vector<16x8xf32>
    %608 = vector.shape_cast %607 : vector<16x8xf32> to vector<2x8x8xf32>
    %609 = vector.extract_strided_slice %553 {offsets = [0, 16], sizes = [16, 8], strides = [1, 1]} : vector<16x32xf32> to vector<16x8xf32>
    %610 = vector.shape_cast %609 : vector<16x8xf32> to vector<2x8x8xf32>
    "tpu.trace_start"() <{level = 10 : i32, message = "bqd,bkd->bqk"}> : () -> ()
    %cst_187 = arith.constant dense<0.000000e+00> : vector<2x8x8xf32>
    %611 = tpu.matmul %606, %608, %cst_187 {dimension_numbers = #tpu.dot_dimension_numbers<[2], [2], [1], [1], [0, 0, 0, 1, 1, 1], [0], [0]>} : vector<2x8x8xf32>, vector<2x8x8xf32>, vector<2x8x8xf32> -> vector<2x8x8xf32>
    "tpu.trace_stop"() : () -> ()
    %612 = vector.broadcast %9 : vector<2x1x8xf32> to vector<2x8x8xf32>
    %613 = arith.addf %611, %612 : vector<2x8x8xf32>
    %cst_188 = arith.constant dense<0xFF800000> : vector<2x8xf32>
    %614 = vector.multi_reduction <maximumf>, %613, %cst_188 [2] : vector<2x8x8xf32> to vector<2x8xf32>
    %615 = vector.shape_cast %614 : vector<2x8xf32> to vector<2x8x1xf32>
    %616 = vector.broadcast %615 : vector<2x8x1xf32> to vector<2x8x8xf32>
    %617 = arith.subf %613, %616 : vector<2x8x8xf32>
    %618 = math.exp %617 : vector<2x8x8xf32>
    %cst_189 = arith.constant dense<0.000000e+00> : vector<2x8xf32>
    %619 = vector.multi_reduction <add>, %618, %cst_189 [2] : vector<2x8x8xf32> to vector<2x8xf32>
    %620 = vector.shape_cast %619 : vector<2x8xf32> to vector<2x8x1xf32>
    %621 = tpu.reciprocal %620 {approx = true} : vector<2x8x1xf32> -> vector<2x8x1xf32>
    %622 = vector.broadcast %621 : vector<2x8x1xf32> to vector<2x8x8xf32>
    %623 = arith.mulf %618, %622 : vector<2x8x8xf32>
    "tpu.trace_start"() <{level = 10 : i32, message = "bqk,bkd->bqd"}> : () -> ()
    %cst_190 = arith.constant dense<0.000000e+00> : vector<2x8x8xf32>
    %624 = tpu.matmul %623, %610, %cst_190 {dimension_numbers = #tpu.dot_dimension_numbers<[2], [1], [1], [2], [0, 0, 0, 1, 1, 2], [0], [0]>} : vector<2x8x8xf32>, vector<2x8x8xf32>, vector<2x8x8xf32> -> vector<2x8x8xf32>
    "tpu.trace_stop"() : () -> ()
    %625 = vector.shape_cast %624 : vector<2x8x8xf32> to vector<16x8xf32>
    %626 = vector.extract_strided_slice %555 {offsets = [16, 0], sizes = [8, 32], strides = [1, 1]} : vector<32x32xf32> to vector<8x32xf32>
    %cst_191 = arith.constant dense<0.000000e+00> : vector<16x32xf32>
    %627 = tpu.matmul %625, %626, %cst_191 {dimension_numbers = #tpu.dot_dimension_numbers<[1], [0], [0], [1], [0, 0, 1, 1], [], []>} : vector<16x8xf32>, vector<8x32xf32>, vector<16x32xf32> -> vector<16x32xf32>
    %628 = arith.addf %604, %627 : vector<16x32xf32>
    %629 = vector.extract_strided_slice %551 {offsets = [0, 24], sizes = [16, 8], strides = [1, 1]} : vector<16x32xf32> to vector<16x8xf32>
    %630 = vector.shape_cast %629 : vector<16x8xf32> to vector<2x8x8xf32>
    %631 = vector.extract_strided_slice %552 {offsets = [0, 24], sizes = [16, 8], strides = [1, 1]} : vector<16x32xf32> to vector<16x8xf32>
    %632 = vector.shape_cast %631 : vector<16x8xf32> to vector<2x8x8xf32>
    %633 = vector.extract_strided_slice %553 {offsets = [0, 24], sizes = [16, 8], strides = [1, 1]} : vector<16x32xf32> to vector<16x8xf32>
    %634 = vector.shape_cast %633 : vector<16x8xf32> to vector<2x8x8xf32>
    "tpu.trace_start"() <{level = 10 : i32, message = "bqd,bkd->bqk"}> : () -> ()
    %cst_192 = arith.constant dense<0.000000e+00> : vector<2x8x8xf32>
    %635 = tpu.matmul %630, %632, %cst_192 {dimension_numbers = #tpu.dot_dimension_numbers<[2], [2], [1], [1], [0, 0, 0, 1, 1, 1], [0], [0]>} : vector<2x8x8xf32>, vector<2x8x8xf32>, vector<2x8x8xf32> -> vector<2x8x8xf32>
    "tpu.trace_stop"() : () -> ()
    %636 = vector.broadcast %9 : vector<2x1x8xf32> to vector<2x8x8xf32>
    %637 = arith.addf %635, %636 : vector<2x8x8xf32>
    %cst_193 = arith.constant dense<0xFF800000> : vector<2x8xf32>
    %638 = vector.multi_reduction <maximumf>, %637, %cst_193 [2] : vector<2x8x8xf32> to vector<2x8xf32>
    %639 = vector.shape_cast %638 : vector<2x8xf32> to vector<2x8x1xf32>
    %640 = vector.broadcast %639 : vector<2x8x1xf32> to vector<2x8x8xf32>
    %641 = arith.subf %637, %640 : vector<2x8x8xf32>
    %642 = math.exp %641 : vector<2x8x8xf32>
    %cst_194 = arith.constant dense<0.000000e+00> : vector<2x8xf32>
    %643 = vector.multi_reduction <add>, %642, %cst_194 [2] : vector<2x8x8xf32> to vector<2x8xf32>
    %644 = vector.shape_cast %643 : vector<2x8xf32> to vector<2x8x1xf32>
    %645 = tpu.reciprocal %644 {approx = true} : vector<2x8x1xf32> -> vector<2x8x1xf32>
    %646 = vector.broadcast %645 : vector<2x8x1xf32> to vector<2x8x8xf32>
    %647 = arith.mulf %642, %646 : vector<2x8x8xf32>
    "tpu.trace_start"() <{level = 10 : i32, message = "bqk,bkd->bqd"}> : () -> ()
    %cst_195 = arith.constant dense<0.000000e+00> : vector<2x8x8xf32>
    %648 = tpu.matmul %647, %634, %cst_195 {dimension_numbers = #tpu.dot_dimension_numbers<[2], [1], [1], [2], [0, 0, 0, 1, 1, 2], [0], [0]>} : vector<2x8x8xf32>, vector<2x8x8xf32>, vector<2x8x8xf32> -> vector<2x8x8xf32>
    "tpu.trace_stop"() : () -> ()
    %649 = vector.shape_cast %648 : vector<2x8x8xf32> to vector<16x8xf32>
    %650 = vector.extract_strided_slice %555 {offsets = [24, 0], sizes = [8, 32], strides = [1, 1]} : vector<32x32xf32> to vector<8x32xf32>
    %cst_196 = arith.constant dense<0.000000e+00> : vector<16x32xf32>
    %651 = tpu.matmul %649, %650, %cst_196 {dimension_numbers = #tpu.dot_dimension_numbers<[1], [0], [0], [1], [0, 0, 1, 1], [], []>} : vector<16x8xf32>, vector<8x32xf32>, vector<16x32xf32> -> vector<16x32xf32>
    %652 = arith.addf %628, %651 : vector<16x32xf32>
    %653 = arith.addf %652, %548 : vector<16x32xf32>
    %654 = vector.extract_strided_slice %422 {offsets = [2, 0], sizes = [1, 32], strides = [1, 1]} : vector<7x32xf32> to vector<1x32xf32>
    %655 = vector.extract_strided_slice %422 {offsets = [3, 0], sizes = [1, 32], strides = [1, 1]} : vector<7x32xf32> to vector<1x32xf32>
    %cst_197 = arith.constant dense<0.000000e+00> : vector<16xf32>
    %656 = vector.multi_reduction <add>, %653, %cst_197 [1] : vector<16x32xf32> to vector<16xf32>
    %657 = vector.shape_cast %656 : vector<16xf32> to vector<16x1xf32>
    %cst_198 = arith.constant 3.200000e+01 : f32
    %658 = vector.broadcast %cst_198 : f32 to vector<16x1xf32>
    %659 = arith.divf %657, %658 : vector<16x1xf32>
    %660 = vector.broadcast %659 : vector<16x1xf32> to vector<16x32xf32>
    %661 = arith.subf %653, %660 : vector<16x32xf32>
    %662 = arith.mulf %661, %661 : vector<16x32xf32>
    %cst_199 = arith.constant dense<0.000000e+00> : vector<16xf32>
    %663 = vector.multi_reduction <add>, %662, %cst_199 [1] : vector<16x32xf32> to vector<16xf32>
    %664 = vector.shape_cast %663 : vector<16xf32> to vector<16x1xf32>
    %cst_200 = arith.constant 3.200000e+01 : f32
    %665 = vector.broadcast %cst_200 : f32 to vector<16x1xf32>
    %666 = arith.divf %664, %665 : vector<16x1xf32>
    %667 = vector.broadcast %659 : vector<16x1xf32> to vector<16x32xf32>
    %668 = arith.subf %653, %667 : vector<16x32xf32>
    %cst_201 = arith.constant 9.99999997E-7 : f32
    %669 = vector.broadcast %cst_201 : f32 to vector<16x1xf32>
    %670 = arith.addf %666, %669 : vector<16x1xf32>
    %671 = math.rsqrt %670 : vector<16x1xf32>
    %672 = vector.broadcast %671 : vector<16x1xf32> to vector<16x32xf32>
    %673 = arith.mulf %668, %672 : vector<16x32xf32>
    %674 = vector.broadcast %654 : vector<1x32xf32> to vector<16x32xf32>
    %675 = arith.mulf %673, %674 : vector<16x32xf32>
    %676 = vector.broadcast %655 : vector<1x32xf32> to vector<16x32xf32>
    %677 = arith.addf %675, %676 : vector<16x32xf32>
    %c0_202 = arith.constant 0 : index
    %c0_203 = arith.constant 0 : index
    %c0_204 = arith.constant 0 : index
    %678 = vector.load %arg17[%c0_202, %c0_203, %c0_204] : memref<2x32x64xf32, #tpu.memory_space<vmem>>, vector<1x32x64xf32>
    %679 = vector.shape_cast %678 : vector<1x32x64xf32> to vector<32x64xf32>
    %cst_205 = arith.constant dense<0.000000e+00> : vector<16x64xf32>
    %680 = tpu.matmul %677, %679, %cst_205 {dimension_numbers = #tpu.dot_dimension_numbers<[1], [0], [0], [1], [0, 0, 1, 1], [], []>} : vector<16x32xf32>, vector<32x64xf32>, vector<16x64xf32> -> vector<16x64xf32>
    %c0_206 = arith.constant 0 : index
    %c0_207 = arith.constant 0 : index
    %c0_208 = arith.constant 0 : index
    %681 = vector.load %arg18[%c0_206, %c0_207, %c0_208] : memref<2x1x64xf32, #tpu.memory_space<vmem>>, vector<1x1x64xf32>
    %682 = vector.shape_cast %681 : vector<1x1x64xf32> to vector<1x64xf32>
    %683 = vector.broadcast %682 : vector<1x64xf32> to vector<16x64xf32>
    %684 = arith.addf %680, %683 : vector<16x64xf32>
    %cst_209 = arith.constant 0.000000e+00 : f32
    %685 = vector.broadcast %cst_209 : f32 to vector<16x64xf32>
    %686 = arith.maximumf %684, %685 : vector<16x64xf32>
    %c0_210 = arith.constant 0 : index
    %c0_211 = arith.constant 0 : index
    %c0_212 = arith.constant 0 : index
    %687 = vector.load %arg19[%c0_210, %c0_211, %c0_212] : memref<2x64x32xf32, #tpu.memory_space<vmem>>, vector<1x64x32xf32>
    %688 = vector.shape_cast %687 : vector<1x64x32xf32> to vector<64x32xf32>
    %cst_213 = arith.constant dense<0.000000e+00> : vector<16x32xf32>
    %689 = tpu.matmul %686, %688, %cst_213 {dimension_numbers = #tpu.dot_dimension_numbers<[1], [0], [0], [1], [0, 0, 1, 1], [], []>} : vector<16x64xf32>, vector<64x32xf32>, vector<16x32xf32> -> vector<16x32xf32>
    %690 = vector.extract_strided_slice %422 {offsets = [6, 0], sizes = [1, 32], strides = [1, 1]} : vector<7x32xf32> to vector<1x32xf32>
    %691 = vector.broadcast %690 : vector<1x32xf32> to vector<16x32xf32>
    %692 = arith.addf %689, %691 : vector<16x32xf32>
    %693 = arith.addf %692, %677 : vector<16x32xf32>
    %694 = vector.extract_strided_slice %422 {offsets = [4, 0], sizes = [1, 32], strides = [1, 1]} : vector<7x32xf32> to vector<1x32xf32>
    %695 = vector.extract_strided_slice %422 {offsets = [5, 0], sizes = [1, 32], strides = [1, 1]} : vector<7x32xf32> to vector<1x32xf32>
    %cst_214 = arith.constant dense<0.000000e+00> : vector<16xf32>
    %696 = vector.multi_reduction <add>, %693, %cst_214 [1] : vector<16x32xf32> to vector<16xf32>
    %697 = vector.shape_cast %696 : vector<16xf32> to vector<16x1xf32>
    %cst_215 = arith.constant 3.200000e+01 : f32
    %698 = vector.broadcast %cst_215 : f32 to vector<16x1xf32>
    %699 = arith.divf %697, %698 : vector<16x1xf32>
    %700 = vector.broadcast %699 : vector<16x1xf32> to vector<16x32xf32>
    %701 = arith.subf %693, %700 : vector<16x32xf32>
    %702 = arith.mulf %701, %701 : vector<16x32xf32>
    %cst_216 = arith.constant dense<0.000000e+00> : vector<16xf32>
    %703 = vector.multi_reduction <add>, %702, %cst_216 [1] : vector<16x32xf32> to vector<16xf32>
    %704 = vector.shape_cast %703 : vector<16xf32> to vector<16x1xf32>
    %cst_217 = arith.constant 3.200000e+01 : f32
    %705 = vector.broadcast %cst_217 : f32 to vector<16x1xf32>
    %706 = arith.divf %704, %705 : vector<16x1xf32>
    %707 = vector.broadcast %699 : vector<16x1xf32> to vector<16x32xf32>
    %708 = arith.subf %693, %707 : vector<16x32xf32>
    %cst_218 = arith.constant 9.99999997E-7 : f32
    %709 = vector.broadcast %cst_218 : f32 to vector<16x1xf32>
    %710 = arith.addf %706, %709 : vector<16x1xf32>
    %711 = math.rsqrt %710 : vector<16x1xf32>
    %712 = vector.broadcast %711 : vector<16x1xf32> to vector<16x32xf32>
    %713 = arith.mulf %708, %712 : vector<16x32xf32>
    %714 = vector.broadcast %694 : vector<1x32xf32> to vector<16x32xf32>
    %715 = arith.mulf %713, %714 : vector<16x32xf32>
    %716 = vector.broadcast %695 : vector<1x32xf32> to vector<16x32xf32>
    %717 = arith.addf %715, %716 : vector<16x32xf32>
    %c1_219 = arith.constant 1 : index
    %c0_220 = arith.constant 0 : index
    %c0_221 = arith.constant 0 : index
    %718 = vector.load %arg20[%c1_219, %c0_220, %c0_221] : memref<2x7x32xf32, #tpu.memory_space<vmem>>, vector<1x7x32xf32>
    %719 = vector.shape_cast %718 : vector<1x7x32xf32> to vector<7x32xf32>
    %c1_222 = arith.constant 1 : index
    %c0_223 = arith.constant 0 : index
    %c0_224 = arith.constant 0 : index
    %720 = vector.load %arg12[%c1_222, %c0_223, %c0_224] : memref<2x32x96xf32, #tpu.memory_space<vmem>>, vector<1x32x96xf32>
    %721 = vector.shape_cast %720 : vector<1x32x96xf32> to vector<32x96xf32>
    %cst_225 = arith.constant dense<0.000000e+00> : vector<16x96xf32>
    %722 = tpu.matmul %717, %721, %cst_225 {dimension_numbers = #tpu.dot_dimension_numbers<[1], [0], [0], [1], [0, 0, 1, 1], [], []>} : vector<16x32xf32>, vector<32x96xf32>, vector<16x96xf32> -> vector<16x96xf32>
    %723 = vector.extract_strided_slice %722 {offsets = [0, 0], sizes = [16, 32], strides = [1, 1]} : vector<16x96xf32> to vector<16x32xf32>
    %724 = vector.extract_strided_slice %722 {offsets = [0, 32], sizes = [16, 32], strides = [1, 1]} : vector<16x96xf32> to vector<16x32xf32>
    %725 = vector.extract_strided_slice %722 {offsets = [0, 64], sizes = [16, 32], strides = [1, 1]} : vector<16x96xf32> to vector<16x32xf32>
    %c1_226 = arith.constant 1 : index
    %c0_227 = arith.constant 0 : index
    %c0_228 = arith.constant 0 : index
    %726 = vector.load %arg13[%c1_226, %c0_227, %c0_228] : memref<2x32x32xf32, #tpu.memory_space<vmem>>, vector<1x32x32xf32>
    %727 = vector.shape_cast %726 : vector<1x32x32xf32> to vector<32x32xf32>
    %cst_229 = arith.constant 0.000000e+00 : f32
    %728 = vector.broadcast %cst_229 : f32 to vector<16x32xf32>
    %729 = vector.extract_strided_slice %723 {offsets = [0, 0], sizes = [16, 8], strides = [1, 1]} : vector<16x32xf32> to vector<16x8xf32>
    %730 = vector.shape_cast %729 : vector<16x8xf32> to vector<2x8x8xf32>
    %731 = vector.extract_strided_slice %724 {offsets = [0, 0], sizes = [16, 8], strides = [1, 1]} : vector<16x32xf32> to vector<16x8xf32>
    %732 = vector.shape_cast %731 : vector<16x8xf32> to vector<2x8x8xf32>
    %733 = vector.extract_strided_slice %725 {offsets = [0, 0], sizes = [16, 8], strides = [1, 1]} : vector<16x32xf32> to vector<16x8xf32>
    %734 = vector.shape_cast %733 : vector<16x8xf32> to vector<2x8x8xf32>
    "tpu.trace_start"() <{level = 10 : i32, message = "bqd,bkd->bqk"}> : () -> ()
    %cst_230 = arith.constant dense<0.000000e+00> : vector<2x8x8xf32>
    %735 = tpu.matmul %730, %732, %cst_230 {dimension_numbers = #tpu.dot_dimension_numbers<[2], [2], [1], [1], [0, 0, 0, 1, 1, 1], [0], [0]>} : vector<2x8x8xf32>, vector<2x8x8xf32>, vector<2x8x8xf32> -> vector<2x8x8xf32>
    "tpu.trace_stop"() : () -> ()
    %736 = arith.addf %735, %20 : vector<2x8x8xf32>
    %cst_231 = arith.constant dense<0xFF800000> : vector<2x8xf32>
    %737 = vector.multi_reduction <maximumf>, %736, %cst_231 [2] : vector<2x8x8xf32> to vector<2x8xf32>
    %738 = vector.shape_cast %737 : vector<2x8xf32> to vector<2x8x1xf32>
    %739 = vector.broadcast %738 : vector<2x8x1xf32> to vector<2x8x8xf32>
    %740 = arith.subf %736, %739 : vector<2x8x8xf32>
    %741 = math.exp %740 : vector<2x8x8xf32>
    %cst_232 = arith.constant dense<0.000000e+00> : vector<2x8xf32>
    %742 = vector.multi_reduction <add>, %741, %cst_232 [2] : vector<2x8x8xf32> to vector<2x8xf32>
    %743 = vector.shape_cast %742 : vector<2x8xf32> to vector<2x8x1xf32>
    %744 = tpu.reciprocal %743 {approx = true} : vector<2x8x1xf32> -> vector<2x8x1xf32>
    %745 = vector.broadcast %744 : vector<2x8x1xf32> to vector<2x8x8xf32>
    %746 = arith.mulf %741, %745 : vector<2x8x8xf32>
    "tpu.trace_start"() <{level = 10 : i32, message = "bqk,bkd->bqd"}> : () -> ()
    %cst_233 = arith.constant dense<0.000000e+00> : vector<2x8x8xf32>
    %747 = tpu.matmul %746, %734, %cst_233 {dimension_numbers = #tpu.dot_dimension_numbers<[2], [1], [1], [2], [0, 0, 0, 1, 1, 2], [0], [0]>} : vector<2x8x8xf32>, vector<2x8x8xf32>, vector<2x8x8xf32> -> vector<2x8x8xf32>
    "tpu.trace_stop"() : () -> ()
    %748 = vector.shape_cast %747 : vector<2x8x8xf32> to vector<16x8xf32>
    %749 = vector.extract_strided_slice %727 {offsets = [0, 0], sizes = [8, 32], strides = [1, 1]} : vector<32x32xf32> to vector<8x32xf32>
    %cst_234 = arith.constant dense<0.000000e+00> : vector<16x32xf32>
    %750 = tpu.matmul %748, %749, %cst_234 {dimension_numbers = #tpu.dot_dimension_numbers<[1], [0], [0], [1], [0, 0, 1, 1], [], []>} : vector<16x8xf32>, vector<8x32xf32>, vector<16x32xf32> -> vector<16x32xf32>
    %751 = arith.addf %728, %750 : vector<16x32xf32>
    %752 = vector.extract_strided_slice %723 {offsets = [0, 8], sizes = [16, 8], strides = [1, 1]} : vector<16x32xf32> to vector<16x8xf32>
    %753 = vector.shape_cast %752 : vector<16x8xf32> to vector<2x8x8xf32>
    %754 = vector.extract_strided_slice %724 {offsets = [0, 8], sizes = [16, 8], strides = [1, 1]} : vector<16x32xf32> to vector<16x8xf32>
    %755 = vector.shape_cast %754 : vector<16x8xf32> to vector<2x8x8xf32>
    %756 = vector.extract_strided_slice %725 {offsets = [0, 8], sizes = [16, 8], strides = [1, 1]} : vector<16x32xf32> to vector<16x8xf32>
    %757 = vector.shape_cast %756 : vector<16x8xf32> to vector<2x8x8xf32>
    "tpu.trace_start"() <{level = 10 : i32, message = "bqd,bkd->bqk"}> : () -> ()
    %cst_235 = arith.constant dense<0.000000e+00> : vector<2x8x8xf32>
    %758 = tpu.matmul %753, %755, %cst_235 {dimension_numbers = #tpu.dot_dimension_numbers<[2], [2], [1], [1], [0, 0, 0, 1, 1, 1], [0], [0]>} : vector<2x8x8xf32>, vector<2x8x8xf32>, vector<2x8x8xf32> -> vector<2x8x8xf32>
    "tpu.trace_stop"() : () -> ()
    %759 = arith.addf %758, %20 : vector<2x8x8xf32>
    %cst_236 = arith.constant dense<0xFF800000> : vector<2x8xf32>
    %760 = vector.multi_reduction <maximumf>, %759, %cst_236 [2] : vector<2x8x8xf32> to vector<2x8xf32>
    %761 = vector.shape_cast %760 : vector<2x8xf32> to vector<2x8x1xf32>
    %762 = vector.broadcast %761 : vector<2x8x1xf32> to vector<2x8x8xf32>
    %763 = arith.subf %759, %762 : vector<2x8x8xf32>
    %764 = math.exp %763 : vector<2x8x8xf32>
    %cst_237 = arith.constant dense<0.000000e+00> : vector<2x8xf32>
    %765 = vector.multi_reduction <add>, %764, %cst_237 [2] : vector<2x8x8xf32> to vector<2x8xf32>
    %766 = vector.shape_cast %765 : vector<2x8xf32> to vector<2x8x1xf32>
    %767 = tpu.reciprocal %766 {approx = true} : vector<2x8x1xf32> -> vector<2x8x1xf32>
    %768 = vector.broadcast %767 : vector<2x8x1xf32> to vector<2x8x8xf32>
    %769 = arith.mulf %764, %768 : vector<2x8x8xf32>
    "tpu.trace_start"() <{level = 10 : i32, message = "bqk,bkd->bqd"}> : () -> ()
    %cst_238 = arith.constant dense<0.000000e+00> : vector<2x8x8xf32>
    %770 = tpu.matmul %769, %757, %cst_238 {dimension_numbers = #tpu.dot_dimension_numbers<[2], [1], [1], [2], [0, 0, 0, 1, 1, 2], [0], [0]>} : vector<2x8x8xf32>, vector<2x8x8xf32>, vector<2x8x8xf32> -> vector<2x8x8xf32>
    "tpu.trace_stop"() : () -> ()
    %771 = vector.shape_cast %770 : vector<2x8x8xf32> to vector<16x8xf32>
    %772 = vector.extract_strided_slice %727 {offsets = [8, 0], sizes = [8, 32], strides = [1, 1]} : vector<32x32xf32> to vector<8x32xf32>
    %cst_239 = arith.constant dense<0.000000e+00> : vector<16x32xf32>
    %773 = tpu.matmul %771, %772, %cst_239 {dimension_numbers = #tpu.dot_dimension_numbers<[1], [0], [0], [1], [0, 0, 1, 1], [], []>} : vector<16x8xf32>, vector<8x32xf32>, vector<16x32xf32> -> vector<16x32xf32>
    %774 = arith.addf %751, %773 : vector<16x32xf32>
    %775 = vector.extract_strided_slice %723 {offsets = [0, 16], sizes = [16, 8], strides = [1, 1]} : vector<16x32xf32> to vector<16x8xf32>
    %776 = vector.shape_cast %775 : vector<16x8xf32> to vector<2x8x8xf32>
    %777 = vector.extract_strided_slice %724 {offsets = [0, 16], sizes = [16, 8], strides = [1, 1]} : vector<16x32xf32> to vector<16x8xf32>
    %778 = vector.shape_cast %777 : vector<16x8xf32> to vector<2x8x8xf32>
    %779 = vector.extract_strided_slice %725 {offsets = [0, 16], sizes = [16, 8], strides = [1, 1]} : vector<16x32xf32> to vector<16x8xf32>
    %780 = vector.shape_cast %779 : vector<16x8xf32> to vector<2x8x8xf32>
    "tpu.trace_start"() <{level = 10 : i32, message = "bqd,bkd->bqk"}> : () -> ()
    %cst_240 = arith.constant dense<0.000000e+00> : vector<2x8x8xf32>
    %781 = tpu.matmul %776, %778, %cst_240 {dimension_numbers = #tpu.dot_dimension_numbers<[2], [2], [1], [1], [0, 0, 0, 1, 1, 1], [0], [0]>} : vector<2x8x8xf32>, vector<2x8x8xf32>, vector<2x8x8xf32> -> vector<2x8x8xf32>
    "tpu.trace_stop"() : () -> ()
    %782 = arith.addf %781, %20 : vector<2x8x8xf32>
    %cst_241 = arith.constant dense<0xFF800000> : vector<2x8xf32>
    %783 = vector.multi_reduction <maximumf>, %782, %cst_241 [2] : vector<2x8x8xf32> to vector<2x8xf32>
    %784 = vector.shape_cast %783 : vector<2x8xf32> to vector<2x8x1xf32>
    %785 = vector.broadcast %784 : vector<2x8x1xf32> to vector<2x8x8xf32>
    %786 = arith.subf %782, %785 : vector<2x8x8xf32>
    %787 = math.exp %786 : vector<2x8x8xf32>
    %cst_242 = arith.constant dense<0.000000e+00> : vector<2x8xf32>
    %788 = vector.multi_reduction <add>, %787, %cst_242 [2] : vector<2x8x8xf32> to vector<2x8xf32>
    %789 = vector.shape_cast %788 : vector<2x8xf32> to vector<2x8x1xf32>
    %790 = tpu.reciprocal %789 {approx = true} : vector<2x8x1xf32> -> vector<2x8x1xf32>
    %791 = vector.broadcast %790 : vector<2x8x1xf32> to vector<2x8x8xf32>
    %792 = arith.mulf %787, %791 : vector<2x8x8xf32>
    "tpu.trace_start"() <{level = 10 : i32, message = "bqk,bkd->bqd"}> : () -> ()
    %cst_243 = arith.constant dense<0.000000e+00> : vector<2x8x8xf32>
    %793 = tpu.matmul %792, %780, %cst_243 {dimension_numbers = #tpu.dot_dimension_numbers<[2], [1], [1], [2], [0, 0, 0, 1, 1, 2], [0], [0]>} : vector<2x8x8xf32>, vector<2x8x8xf32>, vector<2x8x8xf32> -> vector<2x8x8xf32>
    "tpu.trace_stop"() : () -> ()
    %794 = vector.shape_cast %793 : vector<2x8x8xf32> to vector<16x8xf32>
    %795 = vector.extract_strided_slice %727 {offsets = [16, 0], sizes = [8, 32], strides = [1, 1]} : vector<32x32xf32> to vector<8x32xf32>
    %cst_244 = arith.constant dense<0.000000e+00> : vector<16x32xf32>
    %796 = tpu.matmul %794, %795, %cst_244 {dimension_numbers = #tpu.dot_dimension_numbers<[1], [0], [0], [1], [0, 0, 1, 1], [], []>} : vector<16x8xf32>, vector<8x32xf32>, vector<16x32xf32> -> vector<16x32xf32>
    %797 = arith.addf %774, %796 : vector<16x32xf32>
    %798 = vector.extract_strided_slice %723 {offsets = [0, 24], sizes = [16, 8], strides = [1, 1]} : vector<16x32xf32> to vector<16x8xf32>
    %799 = vector.shape_cast %798 : vector<16x8xf32> to vector<2x8x8xf32>
    %800 = vector.extract_strided_slice %724 {offsets = [0, 24], sizes = [16, 8], strides = [1, 1]} : vector<16x32xf32> to vector<16x8xf32>
    %801 = vector.shape_cast %800 : vector<16x8xf32> to vector<2x8x8xf32>
    %802 = vector.extract_strided_slice %725 {offsets = [0, 24], sizes = [16, 8], strides = [1, 1]} : vector<16x32xf32> to vector<16x8xf32>
    %803 = vector.shape_cast %802 : vector<16x8xf32> to vector<2x8x8xf32>
    "tpu.trace_start"() <{level = 10 : i32, message = "bqd,bkd->bqk"}> : () -> ()
    %cst_245 = arith.constant dense<0.000000e+00> : vector<2x8x8xf32>
    %804 = tpu.matmul %799, %801, %cst_245 {dimension_numbers = #tpu.dot_dimension_numbers<[2], [2], [1], [1], [0, 0, 0, 1, 1, 1], [0], [0]>} : vector<2x8x8xf32>, vector<2x8x8xf32>, vector<2x8x8xf32> -> vector<2x8x8xf32>
    "tpu.trace_stop"() : () -> ()
    %805 = arith.addf %804, %20 : vector<2x8x8xf32>
    %cst_246 = arith.constant dense<0xFF800000> : vector<2x8xf32>
    %806 = vector.multi_reduction <maximumf>, %805, %cst_246 [2] : vector<2x8x8xf32> to vector<2x8xf32>
    %807 = vector.shape_cast %806 : vector<2x8xf32> to vector<2x8x1xf32>
    %808 = vector.broadcast %807 : vector<2x8x1xf32> to vector<2x8x8xf32>
    %809 = arith.subf %805, %808 : vector<2x8x8xf32>
    %810 = math.exp %809 : vector<2x8x8xf32>
    %cst_247 = arith.constant dense<0.000000e+00> : vector<2x8xf32>
    %811 = vector.multi_reduction <add>, %810, %cst_247 [2] : vector<2x8x8xf32> to vector<2x8xf32>
    %812 = vector.shape_cast %811 : vector<2x8xf32> to vector<2x8x1xf32>
    %813 = tpu.reciprocal %812 {approx = true} : vector<2x8x1xf32> -> vector<2x8x1xf32>
    %814 = vector.broadcast %813 : vector<2x8x1xf32> to vector<2x8x8xf32>
    %815 = arith.mulf %810, %814 : vector<2x8x8xf32>
    "tpu.trace_start"() <{level = 10 : i32, message = "bqk,bkd->bqd"}> : () -> ()
    %cst_248 = arith.constant dense<0.000000e+00> : vector<2x8x8xf32>
    %816 = tpu.matmul %815, %803, %cst_248 {dimension_numbers = #tpu.dot_dimension_numbers<[2], [1], [1], [2], [0, 0, 0, 1, 1, 2], [0], [0]>} : vector<2x8x8xf32>, vector<2x8x8xf32>, vector<2x8x8xf32> -> vector<2x8x8xf32>
    "tpu.trace_stop"() : () -> ()
    %817 = vector.shape_cast %816 : vector<2x8x8xf32> to vector<16x8xf32>
    %818 = vector.extract_strided_slice %727 {offsets = [24, 0], sizes = [8, 32], strides = [1, 1]} : vector<32x32xf32> to vector<8x32xf32>
    %cst_249 = arith.constant dense<0.000000e+00> : vector<16x32xf32>
    %819 = tpu.matmul %817, %818, %cst_249 {dimension_numbers = #tpu.dot_dimension_numbers<[1], [0], [0], [1], [0, 0, 1, 1], [], []>} : vector<16x8xf32>, vector<8x32xf32>, vector<16x32xf32> -> vector<16x32xf32>
    %820 = arith.addf %797, %819 : vector<16x32xf32>
    %821 = arith.addf %820, %717 : vector<16x32xf32>
    %822 = vector.extract_strided_slice %719 {offsets = [0, 0], sizes = [1, 32], strides = [1, 1]} : vector<7x32xf32> to vector<1x32xf32>
    %823 = vector.extract_strided_slice %719 {offsets = [1, 0], sizes = [1, 32], strides = [1, 1]} : vector<7x32xf32> to vector<1x32xf32>
    %cst_250 = arith.constant dense<0.000000e+00> : vector<16xf32>
    %824 = vector.multi_reduction <add>, %821, %cst_250 [1] : vector<16x32xf32> to vector<16xf32>
    %825 = vector.shape_cast %824 : vector<16xf32> to vector<16x1xf32>
    %cst_251 = arith.constant 3.200000e+01 : f32
    %826 = vector.broadcast %cst_251 : f32 to vector<16x1xf32>
    %827 = arith.divf %825, %826 : vector<16x1xf32>
    %828 = vector.broadcast %827 : vector<16x1xf32> to vector<16x32xf32>
    %829 = arith.subf %821, %828 : vector<16x32xf32>
    %830 = arith.mulf %829, %829 : vector<16x32xf32>
    %cst_252 = arith.constant dense<0.000000e+00> : vector<16xf32>
    %831 = vector.multi_reduction <add>, %830, %cst_252 [1] : vector<16x32xf32> to vector<16xf32>
    %832 = vector.shape_cast %831 : vector<16xf32> to vector<16x1xf32>
    %cst_253 = arith.constant 3.200000e+01 : f32
    %833 = vector.broadcast %cst_253 : f32 to vector<16x1xf32>
    %834 = arith.divf %832, %833 : vector<16x1xf32>
    %835 = vector.broadcast %827 : vector<16x1xf32> to vector<16x32xf32>
    %836 = arith.subf %821, %835 : vector<16x32xf32>
    %cst_254 = arith.constant 9.99999997E-7 : f32
    %837 = vector.broadcast %cst_254 : f32 to vector<16x1xf32>
    %838 = arith.addf %834, %837 : vector<16x1xf32>
    %839 = math.rsqrt %838 : vector<16x1xf32>
    %840 = vector.broadcast %839 : vector<16x1xf32> to vector<16x32xf32>
    %841 = arith.mulf %836, %840 : vector<16x32xf32>
    %842 = vector.broadcast %822 : vector<1x32xf32> to vector<16x32xf32>
    %843 = arith.mulf %841, %842 : vector<16x32xf32>
    %844 = vector.broadcast %823 : vector<1x32xf32> to vector<16x32xf32>
    %845 = arith.addf %843, %844 : vector<16x32xf32>
    %c1_255 = arith.constant 1 : index
    %c0_256 = arith.constant 0 : index
    %c0_257 = arith.constant 0 : index
    %846 = vector.load %arg14[%c1_255, %c0_256, %c0_257] : memref<2x32x32xf32, #tpu.memory_space<vmem>>, vector<1x32x32xf32>
    %847 = vector.shape_cast %846 : vector<1x32x32xf32> to vector<32x32xf32>
    %cst_258 = arith.constant dense<0.000000e+00> : vector<16x32xf32>
    %848 = tpu.matmul %845, %847, %cst_258 {dimension_numbers = #tpu.dot_dimension_numbers<[1], [0], [0], [1], [0, 0, 1, 1], [], []>} : vector<16x32xf32>, vector<32x32xf32>, vector<16x32xf32> -> vector<16x32xf32>
    %849 = vector.extract_strided_slice %395 {offsets = [0, 64], sizes = [16, 32], strides = [1, 1]} : vector<16x128xf32> to vector<16x32xf32>
    %850 = vector.extract_strided_slice %395 {offsets = [0, 96], sizes = [16, 32], strides = [1, 1]} : vector<16x128xf32> to vector<16x32xf32>
    %c1_259 = arith.constant 1 : index
    %c0_260 = arith.constant 0 : index
    %c0_261 = arith.constant 0 : index
    %851 = vector.load %arg16[%c1_259, %c0_260, %c0_261] : memref<2x32x32xf32, #tpu.memory_space<vmem>>, vector<1x32x32xf32>
    %852 = vector.shape_cast %851 : vector<1x32x32xf32> to vector<32x32xf32>
    %cst_262 = arith.constant 0.000000e+00 : f32
    %853 = vector.broadcast %cst_262 : f32 to vector<16x32xf32>
    %854 = vector.extract_strided_slice %848 {offsets = [0, 0], sizes = [16, 8], strides = [1, 1]} : vector<16x32xf32> to vector<16x8xf32>
    %855 = vector.shape_cast %854 : vector<16x8xf32> to vector<2x8x8xf32>
    %856 = vector.extract_strided_slice %849 {offsets = [0, 0], sizes = [16, 8], strides = [1, 1]} : vector<16x32xf32> to vector<16x8xf32>
    %857 = vector.shape_cast %856 : vector<16x8xf32> to vector<2x8x8xf32>
    %858 = vector.extract_strided_slice %850 {offsets = [0, 0], sizes = [16, 8], strides = [1, 1]} : vector<16x32xf32> to vector<16x8xf32>
    %859 = vector.shape_cast %858 : vector<16x8xf32> to vector<2x8x8xf32>
    "tpu.trace_start"() <{level = 10 : i32, message = "bqd,bkd->bqk"}> : () -> ()
    %cst_263 = arith.constant dense<0.000000e+00> : vector<2x8x8xf32>
    %860 = tpu.matmul %855, %857, %cst_263 {dimension_numbers = #tpu.dot_dimension_numbers<[2], [2], [1], [1], [0, 0, 0, 1, 1, 1], [0], [0]>} : vector<2x8x8xf32>, vector<2x8x8xf32>, vector<2x8x8xf32> -> vector<2x8x8xf32>
    "tpu.trace_stop"() : () -> ()
    %861 = vector.broadcast %9 : vector<2x1x8xf32> to vector<2x8x8xf32>
    %862 = arith.addf %860, %861 : vector<2x8x8xf32>
    %cst_264 = arith.constant dense<0xFF800000> : vector<2x8xf32>
    %863 = vector.multi_reduction <maximumf>, %862, %cst_264 [2] : vector<2x8x8xf32> to vector<2x8xf32>
    %864 = vector.shape_cast %863 : vector<2x8xf32> to vector<2x8x1xf32>
    %865 = vector.broadcast %864 : vector<2x8x1xf32> to vector<2x8x8xf32>
    %866 = arith.subf %862, %865 : vector<2x8x8xf32>
    %867 = math.exp %866 : vector<2x8x8xf32>
    %cst_265 = arith.constant dense<0.000000e+00> : vector<2x8xf32>
    %868 = vector.multi_reduction <add>, %867, %cst_265 [2] : vector<2x8x8xf32> to vector<2x8xf32>
    %869 = vector.shape_cast %868 : vector<2x8xf32> to vector<2x8x1xf32>
    %870 = tpu.reciprocal %869 {approx = true} : vector<2x8x1xf32> -> vector<2x8x1xf32>
    %871 = vector.broadcast %870 : vector<2x8x1xf32> to vector<2x8x8xf32>
    %872 = arith.mulf %867, %871 : vector<2x8x8xf32>
    "tpu.trace_start"() <{level = 10 : i32, message = "bqk,bkd->bqd"}> : () -> ()
    %cst_266 = arith.constant dense<0.000000e+00> : vector<2x8x8xf32>
    %873 = tpu.matmul %872, %859, %cst_266 {dimension_numbers = #tpu.dot_dimension_numbers<[2], [1], [1], [2], [0, 0, 0, 1, 1, 2], [0], [0]>} : vector<2x8x8xf32>, vector<2x8x8xf32>, vector<2x8x8xf32> -> vector<2x8x8xf32>
    "tpu.trace_stop"() : () -> ()
    %874 = vector.shape_cast %873 : vector<2x8x8xf32> to vector<16x8xf32>
    %875 = vector.extract_strided_slice %852 {offsets = [0, 0], sizes = [8, 32], strides = [1, 1]} : vector<32x32xf32> to vector<8x32xf32>
    %cst_267 = arith.constant dense<0.000000e+00> : vector<16x32xf32>
    %876 = tpu.matmul %874, %875, %cst_267 {dimension_numbers = #tpu.dot_dimension_numbers<[1], [0], [0], [1], [0, 0, 1, 1], [], []>} : vector<16x8xf32>, vector<8x32xf32>, vector<16x32xf32> -> vector<16x32xf32>
    %877 = arith.addf %853, %876 : vector<16x32xf32>
    %878 = vector.extract_strided_slice %848 {offsets = [0, 8], sizes = [16, 8], strides = [1, 1]} : vector<16x32xf32> to vector<16x8xf32>
    %879 = vector.shape_cast %878 : vector<16x8xf32> to vector<2x8x8xf32>
    %880 = vector.extract_strided_slice %849 {offsets = [0, 8], sizes = [16, 8], strides = [1, 1]} : vector<16x32xf32> to vector<16x8xf32>
    %881 = vector.shape_cast %880 : vector<16x8xf32> to vector<2x8x8xf32>
    %882 = vector.extract_strided_slice %850 {offsets = [0, 8], sizes = [16, 8], strides = [1, 1]} : vector<16x32xf32> to vector<16x8xf32>
    %883 = vector.shape_cast %882 : vector<16x8xf32> to vector<2x8x8xf32>
    "tpu.trace_start"() <{level = 10 : i32, message = "bqd,bkd->bqk"}> : () -> ()
    %cst_268 = arith.constant dense<0.000000e+00> : vector<2x8x8xf32>
    %884 = tpu.matmul %879, %881, %cst_268 {dimension_numbers = #tpu.dot_dimension_numbers<[2], [2], [1], [1], [0, 0, 0, 1, 1, 1], [0], [0]>} : vector<2x8x8xf32>, vector<2x8x8xf32>, vector<2x8x8xf32> -> vector<2x8x8xf32>
    "tpu.trace_stop"() : () -> ()
    %885 = vector.broadcast %9 : vector<2x1x8xf32> to vector<2x8x8xf32>
    %886 = arith.addf %884, %885 : vector<2x8x8xf32>
    %cst_269 = arith.constant dense<0xFF800000> : vector<2x8xf32>
    %887 = vector.multi_reduction <maximumf>, %886, %cst_269 [2] : vector<2x8x8xf32> to vector<2x8xf32>
    %888 = vector.shape_cast %887 : vector<2x8xf32> to vector<2x8x1xf32>
    %889 = vector.broadcast %888 : vector<2x8x1xf32> to vector<2x8x8xf32>
    %890 = arith.subf %886, %889 : vector<2x8x8xf32>
    %891 = math.exp %890 : vector<2x8x8xf32>
    %cst_270 = arith.constant dense<0.000000e+00> : vector<2x8xf32>
    %892 = vector.multi_reduction <add>, %891, %cst_270 [2] : vector<2x8x8xf32> to vector<2x8xf32>
    %893 = vector.shape_cast %892 : vector<2x8xf32> to vector<2x8x1xf32>
    %894 = tpu.reciprocal %893 {approx = true} : vector<2x8x1xf32> -> vector<2x8x1xf32>
    %895 = vector.broadcast %894 : vector<2x8x1xf32> to vector<2x8x8xf32>
    %896 = arith.mulf %891, %895 : vector<2x8x8xf32>
    "tpu.trace_start"() <{level = 10 : i32, message = "bqk,bkd->bqd"}> : () -> ()
    %cst_271 = arith.constant dense<0.000000e+00> : vector<2x8x8xf32>
    %897 = tpu.matmul %896, %883, %cst_271 {dimension_numbers = #tpu.dot_dimension_numbers<[2], [1], [1], [2], [0, 0, 0, 1, 1, 2], [0], [0]>} : vector<2x8x8xf32>, vector<2x8x8xf32>, vector<2x8x8xf32> -> vector<2x8x8xf32>
    "tpu.trace_stop"() : () -> ()
    %898 = vector.shape_cast %897 : vector<2x8x8xf32> to vector<16x8xf32>
    %899 = vector.extract_strided_slice %852 {offsets = [8, 0], sizes = [8, 32], strides = [1, 1]} : vector<32x32xf32> to vector<8x32xf32>
    %cst_272 = arith.constant dense<0.000000e+00> : vector<16x32xf32>
    %900 = tpu.matmul %898, %899, %cst_272 {dimension_numbers = #tpu.dot_dimension_numbers<[1], [0], [0], [1], [0, 0, 1, 1], [], []>} : vector<16x8xf32>, vector<8x32xf32>, vector<16x32xf32> -> vector<16x32xf32>
    %901 = arith.addf %877, %900 : vector<16x32xf32>
    %902 = vector.extract_strided_slice %848 {offsets = [0, 16], sizes = [16, 8], strides = [1, 1]} : vector<16x32xf32> to vector<16x8xf32>
    %903 = vector.shape_cast %902 : vector<16x8xf32> to vector<2x8x8xf32>
    %904 = vector.extract_strided_slice %849 {offsets = [0, 16], sizes = [16, 8], strides = [1, 1]} : vector<16x32xf32> to vector<16x8xf32>
    %905 = vector.shape_cast %904 : vector<16x8xf32> to vector<2x8x8xf32>
    %906 = vector.extract_strided_slice %850 {offsets = [0, 16], sizes = [16, 8], strides = [1, 1]} : vector<16x32xf32> to vector<16x8xf32>
    %907 = vector.shape_cast %906 : vector<16x8xf32> to vector<2x8x8xf32>
    "tpu.trace_start"() <{level = 10 : i32, message = "bqd,bkd->bqk"}> : () -> ()
    %cst_273 = arith.constant dense<0.000000e+00> : vector<2x8x8xf32>
    %908 = tpu.matmul %903, %905, %cst_273 {dimension_numbers = #tpu.dot_dimension_numbers<[2], [2], [1], [1], [0, 0, 0, 1, 1, 1], [0], [0]>} : vector<2x8x8xf32>, vector<2x8x8xf32>, vector<2x8x8xf32> -> vector<2x8x8xf32>
    "tpu.trace_stop"() : () -> ()
    %909 = vector.broadcast %9 : vector<2x1x8xf32> to vector<2x8x8xf32>
    %910 = arith.addf %908, %909 : vector<2x8x8xf32>
    %cst_274 = arith.constant dense<0xFF800000> : vector<2x8xf32>
    %911 = vector.multi_reduction <maximumf>, %910, %cst_274 [2] : vector<2x8x8xf32> to vector<2x8xf32>
    %912 = vector.shape_cast %911 : vector<2x8xf32> to vector<2x8x1xf32>
    %913 = vector.broadcast %912 : vector<2x8x1xf32> to vector<2x8x8xf32>
    %914 = arith.subf %910, %913 : vector<2x8x8xf32>
    %915 = math.exp %914 : vector<2x8x8xf32>
    %cst_275 = arith.constant dense<0.000000e+00> : vector<2x8xf32>
    %916 = vector.multi_reduction <add>, %915, %cst_275 [2] : vector<2x8x8xf32> to vector<2x8xf32>
    %917 = vector.shape_cast %916 : vector<2x8xf32> to vector<2x8x1xf32>
    %918 = tpu.reciprocal %917 {approx = true} : vector<2x8x1xf32> -> vector<2x8x1xf32>
    %919 = vector.broadcast %918 : vector<2x8x1xf32> to vector<2x8x8xf32>
    %920 = arith.mulf %915, %919 : vector<2x8x8xf32>
    "tpu.trace_start"() <{level = 10 : i32, message = "bqk,bkd->bqd"}> : () -> ()
    %cst_276 = arith.constant dense<0.000000e+00> : vector<2x8x8xf32>
    %921 = tpu.matmul %920, %907, %cst_276 {dimension_numbers = #tpu.dot_dimension_numbers<[2], [1], [1], [2], [0, 0, 0, 1, 1, 2], [0], [0]>} : vector<2x8x8xf32>, vector<2x8x8xf32>, vector<2x8x8xf32> -> vector<2x8x8xf32>
    "tpu.trace_stop"() : () -> ()
    %922 = vector.shape_cast %921 : vector<2x8x8xf32> to vector<16x8xf32>
    %923 = vector.extract_strided_slice %852 {offsets = [16, 0], sizes = [8, 32], strides = [1, 1]} : vector<32x32xf32> to vector<8x32xf32>
    %cst_277 = arith.constant dense<0.000000e+00> : vector<16x32xf32>
    %924 = tpu.matmul %922, %923, %cst_277 {dimension_numbers = #tpu.dot_dimension_numbers<[1], [0], [0], [1], [0, 0, 1, 1], [], []>} : vector<16x8xf32>, vector<8x32xf32>, vector<16x32xf32> -> vector<16x32xf32>
    %925 = arith.addf %901, %924 : vector<16x32xf32>
    %926 = vector.extract_strided_slice %848 {offsets = [0, 24], sizes = [16, 8], strides = [1, 1]} : vector<16x32xf32> to vector<16x8xf32>
    %927 = vector.shape_cast %926 : vector<16x8xf32> to vector<2x8x8xf32>
    %928 = vector.extract_strided_slice %849 {offsets = [0, 24], sizes = [16, 8], strides = [1, 1]} : vector<16x32xf32> to vector<16x8xf32>
    %929 = vector.shape_cast %928 : vector<16x8xf32> to vector<2x8x8xf32>
    %930 = vector.extract_strided_slice %850 {offsets = [0, 24], sizes = [16, 8], strides = [1, 1]} : vector<16x32xf32> to vector<16x8xf32>
    %931 = vector.shape_cast %930 : vector<16x8xf32> to vector<2x8x8xf32>
    "tpu.trace_start"() <{level = 10 : i32, message = "bqd,bkd->bqk"}> : () -> ()
    %cst_278 = arith.constant dense<0.000000e+00> : vector<2x8x8xf32>
    %932 = tpu.matmul %927, %929, %cst_278 {dimension_numbers = #tpu.dot_dimension_numbers<[2], [2], [1], [1], [0, 0, 0, 1, 1, 1], [0], [0]>} : vector<2x8x8xf32>, vector<2x8x8xf32>, vector<2x8x8xf32> -> vector<2x8x8xf32>
    "tpu.trace_stop"() : () -> ()
    %933 = vector.broadcast %9 : vector<2x1x8xf32> to vector<2x8x8xf32>
    %934 = arith.addf %932, %933 : vector<2x8x8xf32>
    %cst_279 = arith.constant dense<0xFF800000> : vector<2x8xf32>
    %935 = vector.multi_reduction <maximumf>, %934, %cst_279 [2] : vector<2x8x8xf32> to vector<2x8xf32>
    %936 = vector.shape_cast %935 : vector<2x8xf32> to vector<2x8x1xf32>
    %937 = vector.broadcast %936 : vector<2x8x1xf32> to vector<2x8x8xf32>
    %938 = arith.subf %934, %937 : vector<2x8x8xf32>
    %939 = math.exp %938 : vector<2x8x8xf32>
    %cst_280 = arith.constant dense<0.000000e+00> : vector<2x8xf32>
    %940 = vector.multi_reduction <add>, %939, %cst_280 [2] : vector<2x8x8xf32> to vector<2x8xf32>
    %941 = vector.shape_cast %940 : vector<2x8xf32> to vector<2x8x1xf32>
    %942 = tpu.reciprocal %941 {approx = true} : vector<2x8x1xf32> -> vector<2x8x1xf32>
    %943 = vector.broadcast %942 : vector<2x8x1xf32> to vector<2x8x8xf32>
    %944 = arith.mulf %939, %943 : vector<2x8x8xf32>
    "tpu.trace_start"() <{level = 10 : i32, message = "bqk,bkd->bqd"}> : () -> ()
    %cst_281 = arith.constant dense<0.000000e+00> : vector<2x8x8xf32>
    %945 = tpu.matmul %944, %931, %cst_281 {dimension_numbers = #tpu.dot_dimension_numbers<[2], [1], [1], [2], [0, 0, 0, 1, 1, 2], [0], [0]>} : vector<2x8x8xf32>, vector<2x8x8xf32>, vector<2x8x8xf32> -> vector<2x8x8xf32>
    "tpu.trace_stop"() : () -> ()
    %946 = vector.shape_cast %945 : vector<2x8x8xf32> to vector<16x8xf32>
    %947 = vector.extract_strided_slice %852 {offsets = [24, 0], sizes = [8, 32], strides = [1, 1]} : vector<32x32xf32> to vector<8x32xf32>
    %cst_282 = arith.constant dense<0.000000e+00> : vector<16x32xf32>
    %948 = tpu.matmul %946, %947, %cst_282 {dimension_numbers = #tpu.dot_dimension_numbers<[1], [0], [0], [1], [0, 0, 1, 1], [], []>} : vector<16x8xf32>, vector<8x32xf32>, vector<16x32xf32> -> vector<16x32xf32>
    %949 = arith.addf %925, %948 : vector<16x32xf32>
    %950 = arith.addf %949, %845 : vector<16x32xf32>
    %951 = vector.extract_strided_slice %719 {offsets = [2, 0], sizes = [1, 32], strides = [1, 1]} : vector<7x32xf32> to vector<1x32xf32>
    %952 = vector.extract_strided_slice %719 {offsets = [3, 0], sizes = [1, 32], strides = [1, 1]} : vector<7x32xf32> to vector<1x32xf32>
    %cst_283 = arith.constant dense<0.000000e+00> : vector<16xf32>
    %953 = vector.multi_reduction <add>, %950, %cst_283 [1] : vector<16x32xf32> to vector<16xf32>
    %954 = vector.shape_cast %953 : vector<16xf32> to vector<16x1xf32>
    %cst_284 = arith.constant 3.200000e+01 : f32
    %955 = vector.broadcast %cst_284 : f32 to vector<16x1xf32>
    %956 = arith.divf %954, %955 : vector<16x1xf32>
    %957 = vector.broadcast %956 : vector<16x1xf32> to vector<16x32xf32>
    %958 = arith.subf %950, %957 : vector<16x32xf32>
    %959 = arith.mulf %958, %958 : vector<16x32xf32>
    %cst_285 = arith.constant dense<0.000000e+00> : vector<16xf32>
    %960 = vector.multi_reduction <add>, %959, %cst_285 [1] : vector<16x32xf32> to vector<16xf32>
    %961 = vector.shape_cast %960 : vector<16xf32> to vector<16x1xf32>
    %cst_286 = arith.constant 3.200000e+01 : f32
    %962 = vector.broadcast %cst_286 : f32 to vector<16x1xf32>
    %963 = arith.divf %961, %962 : vector<16x1xf32>
    %964 = vector.broadcast %956 : vector<16x1xf32> to vector<16x32xf32>
    %965 = arith.subf %950, %964 : vector<16x32xf32>
    %cst_287 = arith.constant 9.99999997E-7 : f32
    %966 = vector.broadcast %cst_287 : f32 to vector<16x1xf32>
    %967 = arith.addf %963, %966 : vector<16x1xf32>
    %968 = math.rsqrt %967 : vector<16x1xf32>
    %969 = vector.broadcast %968 : vector<16x1xf32> to vector<16x32xf32>
    %970 = arith.mulf %965, %969 : vector<16x32xf32>
    %971 = vector.broadcast %951 : vector<1x32xf32> to vector<16x32xf32>
    %972 = arith.mulf %970, %971 : vector<16x32xf32>
    %973 = vector.broadcast %952 : vector<1x32xf32> to vector<16x32xf32>
    %974 = arith.addf %972, %973 : vector<16x32xf32>
    %c1_288 = arith.constant 1 : index
    %c0_289 = arith.constant 0 : index
    %c0_290 = arith.constant 0 : index
    %975 = vector.load %arg17[%c1_288, %c0_289, %c0_290] : memref<2x32x64xf32, #tpu.memory_space<vmem>>, vector<1x32x64xf32>
    %976 = vector.shape_cast %975 : vector<1x32x64xf32> to vector<32x64xf32>
    %cst_291 = arith.constant dense<0.000000e+00> : vector<16x64xf32>
    %977 = tpu.matmul %974, %976, %cst_291 {dimension_numbers = #tpu.dot_dimension_numbers<[1], [0], [0], [1], [0, 0, 1, 1], [], []>} : vector<16x32xf32>, vector<32x64xf32>, vector<16x64xf32> -> vector<16x64xf32>
    %c1_292 = arith.constant 1 : index
    %c0_293 = arith.constant 0 : index
    %c0_294 = arith.constant 0 : index
    %978 = vector.load %arg18[%c1_292, %c0_293, %c0_294] : memref<2x1x64xf32, #tpu.memory_space<vmem>>, vector<1x1x64xf32>
    %979 = vector.shape_cast %978 : vector<1x1x64xf32> to vector<1x64xf32>
    %980 = vector.broadcast %979 : vector<1x64xf32> to vector<16x64xf32>
    %981 = arith.addf %977, %980 : vector<16x64xf32>
    %cst_295 = arith.constant 0.000000e+00 : f32
    %982 = vector.broadcast %cst_295 : f32 to vector<16x64xf32>
    %983 = arith.maximumf %981, %982 : vector<16x64xf32>
    %c1_296 = arith.constant 1 : index
    %c0_297 = arith.constant 0 : index
    %c0_298 = arith.constant 0 : index
    %984 = vector.load %arg19[%c1_296, %c0_297, %c0_298] : memref<2x64x32xf32, #tpu.memory_space<vmem>>, vector<1x64x32xf32>
    %985 = vector.shape_cast %984 : vector<1x64x32xf32> to vector<64x32xf32>
    %cst_299 = arith.constant dense<0.000000e+00> : vector<16x32xf32>
    %986 = tpu.matmul %983, %985, %cst_299 {dimension_numbers = #tpu.dot_dimension_numbers<[1], [0], [0], [1], [0, 0, 1, 1], [], []>} : vector<16x64xf32>, vector<64x32xf32>, vector<16x32xf32> -> vector<16x32xf32>
    %987 = vector.extract_strided_slice %719 {offsets = [6, 0], sizes = [1, 32], strides = [1, 1]} : vector<7x32xf32> to vector<1x32xf32>
    %988 = vector.broadcast %987 : vector<1x32xf32> to vector<16x32xf32>
    %989 = arith.addf %986, %988 : vector<16x32xf32>
    %990 = arith.addf %989, %974 : vector<16x32xf32>
    %991 = vector.extract_strided_slice %719 {offsets = [4, 0], sizes = [1, 32], strides = [1, 1]} : vector<7x32xf32> to vector<1x32xf32>
    %992 = vector.extract_strided_slice %719 {offsets = [5, 0], sizes = [1, 32], strides = [1, 1]} : vector<7x32xf32> to vector<1x32xf32>
    %cst_300 = arith.constant dense<0.000000e+00> : vector<16xf32>
    %993 = vector.multi_reduction <add>, %990, %cst_300 [1] : vector<16x32xf32> to vector<16xf32>
    %994 = vector.shape_cast %993 : vector<16xf32> to vector<16x1xf32>
    %cst_301 = arith.constant 3.200000e+01 : f32
    %995 = vector.broadcast %cst_301 : f32 to vector<16x1xf32>
    %996 = arith.divf %994, %995 : vector<16x1xf32>
    %997 = vector.broadcast %996 : vector<16x1xf32> to vector<16x32xf32>
    %998 = arith.subf %990, %997 : vector<16x32xf32>
    %999 = arith.mulf %998, %998 : vector<16x32xf32>
    %cst_302 = arith.constant dense<0.000000e+00> : vector<16xf32>
    %1000 = vector.multi_reduction <add>, %999, %cst_302 [1] : vector<16x32xf32> to vector<16xf32>
    %1001 = vector.shape_cast %1000 : vector<16xf32> to vector<16x1xf32>
    %cst_303 = arith.constant 3.200000e+01 : f32
    %1002 = vector.broadcast %cst_303 : f32 to vector<16x1xf32>
    %1003 = arith.divf %1001, %1002 : vector<16x1xf32>
    %1004 = vector.broadcast %996 : vector<16x1xf32> to vector<16x32xf32>
    %1005 = arith.subf %990, %1004 : vector<16x32xf32>
    %cst_304 = arith.constant 9.99999997E-7 : f32
    %1006 = vector.broadcast %cst_304 : f32 to vector<16x1xf32>
    %1007 = arith.addf %1003, %1006 : vector<16x1xf32>
    %1008 = math.rsqrt %1007 : vector<16x1xf32>
    %1009 = vector.broadcast %1008 : vector<16x1xf32> to vector<16x32xf32>
    %1010 = arith.mulf %1005, %1009 : vector<16x32xf32>
    %1011 = vector.broadcast %991 : vector<1x32xf32> to vector<16x32xf32>
    %1012 = arith.mulf %1010, %1011 : vector<16x32xf32>
    %1013 = vector.broadcast %992 : vector<1x32xf32> to vector<16x32xf32>
    %1014 = arith.addf %1012, %1013 : vector<16x32xf32>
    %c0_305 = arith.constant 0 : index
    %c0_306 = arith.constant 0 : index
    %1015 = vector.load %arg21[%c0_305, %c0_306] : memref<32x128xf32, #tpu.memory_space<vmem>>, vector<32x128xf32>
    %cst_307 = arith.constant dense<0.000000e+00> : vector<16x128xf32>
    %1016 = tpu.matmul %1014, %1015, %cst_307 {dimension_numbers = #tpu.dot_dimension_numbers<[1], [0], [0], [1], [0, 0, 1, 1], [], []>} : vector<16x32xf32>, vector<32x128xf32>, vector<16x128xf32> -> vector<16x128xf32>
    %cst_308 = arith.constant 0.176776692 : f32
    %1017 = vector.broadcast %cst_308 : f32 to vector<16x128xf32>
    %1018 = arith.mulf %1016, %1017 : vector<16x128xf32>
    %c0_309 = arith.constant 0 : index
    %c0_310 = arith.constant 0 : index
    %1019 = vector.load %arg22[%c0_309, %c0_310] : memref<16x128xf32, #tpu.memory_space<vmem>>, vector<16x128xf32>
    tpu.vector_store %arg22[%c0_309, %c0_310], %1018 {strides = array<i32>} : memref<16x128xf32, #tpu.memory_space<vmem>>, vector<16x128xf32>,
    return
  }
}

</mosaic_0001>

<bundles_post_ra>
// kernel: run.1
= control target key start
LH: loop header
LB: loop body
LE: loop exit
PB: predicated region body
PF: predicated region fallthrough
CT: control target
= control target key end

     0   :  { %vm153_vm0 = vcmask 261120   ;;  %v13936_v17 = vmov 0   ;;  %v79_v23 = vlaneseq  ;;  %v13937_v42 = vmov 0.0   ;;  %s15694_s23 = smov 64   ;;  %s15698_s24 = smov 120   ;;  %s15653_s3 = inlined_call_operand.vmem [shape: f32[16,32], index: 3, kind: input, shape index: {}]   ;;  %s15654_s6 = inlined_call_operand.vmem [shape: f32[2,32,96], index: 6, kind: input, shape index: {}]   ;;  %s15655_s5 = inlined_call_operand.vmem [shape: f32[4,32], index: 5, kind: input, shape index: {}]   ;;  %s15656_s0 = inlined_call_operand.vmem [shape: s32[2,8], index: 0, kind: input, shape index: {}]   ;;  %s15657_s7 = inlined_call_operand.vmem [shape: f32[2,32,32], index: 7, kind: input, shape index: {}]   ;;  %s15658_s8 = inlined_call_operand.vmem [shape: f32[2,32,64], index: 8, kind: input, shape index: {}]   ;;  %s15659_s10 = inlined_call_operand.vmem [shape: f32[2,64,32], index: 10, kind: input, shape index: {}]   ;;  %s15660_s11 = inlined_call_operand.vmem [shape: f32[2,5,32], index: 11, kind: input, shape index: {}]   ;;  %s15661_s9 = inlined_call_operand.vmem [shape: f32[2,1,64], index: 9, kind: input, shape index: {}]   ;;  %s15662_s4 = inlined_call_operand.vmem [shape: f32[16,32], index: 4, kind: input, shape index: {}]   ;;  %s15663_s2 = inlined_call_operand.vmem [shape: f32[16,1], index: 2, kind: input, shape index: {}]   ;;  %s15664_s15 = inlined_call_operand.vmem [shape: f32[32,128], index: 15, kind: input, shape index: {}]   ;;  %s15665_s12 = inlined_call_operand.vmem [shape: f32[2,32,96], index: 12, kind: input, shape index: {}]   ;;  %s15666_s1 = inlined_call_operand.vmem [shape: s32[2,8], index: 1, kind: input, shape index: {}]   ;;  %s15667_s13 = inlined_call_operand.vmem [shape: f32[2,32,32], index: 13, kind: input, shape index: {}]   ;;  %s15668_s14 = inlined_call_operand.vmem [shape: f32[2,32,32], index: 14, kind: input, shape index: {}]   ;;  %s15669_s20 = inlined_call_operand.vmem [shape: f32[2,7,32], index: 20, kind: input, shape index: {}]   ;;  %s15670_s16 = inlined_call_operand.vmem [shape: f32[2,32,32], index: 16, kind: input, shape index: {}]   ;;  %s15671_s17 = inlined_call_operand.vmem [shape: f32[2,32,64], index: 17, kind: input, shape index: {}]   ;;  %s15672_s19 = inlined_call_operand.vmem [shape: f32[2,64,32], index: 19, kind: input, shape index: {}]   ;;  %s15673_s18 = inlined_call_operand.vmem [shape: f32[2,1,64], index: 18, kind: input, shape index: {}]   ;;  %s15674_s21 = inlined_call_operand.vmem [shape: f32[32,128], index: 21, kind: input, shape index: {}]   ;;  %s15675_s22 = inlined_call_operand.vmem [shape: f32[16,128], index: 22, kind: output, shape index: {}]  }
   0x1   :  { %15712 = sst [smem:[#allocation2_spill]] %s15653_s3  ;;  %13694 = vset.pattern.permute.xlu1 %v13936_v17  ;;  %13693 = vset.pattern.permute.xlu0 %v13936_v17  ;;  %vm13938_vm1 = vmmov 0   ;;  %vm298_vm2 = vcmask 64512   ;;  %v13940_v47 = vmov 1966171168   ;;  %s15692_s25 = smov 56  }
   0x2   :  { %15713 = sst [smem:[#allocation3_spill]] %s15654_s6  ;;  %s15727_s29 = sld [smem:[#allocation2_spill]]  ;;  %v14096_v27 = vshrl.u32 %v79_v23, 7  ;;  %12680 = vmatprep.subr.mxu1 %v13937_v42  ;;  %12682 = vmatprep.mubr.msk.f32.mxu1 %vm13938_vm1, %v13937_v42  ;;  %v77_v48 = vunpack.c.l.s4 %v13940_v47  ;;  %v13941_v57 = vmov -1e+09   ;;  %vm2088_vm6 = vcmask 523264  }
   0x3   :  { %15714 = sst [smem:[#allocation4_spill]] %s15655_s5  ;;  %s15728_s6 = sld [smem:[#allocation3_spill]] }
   0x4   :  { %15715 = sst [smem:[#allocation5_spill]] %s15656_s0  ;;  %v14099_v29 = vsub.s32 0, %v14096_v27  ;;  %s15729_s28 = sld [smem:[#allocation4_spill]]  ;;  %v14105_v31 = vsub.s32 1, %v14096_v27  ;;  %v78_v50 = vunpack.c.0.s8 %v77_v48 }
   0x5   :  { %15716 = sst [smem:[#allocation6_spill]] %s15657_s7  ;;  %s15730_s3 = sld [smem:[#allocation5_spill]] }
   0x6   :  { %15717 = sst [smem:[#allocation7_spill]] %s15658_s8  ;;  %v14147_v51 = vsub.s32 %v78_v50, %v14096_v27  ;;  %s15700_s8 = smov 88  }
   0x7   :  { %15718 = sst [smem:[#allocation8_spill]] %s15659_s10  ;;  %s15696_s10 = smov 80  }
   0x8   :  { %15719 = sst [smem:[#allocation9_spill]] %s15668_s14  ;;  %v151_v0 = vld [vmem:[%s15727_s29] sm:$0xff]  ;;  %v152_v1 = vld [vmem:[%s15727_s29 + $0x8] sm:$0xff]  ;;  %s15702_s29 = smov 96  }
   0x9   :  { %15720 = sst [smem:[#allocation10_spill]] %s15669_s20  ;;  %v154_v2 = vsel %vm153_vm0, %v151_v0, 0.0  ;;  %v157_v3 = vsel %vm153_vm0, %v152_v1, 0.0  ;;  %v194_v14 = vld [vmem:[%s15728_s6] sm:$0xff]  ;;  %v195_v15 = vld [vmem:[%s15728_s6 + $0x8] sm:$0xff]  ;;  %v196_v16 = vld [vmem:[%s15728_s6 + $0x10] sm:$0xff] }
   0xa   :  { %15721 = sst [smem:[#allocation11_spill]] %s15670_s16  ;;  %155 = vadd.xlane.f32.xlu0 %v154_v2  ;;  %v13477_v18 = vpack.c.bf16 %v195_v15, %v194_v14  ;;  %v197_v19 = vld [vmem:[%s15728_s6 + $0x18] sm:$0xff]  ;;  %v150_v30 = vld [vmem:[%s15729_s28] sm:$0xf]  ;;  %s15684_s26 = smov 112  }
   0xb   :  { %15722 = sst [smem:[#allocation12_spill]] %s15671_s17  ;;  %v13481_v20 = vpack.c.bf16 %v197_v19, %v196_v16  ;;  %v184_v32 = vrot.slane %v150_v30, %v14099_v29  ;;  %v190_v35 = vrot.slane %v150_v30, %v14105_v31  ;;  %v71_v49 = vld [vmem:[%s15730_s3] sm:$0x3]  ;;  %s15690_s5 = smov 48  }
   0xc   :  { %15723 = sst [smem:[#allocation13_spill]] %s15672_s19  ;;  %13478 = vmatprep.subr.bf16.mxu0 %v13477_v18  ;;  %vm72_vm3 = vcmp.ne.s32.totalorder %v71_v49, 0  ;;  %s15682_s27 = smov 72  }
   0xd   :  { %15724 = sst [smem:[#allocation14_spill]] %s15673_s18  ;;  %13480 = vmatpush3.bf16.msra.mxu0 %v13477_v18  ;;  %v75_v52 = vsel %vm72_vm3, 1, %v13936_v17  ;;  %s15688_s0 = smov 104  }
   0xe   :  { %15725 = sst [smem:[#allocation15_spill]] %s15674_s21  ;;  %158 = vadd.xlane.f32.xlu0 %v157_v3  ;;  %13482 = vmatprep.subr.bf16.mxu0 %v13481_v20  ;;  %v82_v53 = vrot.slane %v75_v52, %v14147_v51  ;;  %s15731_s3 = sld [smem:[#allocation6_spill]] }
   0xf   :  { %15726 = sst [smem:[#allocation16_spill]] %s15675_s22  ;;  %s15686_s30 = smov 40  }
  0x10   :  { %v83_v54 = vcombine.high %v82_v53, %v82_v53  ;;  %v90_v55 = vrot.slane %v82_v53, %v14147_v51  ;;  %s15738_s7 = smov 64   ;;  %s15744_s22 = smov 40  }
  0x11   :  { %13484 = vmatpush3.bf16.msra.mxu0 %v13481_v20  ;;  %s15746_s16 = sld [smem:[#allocation10_spill]]  ;;  %s15750_s14 = sld [smem:[#allocation14_spill]] }
  0x12   :  { %12700 = vmatprep.subr.mxu0 %v13937_v42  ;;  %v97_v56 = vrot.slane %v83_v54, %v14147_v51  ;;  %vm98_vm4 = vcmp.ne.s32.totalorder %v90_v55, 0 }
  0x13   :  { %v100_v58 = vsel %vm98_vm4, 0.0, %v13941_v57 }
  0x14   :  { %vm99_vm5 = vcmp.ne.s32.totalorder %v97_v56, 0  ;;  %v14155_v59 = vrot.slane %v100_v58, %v14099_v29 }
  0x15   :  { %v101_v60 = vsel %vm99_vm5, 0.0, %v13941_v57 }
  0x16   :  { %v14159_v62 = vrot.slane %v101_v60, %v14099_v29 }
  0x97   :  { %v156_v4 = vpop.xlane.xlu0 %155 }
  0x98   :  { %v161_v5 = vmul.f32 0.03125, %v156_v4 }
  0x9a   :  { %v163_v6 = vsub.f32 %v151_v0, %v161_v5 }
  0x9b   :  { %v159_v7 = vpop.xlane.xlu0 %158 }
  0x9c   :  { %v162_v8 = vmul.f32 0.03125, %v159_v7  ;;  %v165_v9 = vmul.f32 %v163_v6, %v163_v6 }
  0x9e   :  { %v164_v10 = vsub.f32 %v152_v1, %v162_v8  ;;  %v167_v11 = vsel %vm153_vm0, %v165_v9, 0.0 }
  0x9f   :  { %168 = vadd.xlane.f32.xlu1 %v167_v11 }
  0xa0   :  { %v166_v12 = vmul.f32 %v164_v10, %v164_v10 }
  0xa2   :  { %v170_v13 = vsel %vm153_vm0, %v166_v12, 0.0 }
  0xa3   :  { %171 = vadd.xlane.f32.xlu1 %v170_v13 }
 0x12c   :  { %v169_v21 = vpop.xlane.xlu1 %168 }
 0x12d   :  { %v173_v22 = vmul.f32 0.03125, %v169_v21 }
 0x12f   :  { %v175_v24 = vadd.f32 1e-06, %v173_v22 }
 0x130   :  { %v172_v25 = vpop.xlane.xlu1 %171 }
 0x131   :  { %13695 = vrsqrt.f32 %v175_v24  ;;  %v174_v26 = vmul.f32 0.03125, %v172_v25 }
 0x133   :  { %v176_v28 = vadd.f32 1e-06, %v174_v26 }
 0x135   :  { %13697 = vrsqrt.f32 %v176_v28 }
 0x13b   :  { %v13696_v33 = vpop.eup %13695 }
 0x13c   :  { %v179_v34 = vmul.f32 %v13696_v33, %v163_v6 }
 0x13e   :  { %v185_v36 = vmul.f32 %v184_v32, %v179_v34 }
 0x13f   :  { %v13698_v37 = vpop.eup %13697 }
 0x140   :  { %v180_v38 = vmul.f32 %v13698_v37, %v164_v10  ;;  %v14109_v39 = vadd.f32 %v190_v35, %v185_v36 }
 0x142   :  { %v186_v40 = vmul.f32 %v184_v32, %v180_v38  ;;  %12677 = vmatprep.mubr.msk.f32.mxu0 %vm153_vm0, %v14109_v39 }
 0x144   :  { %v14113_v41 = vadd.f32 %v190_v35, %v186_v40 }
 0x146   :  { %12678 = vmatmul.mubr.msk.f32.vlgmr.msra.gmra.mrb[0].mxu0 %vm153_vm0, %v14113_v41 }
 0x147   :  { %12702 = vmatprep.mubr.msk.f32.mxu0 %vm13938_vm1, %v13937_v42 }
 0x219   :  { %v14123_v43 = vpop.f32.mrb[0].mxu0 }
 0x21a   :  { %374 = vrot.lane.b32.xlu1 %v14123_v43, %s15702_s29  ;;  %v14127_v44 = vpop.f32.mrb[1].mxu0 }
 0x21b   :  { %296 = vrot.lane.b32.xlu0 %v14127_v44, %s15702_s29  ;;  %s15739_s29 = smov 56  }
 0x28c   :  { %v375_v46 = vpop.permute.xlu1 %374 }
 0x28d   :  { %v297_v45 = vpop.permute.xlu0 %296 }
 0x28e   :  { %12681 = vmatpush3.xpose.msk.msra.mxu1 %vm298_vm2, %v297_v45 }
 0x28f   :  { %12685 = vmatprep.subr.mxu1 %v13937_v42 }
 0x291   :  { %12683 = vmatmul.mubr.msk.f32.vlgmr.msra.gmra.mrb[0].mxu1 %vm298_vm2, %v14127_v44 }
 0x292   :  { %12686 = vmatpush3.xpose.msk.msra.mxu1 %vm298_vm2, %v375_v46  ;;  %12687 = vmatprep.mubr.msk.f32.mxu1 %vm13938_vm1, %v13937_v42 }
 0x293   :  { %12690 = vmatprep.subr.mxu1 %v13937_v42 }
 0x295   :  { %12688 = vmatmul.mubr.msk.f32.vlgmr.msra.gmra.mrb[2].mxu1 %vm298_vm2, %v14123_v43 }
 0x296   :  { %12692 = vmatprep.mubr.msk.f32.mxu1 %vm13938_vm1, %v13937_v42 }
 0x364   :  { %v369_v61 = vpop.f32.mrb[0].mxu1 }
 0x365   :  { %v370_v63 = vadd.f32 %v369_v61, %v14155_v59  ;;  %v12684_v0 = vpop.f32.mrb[1].mxu1 }
 0x367   :  { %v450_v1 = vsel %vm298_vm2, %v370_v63, -inf }
 0x368   :  { %v446_v2 = vpop.f32.mrb[2].mxu1  ;;  %451 = vmax.xlane.f32.xlu1 %v450_v1 }
 0x369   :  { %v447_v3 = vadd.f32 %v446_v2, %v14159_v62  ;;  %v12689_v4 = vpop.f32.mrb[3].mxu1 }
 0x36b   :  { %v453_v5 = vsel %vm298_vm2, %v447_v3, -inf }
 0x36c   :  { %454 = vmax.xlane.f32.xlu0 %v453_v5 }
 0x379   :  { %548 = vrot.lane.b32.xlu1 %v14123_v43, %s15694_s23 }
 0x37d   :  { %704 = vrot.lane.b32.xlu1 %v14123_v43, %s15700_s8 }
 0x3f5   :  { %v452_v6 = vpop.xlane.xlu1 %451 }
 0x3f6   :  { %v456_v7 = vsub.f32 %v370_v63, %v452_v6 }
 0x3f8   :  { %v458_v8 = vmul.f32 1.442695, %v456_v7 }
 0x3f9   :  { %v455_v9 = vpop.xlane.xlu0 %454  ;;  %v549_v16 = vpop.permute.xlu1 %548 }
 0x3fa   :  { %13699 = vpow2.f32 %v458_v8  ;;  %v457_v10 = vsub.f32 %v447_v3, %v455_v9 }
 0x3fc   :  { %v460_v11 = vmul.f32 1.442695, %v457_v10 }
 0x3fd   :  { %v705_v18 = vpop.permute.xlu1 %704 }
 0x3fe   :  { %13701 = vpow2.f32 %v460_v11 }
 0x404   :  { %v13700_v12 = vpop.eup %13699 }
 0x405   :  { %v462_v13 = vsel %vm298_vm2, %v13700_v12, 0.0 }
 0x406   :  { %463 = vadd.xlane.f32.xlu0 %v462_v13 }
 0x408   :  { %v13702_v14 = vpop.eup %13701 }
 0x409   :  { %v465_v15 = vsel %vm298_vm2, %v13702_v14, 0.0 }
 0x40a   :  { %466 = vadd.xlane.f32.xlu1 %v465_v15 }
 0x41b   :  { %702 = vrot.lane.b32.xlu1 %v14123_v43, %s15698_s24 }
 0x41c   :  { %472 = vrot.lane.b32.xlu0 %v14127_v44, %s15694_s23 }
 0x41f   :  { %624 = vrot.lane.b32.xlu1 %v14127_v44, %s15698_s24  ;;  %s15733_s24 = sld [smem:[#allocation8_spill]] }
 0x420   :  { %626 = vrot.lane.b32.xlu0 %v14127_v44, %s15700_s8  ;;  %s15740_s8 = smov 112  }
 0x423   :  { %1118 = vrot.lane.b32.xlu1 %v14127_v44, %s15696_s10 }
 0x493   :  { %v464_v19 = vpop.xlane.xlu0 %463 }
 0x494   :  { %13703 = vrcp.f32 %v464_v19 }
 0x497   :  { %v467_v20 = vpop.xlane.xlu1 %466  ;;  %v473_v21 = vpop.permute.xlu0 %472 }
 0x498   :  { %13705 = vrcp.f32 %v467_v20  ;;  %12691 = vmatpush3.msra.mxu1 %v473_v21 }
 0x499   :  { %12695 = vmatprep.subr.mxu1 %v13937_v42 }
 0x49b   :  { %v703_v22 = vpop.permute.xlu1 %702  ;;  %v627_v24 = vpop.permute.xlu0 %626 }
 0x49c   :  { %12701 = vmatpush3.xpose.msk.msra.mxu0 %vm298_vm2, %v627_v24 }
 0x49d   :  { %12710 = vmatprep.subr.mxu0 %v13937_v42 }
 0x49e   :  { %v13704_v25 = vpop.eup %13703 }
 0x49f   :  { %v625_v26 = vpop.permute.xlu1 %624  ;;  %v470_v28 = vmul.f32 %v13704_v25, %v13700_v12  ;;  %v280_v25 = vld [vmem:[%s15731_s3 + $0x8] sm:$0xff] }
 0x4a0   :  { %12703 = vmatmul.mubr.msk.f32.vlgmr.msra.gmra.mrb[2].mxu0 %vm298_vm2, %v625_v26  ;;  %v279_v26 = vld [vmem:[%s15731_s3] sm:$0xff] }
 0x4a1   :  { %12693 = vmatmul.mubr.msk.f32.vlgmr.msra.gmra.mrb[4].mxu1 %vm298_vm2, %v470_v28  ;;  %12712 = vmatprep.mubr.msk.f32.mxu0 %vm13938_vm1, %v13937_v42 }
 0x4a2   :  { %v13706_v30 = vpop.eup %13705  ;;  %12696 = vmatpush3.msra.mxu1 %v549_v16  ;;  %12697 = vmatprep.mubr.msk.f32.mxu1 %vm13938_vm1, %v13937_v42 }
 0x4a3   :  { %v471_v32 = vmul.f32 %v13706_v30, %v13702_v14  ;;  %12705 = vmatprep.subr.mxu1 %v13937_v42  ;;  %v1119_v58 = vpop.permute.xlu1 %1118 }
 0x4a5   :  { %12698 = vmatmul.mubr.msk.f32.vlgmr.msra.gmra.mrb[6].mxu1 %vm298_vm2, %v471_v32 }
 0x4a6   :  { %12707 = vmatprep.mubr.msk.f32.mxu1 %vm13938_vm1, %v13937_v42 }
 0x4a9   :  { %12706 = vmatpush3.xpose.msk.msra.mxu1 %vm298_vm2, %v705_v18 }
 0x4aa   :  { %12715 = vmatprep.subr.mxu1 %v13937_v42 }
 0x4ac   :  { %12708 = vmatmul.mubr.msk.f32.vlgmr.msra.gmra.mrb[8].mxu1 %vm298_vm2, %v703_v22 }
 0x4ad   :  { %12717 = vmatprep.mubr.msk.f32.mxu1 %vm13938_vm1, %v13937_v42 }
 0x573   :  { %v698_v33 = vpop.f32.mrb[2].mxu0 }
 0x574   :  { %v14199_v34 = vpop.f32.mrb[4].mxu1  ;;  %v12704_v35 = vpop.f32.mrb[3].mxu0  ;;  %v699_v55 = vadd.f32 %v698_v33, %v14155_v59 }
 0x575   :  { %v12694_v36 = vpop.f32.mrb[5].mxu1 }
 0x576   :  { %v780_v56 = vsel %vm298_vm2, %v699_v55, -inf }
 0x578   :  { %v14201_v37 = vpop.f32.mrb[6].mxu1 }
 0x579   :  { %v12699_v38 = vpop.f32.mrb[7].mxu1 }
 0x57f   :  { %v776_v40 = vpop.f32.mrb[8].mxu1 }
 0x580   :  { %v777_v45 = vadd.f32 %v776_v40, %v14159_v62  ;;  %v12709_v46 = vpop.f32.mrb[9].mxu1 }
 0x582   :  { %v783_v47 = vsel %vm298_vm2, %v777_v45, -inf }
 0x583   :  { %784 = vmax.xlane.f32.xlu0 %v783_v47 }
 0x599   :  { %878 = vrot.lane.b32.xlu0 %v14123_v43, %s15692_s25 }
 0x59d   :  { %1116 = vrot.lane.b32.xlu0 %v14127_v44, %s15684_s26 }
 0x5a1   :  { %1194 = vrot.lane.b32.xlu0 %v14123_v43, %s15684_s26  ;;  %s15732_s26 = sld [smem:[#allocation7_spill]] }
 0x610   :  { %v785_v48 = vpop.xlane.xlu0 %784 }
 0x611   :  { %v787_v49 = vsub.f32 %v777_v45, %v785_v48 }
 0x613   :  { %v790_v50 = vmul.f32 1.442695, %v787_v49 }
 0x614   :  { %v879_v52 = vpop.permute.xlu0 %878 }
 0x615   :  { %13707 = vpow2.f32 %v790_v50  ;;  %12716 = vmatpush3.msra.mxu1 %v879_v52  ;;  %v281_v52 = vld [vmem:[%s15731_s3 + $0x10] sm:$0xff] }
 0x616   :  { %12730 = vmatprep.subr.mxu1 %v13937_v42 }
 0x618   :  { %v1117_v0 = vpop.permute.xlu0 %1116 }
 0x61c   :  { %v1195_v2 = vpop.permute.xlu0 %1194 }
 0x61f   :  { %v13708_v53 = vpop.eup %13707 }
 0x620   :  { %v795_v54 = vsel %vm298_vm2, %v13708_v53, 0.0 }
 0x621   :  { %796 = vadd.xlane.f32.xlu1 %v795_v54 }
 0x632   :  { %1196 = vrot.lane.b32.xlu1 %v14123_v43, %s15696_s10  ;;  %s15735_s10 = smov 88  }
 0x656   :  { %781 = vmax.xlane.f32.xlu1 %v780_v56 }
 0x6ae   :  { %v797_v60 = vpop.xlane.xlu1 %796 }
 0x6af   :  { %13709 = vrcp.f32 %v797_v60 }
 0x6b2   :  { %v1197_v1 = vpop.permute.xlu1 %1196 }
 0x6b9   :  { %v13710_v61 = vpop.eup %13709 }
 0x6ba   :  { %v801_v63 = vmul.f32 %v13710_v61, %v13708_v53 }
 0x6bc   :  { %12718 = vmatmul.mubr.msk.f32.vlgmr.msra.gmra.mrb[10].mxu1 %vm298_vm2, %v801_v63 }
 0x6bd   :  { %12731 = vmatpush3.xpose.msk.msra.mxu1 %vm298_vm2, %v1119_v58  ;;  %12732 = vmatprep.mubr.msk.f32.mxu1 %vm13938_vm1, %v13937_v42 }
 0x6be   :  { %12735 = vmatprep.subr.mxu1 %v13937_v42 }
 0x6c0   :  { %12733 = vmatmul.mubr.msk.f32.vlgmr.msra.gmra.mrb[12].mxu1 %vm298_vm2, %v1117_v0 }
 0x6c1   :  { %12736 = vmatpush3.xpose.msk.msra.mxu1 %vm298_vm2, %v1197_v1  ;;  %12737 = vmatprep.mubr.msk.f32.mxu1 %vm13938_vm1, %v13937_v42 }
 0x6c2   :  { %12745 = vmatprep.subr.mxu1 %v13937_v42 }
 0x6c4   :  { %12738 = vmatmul.mubr.msk.f32.vlgmr.msra.gmra.mrb[14].mxu1 %vm298_vm2, %v1195_v2 }
 0x6c5   :  { %12747 = vmatprep.mubr.msk.f32.mxu1 %vm13938_vm1, %v13937_v42 }
 0x6e3   :  { %v782_v3 = vpop.xlane.xlu1 %781 }
 0x6e4   :  { %v786_v4 = vsub.f32 %v699_v55, %v782_v3 }
 0x6e6   :  { %v788_v5 = vmul.f32 1.442695, %v786_v4 }
 0x6e8   :  { %13711 = vpow2.f32 %v788_v5 }
 0x6f2   :  { %v13712_v6 = vpop.eup %13711 }
 0x6f3   :  { %v792_v7 = vsel %vm298_vm2, %v13712_v6, 0.0 }
 0x6f4   :  { %793 = vadd.xlane.f32.xlu0 %v792_v7 }
 0x70a   :  { %802 = vrot.lane.b32.xlu0 %v14127_v44, %s15692_s25  ;;  %s15743_s25 = smov 104  }
 0x70e   :  { %1370 = vrot.lane.b32.xlu0 %v14123_v43, %s15690_s5 }
 0x712   :  { %1531 = vrot.lane.b32.xlu0 %v14127_v44, %s15682_s27 }
 0x716   :  { %1609 = vrot.lane.b32.xlu0 %v14123_v43, %s15682_s27  ;;  %s15737_s27 = smov 80  }
 0x71a   :  { %1529 = vrot.lane.b32.xlu0 %v14127_v44, %s15688_s0 }
 0x781   :  { %v794_v8 = vpop.xlane.xlu0 %793 }
 0x782   :  { %13713 = vrcp.f32 %v794_v8 }
 0x785   :  { %v803_v9 = vpop.permute.xlu0 %802 }
 0x786   :  { %12711 = vmatpush3.msra.mxu0 %v803_v9 }
 0x787   :  { %12720 = vmatprep.subr.mxu0 %v280_v25 }
 0x789   :  { %v1371_v10 = vpop.permute.xlu0 %1370 }
 0x78a   :  { %12746 = vmatpush3.msra.mxu1 %v1371_v10 }
 0x78b   :  { %12755 = vmatprep.subr.mxu1 %v13937_v42 }
 0x78c   :  { %v13714_v11 = vpop.eup %13713 }
 0x78d   :  { %v800_v12 = vmul.f32 %v13714_v11, %v13712_v6  ;;  %v1532_v54 = vpop.permute.xlu0 %1531 }
 0x78f   :  { %12713 = vmatmul.mubr.msk.f32.vlgmr.msra.gmra.mrb[4].mxu0 %vm298_vm2, %v800_v12  ;;  %v950_v13 = vpop.f32.mrb[10].mxu1 }
 0x790   :  { %v12719_v14 = vpop.f32.mrb[11].mxu1  ;;  %12721 = vmatpush3.msra.mxu0 %v280_v25 }
 0x791   :  { %12725 = vmatprep.subr.mxu0 %v279_v26  ;;  %v1610_v56 = vpop.permute.xlu0 %1609 }
 0x793   :  { %v1190_v15 = vpop.f32.mrb[12].mxu1 }
 0x794   :  { %v1191_v16 = vadd.f32 %v1190_v15, %v14155_v59  ;;  %v12734_v18 = vpop.f32.mrb[13].mxu1 }
 0x795   :  { %v1530_v60 = vpop.permute.xlu0 %1529 }
 0x796   :  { %v1272_v19 = vsel %vm298_vm2, %v1191_v16, -inf }
 0x797   :  { %1273 = vmax.xlane.f32.xlu1 %v1272_v19  ;;  %v1268_v20 = vpop.f32.mrb[14].mxu1 }
 0x798   :  { %v1269_v21 = vadd.f32 %v1268_v20, %v14159_v62  ;;  %v12739_v22 = vpop.f32.mrb[15].mxu1 }
 0x79a   :  { %v1275_v24 = vsel %vm298_vm2, %v1269_v21, -inf }
 0x79b   :  { %1276 = vmax.xlane.f32.xlu1 %v1275_v24 }
 0x824   :  { %v1274_v28 = vpop.xlane.xlu1 %1273 }
 0x825   :  { %v1278_v30 = vsub.f32 %v1191_v16, %v1274_v28 }
 0x827   :  { %v1280_v32 = vmul.f32 1.442695, %v1278_v30 }
 0x828   :  { %v1277_v33 = vpop.xlane.xlu1 %1276 }
 0x829   :  { %13715 = vpow2.f32 %v1280_v32  ;;  %v1279_v35 = vsub.f32 %v1269_v21, %v1277_v33  ;;  %v282_v33 = vld [vmem:[%s15731_s3 + $0x18] sm:$0xff] }
 0x82b   :  { %v1282_v36 = vmul.f32 1.442695, %v1279_v35 }
 0x82d   :  { %13717 = vpow2.f32 %v1282_v36 }
 0x833   :  { %v13716_v38 = vpop.eup %13715 }
 0x834   :  { %v1284_v40 = vsel %vm298_vm2, %v13716_v38, 0.0 }
 0x835   :  { %1285 = vadd.xlane.f32.xlu1 %v1284_v40 }
 0x837   :  { %v13718_v45 = vpop.eup %13717 }
 0x838   :  { %v1287_v46 = vsel %vm298_vm2, %v13718_v45, 0.0 }
 0x839   :  { %1288 = vadd.xlane.f32.xlu1 %v1287_v46 }
 0x84a   :  { %1294 = vrot.lane.b32.xlu1 %v14127_v44, %s15690_s5  ;;  %s15736_s5 = smov 120  }
 0x84e   :  { %1607 = vrot.lane.b32.xlu1 %v14123_v43, %s15688_s0  ;;  %s15741_s0 = smov 48  }
 0x862   :  { %v874_v47 = vpop.f32.mrb[4].mxu0 }
 0x863   :  { %v12714_v48 = vpop.f32.mrb[5].mxu0  ;;  %12722 = vmatprep.mubr.msk.f32.mxu0 %vm298_vm2, %v874_v47 }
 0x864   :  { %12723 = vmatmul.mubr.msk.f32.vlgmr.msra.gmra.mrb[6].mxu0 %vm298_vm2, %v950_v13 }
 0x865   :  { %12727 = vmatprep.mubr.msk.f32.mxu0 %vm298_vm2, %v14199_v34  ;;  %12726 = vmatpush3.msra.mxu0 %v279_v26 }
 0x866   :  { %12740 = vmatprep.subr.mxu0 %v13937_v42 }
 0x86c   :  { %12728 = vmatmul.mubr.msk.f32.vlgmr.msra.gmra.mrb[6].mxu0 %vm298_vm2, %v14201_v37 }
 0x86d   :  { %12742 = vmatprep.mubr.msk.f32.mxu0 %vm13938_vm1, %v13937_v42 }
 0x8c2   :  { %v1286_v49 = vpop.xlane.xlu1 %1285 }
 0x8c3   :  { %13719 = vrcp.f32 %v1286_v49 }
 0x8c6   :  { %v1289_v50 = vpop.xlane.xlu1 %1288 }
 0x8c7   :  { %13721 = vrcp.f32 %v1289_v50 }
 0x8ca   :  { %v1295_v53 = vpop.permute.xlu1 %1294 }
 0x8cb   :  { %12741 = vmatpush3.msra.mxu0 %v1295_v53 }
 0x8cc   :  { %12750 = vmatprep.subr.mxu0 %v281_v52 }
 0x8cd   :  { %v13720_v34 = vpop.eup %13719 }
 0x8ce   :  { %v1292_v55 = vmul.f32 %v13720_v34, %v13716_v38  ;;  %v1608_v2 = vpop.permute.xlu1 %1607 }
 0x8d0   :  { %12743 = vmatmul.mubr.msk.f32.vlgmr.msra.gmra.mrb[8].mxu0 %vm298_vm2, %v1292_v55 }
 0x8d1   :  { %v13722_v37 = vpop.eup %13721  ;;  %12751 = vmatpush3.msra.mxu0 %v281_v52 }
 0x8d2   :  { %v1293_v58 = vmul.f32 %v13722_v37, %v13718_v45  ;;  %12760 = vmatprep.subr.mxu0 %v13937_v42 }
 0x8d4   :  { %12748 = vmatmul.mubr.msk.f32.vlgmr.msra.gmra.mrb[16].mxu1 %vm298_vm2, %v1293_v58 }
 0x8d5   :  { %12756 = vmatpush3.xpose.msk.msra.mxu1 %vm298_vm2, %v1532_v54  ;;  %12757 = vmatprep.mubr.msk.f32.mxu1 %vm13938_vm1, %v13937_v42 }
 0x8d6   :  { %12765 = vmatprep.subr.mxu1 %v13937_v42 }
 0x8d8   :  { %12758 = vmatmul.mubr.msk.f32.vlgmr.msra.gmra.mrb[18].mxu1 %vm298_vm2, %v1530_v60  ;;  %v1983_v60 = vld [vmem:[%s15732_s26 + $0x8] sm:$0xff] }
 0x8d9   :  { %12767 = vmatprep.mubr.msk.f32.mxu1 %vm13938_vm1, %v13937_v42 }
 0x9a3   :  { %v1366_v61 = vpop.f32.mrb[8].mxu0 }
 0x9a4   :  { %v12744_v63 = vpop.f32.mrb[9].mxu0  ;;  %12752 = vmatprep.mubr.msk.f32.mxu0 %vm298_vm2, %v1366_v61 }
 0x9a5   :  { %v1984_v63 = vld [vmem:[%s15732_s26 + $0x10] sm:$0xff] }
 0x9a7   :  { %v1442_v0 = vpop.f32.mrb[16].mxu1 }
 0x9a8   :  { %v12749_v1 = vpop.f32.mrb[17].mxu1  ;;  %12753 = vmatmul.mubr.msk.f32.vlgmr.msra.gmra.mrb[6].mxu0 %vm298_vm2, %v1442_v0  ;;  %v1985_v0 = vld [vmem:[%s15732_s26 + $0x18] sm:$0xff] }
 0x9a9   :  { %12761 = vmatpush3.xpose.msk.msra.mxu0 %vm298_vm2, %v1610_v56  ;;  %12762 = vmatprep.mubr.msk.f32.mxu0 %vm13938_vm1, %v13937_v42  ;;  %v13489_v1 = vpack.c.bf16 %v1985_v0, %v1984_v63 }
 0x9aa   :  { %12770 = vmatprep.subr.mxu0 %v13937_v42 }
 0x9ab   :  { %v1603_v3 = vpop.f32.mrb[18].mxu1 }
 0x9ac   :  { %v1604_v4 = vadd.f32 %v1603_v3, %v14155_v59  ;;  %v12759_v5 = vpop.f32.mrb[19].mxu1  ;;  %12763 = vmatmul.mubr.msk.f32.vlgmr.msra.gmra.mrb[10].mxu0 %vm298_vm2, %v1608_v2  ;;  %v2076_v2 = vld [vmem:[%s15733_s24] sm:$0xff]  ;;  %v2077_v3 = vld [vmem:[%s15733_s24 + $0x8] sm:$0xff] }
 0x9ad   :  { %12772 = vmatprep.mubr.msk.f32.mxu0 %vm13938_vm1, %v13937_v42  ;;  %v13493_v5 = vpack.c.bf16 %v2077_v3, %v2076_v2 }
 0x9ae   :  { %v1685_v6 = vsel %vm298_vm2, %v1604_v4, -inf }
 0x9af   :  { %1686 = vmax.xlane.f32.xlu0 %v1685_v6  ;;  %v2079_v6 = vld [vmem:[%s15733_s24 + $0x18] sm:$0xff] }
 0xa3c   :  { %v1687_v7 = vpop.xlane.xlu0 %1686 }
 0xa3d   :  { %v1691_v8 = vsub.f32 %v1604_v4, %v1687_v7  ;;  %v2078_v4 = vld [vmem:[%s15733_s24 + $0x10] sm:$0xff] }
 0xa3e   :  { %v13497_v7 = vpack.c.bf16 %v2079_v6, %v2078_v4  ;;  %v12053_v4 = vld [vmem:[%s15728_s6 + $0x20] sm:$0xff] }
 0xa3f   :  { %v1693_v9 = vmul.f32 1.442695, %v1691_v8  ;;  %v2080_v8 = vld [vmem:[%s15733_s24 + $0x20] sm:$0xff] }
 0xa41   :  { %13723 = vpow2.f32 %v1693_v9  ;;  %v2081_v9 = vld [vmem:[%s15733_s24 + $0x28] sm:$0xff] }
 0xa4b   :  { %v13724_v10 = vpop.eup %13723 }
 0xa4c   :  { %v1697_v11 = vsel %vm298_vm2, %v13724_v10, 0.0 }
 0xa4d   :  { %1698 = vadd.xlane.f32.xlu0 %v1697_v11 }
 0xa7f   :  { %v1681_v12 = vpop.f32.mrb[10].mxu0 }
 0xa80   :  { %v1682_v13 = vadd.f32 %v1681_v12, %v14159_v62  ;;  %v12764_v14 = vpop.f32.mrb[11].mxu0 }
 0xa82   :  { %v1688_v15 = vsel %vm298_vm2, %v1682_v13, -inf }
 0xa83   :  { %1689 = vmax.xlane.f32.xlu1 %v1688_v15 }
 0xa94   :  { %1783 = vrot.lane.b32.xlu1 %v14123_v43, %s15686_s30 }
 0xada   :  { %v1699_v24 = vpop.xlane.xlu0 %1698 }
 0xb10   :  { %v1690_v16 = vpop.xlane.xlu1 %1689 }
 0xb11   :  { %v1692_v18 = vsub.f32 %v1682_v13, %v1690_v16 }
 0xb13   :  { %v1695_v19 = vmul.f32 1.442695, %v1692_v18  ;;  %v14346_v18 = vld [vmem:[%s15660_s11] sm:$0x1f] }
 0xb14   :  { %v1784_v20 = vpop.permute.xlu1 %1783 }
 0xb15   :  { %13725 = vpow2.f32 %v1695_v19  ;;  %12771 = vmatpush3.msra.mxu0 %v1784_v20  ;;  %v1973_v19 = vrot.slane %v14346_v18, %v14099_v29 }
 0xb16   :  { %13727 = vrcp.f32 %v1699_v24  ;;  %12775 = vmatprep.subr.mxu0 %v282_v33 }
 0xb1f   :  { %v13726_v21 = vpop.eup %13725 }
 0xb20   :  { %v1700_v22 = vsel %vm298_vm2, %v13726_v21, 0.0  ;;  %v13728_v26 = vpop.eup %13727 }
 0xb21   :  { %1701 = vadd.xlane.f32.xlu0 %v1700_v22  ;;  %v1705_v43 = vmul.f32 %v13728_v26, %v13724_v10  ;;  %v13501_v10 = vpack.c.bf16 %v2081_v9, %v2080_v8  ;;  %v12056_v8 = vld [vmem:[%s15728_s6 + $0x38] sm:$0xff] }
 0xb37   :  { %1707 = vrot.lane.b32.xlu0 %v14127_v44, %s15686_s30  ;;  %s15742_s30 = smov 72  }
 0xbae   :  { %v1702_v25 = vpop.xlane.xlu0 %1701 }
 0xbaf   :  { %13729 = vrcp.f32 %v1702_v25  ;;  %v1979_v25 = vrot.slane %v14346_v18, %v14105_v31 }
 0xbb2   :  { %v1708_v28 = vpop.permute.xlu0 %1707 }
 0xbb3   :  { %12766 = vmatpush3.msra.mxu1 %v1708_v28 }
 0xbb4   :  { %12768 = vmatmul.mubr.msk.f32.vlgmr.msra.gmra.mrb[20].mxu1 %vm298_vm2, %v1705_v43 }
 0xbb9   :  { %v13730_v30 = vpop.eup %13729 }
 0xbba   :  { %v1706_v32 = vmul.f32 %v13730_v30, %v13726_v21 }
 0xbbc   :  { %12773 = vmatmul.mubr.msk.f32.vlgmr.msra.gmra.mrb[12].mxu0 %vm298_vm2, %v1706_v32  ;;  %v2082_v32 = vld [vmem:[%s15733_s24 + $0x30] sm:$0xff] }
 0xbbd   :  { %12776 = vmatpush3.msra.mxu0 %v282_v33  ;;  %v2083_v33 = vld [vmem:[%s15733_s24 + $0x38] sm:$0xff] }
 0xbbe   :  { %13494 = vmatprep.subr.bf16.mxu0 %v13493_v5 }
 0xc87   :  { %v1779_v44 = vpop.f32.mrb[20].mxu1 }
 0xc88   :  { %v12769_v35 = vpop.f32.mrb[21].mxu1  ;;  %12777 = vmatprep.mubr.msk.f32.mxu0 %vm298_vm2, %v1779_v44  ;;  %v13505_v44 = vpack.c.bf16 %v2083_v33, %v2082_v32 }
 0xc89   :  { %v12047_v35 = vld [vmem:[%s15661_s9] ss:$0 sm:$0xff] }
 0xc8f   :  { %v1855_v36 = vpop.f32.mrb[12].mxu0 }
 0xc90   :  { %v12774_v38 = vpop.f32.mrb[13].mxu0  ;;  %12778 = vmatmul.mubr.msk.f32.vlgmr.msra.gmra.mrb[6].mxu0 %vm298_vm2, %v1855_v36 }
 0xc91   :  { %13496 = vmatpush3.bf16.msra.mxu0 %v13493_v5  ;;  %v12054_v5 = vld [vmem:[%s15728_s6 + $0x28] sm:$0xff] }
 0xc92   :  { %13498 = vmatprep.subr.bf16.mxu0 %v13497_v7  ;;  %v13509_v6 = vpack.c.bf16 %v12054_v5, %v12053_v4 }
 0xc95   :  { %13500 = vmatpush3.bf16.msra.mxu0 %v13497_v7  ;;  %v12055_v7 = vld [vmem:[%s15728_s6 + $0x30] sm:$0xff]  ;;  %s15734_s6 = smov 96  }
 0xc96   :  { %13502 = vmatprep.subr.bf16.mxu0 %v13501_v10  ;;  %v13513_v9 = vpack.c.bf16 %v12056_v8, %v12055_v7 }
 0xc99   :  { %13504 = vmatpush3.bf16.msra.mxu0 %v13501_v10 }
 0xc9a   :  { %13506 = vmatprep.subr.bf16.mxu0 %v13505_v44 }
 0xc9d   :  { %13508 = vmatpush3.bf16.msra.mxu0 %v13505_v44 }
 0xc9e   :  { %12831 = vmatprep.subr.mxu0 %v13937_v42 }
 0xd63   :  { %v12779_v40 = vpop.f32.mrb[6].mxu0 }
 0xd64   :  { %v1943_v45 = vadd.f32 %v12779_v40, %v14113_v41  ;;  %v1931_v46 = vpop.f32.mrb[7].mxu0 }
 0xd65   :  { %v1942_v47 = vadd.f32 %v1931_v46, %v14109_v39  ;;  %v1982_v39 = vld [vmem:[%s15732_s26] sm:$0xff] }
 0xd66   :  { %v1947_v48 = vsel %vm153_vm0, %v1943_v45, 0.0  ;;  %v13485_v61 = vpack.c.bf16 %v1983_v60, %v1982_v39 }
 0xd67   :  { %1948 = vadd.xlane.f32.xlu0 %v1947_v48  ;;  %v1944_v49 = vsel %vm153_vm0, %v1942_v47, 0.0  ;;  %v14369_v48 = vsub.s32 4, %v14096_v27 }
 0xd68   :  { %1945 = vadd.xlane.f32.xlu1 %v1944_v49  ;;  %13486 = vmatprep.subr.bf16.mxu1 %v13485_v61 }
 0xd69   :  { %13488 = vmatpush3.bf16.msra.mxu1 %v13485_v61  ;;  %v2087_v49 = vrot.slane %v14346_v18, %v14369_v48 }
 0xd6a   :  { %13490 = vmatprep.subr.bf16.mxu1 %v13489_v1 }
 0xd6d   :  { %13492 = vmatpush3.bf16.msra.mxu1 %v13489_v1 }
 0xd6e   :  { %13510 = vmatprep.subr.bf16.mxu1 %v13509_v6 }
 0xdf4   :  { %v1949_v50 = vpop.xlane.xlu0 %1948 }
 0xdf5   :  { %v1951_v52 = vmul.f32 0.03125, %v1949_v50  ;;  %v1946_v53 = vpop.xlane.xlu1 %1945 }
 0xdf6   :  { %v1950_v54 = vmul.f32 0.03125, %v1946_v53 }
 0xdf7   :  { %v1953_v34 = vsub.f32 %v1943_v45, %v1951_v52 }
 0xdf8   :  { %v1952_v55 = vsub.f32 %v1942_v47, %v1950_v54 }
 0xdf9   :  { %v1955_v37 = vmul.f32 %v1953_v34, %v1953_v34 }
 0xdfa   :  { %v1954_v56 = vmul.f32 %v1952_v55, %v1952_v55 }
 0xdfb   :  { %v1959_v58 = vsel %vm153_vm0, %v1955_v37, 0.0 }
 0xdfc   :  { %1960 = vadd.xlane.f32.xlu1 %v1959_v58  ;;  %v1956_v41 = vsel %vm153_vm0, %v1954_v56, 0.0 }
 0xdfd   :  { %1957 = vadd.xlane.f32.xlu0 %v1956_v41 }
 0xe89   :  { %v1961_v11 = vpop.xlane.xlu1 %1960 }
 0xe8a   :  { %v1963_v12 = vmul.f32 0.03125, %v1961_v11  ;;  %v1958_v13 = vpop.xlane.xlu0 %1957 }
 0xe8b   :  { %v1962_v14 = vmul.f32 0.03125, %v1958_v13 }
 0xe8c   :  { %v1965_v15 = vadd.f32 1e-06, %v1963_v12 }
 0xe8d   :  { %v1964_v16 = vadd.f32 1e-06, %v1962_v14 }
 0xe8e   :  { %13731 = vrsqrt.f32 %v1965_v15 }
 0xe8f   :  { %13733 = vrsqrt.f32 %v1964_v16  ;;  %v14391_v16 = vsub.s32 2, %v14096_v27 }
 0xe98   :  { %v13732_v20 = vpop.eup %13731 }
 0xe99   :  { %v13734_v21 = vpop.eup %13733  ;;  %v1969_v22 = vmul.f32 %v13732_v20, %v1953_v34  ;;  %v2201_v20 = vrot.slane %v14346_v18, %v14391_v16 }
 0xe9a   :  { %v1968_v24 = vmul.f32 %v13734_v21, %v1952_v55 }
 0xe9b   :  { %v1975_v26 = vmul.f32 %v1973_v19, %v1969_v22 }
 0xe9c   :  { %v1974_v28 = vmul.f32 %v1973_v19, %v1968_v24  ;;  %v14394_v19 = vsub.s32 3, %v14096_v27 }
 0xe9d   :  { %v1981_v30 = vadd.f32 %v1979_v25, %v1975_v26 }
 0xe9e   :  { %v1980_v43 = vadd.f32 %v1979_v25, %v1974_v28  ;;  %v2207_v26 = vrot.slane %v14346_v18, %v14394_v19 }
 0xea0   :  { %12788 = vmatprep.mubr.msk.f32.mxu1 %vm153_vm0, %v1980_v43 }
 0xea1   :  { %12789 = vmatmul.mubr.msk.f32.vlgmr.msra.gmra.mrb[22].mxu1 %vm153_vm0, %v1981_v30 }
 0xea2   :  { %13512 = vmatpush3.bf16.msra.mxu1 %v13509_v6 }
 0xea3   :  { %13514 = vmatprep.subr.bf16.mxu1 %v13513_v9 }
 0xea6   :  { %13516 = vmatpush3.bf16.msra.mxu1 %v13513_v9 }
 0xea7   :  { %12821 = vmatprep.subr.mxu1 %v13937_v42 }
 0xf74   :  { %v12790_v36 = vpop.f32.mrb[22].mxu1 }
 0xf75   :  { %v2071_v38 = vadd.f32 %v12790_v36, %v12047_v35  ;;  %v2065_v40 = vpop.f32.mrb[23].mxu1 }
 0xf76   :  { %v2066_v45 = vadd.f32 %v12047_v35, %v2065_v40 }
 0xf77   :  { %v2075_v47 = vmax.f32 %v2071_v38, 0.0 }
 0xf78   :  { %v2074_v46 = vmax.f32 %v2066_v45, 0.0 }
 0xf7a   :  { %12807 = vmatprep.mubr.msk.f32.mxu0 %vm2088_vm6, %v2074_v46 }
 0xf7b   :  { %12808 = vmatmul.mubr.msk.f32.vlgmr.msra.gmra.mrb[14].mxu0 %vm2088_vm6, %v2075_v47 }
 0xf7c   :  { %12833 = vmatprep.mubr.msk.f32.mxu0 %vm13938_vm1, %v13937_v42 }
0x104e   :  { %v12809_v50 = vpop.f32.mrb[14].mxu0 }
0x104f   :  { %v2167_v52 = vadd.f32 %v12809_v50, %v2087_v49  ;;  %v2161_v53 = vpop.f32.mrb[15].mxu0 }
0x1050   :  { %v2162_v54 = vadd.f32 %v2161_v53, %v2087_v49 }
0x1051   :  { %v2171_v34 = vadd.f32 %v2167_v52, %v1981_v30 }
0x1052   :  { %v2170_v55 = vadd.f32 %v2162_v54, %v1980_v43 }
0x1053   :  { %v2175_v37 = vsel %vm153_vm0, %v2171_v34, 0.0 }
0x1054   :  { %2176 = vadd.xlane.f32.xlu1 %v2175_v37  ;;  %v2172_v56 = vsel %vm153_vm0, %v2170_v55, 0.0 }
0x1055   :  { %2173 = vadd.xlane.f32.xlu0 %v2172_v56 }
0x10e1   :  { %v2177_v58 = vpop.xlane.xlu1 %2176 }
0x10e2   :  { %v2179_v41 = vmul.f32 0.03125, %v2177_v58  ;;  %v2174_v39 = vpop.xlane.xlu0 %2173 }
0x10e3   :  { %v2178_v60 = vmul.f32 0.03125, %v2174_v39 }
0x10e4   :  { %v2181_v61 = vsub.f32 %v2171_v34, %v2179_v41 }
0x10e5   :  { %v2180_v63 = vsub.f32 %v2170_v55, %v2178_v60 }
0x10e6   :  { %v2183_v0 = vmul.f32 %v2181_v61, %v2181_v61 }
0x10e7   :  { %v2182_v1 = vmul.f32 %v2180_v63, %v2180_v63 }
0x10e8   :  { %v2187_v2 = vsel %vm153_vm0, %v2183_v0, 0.0 }
0x10e9   :  { %2188 = vadd.xlane.f32.xlu1 %v2187_v2  ;;  %v2184_v3 = vsel %vm153_vm0, %v2182_v1, 0.0 }
0x10ea   :  { %2185 = vadd.xlane.f32.xlu0 %v2184_v3 }
0x1176   :  { %v2189_v10 = vpop.xlane.xlu1 %2188 }
0x1177   :  { %v2191_v11 = vmul.f32 0.03125, %v2189_v10  ;;  %v2186_v12 = vpop.xlane.xlu0 %2185 }
0x1178   :  { %v2190_v13 = vmul.f32 0.03125, %v2186_v12 }
0x1179   :  { %v2193_v14 = vadd.f32 1e-06, %v2191_v11 }
0x117a   :  { %v2192_v15 = vadd.f32 1e-06, %v2190_v13 }
0x117b   :  { %13735 = vrsqrt.f32 %v2193_v14 }
0x117c   :  { %13737 = vrsqrt.f32 %v2192_v15 }
0x1185   :  { %v13736_v21 = vpop.eup %13735 }
0x1186   :  { %v13738_v22 = vpop.eup %13737  ;;  %v2197_v24 = vmul.f32 %v13736_v21, %v2181_v61 }
0x1187   :  { %v2196_v25 = vmul.f32 %v13738_v22, %v2180_v63 }
0x1188   :  { %v2203_v28 = vmul.f32 %v2201_v20, %v2197_v24 }
0x1189   :  { %v2202_v43 = vmul.f32 %v2201_v20, %v2196_v25 }
0x118a   :  { %v14402_v32 = vadd.f32 %v2207_v26, %v2203_v28 }
0x118b   :  { %v14400_v30 = vadd.f32 %v2207_v26, %v2202_v43 }
0x118d   :  { %12818 = vmatprep.mubr.msk.f32.mxu1 %vm153_vm0, %v14400_v30 }
0x118e   :  { %12819 = vmatmul.mubr.msk.f32.vlgmr.msra.gmra.mrb[24].mxu1 %vm153_vm0, %v14402_v32 }
0x118f   :  { %12823 = vmatprep.mubr.msk.f32.mxu1 %vm13938_vm1, %v13937_v42 }
0x1261   :  { %v14410_v33 = vpop.f32.mrb[24].mxu1 }
0x1262   :  { %2381 = vrot.lane.b32.xlu1 %v14410_v33, %s15734_s6  ;;  %v14414_v18 = vpop.f32.mrb[25].mxu1 }
0x1263   :  { %2304 = vrot.lane.b32.xlu0 %v14414_v18, %s15734_s6 }
0x12d4   :  { %v2382_v35 = vpop.permute.xlu1 %2381 }
0x12d5   :  { %v2305_v44 = vpop.permute.xlu0 %2304 }
0x12d6   :  { %12822 = vmatpush3.xpose.msk.msra.mxu1 %vm298_vm2, %v2305_v44 }
0x12d7   :  { %12826 = vmatprep.subr.mxu1 %v13937_v42 }
0x12d9   :  { %12824 = vmatmul.mubr.msk.f32.vlgmr.msra.gmra.mrb[26].mxu1 %vm298_vm2, %v14414_v18 }
0x12da   :  { %12827 = vmatpush3.xpose.msk.msra.mxu1 %vm298_vm2, %v2382_v35  ;;  %12828 = vmatprep.mubr.msk.f32.mxu1 %vm13938_vm1, %v13937_v42 }
0x12db   :  { %12836 = vmatprep.subr.mxu1 %v13937_v42 }
0x12dd   :  { %12829 = vmatmul.mubr.msk.f32.vlgmr.msra.gmra.mrb[28].mxu1 %vm298_vm2, %v14410_v33 }
0x12de   :  { %12838 = vmatprep.mubr.msk.f32.mxu1 %vm13938_vm1, %v13937_v42 }
0x13ac   :  { %v2376_v36 = vpop.f32.mrb[26].mxu1 }
0x13ad   :  { %v12825_v38 = vpop.f32.mrb[27].mxu1  ;;  %v2377_v49 = vadd.f32 %v2376_v36, %v14155_v59 }
0x13af   :  { %v2457_v50 = vsel %vm298_vm2, %v2377_v49, -inf }
0x13b0   :  { %v2453_v40 = vpop.f32.mrb[28].mxu1 }
0x13b1   :  { %v2454_v45 = vadd.f32 %v2453_v40, %v14159_v62  ;;  %v12830_v46 = vpop.f32.mrb[29].mxu1 }
0x13b3   :  { %v2460_v47 = vsel %vm298_vm2, %v2454_v45, -inf }
0x13b4   :  { %2461 = vmax.xlane.f32.xlu1 %v2460_v47 }
0x13c5   :  { %2711 = vrot.lane.b32.xlu1 %v14410_v33, %s15735_s10 }
0x13c9   :  { %2709 = vrot.lane.b32.xlu1 %v14410_v33, %s15736_s5 }
0x13ed   :  { %2458 = vmax.xlane.f32.xlu1 %v2457_v50 }
0x13fe   :  { %2633 = vrot.lane.b32.xlu1 %v14414_v18, %s15735_s10 }
0x1402   :  { %2631 = vrot.lane.b32.xlu1 %v14414_v18, %s15736_s5 }
0x1406   :  { %3125 = vrot.lane.b32.xlu1 %v14414_v18, %s15737_s27 }
0x1441   :  { %v2462_v52 = vpop.xlane.xlu1 %2461 }
0x1442   :  { %v2464_v53 = vsub.f32 %v2454_v45, %v2462_v52 }
0x1444   :  { %v2467_v54 = vmul.f32 1.442695, %v2464_v53 }
0x1445   :  { %v2712_v37 = vpop.permute.xlu1 %2711 }
0x1446   :  { %13739 = vpow2.f32 %v2467_v54 }
0x1449   :  { %v2710_v56 = vpop.permute.xlu1 %2709 }
0x1450   :  { %v13740_v34 = vpop.eup %13739 }
0x1451   :  { %v2472_v55 = vsel %vm298_vm2, %v13740_v34, 0.0 }
0x1452   :  { %2473 = vadd.xlane.f32.xlu0 %v2472_v55 }
0x1468   :  { %2555 = vrot.lane.b32.xlu0 %v14410_v33, %s15738_s7 }
0x147a   :  { %v2459_v58 = vpop.xlane.xlu1 %2458 }
0x147b   :  { %v2463_v41 = vsub.f32 %v2377_v49, %v2459_v58 }
0x147d   :  { %v2465_v39 = vmul.f32 1.442695, %v2463_v41 }
0x147e   :  { %v2634_v6 = vpop.permute.xlu1 %2633 }
0x147f   :  { %13741 = vpow2.f32 %v2465_v39 }
0x1482   :  { %v2632_v8 = vpop.permute.xlu1 %2631 }
0x1486   :  { %v3126_v38 = vpop.permute.xlu1 %3125 }
0x1489   :  { %v13742_v60 = vpop.eup %13741 }
0x148a   :  { %v2469_v61 = vsel %vm298_vm2, %v13742_v60, 0.0 }
0x148b   :  { %2470 = vadd.xlane.f32.xlu0 %v2469_v61 }
0x14a1   :  { %2479 = vrot.lane.b32.xlu0 %v14414_v18, %s15738_s7 }
0x14df   :  { %v2474_v63 = vpop.xlane.xlu0 %2473 }
0x14e0   :  { %13743 = vrcp.f32 %v2474_v63 }
0x14e3   :  { %v2556_v0 = vpop.permute.xlu0 %2555 }
0x14e4   :  { %12837 = vmatpush3.msra.mxu1 %v2556_v0 }
0x14e5   :  { %12846 = vmatprep.subr.mxu1 %v13937_v42 }
0x14ea   :  { %v13744_v1 = vpop.eup %13743 }
0x14eb   :  { %v2478_v2 = vmul.f32 %v13744_v1, %v13740_v34 }
0x14ed   :  { %12839 = vmatmul.mubr.msk.f32.vlgmr.msra.gmra.mrb[30].mxu1 %vm298_vm2, %v2478_v2 }
0x14ee   :  { %12847 = vmatpush3.xpose.msk.msra.mxu1 %vm298_vm2, %v2712_v37  ;;  %12848 = vmatprep.mubr.msk.f32.mxu1 %vm13938_vm1, %v13937_v42 }
0x14ef   :  { %12856 = vmatprep.subr.mxu1 %v13937_v42 }
0x14f1   :  { %12849 = vmatmul.mubr.msk.f32.vlgmr.msra.gmra.mrb[32].mxu1 %vm298_vm2, %v2710_v56 }
0x14f2   :  { %12858 = vmatprep.mubr.msk.f32.mxu1 %vm13938_vm1, %v13937_v42 }
0x1518   :  { %v2471_v3 = vpop.xlane.xlu0 %2470 }
0x1519   :  { %13745 = vrcp.f32 %v2471_v3 }
0x151c   :  { %v2480_v4 = vpop.permute.xlu0 %2479 }
0x151d   :  { %12832 = vmatpush3.msra.mxu0 %v2480_v4 }
0x151e   :  { %12841 = vmatprep.subr.mxu0 %v13937_v42 }
0x1523   :  { %v13746_v5 = vpop.eup %13745 }
0x1524   :  { %v2477_v7 = vmul.f32 %v13746_v5, %v13742_v60 }
0x1526   :  { %12834 = vmatmul.mubr.msk.f32.vlgmr.msra.gmra.mrb[16].mxu0 %vm298_vm2, %v2477_v7  ;;  %v12060_v7 = vld [vmem:[%s15731_s3 + $0x28] sm:$0xff] }
0x1527   :  { %12842 = vmatpush3.xpose.msk.msra.mxu0 %vm298_vm2, %v2634_v6  ;;  %12843 = vmatprep.mubr.msk.f32.mxu0 %vm13938_vm1, %v13937_v42 }
0x1528   :  { %12851 = vmatprep.subr.mxu0 %v13937_v42 }
0x152a   :  { %12844 = vmatmul.mubr.msk.f32.vlgmr.msra.gmra.mrb[18].mxu0 %vm298_vm2, %v2632_v8  ;;  %v12059_v8 = vld [vmem:[%s15731_s3 + $0x20] sm:$0xff] }
0x152b   :  { %12853 = vmatprep.mubr.msk.f32.mxu0 %vm13938_vm1, %v13937_v42 }
0x15c0   :  { %v14468_v9 = vpop.f32.mrb[30].mxu1 }
0x15c1   :  { %v12840_v10 = vpop.f32.mrb[31].mxu1 }
0x15c4   :  { %v2783_v11 = vpop.f32.mrb[32].mxu1 }
0x15c5   :  { %v2784_v12 = vadd.f32 %v2783_v11, %v14159_v62  ;;  %v12850_v13 = vpop.f32.mrb[33].mxu1 }
0x15c7   :  { %v2790_v14 = vsel %vm298_vm2, %v2784_v12, -inf }
0x15c8   :  { %2791 = vmax.xlane.f32.xlu0 %v2790_v14 }
0x15de   :  { %2885 = vrot.lane.b32.xlu0 %v14410_v33, %s15739_s29 }
0x15e2   :  { %3123 = vrot.lane.b32.xlu0 %v14414_v18, %s15740_s8 }
0x15e6   :  { %3201 = vrot.lane.b32.xlu0 %v14410_v33, %s15740_s8 }
0x15f9   :  { %v14478_v15 = vpop.f32.mrb[16].mxu0 }
0x15fa   :  { %v12835_v20 = vpop.f32.mrb[17].mxu0 }
0x15fd   :  { %v2705_v21 = vpop.f32.mrb[18].mxu0 }
0x15fe   :  { %v12845_v22 = vpop.f32.mrb[19].mxu0  ;;  %v2706_v35 = vadd.f32 %v2705_v21, %v14155_v59 }
0x1600   :  { %v2787_v36 = vsel %vm298_vm2, %v2706_v35, -inf }
0x1655   :  { %v2792_v24 = vpop.xlane.xlu0 %2791 }
0x1656   :  { %v2794_v25 = vsub.f32 %v2784_v12, %v2792_v24 }
0x1658   :  { %v2797_v26 = vmul.f32 1.442695, %v2794_v25 }
0x1659   :  { %v2886_v28 = vpop.permute.xlu0 %2885 }
0x165a   :  { %13747 = vpow2.f32 %v2797_v26  ;;  %12857 = vmatpush3.msra.mxu1 %v2886_v28 }
0x165b   :  { %12871 = vmatprep.subr.mxu1 %v13937_v42 }
0x165d   :  { %v3124_v47 = vpop.permute.xlu0 %3123 }
0x1661   :  { %v3202_v50 = vpop.permute.xlu0 %3201 }
0x1664   :  { %v13748_v43 = vpop.eup %13747 }
0x1665   :  { %v2802_v44 = vsel %vm298_vm2, %v13748_v43, 0.0 }
0x1666   :  { %2803 = vadd.xlane.f32.xlu1 %v2802_v44 }
0x1677   :  { %3203 = vrot.lane.b32.xlu1 %v14410_v33, %s15737_s27 }
0x169b   :  { %2788 = vmax.xlane.f32.xlu1 %v2787_v36 }
0x16f3   :  { %v2804_v40 = vpop.xlane.xlu1 %2803 }
0x16f4   :  { %13749 = vrcp.f32 %v2804_v40 }
0x16f7   :  { %v3204_v49 = vpop.permute.xlu1 %3203 }
0x16fe   :  { %v13750_v45 = vpop.eup %13749 }
0x16ff   :  { %v2808_v46 = vmul.f32 %v13750_v45, %v13748_v43 }
0x1701   :  { %12859 = vmatmul.mubr.msk.f32.vlgmr.msra.gmra.mrb[34].mxu1 %vm298_vm2, %v2808_v46 }
0x1702   :  { %12872 = vmatpush3.xpose.msk.msra.mxu1 %vm298_vm2, %v3126_v38  ;;  %12873 = vmatprep.mubr.msk.f32.mxu1 %vm13938_vm1, %v13937_v42 }
0x1703   :  { %12876 = vmatprep.subr.mxu1 %v13937_v42 }
0x1705   :  { %12874 = vmatmul.mubr.msk.f32.vlgmr.msra.gmra.mrb[36].mxu1 %vm298_vm2, %v3124_v47 }
0x1706   :  { %12877 = vmatpush3.xpose.msk.msra.mxu1 %vm298_vm2, %v3204_v49  ;;  %12878 = vmatprep.mubr.msk.f32.mxu1 %vm13938_vm1, %v13937_v42 }
0x1707   :  { %12886 = vmatprep.subr.mxu1 %v13937_v42 }
0x1709   :  { %12879 = vmatmul.mubr.msk.f32.vlgmr.msra.gmra.mrb[38].mxu1 %vm298_vm2, %v3202_v50 }
0x170a   :  { %12888 = vmatprep.mubr.msk.f32.mxu1 %vm13938_vm1, %v13937_v42 }
0x1728   :  { %v2789_v52 = vpop.xlane.xlu1 %2788 }
0x1729   :  { %v2793_v53 = vsub.f32 %v2706_v35, %v2789_v52  ;;  %v12061_v35 = vld [vmem:[%s15731_s3 + $0x30] sm:$0xff] }
0x172b   :  { %v2795_v54 = vmul.f32 1.442695, %v2793_v53 }
0x172d   :  { %13751 = vpow2.f32 %v2795_v54 }
0x1737   :  { %v13752_v34 = vpop.eup %13751 }
0x1738   :  { %v2799_v55 = vsel %vm298_vm2, %v13752_v34, 0.0 }
0x1739   :  { %2800 = vadd.xlane.f32.xlu0 %v2799_v55 }
0x174f   :  { %2809 = vrot.lane.b32.xlu0 %v14414_v18, %s15739_s29 }
0x1753   :  { %3377 = vrot.lane.b32.xlu0 %v14410_v33, %s15741_s0 }
0x1757   :  { %3538 = vrot.lane.b32.xlu0 %v14414_v18, %s15742_s30 }
0x175b   :  { %3616 = vrot.lane.b32.xlu0 %v14410_v33, %s15742_s30 }
0x175f   :  { %3536 = vrot.lane.b32.xlu0 %v14414_v18, %s15743_s25 }
0x17c6   :  { %v2801_v37 = vpop.xlane.xlu0 %2800 }
0x17c7   :  { %13753 = vrcp.f32 %v2801_v37 }
0x17ca   :  { %v2810_v56 = vpop.permute.xlu0 %2809 }
0x17cb   :  { %12852 = vmatpush3.msra.mxu0 %v2810_v56 }
0x17cc   :  { %12861 = vmatprep.subr.mxu0 %v12060_v7 }
0x17ce   :  { %v3378_v58 = vpop.permute.xlu0 %3377 }
0x17cf   :  { %12887 = vmatpush3.msra.mxu1 %v3378_v58 }
0x17d0   :  { %12896 = vmatprep.subr.mxu1 %v13937_v42 }
0x17d1   :  { %v13754_v41 = vpop.eup %13753 }
0x17d2   :  { %v2807_v39 = vmul.f32 %v13754_v41, %v13752_v34  ;;  %v3539_v38 = vpop.permute.xlu0 %3538 }
0x17d4   :  { %12854 = vmatmul.mubr.msk.f32.vlgmr.msra.gmra.mrb[20].mxu0 %vm298_vm2, %v2807_v39  ;;  %v2957_v60 = vpop.f32.mrb[34].mxu1 }
0x17d5   :  { %v12860_v61 = vpop.f32.mrb[35].mxu1  ;;  %12862 = vmatpush3.msra.mxu0 %v12060_v7 }
0x17d6   :  { %12866 = vmatprep.subr.mxu0 %v12059_v8  ;;  %v3617_v45 = vpop.permute.xlu0 %3616 }
0x17d8   :  { %v3197_v63 = vpop.f32.mrb[36].mxu1 }
0x17d9   :  { %v3198_v0 = vadd.f32 %v3197_v63, %v14155_v59  ;;  %v12875_v1 = vpop.f32.mrb[37].mxu1 }
0x17da   :  { %v3537_v47 = vpop.permute.xlu0 %3536 }
0x17db   :  { %v3279_v2 = vsel %vm298_vm2, %v3198_v0, -inf }
0x17dc   :  { %3280 = vmax.xlane.f32.xlu1 %v3279_v2  ;;  %v3275_v3 = vpop.f32.mrb[38].mxu1 }
0x17dd   :  { %v3276_v4 = vadd.f32 %v3275_v3, %v14159_v62  ;;  %v12880_v5 = vpop.f32.mrb[39].mxu1 }
0x17df   :  { %v3282_v6 = vsel %vm298_vm2, %v3276_v4, -inf }
0x17e0   :  { %3283 = vmax.xlane.f32.xlu1 %v3282_v6 }
0x1869   :  { %v3281_v10 = vpop.xlane.xlu1 %3280 }
0x186a   :  { %v3285_v11 = vsub.f32 %v3198_v0, %v3281_v10 }
0x186c   :  { %v3287_v12 = vmul.f32 1.442695, %v3285_v11 }
0x186d   :  { %v3284_v13 = vpop.xlane.xlu1 %3283 }
0x186e   :  { %13755 = vpow2.f32 %v3287_v12  ;;  %v3286_v14 = vsub.f32 %v3276_v4, %v3284_v13 }
0x1870   :  { %v3289_v20 = vmul.f32 1.442695, %v3286_v14 }
0x1872   :  { %13757 = vpow2.f32 %v3289_v20 }
0x1878   :  { %v13756_v21 = vpop.eup %13755 }
0x1879   :  { %v3291_v22 = vsel %vm298_vm2, %v13756_v21, 0.0 }
0x187a   :  { %3292 = vadd.xlane.f32.xlu1 %v3291_v22 }
0x187c   :  { %v13758_v24 = vpop.eup %13757 }
0x187d   :  { %v3294_v25 = vsel %vm298_vm2, %v13758_v24, 0.0 }
0x187e   :  { %3295 = vadd.xlane.f32.xlu1 %v3294_v25 }
0x188f   :  { %3301 = vrot.lane.b32.xlu1 %v14414_v18, %s15741_s0 }
0x1893   :  { %3614 = vrot.lane.b32.xlu1 %v14410_v33, %s15743_s25 }
0x18a7   :  { %v2881_v26 = vpop.f32.mrb[20].mxu0 }
0x18a8   :  { %v12855_v28 = vpop.f32.mrb[21].mxu0  ;;  %12863 = vmatprep.mubr.msk.f32.mxu0 %vm298_vm2, %v2881_v26 }
0x18a9   :  { %12864 = vmatmul.mubr.msk.f32.vlgmr.msra.gmra.mrb[22].mxu0 %vm298_vm2, %v2957_v60 }
0x18aa   :  { %12868 = vmatprep.mubr.msk.f32.mxu0 %vm298_vm2, %v14478_v15  ;;  %12867 = vmatpush3.msra.mxu0 %v12059_v8 }
0x18ab   :  { %12881 = vmatprep.subr.mxu0 %v13937_v42 }
0x18b1   :  { %12869 = vmatmul.mubr.msk.f32.vlgmr.msra.gmra.mrb[22].mxu0 %vm298_vm2, %v14468_v9 }
0x18b2   :  { %12883 = vmatprep.mubr.msk.f32.mxu0 %vm13938_vm1, %v13937_v42 }
0x1907   :  { %v3293_v43 = vpop.xlane.xlu1 %3292 }
0x1908   :  { %13759 = vrcp.f32 %v3293_v43 }
0x190b   :  { %v3296_v44 = vpop.xlane.xlu1 %3295 }
0x190c   :  { %13761 = vrcp.f32 %v3296_v44 }
0x190f   :  { %v3302_v36 = vpop.permute.xlu1 %3301 }
0x1910   :  { %12882 = vmatpush3.msra.mxu0 %v3302_v36 }
0x1911   :  { %12891 = vmatprep.subr.mxu0 %v12061_v35 }
0x1912   :  { %v13760_v15 = vpop.eup %13759 }
0x1913   :  { %v3299_v40 = vmul.f32 %v13760_v15, %v13756_v21  ;;  %v3615_v54 = vpop.permute.xlu1 %3614  ;;  %v12062_v21 = vld [vmem:[%s15731_s3 + $0x38] sm:$0xff] }
0x1915   :  { %12884 = vmatmul.mubr.msk.f32.vlgmr.msra.gmra.mrb[24].mxu0 %vm298_vm2, %v3299_v40 }
0x1916   :  { %v13762_v9 = vpop.eup %13761  ;;  %12892 = vmatpush3.msra.mxu0 %v12061_v35 }
0x1917   :  { %v3300_v46 = vmul.f32 %v13762_v9, %v13758_v24  ;;  %12901 = vmatprep.subr.mxu0 %v13937_v42 }
0x1919   :  { %12889 = vmatmul.mubr.msk.f32.vlgmr.msra.gmra.mrb[40].mxu1 %vm298_vm2, %v3300_v46 }
0x191a   :  { %12897 = vmatpush3.xpose.msk.msra.mxu1 %vm298_vm2, %v3539_v38  ;;  %12898 = vmatprep.mubr.msk.f32.mxu1 %vm13938_vm1, %v13937_v42 }
0x191b   :  { %12906 = vmatprep.subr.mxu1 %v13937_v42 }
0x191d   :  { %12899 = vmatmul.mubr.msk.f32.vlgmr.msra.gmra.mrb[42].mxu1 %vm298_vm2, %v3537_v47 }
0x191e   :  { %12908 = vmatprep.mubr.msk.f32.mxu1 %vm13938_vm1, %v13937_v42 }
0x19e8   :  { %v3373_v49 = vpop.f32.mrb[24].mxu0 }
0x19e9   :  { %v12885_v50 = vpop.f32.mrb[25].mxu0  ;;  %12893 = vmatprep.mubr.msk.f32.mxu0 %vm298_vm2, %v3373_v49 }
0x19ec   :  { %v3449_v52 = vpop.f32.mrb[40].mxu1 }
0x19ed   :  { %v12890_v53 = vpop.f32.mrb[41].mxu1  ;;  %12894 = vmatmul.mubr.msk.f32.vlgmr.msra.gmra.mrb[22].mxu0 %vm298_vm2, %v3449_v52  ;;  %v12096_v52 = vld [vmem:[%s15732_s26 + $0x28] sm:$0xff] }
0x19ee   :  { %12902 = vmatpush3.xpose.msk.msra.mxu0 %vm298_vm2, %v3617_v45  ;;  %12903 = vmatprep.mubr.msk.f32.mxu0 %vm13938_vm1, %v13937_v42 }
0x19ef   :  { %12911 = vmatprep.subr.mxu0 %v13937_v42 }
0x19f0   :  { %v3610_v34 = vpop.f32.mrb[42].mxu1 }
0x19f1   :  { %v3611_v55 = vadd.f32 %v3610_v34, %v14155_v59  ;;  %v12900_v37 = vpop.f32.mrb[43].mxu1  ;;  %12904 = vmatmul.mubr.msk.f32.vlgmr.msra.gmra.mrb[26].mxu0 %vm298_vm2, %v3615_v54  ;;  %v12097_v54 = vld [vmem:[%s15732_s26 + $0x30] sm:$0xff]  ;;  %v12098_v34 = vld [vmem:[%s15732_s26 + $0x38] sm:$0xff] }
0x19f2   :  { %12913 = vmatprep.mubr.msk.f32.mxu0 %vm13938_vm1, %v13937_v42  ;;  %v12103_v37 = vld [vmem:[%s15733_s24 + $0x40] sm:$0xff] }
0x19f3   :  { %v3692_v56 = vsel %vm298_vm2, %v3611_v55, -inf }
0x19f4   :  { %3693 = vmax.xlane.f32.xlu0 %v3692_v56  ;;  %v12104_v56 = vld [vmem:[%s15733_s24 + $0x48] sm:$0xff] }
0x1a81   :  { %v3694_v58 = vpop.xlane.xlu0 %3693 }
0x1a82   :  { %v3698_v41 = vsub.f32 %v3611_v55, %v3694_v58  ;;  %v13521_v55 = vpack.c.bf16 %v12098_v34, %v12097_v54  ;;  %v12105_v58 = vld [vmem:[%s15733_s24 + $0x50] sm:$0xff] }
0x1a84   :  { %v3700_v39 = vmul.f32 1.442695, %v3698_v41  ;;  %v13525_v41 = vpack.c.bf16 %v12104_v56, %v12103_v37 }
0x1a86   :  { %13763 = vpow2.f32 %v3700_v39  ;;  %v12106_v39 = vld [vmem:[%s15733_s24 + $0x58] sm:$0xff] }
0x1a90   :  { %v13764_v60 = vpop.eup %13763 }
0x1a91   :  { %v3704_v61 = vsel %vm298_vm2, %v13764_v60, 0.0 }
0x1a92   :  { %3705 = vadd.xlane.f32.xlu0 %v3704_v61  ;;  %v12107_v61 = vld [vmem:[%s15733_s24 + $0x60] sm:$0xff] }
0x1ac4   :  { %v3688_v63 = vpop.f32.mrb[26].mxu0 }
0x1ac5   :  { %v3689_v0 = vadd.f32 %v3688_v63, %v14159_v62  ;;  %v12905_v1 = vpop.f32.mrb[27].mxu0  ;;  %v12108_v63 = vld [vmem:[%s15733_s24 + $0x68] sm:$0xff] }
0x1ac7   :  { %v3695_v2 = vsel %vm298_vm2, %v3689_v0, -inf }
0x1ac8   :  { %3696 = vmax.xlane.f32.xlu1 %v3695_v2 }
0x1ad9   :  { %3790 = vrot.lane.b32.xlu1 %v14410_v33, %s15744_s22 }
0x1b1f   :  { %v3706_v10 = vpop.xlane.xlu0 %3705 }
0x1b55   :  { %v3697_v3 = vpop.xlane.xlu1 %3696 }
0x1b56   :  { %v3699_v4 = vsub.f32 %v3689_v0, %v3697_v3  ;;  %v13533_v0 = vpack.c.bf16 %v12108_v63, %v12107_v61 }
0x1b58   :  { %v3702_v5 = vmul.f32 1.442695, %v3699_v4 }
0x1b59   :  { %v3791_v6 = vpop.permute.xlu1 %3790 }
0x1b5a   :  { %13765 = vpow2.f32 %v3702_v5  ;;  %12912 = vmatpush3.msra.mxu0 %v3791_v6 }
0x1b5b   :  { %13767 = vrcp.f32 %v3706_v10  ;;  %12916 = vmatprep.subr.mxu0 %v12062_v21 }
0x1b64   :  { %v13766_v7 = vpop.eup %13765 }
0x1b65   :  { %v3707_v8 = vsel %vm298_vm2, %v13766_v7, 0.0  ;;  %v13768_v12 = vpop.eup %13767 }
0x1b66   :  { %3708 = vadd.xlane.f32.xlu0 %v3707_v8  ;;  %v3712_v33 = vmul.f32 %v13768_v12, %v13764_v60  ;;  %v13529_v60 = vpack.c.bf16 %v12106_v39, %v12105_v58 }
0x1b7c   :  { %3714 = vrot.lane.b32.xlu0 %v14414_v18, %s15744_s22 }
0x1bf3   :  { %v3709_v11 = vpop.xlane.xlu0 %3708 }
0x1bf4   :  { %13769 = vrcp.f32 %v3709_v11 }
0x1bf7   :  { %v3715_v13 = vpop.permute.xlu0 %3714 }
0x1bf8   :  { %12907 = vmatpush3.msra.mxu1 %v3715_v13 }
0x1bf9   :  { %12909 = vmatmul.mubr.msk.f32.vlgmr.msra.gmra.mrb[44].mxu1 %vm298_vm2, %v3712_v33 }
0x1bfe   :  { %v13770_v14 = vpop.eup %13769 }
0x1bff   :  { %v3713_v20 = vmul.f32 %v13770_v14, %v13766_v7  ;;  %v14615_v7 = vld [vmem:[%s15660_s11 + $0x8] sm:$0x1f]  ;;  %s15748_s11 = sld [smem:[#allocation12_spill]] }
0x1c00   :  { %v3980_v8 = vrot.slane %v14615_v7, %v14099_v29  ;;  %v3986_v33 = vrot.slane %v14615_v7, %v14105_v31 }
0x1c01   :  { %12914 = vmatmul.mubr.msk.f32.vlgmr.msra.gmra.mrb[28].mxu0 %vm298_vm2, %v3713_v20 }
0x1c02   :  { %12917 = vmatpush3.msra.mxu0 %v12062_v21 }
0x1c03   :  { %13526 = vmatprep.subr.bf16.mxu0 %v13525_v41 }
0x1ccc   :  { %v3786_v18 = vpop.f32.mrb[44].mxu1 }
0x1ccd   :  { %v12910_v22 = vpop.f32.mrb[45].mxu1  ;;  %12918 = vmatprep.mubr.msk.f32.mxu0 %vm298_vm2, %v3786_v18 }
0x1cce   :  { %v12109_v22 = vld [vmem:[%s15733_s24 + $0x70] sm:$0xff] }
0x1cd4   :  { %v3862_v24 = vpop.f32.mrb[28].mxu0 }
0x1cd5   :  { %v12915_v25 = vpop.f32.mrb[29].mxu0  ;;  %12919 = vmatmul.mubr.msk.f32.vlgmr.msra.gmra.mrb[22].mxu0 %vm298_vm2, %v3862_v24  ;;  %v12110_v24 = vld [vmem:[%s15733_s24 + $0x78] sm:$0xff] }
0x1cd6   :  { %13528 = vmatpush3.bf16.msra.mxu0 %v13525_v41  ;;  %v13537_v25 = vpack.c.bf16 %v12110_v24, %v12109_v22  ;;  %v4359_v24 = vld [vmem:[%s15665_s12] sm:$0xff] }
0x1cd7   :  { %13530 = vmatprep.subr.bf16.mxu0 %v13529_v60 }
0x1cda   :  { %13532 = vmatpush3.bf16.msra.mxu0 %v13529_v60 }
0x1cdb   :  { %13534 = vmatprep.subr.bf16.mxu0 %v13533_v0 }
0x1cde   :  { %13536 = vmatpush3.bf16.msra.mxu0 %v13533_v0 }
0x1cdf   :  { %13538 = vmatprep.subr.bf16.mxu0 %v13537_v25 }
0x1ce2   :  { %13540 = vmatpush3.bf16.msra.mxu0 %v13537_v25  ;;  %v4360_v25 = vld [vmem:[%s15665_s12 + $0x8] sm:$0xff] }
0x1ce3   :  { %12973 = vmatprep.subr.mxu0 %v13937_v42 }
0x1da8   :  { %v12920_v26 = vpop.f32.mrb[22].mxu0 }
0x1da9   :  { %v3950_v28 = vadd.f32 %v12920_v26, %v14402_v32  ;;  %v3938_v43 = vpop.f32.mrb[23].mxu0  ;;  %v12100_v26 = vld [vmem:[%s15661_s9 + $0x1] ss:$0 sm:$0xff]  ;;  %s15747_s9 = sld [smem:[#allocation11_spill]] }
0x1daa   :  { %v3949_v44 = vadd.f32 %v3938_v43, %v14400_v30  ;;  %v12095_v30 = vld [vmem:[%s15732_s26 + $0x20] sm:$0xff]  ;;  %s15749_s26 = sld [smem:[#allocation13_spill]] }
0x1dab   :  { %v3954_v35 = vsel %vm153_vm0, %v3950_v28, 0.0  ;;  %v13517_v53 = vpack.c.bf16 %v12096_v52, %v12095_v30  ;;  %v4318_v30 = vld [vmem:[%s15662_s4] sm:$0xff] }
0x1dac   :  { %3955 = vadd.xlane.f32.xlu0 %v3954_v35  ;;  %v3951_v36 = vsel %vm153_vm0, %v3949_v44, 0.0  ;;  %v4320_v54 = vsel %vm153_vm0, %v4318_v30, 0.0 }
0x1dad   :  { %3952 = vadd.xlane.f32.xlu1 %v3951_v36  ;;  %13518 = vmatprep.subr.bf16.mxu1 %v13517_v53 }
0x1dae   :  { %13520 = vmatpush3.bf16.msra.mxu1 %v13517_v53 }
0x1daf   :  { %13522 = vmatprep.subr.bf16.mxu1 %v13521_v55 }
0x1db2   :  { %13524 = vmatpush3.bf16.msra.mxu1 %v13521_v55 }
0x1e39   :  { %v3956_v38 = vpop.xlane.xlu0 %3955 }
0x1e3a   :  { %v3958_v15 = vmul.f32 0.03125, %v3956_v38  ;;  %v3953_v40 = vpop.xlane.xlu1 %3952 }
0x1e3b   :  { %v3957_v9 = vmul.f32 0.03125, %v3953_v40 }
0x1e3c   :  { %v3960_v45 = vsub.f32 %v3950_v28, %v3958_v15  ;;  %v4097_v15 = vrot.slane %v14615_v7, %v14369_v48 }
0x1e3d   :  { %v3959_v46 = vsub.f32 %v3949_v44, %v3957_v9 }
0x1e3e   :  { %v3962_v47 = vmul.f32 %v3960_v45, %v3960_v45 }
0x1e3f   :  { %v3961_v49 = vmul.f32 %v3959_v46, %v3959_v46 }
0x1e40   :  { %v3966_v50 = vsel %vm153_vm0, %v3962_v47, 0.0 }
0x1e41   :  { %3967 = vadd.xlane.f32.xlu1 %v3966_v50  ;;  %v3963_v32 = vsel %vm153_vm0, %v3961_v49, 0.0  ;;  %v4319_v50 = vld [vmem:[%s15662_s4 + $0x8] sm:$0xff] }
0x1e42   :  { %3964 = vadd.xlane.f32.xlu0 %v3963_v32  ;;  %v4323_v53 = vsel %vm153_vm0, %v4319_v50, 0.0 }
0x1ece   :  { %v3968_v1 = vpop.xlane.xlu1 %3967 }
0x1ecf   :  { %v3970_v2 = vmul.f32 0.03125, %v3968_v1  ;;  %v3965_v3 = vpop.xlane.xlu0 %3964 }
0x1ed0   :  { %v3969_v4 = vmul.f32 0.03125, %v3965_v3 }
0x1ed1   :  { %v3972_v5 = vadd.f32 1e-06, %v3970_v2 }
0x1ed2   :  { %v3971_v6 = vadd.f32 1e-06, %v3969_v4 }
0x1ed3   :  { %13771 = vrsqrt.f32 %v3972_v5 }
0x1ed4   :  { %13773 = vrsqrt.f32 %v3971_v6 }
0x1edd   :  { %v13772_v10 = vpop.eup %13771 }
0x1ede   :  { %v13774_v11 = vpop.eup %13773  ;;  %v3976_v12 = vmul.f32 %v13772_v10, %v3960_v45 }
0x1edf   :  { %v3975_v13 = vmul.f32 %v13774_v11, %v3959_v46 }
0x1ee0   :  { %v3982_v14 = vmul.f32 %v3980_v8, %v3976_v12  ;;  %v4220_v12 = vld [vmem:[%s15663_s2 + $0x8] sm:$0xff] }
0x1ee1   :  { %v3981_v20 = vmul.f32 %v3980_v8, %v3975_v13  ;;  %v4219_v13 = vld [vmem:[%s15663_s2] sm:$0xff] }
0x1ee2   :  { %v3988_v18 = vadd.f32 %v3986_v33, %v3982_v14  ;;  %v4234_v14 = vld [vmem:[%s15664_s15 + $0x8] sm:$0xff] }
0x1ee3   :  { %v3987_v21 = vadd.f32 %v3986_v33, %v3981_v20  ;;  %v4233_v33 = vld [vmem:[%s15664_s15] sm:$0xff]  ;;  %v4235_v20 = vld [vmem:[%s15664_s15 + $0x10] sm:$0xff] }
0x1ee5   :  { %12929 = vmatprep.mubr.msk.f32.mxu1 %vm153_vm0, %v3987_v21 }
0x1ee6   :  { %12930 = vmatmul.mubr.msk.f32.vlgmr.msra.gmra.mrb[46].mxu1 %vm153_vm0, %v3988_v18 }
0x1fb9   :  { %v12931_v28 = vpop.f32.mrb[46].mxu1 }
0x1fba   :  { %v4080_v43 = vadd.f32 %v12931_v28, %v12100_v26  ;;  %v4074_v44 = vpop.f32.mrb[47].mxu1 }
0x1fbb   :  { %v4075_v35 = vadd.f32 %v12100_v26, %v4074_v44  ;;  %v13549_v26 = vpack.c.bf16 %v4360_v25, %v4359_v24 }
0x1fbc   :  { %v4084_v38 = vmax.f32 %v4080_v43, 0.0 }
0x1fbd   :  { %v4083_v36 = vmax.f32 %v4075_v35, 0.0 }
0x1fbf   :  { %12948 = vmatprep.mubr.msk.f32.mxu0 %vm2088_vm6, %v4083_v36 }
0x1fc0   :  { %12949 = vmatmul.mubr.msk.f32.vlgmr.msra.gmra.mrb[30].mxu0 %vm2088_vm6, %v4084_v38 }
0x1fc1   :  { %12975 = vmatprep.mubr.msk.f32.mxu0 %vm13938_vm1, %v13937_v42 }
0x2093   :  { %v12950_v40 = vpop.f32.mrb[30].mxu0 }
0x2094   :  { %v4176_v9 = vadd.f32 %v12950_v40, %v4097_v15  ;;  %v4170_v45 = vpop.f32.mrb[31].mxu0 }
0x2095   :  { %v4171_v46 = vadd.f32 %v4170_v45, %v4097_v15 }
0x2096   :  { %v4180_v47 = vadd.f32 %v4176_v9, %v3988_v18  ;;  %v4236_v18 = vld [vmem:[%s15664_s15 + $0x18] sm:$0xff]  ;;  %s15745_s15 = sld [smem:[#allocation9_spill]] }
0x2097   :  { %v4179_v49 = vadd.f32 %v4171_v46, %v3987_v21  ;;  %v13541_v21 = vpack.c.bf16 %v4234_v14, %v4233_v33  ;;  %v13545_v22 = vpack.c.bf16 %v4236_v18, %v4235_v20  ;;  %v73_v18 = vld [vmem:[%s15666_s1] sm:$0x3] }
0x2098   :  { %v4184_v32 = vsel %vm153_vm0, %v4180_v47, 0.0  ;;  %vm74_vm7 = vcmp.ne.s32.totalorder %v73_v18, 0 }
0x2099   :  { %4185 = vadd.xlane.f32.xlu1 %v4184_v32  ;;  %v4181_v52 = vsel %vm153_vm0, %v4179_v49, 0.0  ;;  %13542 = vmatprep.subr.bf16.mxu1 %v13541_v21 }
0x209a   :  { %4182 = vadd.xlane.f32.xlu0 %v4181_v52  ;;  %13544 = vmatpush3.bf16.msra.mxu1 %v13541_v21 }
0x209b   :  { %13546 = vmatprep.subr.bf16.mxu1 %v13545_v22 }
0x209d   :  { %4324 = vadd.xlane.f32.xlu1 %v4323_v53  ;;  %v4216_v53 = vrot.slane %v14615_v7, %v14394_v19 }
0x209e   :  { %4321 = vadd.xlane.f32.xlu0 %v4320_v54  ;;  %13548 = vmatpush3.bf16.msra.mxu1 %v13545_v22  ;;  %v106_v22 = vsel %vm74_vm7, 1, %v13936_v17 }
0x209f   :  { %13550 = vmatprep.subr.bf16.mxu1 %v13549_v26  ;;  %v113_v24 = vrot.slane %v106_v22, %v14147_v51 }
0x20a1   :  { %v114_v25 = vcombine.high %v113_v24, %v113_v24 }
0x2126   :  { %v4186_v34 = vpop.xlane.xlu1 %4185 }
0x2127   :  { %v4183_v55 = vpop.xlane.xlu0 %4182  ;;  %v4188_v37 = vmul.f32 0.03125, %v4186_v34 }
0x2128   :  { %v4187_v56 = vmul.f32 0.03125, %v4183_v55  ;;  %v13935_v55 = vld [vmem:[%s15729_s28] sm:$0xf] }
0x2129   :  { %v4190_v61 = vsub.f32 %v4180_v47, %v4188_v37  ;;  %v4349_v37 = vrot.slane %v13935_v55, %v14391_v16 }
0x212a   :  { %v4325_v58 = vpop.xlane.xlu1 %4324  ;;  %v4189_v0 = vsub.f32 %v4179_v49, %v4187_v56 }
0x212b   :  { %v4327_v41 = vmul.f32 0.03125, %v4325_v58  ;;  %v4322_v39 = vpop.xlane.xlu0 %4321  ;;  %v4192_v5 = vmul.f32 %v4190_v61, %v4190_v61 }
0x212c   :  { %v4326_v60 = vmul.f32 0.03125, %v4322_v39  ;;  %v4191_v8 = vmul.f32 %v4189_v0, %v4189_v0 }
0x212d   :  { %v14649_v63 = vsub.f32 %v4319_v50, %v4327_v41  ;;  %v4196_v10 = vsel %vm153_vm0, %v4192_v5, 0.0  ;;  %v4210_v50 = vrot.slane %v14615_v7, %v14391_v16  ;;  %v4361_v7 = vld [vmem:[%s15665_s12 + $0x10] sm:$0xff] }
0x212e   :  { %v4328_v1 = vsub.f32 %v4318_v30, %v4326_v60  ;;  %v4193_v11 = vsel %vm153_vm0, %v4191_v8, 0.0 }
0x212f   :  { %v4331_v2 = vmul.f32 %v14649_v63, %v14649_v63 }
0x2130   :  { %v4330_v3 = vmul.f32 %v4328_v1, %v4328_v1 }
0x2131   :  { %v4335_v4 = vsel %vm153_vm0, %v4331_v2, 0.0 }
0x2132   :  { %4336 = vadd.xlane.f32.xlu1 %v4335_v4  ;;  %v4332_v6 = vsel %vm153_vm0, %v4330_v3, 0.0 }
0x2133   :  { %4333 = vadd.xlane.f32.xlu0 %v4332_v6 }
0x2136   :  { %4197 = vadd.xlane.f32.xlu1 %v4196_v10 }
0x2137   :  { %4194 = vadd.xlane.f32.xlu0 %v4193_v11 }
0x2147   :  { %4228 = vperm.xlu1 %13694, %v4220_v12  }
0x214d   :  { %4223 = vperm.xlu0 %13693, %v4219_v13  }
0x21bf   :  { %v4337_v28 = vpop.xlane.xlu1 %4336 }
0x21c0   :  { %v4334_v43 = vpop.xlane.xlu0 %4333  ;;  %v4339_v9 = vmul.f32 0.03125, %v4337_v28 }
0x21c1   :  { %v4338_v44 = vmul.f32 0.03125, %v4334_v43  ;;  %v105_v43 = vand.u32 127, %v79_v23 }
0x21c2   :  { %v4341_v47 = vadd.f32 1e-06, %v4339_v9 }
0x21c3   :  { %v4340_v35 = vadd.f32 1e-06, %v4338_v44  ;;  %v4198_v36 = vpop.xlane.xlu1 %4197  ;;  %vm131_vm9 = vcmp.ge.s32.totalorder %v14096_v27, %v105_v43 }
0x21c4   :  { %v4200_v38 = vmul.f32 0.03125, %v4198_v36  ;;  %v4195_v15 = vpop.xlane.xlu0 %4194 }
0x21c5   :  { %v4199_v40 = vmul.f32 0.03125, %v4195_v15  ;;  %13775 = vrsqrt.f32 %v4340_v35 }
0x21c6   :  { %v4202_v45 = vadd.f32 1e-06, %v4200_v38 }
0x21c7   :  { %v4201_v46 = vadd.f32 1e-06, %v4199_v40  ;;  %v4229_v2 = vpop.permute.xlu1 %4228 }
0x21c8   :  { %13777 = vrsqrt.f32 %v4202_v45  ;;  %v121_v45 = vrot.slane %v113_v24, %v14147_v51 }
0x21c9   :  { %13779 = vrsqrt.f32 %v4201_v46 }
0x21ca   :  { %13781 = vrsqrt.f32 %v4341_v47  ;;  %vm129_vm12 = vcmp.ne.s32.totalorder %v121_v45, 0 }
0x21cb   :  { %v132_v46 = vsel %vm129_vm12, 1, %v13936_v17 }
0x21cc   :  { %v4224_v39 = vpop.permute.xlu0 %4223  ;;  %v137_v47 = vrot.slane %v132_v46, %v14099_v29 }
0x21ce   :  { %vm142_vm13 = vcmp.eq.s32.totalorder %v137_v47, 1 }
0x21cf   :  { %v13776_v49 = vpop.eup %13775  ;;  %vm146_vm14 = vmand %vm142_vm13, %vm131_vm9 }
0x21d0   :  { %v4344_v34 = vmul.f32 %v13776_v49, %v4328_v1  ;;  %v14761_v49 = vsel %vm146_vm14, 0.0, %v13941_v57 }
0x21d2   :  { %v13778_v32 = vpop.eup %13777  ;;  %v4350_v4 = vmul.f32 %v4349_v37, %v4344_v34 }
0x21d3   :  { %v13780_v30 = vpop.eup %13779  ;;  %v4206_v52 = vmul.f32 %v13778_v32, %v4190_v61  ;;  %v4355_v61 = vrot.slane %v13935_v55, %v14394_v19 }
0x21d4   :  { %v4205_v54 = vmul.f32 %v13780_v30, %v4189_v0  ;;  %v13782_v60 = vpop.eup %13781  ;;  %v4362_v0 = vld [vmem:[%s15665_s12 + $0x18] sm:$0xff] }
0x21d5   :  { %v4212_v56 = vmul.f32 %v4210_v50, %v4206_v52  ;;  %v4345_v5 = vmul.f32 %v13782_v60, %v14649_v63  ;;  %v13553_v8 = vpack.c.bf16 %v4362_v0, %v4361_v7  ;;  %v14698_v10 = vadd.f32 %v4355_v61, %v4350_v4 }
0x21d6   :  { %v4211_v58 = vmul.f32 %v4210_v50, %v4205_v54 }
0x21d7   :  { %v4218_v41 = vadd.f32 %v4216_v53, %v4212_v56  ;;  %v4351_v11 = vmul.f32 %v4349_v37, %v4345_v5 }
0x21d8   :  { %v4217_v3 = vadd.f32 %v4216_v53, %v4211_v58 }
0x21d9   :  { %v4232_v6 = vmul.f32 %v4229_v2, %v4218_v41  ;;  %v14703_v12 = vadd.f32 %v4355_v61, %v4351_v11 }
0x21da   :  { %v4231_v1 = vmul.f32 %v4224_v39, %v4217_v3 }
0x21dc   :  { %12959 = vmatprep.mubr.msk.f32.mxu1 %vm153_vm0, %v4231_v1 }
0x21dd   :  { %12960 = vmatmul.mubr.msk.f32.vlgmr.msra.gmra.mrb[48].mxu1 %vm153_vm0, %v4232_v6 }
0x21de   :  { %13552 = vmatpush3.bf16.msra.mxu1 %v13549_v26  ;;  %12970 = vmatprep.mubr.msk.f32.mxu1 %vm153_vm0, %v14698_v10  ;;  %v128_v26 = vrot.slane %v114_v25, %v14147_v51 }
0x21df   :  { %13554 = vmatprep.subr.bf16.mxu1 %v13553_v8 }
0x21e0   :  { %vm130_vm8 = vcmp.ne.s32.totalorder %v128_v26, 0 }
0x21e1   :  { %v133_v28 = vsel %vm130_vm8, 1, %v13936_v17 }
0x21e2   :  { %13556 = vmatpush3.bf16.msra.mxu1 %v13553_v8  ;;  %v141_v44 = vrot.slane %v133_v28, %v14099_v29 }
0x21e3   :  { %12978 = vmatprep.subr.mxu1 %v13937_v42 }
0x21e4   :  { %vm143_vm10 = vcmp.eq.s32.totalorder %v141_v44, 1 }
0x21e5   :  { %12971 = vmatmul.mubr.msk.f32.vlgmr.msra.gmra.mrb[50].mxu1 %vm153_vm0, %v14703_v12  ;;  %vm147_vm11 = vmand %vm143_vm10, %vm131_vm9 }
0x21e6   :  { %12980 = vmatprep.mubr.msk.f32.mxu1 %vm13938_vm1, %v13937_v42  ;;  %v14747_v35 = vsel %vm147_vm11, 0.0, %v13941_v57 }
0x22b0   :  { %v14710_v63 = vpop.f32.mrb[48].mxu1 }
0x22b1   :  { %v14712_v13 = vpop.f32.mrb[49].mxu1 }
0x22b8   :  { %v14714_v33 = vpop.f32.mrb[50].mxu1 }
0x22b9   :  { %4526 = vrot.lane.b32.xlu1 %v14714_v33, %s15734_s6  ;;  %v14718_v14 = vpop.f32.mrb[51].mxu1 }
0x22bd   :  { %4449 = vrot.lane.b32.xlu1 %v14718_v14, %s15734_s6 }
0x232b   :  { %v4527_v20 = vpop.permute.xlu1 %4526 }
0x232c   :  { %12979 = vmatpush3.xpose.msk.msra.mxu1 %vm298_vm2, %v4527_v20 }
0x232d   :  { %12988 = vmatprep.subr.mxu1 %v13937_v42 }
0x232f   :  { %12981 = vmatmul.mubr.msk.f32.vlgmr.msra.gmra.mrb[52].mxu1 %vm298_vm2, %v14714_v33  ;;  %v4450_v21 = vpop.permute.xlu1 %4449 }
0x2330   :  { %12974 = vmatpush3.xpose.msk.msra.mxu0 %vm298_vm2, %v4450_v21  ;;  %12990 = vmatprep.mubr.msk.f32.mxu1 %vm13938_vm1, %v13937_v42 }
0x2331   :  { %12983 = vmatprep.subr.mxu0 %v13937_v42 }
0x2333   :  { %12976 = vmatmul.mubr.msk.f32.vlgmr.msra.gmra.mrb[32].mxu0 %vm298_vm2, %v14718_v14 }
0x2334   :  { %12985 = vmatprep.mubr.msk.f32.mxu0 %vm13938_vm1, %v13937_v42 }
0x2402   :  { %v4598_v36 = vpop.f32.mrb[52].mxu1 }
0x2403   :  { %v4599_v38 = vadd.f32 %v4598_v36, %v14747_v35  ;;  %v12982_v15 = vpop.f32.mrb[53].mxu1 }
0x2405   :  { %v4605_v40 = vsel %vm298_vm2, %v4599_v38, -inf }
0x2406   :  { %v4521_v9 = vpop.f32.mrb[32].mxu0  ;;  %4606 = vmax.xlane.f32.xlu1 %v4605_v40 }
0x2407   :  { %v12977_v23 = vpop.f32.mrb[33].mxu0  ;;  %v4522_v50 = vadd.f32 %v4521_v9, %v14761_v49 }
0x2409   :  { %v4602_v32 = vsel %vm298_vm2, %v4522_v50, -inf }
0x2417   :  { %4700 = vrot.lane.b32.xlu1 %v14714_v33, %s15738_s7 }
0x241b   :  { %4854 = vrot.lane.b32.xlu1 %v14714_v33, %s15736_s5 }
0x243f   :  { %4603 = vmax.xlane.f32.xlu1 %v4602_v32 }
0x2450   :  { %4624 = vrot.lane.b32.xlu1 %v14718_v14, %s15738_s7 }
0x2454   :  { %4776 = vrot.lane.b32.xlu1 %v14718_v14, %s15736_s5 }
0x2493   :  { %v4607_v17 = vpop.xlane.xlu1 %4606 }
0x2494   :  { %v4609_v51 = vsub.f32 %v4599_v38, %v4607_v17 }
0x2496   :  { %v4612_v30 = vmul.f32 1.442695, %v4609_v51 }
0x2497   :  { %v4701_v52 = vpop.permute.xlu1 %4700 }
0x2498   :  { %13783 = vpow2.f32 %v4612_v30  ;;  %12989 = vmatpush3.msra.mxu1 %v4701_v52 }
0x2499   :  { %12998 = vmatprep.subr.mxu1 %v13937_v42 }
0x249b   :  { %v4855_v54 = vpop.permute.xlu1 %4854 }
0x24a2   :  { %v13784_v57 = vpop.eup %13783 }
0x24a3   :  { %v4617_v53 = vsel %vm298_vm2, %v13784_v57, 0.0 }
0x24a4   :  { %4618 = vadd.xlane.f32.xlu0 %v4617_v53 }
0x24ba   :  { %4856 = vrot.lane.b32.xlu0 %v14714_v33, %s15735_s10 }
0x24cc   :  { %v4604_v34 = vpop.xlane.xlu1 %4603 }
0x24cd   :  { %v4608_v55 = vsub.f32 %v4522_v50, %v4604_v34 }
0x24cf   :  { %v4610_v37 = vmul.f32 1.442695, %v4608_v55 }
0x24d0   :  { %v4625_v56 = vpop.permute.xlu1 %4624 }
0x24d1   :  { %13785 = vpow2.f32 %v4610_v37  ;;  %12984 = vmatpush3.msra.mxu0 %v4625_v56 }
0x24d2   :  { %12993 = vmatprep.subr.mxu0 %v13937_v42 }
0x24d4   :  { %v4777_v1 = vpop.permute.xlu1 %4776 }
0x24db   :  { %v13786_v58 = vpop.eup %13785 }
0x24dc   :  { %v4614_v41 = vsel %vm298_vm2, %v13786_v58, 0.0 }
0x24dd   :  { %4615 = vadd.xlane.f32.xlu0 %v4614_v41 }
0x24f3   :  { %4778 = vrot.lane.b32.xlu0 %v14718_v14, %s15735_s10 }
0x2531   :  { %v4619_v39 = vpop.xlane.xlu0 %4618 }
0x2532   :  { %13787 = vrcp.f32 %v4619_v39 }
0x2535   :  { %v4857_v3 = vpop.permute.xlu0 %4856 }
0x253c   :  { %v13788_v60 = vpop.eup %13787 }
0x253d   :  { %v4623_v2 = vmul.f32 %v13788_v60, %v13784_v57 }
0x253f   :  { %12991 = vmatmul.mubr.msk.f32.vlgmr.msra.gmra.mrb[54].mxu1 %vm298_vm2, %v4623_v2 }
0x2540   :  { %12999 = vmatpush3.xpose.msk.msra.mxu1 %vm298_vm2, %v4857_v3  ;;  %13000 = vmatprep.mubr.msk.f32.mxu1 %vm13938_vm1, %v13937_v42 }
0x2541   :  { %13008 = vmatprep.subr.mxu1 %v13937_v42 }
0x2543   :  { %13001 = vmatmul.mubr.msk.f32.vlgmr.msra.gmra.mrb[56].mxu1 %vm298_vm2, %v4855_v54 }
0x2544   :  { %13010 = vmatprep.mubr.msk.f32.mxu1 %vm13938_vm1, %v13937_v42 }
0x256a   :  { %v4616_v4 = vpop.xlane.xlu0 %4615 }
0x256b   :  { %13789 = vrcp.f32 %v4616_v4 }
0x256e   :  { %v4779_v0 = vpop.permute.xlu0 %4778 }
0x2575   :  { %v13790_v61 = vpop.eup %13789 }
0x2576   :  { %v4622_v7 = vmul.f32 %v13790_v61, %v13786_v58 }
0x2578   :  { %12986 = vmatmul.mubr.msk.f32.vlgmr.msra.gmra.mrb[34].mxu0 %vm298_vm2, %v4622_v7  ;;  %v4445_v7 = vld [vmem:[%s15667_s13 + $0x8] sm:$0xff] }
0x2579   :  { %12994 = vmatpush3.xpose.msk.msra.mxu0 %vm298_vm2, %v4779_v0  ;;  %12995 = vmatprep.mubr.msk.f32.mxu0 %vm13938_vm1, %v13937_v42  ;;  %v4444_v0 = vld [vmem:[%s15667_s13] sm:$0xff] }
0x257a   :  { %13003 = vmatprep.subr.mxu0 %v13937_v42 }
0x257c   :  { %12996 = vmatmul.mubr.msk.f32.vlgmr.msra.gmra.mrb[36].mxu0 %vm298_vm2, %v4777_v1 }
0x257d   :  { %13005 = vmatprep.mubr.msk.f32.mxu0 %vm13938_vm1, %v13937_v42 }
0x2612   :  { %v14793_v5 = vpop.f32.mrb[54].mxu1 }
0x2613   :  { %v12992_v6 = vpop.f32.mrb[55].mxu1 }
0x2616   :  { %v4928_v8 = vpop.f32.mrb[56].mxu1 }
0x2617   :  { %v4929_v11 = vadd.f32 %v4928_v8, %v14747_v35  ;;  %v13002_v20 = vpop.f32.mrb[57].mxu1 }
0x2619   :  { %v4935_v21 = vsel %vm298_vm2, %v4929_v11, -inf }
0x261a   :  { %4936 = vmax.xlane.f32.xlu1 %v4935_v21 }
0x262b   :  { %5030 = vrot.lane.b32.xlu1 %v14714_v33, %s15739_s29 }
0x262f   :  { %5268 = vrot.lane.b32.xlu1 %v14718_v14, %s15740_s8 }
0x2633   :  { %5348 = vrot.lane.b32.xlu1 %v14714_v33, %s15737_s27 }
0x2637   :  { %5346 = vrot.lane.b32.xlu1 %v14714_v33, %s15740_s8 }
0x264b   :  { %v14805_v18 = vpop.f32.mrb[34].mxu0 }
0x264c   :  { %v12987_v22 = vpop.f32.mrb[35].mxu0 }
0x264f   :  { %v4850_v24 = vpop.f32.mrb[36].mxu0 }
0x2650   :  { %v12997_v25 = vpop.f32.mrb[37].mxu0  ;;  %v4851_v15 = vadd.f32 %v4850_v24, %v14761_v49 }
0x2652   :  { %v4932_v40 = vsel %vm298_vm2, %v4851_v15, -inf }
0x26a7   :  { %v4937_v26 = vpop.xlane.xlu1 %4936 }
0x26a8   :  { %v4939_v28 = vsub.f32 %v4929_v11, %v4937_v26 }
0x26aa   :  { %v4942_v43 = vmul.f32 1.442695, %v4939_v28 }
0x26ab   :  { %v5031_v44 = vpop.permute.xlu1 %5030 }
0x26ac   :  { %13791 = vpow2.f32 %v4942_v43  ;;  %13009 = vmatpush3.msra.mxu1 %v5031_v44  ;;  %v4446_v44 = vld [vmem:[%s15667_s13 + $0x10] sm:$0xff] }
0x26ad   :  { %13023 = vmatprep.subr.mxu1 %v13937_v42 }
0x26af   :  { %v5269_v23 = vpop.permute.xlu1 %5268 }
0x26b3   :  { %v5349_v50 = vpop.permute.xlu1 %5348 }
0x26b6   :  { %v13792_v36 = vpop.eup %13791 }
0x26b7   :  { %v4947_v38 = vsel %vm298_vm2, %v13792_v36, 0.0  ;;  %v5347_v32 = vpop.permute.xlu1 %5346 }
0x26b8   :  { %4948 = vadd.xlane.f32.xlu0 %v4947_v38 }
0x26ce   :  { %5270 = vrot.lane.b32.xlu0 %v14718_v14, %s15737_s27 }
0x26ed   :  { %4933 = vmax.xlane.f32.xlu0 %v4932_v40 }
0x2703   :  { %4954 = vrot.lane.b32.xlu0 %v14718_v14, %s15739_s29 }
0x2707   :  { %5446 = vrot.lane.b32.xlu0 %v14718_v14, %s15741_s0 }
0x270b   :  { %5683 = vrot.lane.b32.xlu0 %v14718_v14, %s15742_s30 }
0x270f   :  { %5761 = vrot.lane.b32.xlu0 %v14714_v33, %s15742_s30 }
0x2713   :  { %5681 = vrot.lane.b32.xlu0 %v14718_v14, %s15743_s25 }
0x2717   :  { %5759 = vrot.lane.b32.xlu0 %v14714_v33, %s15743_s25 }
0x2745   :  { %v4949_v9 = vpop.xlane.xlu0 %4948 }
0x2746   :  { %13793 = vrcp.f32 %v4949_v9 }
0x2749   :  { %v5271_v47 = vpop.permute.xlu0 %5270 }
0x2750   :  { %v13794_v45 = vpop.eup %13793 }
0x2751   :  { %v4953_v46 = vmul.f32 %v13794_v45, %v13792_v36 }
0x2753   :  { %13011 = vmatmul.mubr.msk.f32.vlgmr.msra.gmra.mrb[58].mxu1 %vm298_vm2, %v4953_v46 }
0x2754   :  { %13024 = vmatpush3.xpose.msk.msra.mxu1 %vm298_vm2, %v5271_v47  ;;  %13025 = vmatprep.mubr.msk.f32.mxu1 %vm13938_vm1, %v13937_v42 }
0x2755   :  { %13028 = vmatprep.subr.mxu1 %v13937_v42 }
0x2757   :  { %13026 = vmatmul.mubr.msk.f32.vlgmr.msra.gmra.mrb[60].mxu1 %vm298_vm2, %v5269_v23 }
0x2758   :  { %13029 = vmatpush3.xpose.msk.msra.mxu1 %vm298_vm2, %v5349_v50  ;;  %13030 = vmatprep.mubr.msk.f32.mxu1 %vm13938_vm1, %v13937_v42 }
0x2759   :  { %13038 = vmatprep.subr.mxu1 %v13937_v42 }
0x275b   :  { %13031 = vmatmul.mubr.msk.f32.vlgmr.msra.gmra.mrb[62].mxu1 %vm298_vm2, %v5347_v32 }
0x275c   :  { %13040 = vmatprep.mubr.msk.f32.mxu1 %vm13938_vm1, %v13937_v42 }
0x277a   :  { %v4934_v17 = vpop.xlane.xlu0 %4933 }
0x277b   :  { %v4938_v51 = vsub.f32 %v4851_v15, %v4934_v17 }
0x277d   :  { %v4940_v30 = vmul.f32 1.442695, %v4938_v51 }
0x277e   :  { %v4955_v52 = vpop.permute.xlu0 %4954 }
0x277f   :  { %13795 = vpow2.f32 %v4940_v30  ;;  %13004 = vmatpush3.msra.mxu0 %v4955_v52 }
0x2780   :  { %13013 = vmatprep.subr.mxu0 %v4445_v7 }
0x2782   :  { %v5447_v36 = vpop.permute.xlu0 %5446 }
0x2786   :  { %v5684_v40 = vpop.permute.xlu0 %5683 }
0x2789   :  { %v13796_v57 = vpop.eup %13795 }
0x278a   :  { %v4944_v53 = vsel %vm298_vm2, %v13796_v57, 0.0 }
0x278b   :  { %4945 = vadd.xlane.f32.xlu1 %v4944_v53 }
0x2818   :  { %v4946_v54 = vpop.xlane.xlu1 %4945 }
0x2819   :  { %13797 = vrcp.f32 %v4946_v54 }
0x2823   :  { %v13798_v34 = vpop.eup %13797 }
0x2824   :  { %v4952_v55 = vmul.f32 %v13798_v34, %v13796_v57 }
0x2826   :  { %13006 = vmatmul.mubr.msk.f32.vlgmr.msra.gmra.mrb[38].mxu0 %vm298_vm2, %v4952_v55  ;;  %v5102_v37 = vpop.f32.mrb[58].mxu1 }
0x2827   :  { %v13012_v56 = vpop.f32.mrb[59].mxu1  ;;  %13014 = vmatpush3.msra.mxu0 %v4445_v7 }
0x2828   :  { %13018 = vmatprep.subr.mxu0 %v4444_v0 }
0x282a   :  { %v5342_v58 = vpop.f32.mrb[60].mxu1 }
0x282b   :  { %v5343_v41 = vadd.f32 %v5342_v58, %v14761_v49  ;;  %v13027_v39 = vpop.f32.mrb[61].mxu1 }
0x282d   :  { %v5424_v60 = vsel %vm298_vm2, %v5343_v41, -inf }
0x282e   :  { %5425 = vmax.xlane.f32.xlu1 %v5424_v60  ;;  %v5420_v2 = vpop.f32.mrb[62].mxu1 }
0x282f   :  { %v5421_v3 = vadd.f32 %v5420_v2, %v14747_v35  ;;  %v13032_v4 = vpop.f32.mrb[63].mxu1 }
0x2831   :  { %v5427_v61 = vsel %vm298_vm2, %v5421_v3, -inf }
0x2832   :  { %5428 = vmax.xlane.f32.xlu1 %v5427_v61 }
0x28bb   :  { %v5426_v1 = vpop.xlane.xlu1 %5425 }
0x28bc   :  { %v5430_v6 = vsub.f32 %v5343_v41, %v5426_v1 }
0x28be   :  { %v5432_v8 = vmul.f32 1.442695, %v5430_v6 }
0x28bf   :  { %v5429_v11 = vpop.xlane.xlu1 %5428 }
0x28c0   :  { %13799 = vpow2.f32 %v5432_v8  ;;  %v5431_v20 = vsub.f32 %v5421_v3, %v5429_v11 }
0x28c2   :  { %v5434_v21 = vmul.f32 1.442695, %v5431_v20  ;;  %v4447_v20 = vld [vmem:[%s15667_s13 + $0x18] sm:$0xff] }
0x28c4   :  { %13801 = vpow2.f32 %v5434_v21 }
0x28ca   :  { %v13800_v22 = vpop.eup %13799 }
0x28cb   :  { %v5436_v24 = vsel %vm298_vm2, %v13800_v22, 0.0 }
0x28cc   :  { %5437 = vadd.xlane.f32.xlu1 %v5436_v24 }
0x28ce   :  { %v13802_v25 = vpop.eup %13801 }
0x28cf   :  { %v5439_v26 = vsel %vm298_vm2, %v13802_v25, 0.0 }
0x28d0   :  { %5440 = vadd.xlane.f32.xlu1 %v5439_v26 }
0x28e1   :  { %5522 = vrot.lane.b32.xlu1 %v14714_v33, %s15741_s0 }
0x28f9   :  { %v5026_v28 = vpop.f32.mrb[38].mxu0 }
0x28fa   :  { %v13007_v43 = vpop.f32.mrb[39].mxu0  ;;  %13015 = vmatprep.mubr.msk.f32.mxu0 %vm298_vm2, %v5026_v28 }
0x28fb   :  { %13016 = vmatmul.mubr.msk.f32.vlgmr.msra.gmra.mrb[40].mxu0 %vm298_vm2, %v5102_v37 }
0x28fc   :  { %13020 = vmatprep.mubr.msk.f32.mxu0 %vm298_vm2, %v14805_v18  ;;  %13019 = vmatpush3.msra.mxu0 %v4444_v0 }
0x28fd   :  { %13033 = vmatprep.subr.mxu0 %v13937_v42 }
0x2903   :  { %13021 = vmatmul.mubr.msk.f32.vlgmr.msra.gmra.mrb[40].mxu0 %vm298_vm2, %v14793_v5  ;;  %v5762_v5 = vpop.permute.xlu0 %5761 }
0x2904   :  { %13034 = vmatpush3.msra.mxu0 %v5447_v36  ;;  %13035 = vmatprep.mubr.msk.f32.mxu0 %vm13938_vm1, %v13937_v42 }
0x2905   :  { %13043 = vmatprep.subr.mxu0 %v4446_v44 }
0x2907   :  { %v5682_v47 = vpop.permute.xlu0 %5681 }
0x290b   :  { %v5760_v30 = vpop.permute.xlu0 %5759 }
0x2959   :  { %v5438_v38 = vpop.xlane.xlu1 %5437 }
0x295a   :  { %13803 = vrcp.f32 %v5438_v38 }
0x295d   :  { %v5441_v15 = vpop.xlane.xlu1 %5440 }
0x295e   :  { %13805 = vrcp.f32 %v5441_v15 }
0x2961   :  { %v5523_v18 = vpop.permute.xlu1 %5522 }
0x2962   :  { %13039 = vmatpush3.msra.mxu1 %v5523_v18 }
0x2963   :  { %13048 = vmatprep.subr.mxu1 %v13937_v42 }
0x2964   :  { %v13804_v9 = vpop.eup %13803 }
0x2965   :  { %v5444_v23 = vmul.f32 %v13804_v9, %v13800_v22 }
0x2967   :  { %13036 = vmatmul.mubr.msk.f32.vlgmr.msra.gmra.mrb[42].mxu0 %vm298_vm2, %v5444_v23 }
0x2968   :  { %v13806_v45 = vpop.eup %13805  ;;  %13044 = vmatpush3.msra.mxu0 %v4446_v44 }
0x2969   :  { %v5445_v46 = vmul.f32 %v13806_v45, %v13802_v25  ;;  %13053 = vmatprep.subr.mxu0 %v13937_v42 }
0x296b   :  { %13041 = vmatmul.mubr.msk.f32.vlgmr.msra.gmra.mrb[64].mxu1 %vm298_vm2, %v5445_v46 }
0x296c   :  { %13049 = vmatpush3.xpose.msk.msra.mxu1 %vm298_vm2, %v5684_v40  ;;  %13050 = vmatprep.mubr.msk.f32.mxu1 %vm13938_vm1, %v13937_v42 }
0x296d   :  { %13058 = vmatprep.subr.mxu1 %v13937_v42 }
0x296f   :  { %13051 = vmatmul.mubr.msk.f32.vlgmr.msra.gmra.mrb[66].mxu1 %vm298_vm2, %v5682_v47 }
0x2970   :  { %13060 = vmatprep.mubr.msk.f32.mxu1 %vm13938_vm1, %v13937_v42 }
0x2a3a   :  { %v5518_v50 = vpop.f32.mrb[42].mxu0 }
0x2a3b   :  { %v13037_v32 = vpop.f32.mrb[43].mxu0  ;;  %13045 = vmatprep.mubr.msk.f32.mxu0 %vm298_vm2, %v5518_v50 }
0x2a3e   :  { %v5594_v17 = vpop.f32.mrb[64].mxu1 }
0x2a3f   :  { %v13042_v51 = vpop.f32.mrb[65].mxu1  ;;  %13046 = vmatmul.mubr.msk.f32.vlgmr.msra.gmra.mrb[40].mxu0 %vm298_vm2, %v5594_v17  ;;  %v6135_v17 = vld [vmem:[%s15745_s15 + $0x8] sm:$0xff] }
0x2a40   :  { %13054 = vmatpush3.xpose.msk.msra.mxu0 %vm298_vm2, %v5762_v5  ;;  %13055 = vmatprep.mubr.msk.f32.mxu0 %vm13938_vm1, %v13937_v42 }
0x2a41   :  { %13063 = vmatprep.subr.mxu0 %v13937_v42 }
0x2a42   :  { %v5755_v52 = vpop.f32.mrb[66].mxu1 }
0x2a43   :  { %v5756_v57 = vadd.f32 %v5755_v52, %v14761_v49  ;;  %v13052_v53 = vpop.f32.mrb[67].mxu1  ;;  %13056 = vmatmul.mubr.msk.f32.vlgmr.msra.gmra.mrb[44].mxu0 %vm298_vm2, %v5760_v30  ;;  %v6136_v30 = vld [vmem:[%s15745_s15 + $0x10] sm:$0xff]  ;;  %v6137_v52 = vld [vmem:[%s15745_s15 + $0x18] sm:$0xff] }
0x2a44   :  { %13065 = vmatprep.mubr.msk.f32.mxu0 %vm13938_vm1, %v13937_v42 }
0x2a45   :  { %v5837_v54 = vsel %vm298_vm2, %v5756_v57, -inf }
0x2a46   :  { %5838 = vmax.xlane.f32.xlu1 %v5837_v54 }
0x2ad3   :  { %v5839_v34 = vpop.xlane.xlu1 %5838 }
0x2ad4   :  { %v5843_v55 = vsub.f32 %v5756_v57, %v5839_v34  ;;  %v13561_v57 = vpack.c.bf16 %v6137_v52, %v6136_v30 }
0x2ad6   :  { %v5845_v37 = vmul.f32 1.442695, %v5843_v55 }
0x2ad8   :  { %13807 = vpow2.f32 %v5845_v37 }
0x2ae2   :  { %v13808_v60 = vpop.eup %13807 }
0x2ae3   :  { %v5849_v2 = vsel %vm298_vm2, %v13808_v60, 0.0 }
0x2b16   :  { %v5833_v56 = vpop.f32.mrb[44].mxu0 }
0x2b17   :  { %v5834_v58 = vadd.f32 %v5833_v56, %v14747_v35  ;;  %v13057_v41 = vpop.f32.mrb[45].mxu0 }
0x2b19   :  { %v5840_v39 = vsel %vm298_vm2, %v5834_v58, -inf }
0x2b1a   :  { %5841 = vmax.xlane.f32.xlu0 %v5840_v39 }
0x2b1e   :  { %5850 = vadd.xlane.f32.xlu0 %v5849_v2 }
0x2b34   :  { %5859 = vrot.lane.b32.xlu0 %v14718_v14, %s15744_s22 }
0x2ba7   :  { %v5842_v3 = vpop.xlane.xlu0 %5841 }
0x2ba8   :  { %v5844_v4 = vsub.f32 %v5834_v58, %v5842_v3  ;;  %v14933_v58 = vld [vmem:[%s15746_s16] sm:$0x7f] }
0x2ba9   :  { %v6125_v41 = vrot.slane %v14933_v58, %v14099_v29 }
0x2baa   :  { %v5847_v61 = vmul.f32 1.442695, %v5844_v4  ;;  %v6131_v4 = vrot.slane %v14933_v58, %v14105_v31 }
0x2bab   :  { %v5851_v7 = vpop.xlane.xlu0 %5850 }
0x2bac   :  { %13809 = vpow2.f32 %v5847_v61 }
0x2bad   :  { %13811 = vrcp.f32 %v5851_v7 }
0x2baf   :  { %v5860_v0 = vpop.permute.xlu0 %5859 }
0x2bb0   :  { %13059 = vmatpush3.msra.mxu1 %v5860_v0 }
0x2bb6   :  { %v13810_v1 = vpop.eup %13809 }
0x2bb7   :  { %v13812_v6 = vpop.eup %13811  ;;  %v5852_v8 = vsel %vm298_vm2, %v13810_v1, 0.0 }
0x2bb8   :  { %5853 = vadd.xlane.f32.xlu1 %v5852_v8  ;;  %v5857_v11 = vmul.f32 %v13812_v6, %v13808_v60 }
0x2bba   :  { %13061 = vmatmul.mubr.msk.f32.vlgmr.msra.gmra.mrb[68].mxu1 %vm298_vm2, %v5857_v11 }
0x2bc9   :  { %5935 = vrot.lane.b32.xlu1 %v14714_v33, %s15744_s22 }
0x2c45   :  { %v5854_v14 = vpop.xlane.xlu1 %5853 }
0x2c46   :  { %13813 = vrcp.f32 %v5854_v14 }
0x2c49   :  { %v5936_v21 = vpop.permute.xlu1 %5935 }
0x2c4a   :  { %13064 = vmatpush3.msra.mxu0 %v5936_v21 }
0x2c4b   :  { %13068 = vmatprep.subr.mxu0 %v4447_v20 }
0x2c50   :  { %v13814_v22 = vpop.eup %13813 }
0x2c51   :  { %v5858_v24 = vmul.f32 %v13814_v22, %v13810_v1 }
0x2c53   :  { %13066 = vmatmul.mubr.msk.f32.vlgmr.msra.gmra.mrb[46].mxu0 %vm298_vm2, %v5858_v24 }
0x2c54   :  { %13069 = vmatpush3.msra.mxu0 %v4447_v20 }
0x2c55   :  { %13084 = vmatprep.subr.mxu0 %v13937_v42 }
0x2c8d   :  { %v5931_v25 = vpop.f32.mrb[68].mxu1 }
0x2c8e   :  { %v13062_v26 = vpop.f32.mrb[69].mxu1  ;;  %13070 = vmatprep.mubr.msk.f32.mxu0 %vm298_vm2, %v5931_v25 }
0x2d26   :  { %v6007_v33 = vpop.f32.mrb[46].mxu0 }
0x2d27   :  { %v13067_v28 = vpop.f32.mrb[47].mxu0  ;;  %13071 = vmatmul.mubr.msk.f32.vlgmr.msra.gmra.mrb[40].mxu0 %vm298_vm2, %v6007_v33 }
0x2d28   :  { %13085 = vmatpush3.xpose.msk.msra.mxu0 %vm298_vm2, %v14712_v13  ;;  %13086 = vmatprep.mubr.msk.f32.mxu0 %vm13938_vm1, %v13937_v42 }
0x2d29   :  { %13094 = vmatprep.subr.mxu0 %v13937_v42 }
0x2dfa   :  { %v13072_v43 = vpop.f32.mrb[40].mxu0 }
0x2dfb   :  { %v6095_v44 = vadd.f32 %v13072_v43, %v14703_v12  ;;  %v6083_v36 = vpop.f32.mrb[41].mxu0 }
0x2dfc   :  { %v6094_v38 = vadd.f32 %v6083_v36, %v14698_v10  ;;  %v6134_v10 = vld [vmem:[%s15745_s15] sm:$0xff] }
0x2dfd   :  { %v6099_v15 = vsel %vm153_vm0, %v6095_v44, 0.0  ;;  %v13557_v51 = vpack.c.bf16 %v6135_v17, %v6134_v10 }
0x2dfe   :  { %6100 = vadd.xlane.f32.xlu0 %v6099_v15  ;;  %v6096_v18 = vsel %vm153_vm0, %v6094_v38, 0.0 }
0x2dff   :  { %6097 = vadd.xlane.f32.xlu1 %v6096_v18  ;;  %13558 = vmatprep.subr.bf16.mxu1 %v13557_v51 }
0x2e00   :  { %13560 = vmatpush3.bf16.msra.mxu1 %v13557_v51 }
0x2e01   :  { %13562 = vmatprep.subr.bf16.mxu1 %v13561_v57 }
0x2e04   :  { %13564 = vmatpush3.bf16.msra.mxu1 %v13561_v57 }
0x2e05   :  { %13089 = vmatprep.subr.mxu1 %v13937_v42 }
0x2e8b   :  { %v6101_v40 = vpop.xlane.xlu0 %6100 }
0x2e8c   :  { %v6103_v9 = vmul.f32 0.03125, %v6101_v40  ;;  %v6098_v23 = vpop.xlane.xlu1 %6097 }
0x2e8d   :  { %v6102_v45 = vmul.f32 0.03125, %v6098_v23 }
0x2e8e   :  { %v6105_v5 = vsub.f32 %v6095_v44, %v6103_v9 }
0x2e8f   :  { %v6104_v46 = vsub.f32 %v6094_v38, %v6102_v45 }
0x2e90   :  { %v6107_v47 = vmul.f32 %v6105_v5, %v6105_v5 }
0x2e91   :  { %v6106_v50 = vmul.f32 %v6104_v46, %v6104_v46 }
0x2e92   :  { %v6111_v32 = vsel %vm153_vm0, %v6107_v47, 0.0 }
0x2e93   :  { %6112 = vadd.xlane.f32.xlu1 %v6111_v32  ;;  %v6108_v12 = vsel %vm153_vm0, %v6106_v50, 0.0 }
0x2e94   :  { %6109 = vadd.xlane.f32.xlu0 %v6108_v12 }
0x2ea4   :  { %6629 = vrot.lane.b32.xlu1 %v14710_v63, %s15736_s5 }
0x2f20   :  { %v6113_v53 = vpop.xlane.xlu1 %6112 }
0x2f21   :  { %v6115_v54 = vmul.f32 0.03125, %v6113_v53  ;;  %v6110_v34 = vpop.xlane.xlu0 %6109 }
0x2f22   :  { %v6114_v55 = vmul.f32 0.03125, %v6110_v34 }
0x2f23   :  { %v6117_v37 = vadd.f32 1e-06, %v6115_v54 }
0x2f24   :  { %v6116_v56 = vadd.f32 1e-06, %v6114_v55 }
0x2f25   :  { %13815 = vrsqrt.f32 %v6117_v37 }
0x2f26   :  { %13817 = vrsqrt.f32 %v6116_v56 }
0x2f2f   :  { %v13816_v39 = vpop.eup %13815 }
0x2f30   :  { %v13818_v60 = vpop.eup %13817  ;;  %v6121_v2 = vmul.f32 %v13816_v39, %v6105_v5  ;;  %v6630_v5 = vpop.permute.xlu1 %6629 }
0x2f31   :  { %v6120_v3 = vmul.f32 %v13818_v60, %v6104_v46 }
0x2f32   :  { %v6127_v61 = vmul.f32 %v6125_v41, %v6121_v2 }
0x2f33   :  { %v6126_v7 = vmul.f32 %v6125_v41, %v6120_v3 }
0x2f34   :  { %v14941_v1 = vadd.f32 %v6131_v4, %v6127_v61 }
0x2f35   :  { %v14939_v0 = vadd.f32 %v6131_v4, %v6126_v7 }
0x2f37   :  { %13081 = vmatprep.mubr.msk.f32.mxu1 %vm153_vm0, %v14939_v0 }
0x2f38   :  { %13082 = vmatmul.mubr.msk.f32.vlgmr.msra.gmra.mrb[70].mxu1 %vm153_vm0, %v14941_v1 }
0x2f39   :  { %13090 = vmatpush3.xpose.msk.msra.mxu1 %vm298_vm2, %v14710_v63  ;;  %13091 = vmatprep.mubr.msk.f32.mxu1 %vm13938_vm1, %v13937_v42 }
0x2f3a   :  { %13099 = vmatprep.subr.mxu1 %v13937_v42 }
0x300b   :  { %v14952_v6 = vpop.f32.mrb[70].mxu1 }
0x300c   :  { %v14954_v8 = vpop.f32.mrb[71].mxu1  ;;  %13092 = vmatmul.mubr.msk.f32.vlgmr.msra.gmra.mrb[72].mxu1 %vm298_vm2, %v14952_v6 }
0x300d   :  { %13087 = vmatmul.mubr.msk.f32.vlgmr.msra.gmra.mrb[48].mxu0 %vm298_vm2, %v14954_v8  ;;  %13101 = vmatprep.mubr.msk.f32.mxu1 %vm13938_vm1, %v13937_v42 }
0x300e   :  { %13096 = vmatprep.mubr.msk.f32.mxu0 %vm13938_vm1, %v13937_v42 }
0x30df   :  { %v6371_v11 = vpop.f32.mrb[72].mxu1 }
0x30e0   :  { %v6372_v14 = vadd.f32 %v6371_v11, %v14159_v62  ;;  %v6295_v20 = vpop.f32.mrb[48].mxu0  ;;  %v13093_v21 = vpop.f32.mrb[73].mxu1 }
0x30e1   :  { %v13088_v22 = vpop.f32.mrb[49].mxu0  ;;  %v6296_v25 = vadd.f32 %v6295_v20, %v14155_v59 }
0x30e2   :  { %v6378_v24 = vsel %vm298_vm2, %v6372_v14, -inf }
0x30e3   :  { %6379 = vmax.xlane.f32.xlu0 %v6378_v24  ;;  %v6375_v26 = vsel %vm298_vm2, %v6296_v25, -inf }
0x30f9   :  { %6473 = vrot.lane.b32.xlu0 %v14710_v63, %s15734_s6 }
0x3118   :  { %6376 = vmax.xlane.f32.xlu0 %v6375_v26 }
0x312e   :  { %6397 = vrot.lane.b32.xlu0 %v14712_v13, %s15734_s6 }
0x3132   :  { %6549 = vrot.lane.b32.xlu0 %v14954_v8, %s15736_s5 }
0x3170   :  { %v6380_v33 = vpop.xlane.xlu0 %6379 }
0x3171   :  { %v6382_v28 = vsub.f32 %v6372_v14, %v6380_v33 }
0x3173   :  { %v6385_v43 = vmul.f32 1.442695, %v6382_v28 }
0x3174   :  { %v6474_v44 = vpop.permute.xlu0 %6473 }
0x3175   :  { %13819 = vpow2.f32 %v6385_v43  ;;  %13100 = vmatpush3.msra.mxu1 %v6474_v44 }
0x3176   :  { %13109 = vmatprep.subr.mxu1 %v13937_v42 }
0x317f   :  { %v13820_v36 = vpop.eup %13819 }
0x3180   :  { %v6390_v38 = vsel %vm298_vm2, %v13820_v36, 0.0 }
0x3181   :  { %6391 = vadd.xlane.f32.xlu1 %v6390_v38 }
0x3192   :  { %6627 = vrot.lane.b32.xlu1 %v14952_v6, %s15736_s5 }
0x31a5   :  { %v6377_v15 = vpop.xlane.xlu0 %6376 }
0x31a6   :  { %v6381_v18 = vsub.f32 %v6296_v25, %v6377_v15 }
0x31a8   :  { %v6383_v40 = vmul.f32 1.442695, %v6381_v18 }
0x31a9   :  { %v6398_v9 = vpop.permute.xlu0 %6397 }
0x31aa   :  { %13821 = vpow2.f32 %v6383_v40  ;;  %13095 = vmatpush3.msra.mxu0 %v6398_v9 }
0x31ab   :  { %13104 = vmatprep.subr.mxu0 %v13937_v42 }
0x31ad   :  { %v6550_v30 = vpop.permute.xlu0 %6549 }
0x31b4   :  { %v13822_v23 = vpop.eup %13821 }
0x31b5   :  { %v6387_v45 = vsel %vm298_vm2, %v13822_v23, 0.0 }
0x31b6   :  { %6388 = vadd.xlane.f32.xlu1 %v6387_v45 }
0x31c7   :  { %6551 = vrot.lane.b32.xlu1 %v14712_v13, %s15736_s5 }
0x320e   :  { %v6392_v46 = vpop.xlane.xlu1 %6391 }
0x320f   :  { %13823 = vrcp.f32 %v6392_v46 }
0x3212   :  { %v6628_v32 = vpop.permute.xlu1 %6627 }
0x3219   :  { %v13824_v47 = vpop.eup %13823 }
0x321a   :  { %v6396_v50 = vmul.f32 %v13824_v47, %v13820_v36 }
0x321c   :  { %13102 = vmatmul.mubr.msk.f32.vlgmr.msra.gmra.mrb[74].mxu1 %vm298_vm2, %v6396_v50 }
0x321d   :  { %13110 = vmatpush3.xpose.msk.msra.mxu1 %vm298_vm2, %v6630_v5  ;;  %13111 = vmatprep.mubr.msk.f32.mxu1 %vm13938_vm1, %v13937_v42 }
0x321e   :  { %13119 = vmatprep.subr.mxu1 %v13937_v42 }
0x3220   :  { %13112 = vmatmul.mubr.msk.f32.vlgmr.msra.gmra.mrb[76].mxu1 %vm298_vm2, %v6628_v32 }
0x3221   :  { %13121 = vmatprep.mubr.msk.f32.mxu1 %vm13938_vm1, %v13937_v42 }
0x3243   :  { %v6389_v12 = vpop.xlane.xlu1 %6388 }
0x3244   :  { %13825 = vrcp.f32 %v6389_v12 }
0x3247   :  { %v6552_v51 = vpop.permute.xlu1 %6551 }
0x324e   :  { %v13826_v10 = vpop.eup %13825 }
0x324f   :  { %v6395_v17 = vmul.f32 %v13826_v10, %v13822_v23  ;;  %v6220_v10 = vld [vmem:[%s15747_s9 + $0x8] sm:$0xff] }
0x3251   :  { %13097 = vmatmul.mubr.msk.f32.vlgmr.msra.gmra.mrb[50].mxu0 %vm298_vm2, %v6395_v17  ;;  %v6219_v17 = vld [vmem:[%s15747_s9] sm:$0xff] }
0x3252   :  { %13105 = vmatpush3.xpose.msk.msra.mxu0 %vm298_vm2, %v6552_v51  ;;  %13106 = vmatprep.mubr.msk.f32.mxu0 %vm13938_vm1, %v13937_v42 }
0x3253   :  { %13114 = vmatprep.subr.mxu0 %v13937_v42 }
0x3255   :  { %13107 = vmatmul.mubr.msk.f32.vlgmr.msra.gmra.mrb[52].mxu0 %vm298_vm2, %v6550_v30 }
0x3256   :  { %13116 = vmatprep.mubr.msk.f32.mxu0 %vm13938_vm1, %v13937_v42 }
0x32ef   :  { %v14998_v52 = vpop.f32.mrb[74].mxu1 }
0x32f0   :  { %v13103_v57 = vpop.f32.mrb[75].mxu1 }
0x32f3   :  { %v6701_v53 = vpop.f32.mrb[76].mxu1 }
0x32f4   :  { %v6702_v54 = vadd.f32 %v6701_v53, %v14159_v62  ;;  %v13113_v34 = vpop.f32.mrb[77].mxu1 }
0x32f6   :  { %v6708_v55 = vsel %vm298_vm2, %v6702_v54, -inf }
0x32f7   :  { %6709 = vmax.xlane.f32.xlu1 %v6708_v55 }
0x3308   :  { %7043 = vrot.lane.b32.xlu1 %v14712_v13, %s15740_s8 }
0x330c   :  { %7041 = vrot.lane.b32.xlu1 %v14954_v8, %s15740_s8 }
0x3310   :  { %7119 = vrot.lane.b32.xlu1 %v14952_v6, %s15740_s8 }
0x3324   :  { %v15008_v37 = vpop.f32.mrb[50].mxu0 }
0x3325   :  { %v13098_v56 = vpop.f32.mrb[51].mxu0 }
0x3328   :  { %v6623_v41 = vpop.f32.mrb[52].mxu0 }
0x3329   :  { %v13108_v39 = vpop.f32.mrb[53].mxu0  ;;  %v6624_v7 = vadd.f32 %v6623_v41, %v14155_v59 }
0x332b   :  { %v6705_v11 = vsel %vm298_vm2, %v6624_v7, -inf }
0x3384   :  { %v6710_v60 = vpop.xlane.xlu1 %6709 }
0x3385   :  { %v6712_v2 = vsub.f32 %v6702_v54, %v6710_v60 }
0x3387   :  { %v6715_v3 = vmul.f32 1.442695, %v6712_v2 }
0x3388   :  { %v7044_v21 = vpop.permute.xlu1 %7043 }
0x3389   :  { %13827 = vpow2.f32 %v6715_v3  ;;  %v6221_v3 = vld [vmem:[%s15747_s9 + $0x10] sm:$0xff] }
0x338c   :  { %v7042_v25 = vpop.permute.xlu1 %7041 }
0x3393   :  { %v13828_v4 = vpop.eup %13827 }
0x3394   :  { %v6720_v61 = vsel %vm298_vm2, %v13828_v4, 0.0 }
0x3395   :  { %6721 = vadd.xlane.f32.xlu0 %v6720_v61 }
0x33ab   :  { %6803 = vrot.lane.b32.xlu0 %v14710_v63, %s15735_s10 }
0x33af   :  { %7121 = vrot.lane.b32.xlu0 %v14710_v63, %s15740_s8 }
0x33ce   :  { %6706 = vmax.xlane.f32.xlu0 %v6705_v11 }
0x33e4   :  { %6727 = vrot.lane.b32.xlu0 %v14712_v13, %s15735_s10 }
0x33e8   :  { %7219 = vrot.lane.b32.xlu0 %v14712_v13, %s15737_s27 }
0x33ec   :  { %7456 = vrot.lane.b32.xlu0 %v14712_v13, %s15743_s25 }
0x33f0   :  { %7534 = vrot.lane.b32.xlu0 %v14710_v63, %s15743_s25 }
0x33f4   :  { %7454 = vrot.lane.b32.xlu0 %v14954_v8, %s15743_s25  ;;  %v7120_v8 = vpop.permute.xlu1 %7119 }
0x33f8   :  { %7532 = vrot.lane.b32.xlu0 %v14952_v6, %s15743_s25 }
0x3422   :  { %v6722_v14 = vpop.xlane.xlu0 %6721 }
0x3423   :  { %13829 = vrcp.f32 %v6722_v14 }
0x3426   :  { %v6804_v20 = vpop.permute.xlu0 %6803 }
0x3427   :  { %13120 = vmatpush3.msra.mxu1 %v6804_v20 }
0x3428   :  { %13134 = vmatprep.subr.mxu1 %v13937_v42 }
0x342a   :  { %v7122_v6 = vpop.permute.xlu0 %7121 }
0x342d   :  { %v13830_v22 = vpop.eup %13829 }
0x342e   :  { %v6726_v24 = vmul.f32 %v13830_v22, %v13828_v4 }
0x3430   :  { %13122 = vmatmul.mubr.msk.f32.vlgmr.msra.gmra.mrb[78].mxu1 %vm298_vm2, %v6726_v24 }
0x3431   :  { %13135 = vmatpush3.xpose.msk.msra.mxu1 %vm298_vm2, %v7044_v21  ;;  %13136 = vmatprep.mubr.msk.f32.mxu1 %vm13938_vm1, %v13937_v42 }
0x3432   :  { %13139 = vmatprep.subr.mxu1 %v13937_v42 }
0x3434   :  { %13137 = vmatmul.mubr.msk.f32.vlgmr.msra.gmra.mrb[80].mxu1 %vm298_vm2, %v7042_v25 }
0x3435   :  { %13140 = vmatpush3.xpose.msk.msra.mxu1 %vm298_vm2, %v7122_v6  ;;  %13141 = vmatprep.mubr.msk.f32.mxu1 %vm13938_vm1, %v13937_v42 }
0x3436   :  { %13149 = vmatprep.subr.mxu1 %v13937_v42 }
0x3438   :  { %13142 = vmatmul.mubr.msk.f32.vlgmr.msra.gmra.mrb[82].mxu1 %vm298_vm2, %v7120_v8 }
0x3439   :  { %13151 = vmatprep.mubr.msk.f32.mxu1 %vm13938_vm1, %v13937_v42 }
0x345b   :  { %v6707_v26 = vpop.xlane.xlu0 %6706 }
0x345c   :  { %v6711_v33 = vsub.f32 %v6624_v7, %v6707_v26 }
0x345e   :  { %v6713_v28 = vmul.f32 1.442695, %v6711_v33 }
0x345f   :  { %v6728_v43 = vpop.permute.xlu0 %6727 }
0x3460   :  { %13831 = vpow2.f32 %v6713_v28  ;;  %13115 = vmatpush3.msra.mxu0 %v6728_v43 }
0x3461   :  { %13124 = vmatprep.subr.mxu0 %v6220_v10 }
0x3463   :  { %v7220_v4 = vpop.permute.xlu0 %7219 }
0x3467   :  { %v7457_v11 = vpop.permute.xlu0 %7456 }
0x346a   :  { %v13832_v44 = vpop.eup %13831 }
0x346b   :  { %v6717_v36 = vsel %vm298_vm2, %v13832_v44, 0.0 }
0x346c   :  { %6718 = vadd.xlane.f32.xlu1 %v6717_v36 }
0x34f9   :  { %v6719_v38 = vpop.xlane.xlu1 %6718 }
0x34fa   :  { %13833 = vrcp.f32 %v6719_v38 }
0x3503   :  { %v6875_v15 = vpop.f32.mrb[78].mxu1 }
0x3504   :  { %v13834_v18 = vpop.eup %13833  ;;  %v13123_v40 = vpop.f32.mrb[79].mxu1 }
0x3505   :  { %v6725_v9 = vmul.f32 %v13834_v18, %v13832_v44 }
0x3507   :  { %13117 = vmatmul.mubr.msk.f32.vlgmr.msra.gmra.mrb[54].mxu0 %vm298_vm2, %v6725_v9  ;;  %v7115_v23 = vpop.f32.mrb[80].mxu1 }
0x3508   :  { %v7116_v45 = vadd.f32 %v7115_v23, %v14155_v59  ;;  %v13138_v5 = vpop.f32.mrb[81].mxu1  ;;  %13125 = vmatpush3.msra.mxu0 %v6220_v10 }
0x3509   :  { %13129 = vmatprep.subr.mxu0 %v6219_v17 }
0x350a   :  { %v7197_v46 = vsel %vm298_vm2, %v7116_v45, -inf }
0x350b   :  { %v7193_v47 = vpop.f32.mrb[82].mxu1  ;;  %7198 = vmax.xlane.f32.xlu1 %v7197_v46 }
0x350c   :  { %v7194_v50 = vadd.f32 %v7193_v47, %v14159_v62  ;;  %v13143_v32 = vpop.f32.mrb[83].mxu1 }
0x350e   :  { %v7200_v12 = vsel %vm298_vm2, %v7194_v50, -inf }
0x350f   :  { %7201 = vmax.xlane.f32.xlu1 %v7200_v12 }
0x3598   :  { %v7199_v51 = vpop.xlane.xlu1 %7198 }
0x3599   :  { %v7203_v30 = vsub.f32 %v7116_v45, %v7199_v51 }
0x359b   :  { %v7205_v57 = vmul.f32 1.442695, %v7203_v30 }
0x359c   :  { %v7202_v53 = vpop.xlane.xlu1 %7201 }
0x359d   :  { %13835 = vpow2.f32 %v7205_v57  ;;  %v7204_v54 = vsub.f32 %v7194_v50, %v7202_v53 }
0x359f   :  { %v7207_v34 = vmul.f32 1.442695, %v7204_v54  ;;  %v6222_v54 = vld [vmem:[%s15747_s9 + $0x18] sm:$0xff] }
0x35a1   :  { %13837 = vpow2.f32 %v7207_v34 }
0x35a7   :  { %v13836_v55 = vpop.eup %13835 }
0x35a8   :  { %v7209_v56 = vsel %vm298_vm2, %v13836_v55, 0.0 }
0x35a9   :  { %7210 = vadd.xlane.f32.xlu1 %v7209_v56 }
0x35ab   :  { %v13838_v41 = vpop.eup %13837 }
0x35ac   :  { %v7212_v39 = vsel %vm298_vm2, %v13838_v41, 0.0 }
0x35ad   :  { %7213 = vadd.xlane.f32.xlu1 %v7212_v39 }
0x35be   :  { %7295 = vrot.lane.b32.xlu1 %v14710_v63, %s15737_s27 }
0x35da   :  { %v6799_v60 = vpop.f32.mrb[54].mxu0 }
0x35db   :  { %v13118_v2 = vpop.f32.mrb[55].mxu0  ;;  %13126 = vmatprep.mubr.msk.f32.mxu0 %vm298_vm2, %v6799_v60 }
0x35dc   :  { %13127 = vmatmul.mubr.msk.f32.vlgmr.msra.gmra.mrb[56].mxu0 %vm298_vm2, %v6875_v15 }
0x35dd   :  { %13131 = vmatprep.mubr.msk.f32.mxu0 %vm298_vm2, %v15008_v37  ;;  %13130 = vmatpush3.msra.mxu0 %v6219_v17 }
0x35de   :  { %13144 = vmatprep.subr.mxu0 %v13937_v42 }
0x35e4   :  { %13132 = vmatmul.mubr.msk.f32.vlgmr.msra.gmra.mrb[56].mxu0 %vm298_vm2, %v14998_v52  ;;  %v7535_v52 = vpop.permute.xlu0 %7534 }
0x35e5   :  { %13145 = vmatpush3.msra.mxu0 %v7220_v4  ;;  %13146 = vmatprep.mubr.msk.f32.mxu0 %vm13938_vm1, %v13937_v42 }
0x35e6   :  { %13154 = vmatprep.subr.mxu0 %v6221_v3 }
0x35e8   :  { %v7455_v24 = vpop.permute.xlu0 %7454 }
0x35ec   :  { %v7533_v33 = vpop.permute.xlu0 %7532 }
0x3636   :  { %v7211_v61 = vpop.xlane.xlu1 %7210 }
0x3637   :  { %13839 = vrcp.f32 %v7211_v61 }
0x363a   :  { %v7214_v7 = vpop.xlane.xlu1 %7213 }
0x363b   :  { %13841 = vrcp.f32 %v7214_v7 }
0x363e   :  { %v7296_v37 = vpop.permute.xlu1 %7295 }
0x363f   :  { %13150 = vmatpush3.msra.mxu1 %v7296_v37 }
0x3640   :  { %13159 = vmatprep.subr.mxu1 %v13937_v42 }
0x3641   :  { %v13840_v14 = vpop.eup %13839 }
0x3642   :  { %v7217_v20 = vmul.f32 %v13840_v14, %v13836_v55 }
0x3644   :  { %13147 = vmatmul.mubr.msk.f32.vlgmr.msra.gmra.mrb[58].mxu0 %vm298_vm2, %v7217_v20 }
0x3645   :  { %v13842_v21 = vpop.eup %13841  ;;  %13155 = vmatpush3.msra.mxu0 %v6221_v3 }
0x3646   :  { %v7218_v22 = vmul.f32 %v13842_v21, %v13838_v41  ;;  %13164 = vmatprep.subr.mxu0 %v13937_v42 }
0x3648   :  { %13152 = vmatmul.mubr.msk.f32.vlgmr.msra.gmra.mrb[84].mxu1 %vm298_vm2, %v7218_v22 }
0x3649   :  { %13160 = vmatpush3.xpose.msk.msra.mxu1 %vm298_vm2, %v7457_v11  ;;  %13161 = vmatprep.mubr.msk.f32.mxu1 %vm13938_vm1, %v13937_v42 }
0x364a   :  { %13169 = vmatprep.subr.mxu1 %v13937_v42 }
0x364c   :  { %13162 = vmatmul.mubr.msk.f32.vlgmr.msra.gmra.mrb[86].mxu1 %vm298_vm2, %v7455_v24 }
0x364d   :  { %13171 = vmatprep.mubr.msk.f32.mxu1 %vm13938_vm1, %v13937_v42 }
0x3717   :  { %v7291_v25 = vpop.f32.mrb[58].mxu0 }
0x3718   :  { %v13148_v6 = vpop.f32.mrb[59].mxu0  ;;  %13156 = vmatprep.mubr.msk.f32.mxu0 %vm298_vm2, %v7291_v25 }
0x371b   :  { %v7367_v8 = vpop.f32.mrb[84].mxu1 }
0x371c   :  { %v13153_v26 = vpop.f32.mrb[85].mxu1  ;;  %13157 = vmatmul.mubr.msk.f32.vlgmr.msra.gmra.mrb[56].mxu0 %vm298_vm2, %v7367_v8 }
0x371d   :  { %13165 = vmatpush3.xpose.msk.msra.mxu0 %vm298_vm2, %v7535_v52  ;;  %13166 = vmatprep.mubr.msk.f32.mxu0 %vm13938_vm1, %v13937_v42  ;;  %v7908_v26 = vld [vmem:[%s15748_s11 + $0x8] sm:$0xff] }
0x371e   :  { %13174 = vmatprep.subr.mxu0 %v13937_v42 }
0x371f   :  { %v7528_v28 = vpop.f32.mrb[86].mxu1 }
0x3720   :  { %v7529_v43 = vadd.f32 %v7528_v28, %v14155_v59  ;;  %v13163_v44 = vpop.f32.mrb[87].mxu1  ;;  %13167 = vmatmul.mubr.msk.f32.vlgmr.msra.gmra.mrb[60].mxu0 %vm298_vm2, %v7533_v33  ;;  %v7909_v28 = vld [vmem:[%s15748_s11 + $0x10] sm:$0xff] }
0x3721   :  { %13176 = vmatprep.mubr.msk.f32.mxu0 %vm13938_vm1, %v13937_v42 }
0x3722   :  { %v7610_v36 = vsel %vm298_vm2, %v7529_v43, -inf }
0x3723   :  { %7611 = vmax.xlane.f32.xlu1 %v7610_v36  ;;  %v8001_v36 = vld [vmem:[%s15749_s26] sm:$0xff] }
0x37b0   :  { %v7612_v38 = vpop.xlane.xlu1 %7611 }
0x37b1   :  { %v7616_v15 = vsub.f32 %v7529_v43, %v7612_v38  ;;  %v7910_v43 = vld [vmem:[%s15748_s11 + $0x18] sm:$0xff]  ;;  %v8002_v38 = vld [vmem:[%s15749_s26 + $0x8] sm:$0xff] }
0x37b2   :  { %v13569_v44 = vpack.c.bf16 %v7910_v43, %v7909_v28 }
0x37b3   :  { %v7618_v18 = vmul.f32 1.442695, %v7616_v15  ;;  %v8003_v15 = vld [vmem:[%s15749_s26 + $0x10] sm:$0xff] }
0x37b5   :  { %13843 = vpow2.f32 %v7618_v18  ;;  %v13573_v18 = vpack.c.bf16 %v8002_v38, %v8001_v36 }
0x37bf   :  { %v13844_v5 = vpop.eup %13843 }
0x37c0   :  { %v7622_v46 = vsel %vm298_vm2, %v13844_v5, 0.0 }
0x37f3   :  { %v7606_v40 = vpop.f32.mrb[60].mxu0 }
0x37f4   :  { %v7607_v9 = vadd.f32 %v7606_v40, %v14159_v62  ;;  %v13168_v23 = vpop.f32.mrb[61].mxu0  ;;  %v8004_v40 = vld [vmem:[%s15749_s26 + $0x18] sm:$0xff] }
0x37f5   :  { %v8005_v23 = vld [vmem:[%s15749_s26 + $0x20] sm:$0xff] }
0x37f6   :  { %v7613_v45 = vsel %vm298_vm2, %v7607_v9, -inf }
0x37f7   :  { %7614 = vmax.xlane.f32.xlu0 %v7613_v45  ;;  %v8006_v45 = vld [vmem:[%s15749_s26 + $0x28] sm:$0xff] }
0x37fb   :  { %7623 = vadd.xlane.f32.xlu0 %v7622_v46 }
0x3811   :  { %7632 = vrot.lane.b32.xlu0 %v14712_v13, %s15742_s30 }
0x3884   :  { %v7615_v47 = vpop.xlane.xlu0 %7614 }
0x3885   :  { %v7617_v50 = vsub.f32 %v7607_v9, %v7615_v47  ;;  %v13577_v9 = vpack.c.bf16 %v8004_v40, %v8003_v15 }
0x3887   :  { %v7620_v32 = vmul.f32 1.442695, %v7617_v50 }
0x3888   :  { %v7624_v12 = vpop.xlane.xlu0 %7623 }
0x3889   :  { %13845 = vpow2.f32 %v7620_v32 }
0x388a   :  { %13847 = vrcp.f32 %v7624_v12 }
0x388c   :  { %v7633_v10 = vpop.permute.xlu0 %7632 }
0x388d   :  { %13170 = vmatpush3.msra.mxu1 %v7633_v10 }
0x3893   :  { %v13846_v17 = vpop.eup %13845 }
0x3894   :  { %v13848_v51 = vpop.eup %13847  ;;  %v7625_v30 = vsel %vm298_vm2, %v13846_v17, 0.0 }
0x3895   :  { %7626 = vadd.xlane.f32.xlu1 %v7625_v30  ;;  %v7630_v57 = vmul.f32 %v13848_v51, %v13844_v5  ;;  %v13581_v5 = vpack.c.bf16 %v8006_v45, %v8005_v23  ;;  %v12190_v23 = vld [vmem:[%s15665_s12 + $0x28] sm:$0xff] }
0x3897   :  { %13172 = vmatmul.mubr.msk.f32.vlgmr.msra.gmra.mrb[88].mxu1 %vm298_vm2, %v7630_v57 }
0x38a6   :  { %7708 = vrot.lane.b32.xlu1 %v14710_v63, %s15742_s30 }
0x3922   :  { %v7627_v53 = vpop.xlane.xlu1 %7626 }
0x3923   :  { %13849 = vrcp.f32 %v7627_v53 }
0x3926   :  { %v7709_v34 = vpop.permute.xlu1 %7708 }
0x3927   :  { %13175 = vmatpush3.msra.mxu0 %v7709_v34 }
0x3928   :  { %13179 = vmatprep.subr.mxu0 %v6222_v54 }
0x392d   :  { %v13850_v55 = vpop.eup %13849 }
0x392e   :  { %v7631_v56 = vmul.f32 %v13850_v55, %v13846_v17  ;;  %v7898_v17 = vrot.slane %v14933_v58, %v14391_v16 }
0x3930   :  { %13177 = vmatmul.mubr.msk.f32.vlgmr.msra.gmra.mrb[62].mxu0 %vm298_vm2, %v7631_v56 }
0x3931   :  { %13180 = vmatpush3.msra.mxu0 %v6222_v54  ;;  %v7904_v54 = vrot.slane %v14933_v58, %v14394_v19 }
0x3932   :  { %13574 = vmatprep.subr.bf16.mxu0 %v13573_v18 }
0x396a   :  { %v7704_v41 = vpop.f32.mrb[88].mxu1 }
0x396b   :  { %v13173_v39 = vpop.f32.mrb[89].mxu1  ;;  %13181 = vmatprep.mubr.msk.f32.mxu0 %vm298_vm2, %v7704_v41 }
0x396c   :  { %v8007_v39 = vld [vmem:[%s15749_s26 + $0x30] sm:$0xff] }
0x3a03   :  { %v7780_v60 = vpop.f32.mrb[62].mxu0 }
0x3a04   :  { %v13178_v2 = vpop.f32.mrb[63].mxu0  ;;  %13182 = vmatmul.mubr.msk.f32.vlgmr.msra.gmra.mrb[56].mxu0 %vm298_vm2, %v7780_v60  ;;  %v8008_v60 = vld [vmem:[%s15749_s26 + $0x38] sm:$0xff] }
0x3a05   :  { %13576 = vmatpush3.bf16.msra.mxu0 %v13573_v18  ;;  %v13585_v2 = vpack.c.bf16 %v8008_v60, %v8007_v39 }
0x3a06   :  { %13578 = vmatprep.subr.bf16.mxu0 %v13577_v9 }
0x3a09   :  { %13580 = vmatpush3.bf16.msra.mxu0 %v13577_v9  ;;  %v12189_v9 = vld [vmem:[%s15665_s12 + $0x20] sm:$0xff] }
0x3a0a   :  { %13582 = vmatprep.subr.bf16.mxu0 %v13581_v5  ;;  %v13589_v45 = vpack.c.bf16 %v12190_v23, %v12189_v9 }
0x3a0d   :  { %13584 = vmatpush3.bf16.msra.mxu0 %v13581_v5  ;;  %v12191_v5 = vld [vmem:[%s15665_s12 + $0x30] sm:$0xff] }
0x3a0e   :  { %13586 = vmatprep.subr.bf16.mxu0 %v13585_v2 }
0x3a11   :  { %13588 = vmatpush3.bf16.msra.mxu0 %v13585_v2 }
0x3a12   :  { %13235 = vmatprep.subr.mxu0 %v13937_v42 }
0x3ad7   :  { %v13183_v3 = vpop.f32.mrb[56].mxu0 }
0x3ad8   :  { %v7868_v4 = vadd.f32 %v13183_v3, %v14941_v1  ;;  %v7856_v61 = vpop.f32.mrb[57].mxu0  ;;  %v12183_v3 = vld [vmem:[%s15750_s14] ss:$0 sm:$0xff] }
0x3ad9   :  { %v7867_v7 = vadd.f32 %v7856_v61, %v14939_v0  ;;  %v7907_v0 = vld [vmem:[%s15748_s11] sm:$0xff] }
0x3ada   :  { %v7872_v37 = vsel %vm153_vm0, %v7868_v4, 0.0  ;;  %v13565_v33 = vpack.c.bf16 %v7908_v26, %v7907_v0 }
0x3adb   :  { %7873 = vadd.xlane.f32.xlu0 %v7872_v37  ;;  %v7869_v11 = vsel %vm153_vm0, %v7867_v7, 0.0 }
0x3adc   :  { %7870 = vadd.xlane.f32.xlu1 %v7869_v11  ;;  %13566 = vmatprep.subr.bf16.mxu1 %v13565_v33 }
0x3add   :  { %13568 = vmatpush3.bf16.msra.mxu1 %v13565_v33 }
0x3ade   :  { %13570 = vmatprep.subr.bf16.mxu1 %v13569_v44 }
0x3ae1   :  { %13572 = vmatpush3.bf16.msra.mxu1 %v13569_v44 }
0x3ae2   :  { %13590 = vmatprep.subr.bf16.mxu1 %v13589_v45 }
0x3b68   :  { %v7874_v14 = vpop.xlane.xlu0 %7873 }
0x3b69   :  { %v7876_v20 = vmul.f32 0.03125, %v7874_v14  ;;  %v7871_v21 = vpop.xlane.xlu1 %7870 }
0x3b6a   :  { %v7875_v52 = vmul.f32 0.03125, %v7871_v21 }
0x3b6b   :  { %v7878_v22 = vsub.f32 %v7868_v4, %v7876_v20  ;;  %v8011_v20 = vsub.s32 6, %v14096_v27 }
0x3b6c   :  { %v7877_v24 = vsub.f32 %v7867_v7, %v7875_v52 }
0x3b6d   :  { %v7880_v25 = vmul.f32 %v7878_v22, %v7878_v22  ;;  %v8012_v21 = vrot.slane %v14933_v58, %v8011_v20 }
0x3b6e   :  { %v7879_v6 = vmul.f32 %v7877_v24, %v7877_v24 }
0x3b6f   :  { %v7884_v8 = vsel %vm153_vm0, %v7880_v25, 0.0 }
0x3b70   :  { %7885 = vadd.xlane.f32.xlu1 %v7884_v8  ;;  %v7881_v1 = vsel %vm153_vm0, %v7879_v6, 0.0 }
0x3b71   :  { %7882 = vadd.xlane.f32.xlu0 %v7881_v1 }
0x3bfd   :  { %v7886_v46 = vpop.xlane.xlu1 %7885 }
0x3bfe   :  { %v7888_v47 = vmul.f32 0.03125, %v7886_v46  ;;  %v7883_v50 = vpop.xlane.xlu0 %7882  ;;  %v12192_v46 = vld [vmem:[%s15665_s12 + $0x38] sm:$0xff]  ;;  %s13955_s12 = smov 8  }
0x3bff   :  { %v7887_v32 = vmul.f32 0.03125, %v7883_v50 }
0x3c00   :  { %v7890_v12 = vadd.f32 1e-06, %v7888_v47  ;;  %v13593_v47 = vpack.c.bf16 %v12192_v46, %v12191_v5 }
0x3c01   :  { %v7889_v10 = vadd.f32 1e-06, %v7887_v32 }
0x3c02   :  { %13851 = vrsqrt.f32 %v7890_v12 }
0x3c03   :  { %13853 = vrsqrt.f32 %v7889_v10 }
0x3c0c   :  { %v13852_v51 = vpop.eup %13851 }
0x3c0d   :  { %v13854_v30 = vpop.eup %13853  ;;  %v7894_v57 = vmul.f32 %v13852_v51, %v7878_v22 }
0x3c0e   :  { %v7893_v53 = vmul.f32 %v13854_v30, %v7877_v24  ;;  %v8130_v30 = vsub.s32 5, %v14096_v27 }
0x3c0f   :  { %v7900_v34 = vmul.f32 %v7898_v17, %v7894_v57  ;;  %v8125_v57 = vrot.slane %v14933_v58, %v14369_v48 }
0x3c10   :  { %v7899_v55 = vmul.f32 %v7898_v17, %v7893_v53 }
0x3c11   :  { %v7906_v41 = vadd.f32 %v7904_v54, %v7900_v34 }
0x3c12   :  { %v7905_v56 = vadd.f32 %v7904_v54, %v7899_v55 }
0x3c14   :  { %13192 = vmatprep.mubr.msk.f32.mxu1 %vm153_vm0, %v7905_v56 }
0x3c15   :  { %13193 = vmatmul.mubr.msk.f32.vlgmr.msra.gmra.mrb[90].mxu1 %vm153_vm0, %v7906_v41 }
0x3c16   :  { %13592 = vmatpush3.bf16.msra.mxu1 %v13589_v45 }
0x3c17   :  { %13594 = vmatprep.subr.bf16.mxu1 %v13593_v47 }
0x3c1a   :  { %13596 = vmatpush3.bf16.msra.mxu1 %v13593_v47 }
0x3c1b   :  { %13225 = vmatprep.subr.mxu1 %v13937_v42 }
0x3ce8   :  { %v13194_v4 = vpop.f32.mrb[90].mxu1 }
0x3ce9   :  { %v7996_v61 = vadd.f32 %v13194_v4, %v12183_v3  ;;  %v7990_v7 = vpop.f32.mrb[91].mxu1 }
0x3cea   :  { %v7991_v37 = vadd.f32 %v12183_v3, %v7990_v7 }
0x3ceb   :  { %v8000_v14 = vmax.f32 %v7996_v61, 0.0 }
0x3cec   :  { %v7999_v11 = vmax.f32 %v7991_v37, 0.0 }
0x3cee   :  { %13211 = vmatprep.mubr.msk.f32.mxu0 %vm2088_vm6, %v7999_v11 }
0x3cef   :  { %13212 = vmatmul.mubr.msk.f32.vlgmr.msra.gmra.mrb[64].mxu0 %vm2088_vm6, %v8000_v14 }
0x3cf0   :  { %13237 = vmatprep.mubr.msk.f32.mxu0 %vm13938_vm1, %v13937_v42 }
0x3dc2   :  { %v13213_v52 = vpop.f32.mrb[64].mxu0 }
0x3dc3   :  { %v8091_v22 = vadd.f32 %v13213_v52, %v8012_v21  ;;  %v8085_v24 = vpop.f32.mrb[65].mxu0 }
0x3dc4   :  { %v8086_v25 = vadd.f32 %v8085_v24, %v8012_v21 }
0x3dc5   :  { %v8095_v6 = vadd.f32 %v8091_v22, %v7906_v41 }
0x3dc6   :  { %v8094_v8 = vadd.f32 %v8086_v25, %v7905_v56  ;;  %v8131_v56 = vrot.slane %v14933_v58, %v8130_v30 }
0x3dc7   :  { %v8099_v1 = vsel %vm153_vm0, %v8095_v6, 0.0 }
0x3dc8   :  { %8100 = vadd.xlane.f32.xlu1 %v8099_v1  ;;  %v8096_v0 = vsel %vm153_vm0, %v8094_v8, 0.0 }
0x3dc9   :  { %8097 = vadd.xlane.f32.xlu0 %v8096_v0 }
0x3e55   :  { %v8101_v26 = vpop.xlane.xlu1 %8100 }
0x3e56   :  { %v8103_v33 = vmul.f32 0.03125, %v8101_v26  ;;  %v8098_v28 = vpop.xlane.xlu0 %8097 }
0x3e57   :  { %v8102_v43 = vmul.f32 0.03125, %v8098_v28 }
0x3e58   :  { %v8105_v44 = vsub.f32 %v8095_v6, %v8103_v33 }
0x3e59   :  { %v8104_v36 = vsub.f32 %v8094_v8, %v8102_v43 }
0x3e5a   :  { %v8107_v38 = vmul.f32 %v8105_v44, %v8105_v44 }
0x3e5b   :  { %v8106_v15 = vmul.f32 %v8104_v36, %v8104_v36 }
0x3e5c   :  { %v8111_v18 = vsel %vm153_vm0, %v8107_v38, 0.0 }
0x3e5d   :  { %8112 = vadd.xlane.f32.xlu1 %v8111_v18  ;;  %v8108_v40 = vsel %vm153_vm0, %v8106_v15, 0.0 }
0x3e5e   :  { %8109 = vadd.xlane.f32.xlu0 %v8108_v40 }
0x3eea   :  { %v8113_v50 = vpop.xlane.xlu1 %8112 }
0x3eeb   :  { %v8115_v32 = vmul.f32 0.03125, %v8113_v50  ;;  %v8110_v12 = vpop.xlane.xlu0 %8109 }
0x3eec   :  { %v8114_v10 = vmul.f32 0.03125, %v8110_v12 }
0x3eed   :  { %v8117_v17 = vadd.f32 1e-06, %v8115_v32 }
0x3eee   :  { %v8116_v51 = vadd.f32 1e-06, %v8114_v10 }
0x3eef   :  { %13855 = vrsqrt.f32 %v8117_v17 }
0x3ef0   :  { %13857 = vrsqrt.f32 %v8116_v51 }
0x3ef9   :  { %v13856_v53 = vpop.eup %13855 }
0x3efa   :  { %v13858_v54 = vpop.eup %13857  ;;  %v8121_v34 = vmul.f32 %v13856_v53, %v8105_v44 }
0x3efb   :  { %v8120_v55 = vmul.f32 %v13858_v54, %v8104_v36 }
0x3efc   :  { %v8127_v41 = vmul.f32 %v8125_v57, %v8121_v34 }
0x3efd   :  { %v8126_v39 = vmul.f32 %v8125_v57, %v8120_v55 }
0x3efe   :  { %v15193_v2 = vadd.f32 %v8131_v56, %v8127_v41 }
0x3eff   :  { %v15191_v60 = vadd.f32 %v8131_v56, %v8126_v39 }
0x3f01   :  { %13222 = vmatprep.mubr.msk.f32.mxu1 %vm153_vm0, %v15191_v60 }
0x3f02   :  { %13223 = vmatmul.mubr.msk.f32.vlgmr.msra.gmra.mrb[92].mxu1 %vm153_vm0, %v15193_v2 }
0x3f03   :  { %13227 = vmatprep.mubr.msk.f32.mxu1 %vm13938_vm1, %v13937_v42 }
0x3fd5   :  { %v15201_v3 = vpop.f32.mrb[92].mxu1 }
0x3fd6   :  { %8305 = vrot.lane.b32.xlu1 %v15201_v3, %s15734_s6  ;;  %v15205_v58 = vpop.f32.mrb[93].mxu1 }
0x3fd7   :  { %8228 = vrot.lane.b32.xlu0 %v15205_v58, %s15734_s6 }
0x4048   :  { %v8306_v61 = vpop.permute.xlu1 %8305 }
0x4049   :  { %v8229_v4 = vpop.permute.xlu0 %8228 }
0x404a   :  { %13226 = vmatpush3.xpose.msk.msra.mxu1 %vm298_vm2, %v8229_v4 }
0x404b   :  { %13230 = vmatprep.subr.mxu1 %v13937_v42 }
0x404d   :  { %13228 = vmatmul.mubr.msk.f32.vlgmr.msra.gmra.mrb[94].mxu1 %vm298_vm2, %v15205_v58 }
0x404e   :  { %13231 = vmatpush3.xpose.msk.msra.mxu1 %vm298_vm2, %v8306_v61  ;;  %13232 = vmatprep.mubr.msk.f32.mxu1 %vm13938_vm1, %v13937_v42 }
0x404f   :  { %13240 = vmatprep.subr.mxu1 %v13937_v42 }
0x4051   :  { %13233 = vmatmul.mubr.msk.f32.vlgmr.msra.gmra.mrb[96].mxu1 %vm298_vm2, %v15201_v3 }
0x4052   :  { %13242 = vmatprep.mubr.msk.f32.mxu1 %vm13938_vm1, %v13937_v42 }
0x4120   :  { %v8300_v7 = vpop.f32.mrb[94].mxu1 }
0x4121   :  { %v13229_v37 = vpop.f32.mrb[95].mxu1  ;;  %v8301_v1 = vadd.f32 %v8300_v7, %v14761_v49 }
0x4123   :  { %v8381_v0 = vsel %vm298_vm2, %v8301_v1, -inf }
0x4124   :  { %v8377_v11 = vpop.f32.mrb[96].mxu1 }
0x4125   :  { %v8378_v14 = vadd.f32 %v8377_v11, %v14747_v35  ;;  %v13234_v21 = vpop.f32.mrb[97].mxu1 }
0x4127   :  { %v8384_v52 = vsel %vm298_vm2, %v8378_v14, -inf }
0x4128   :  { %8385 = vmax.xlane.f32.xlu1 %v8384_v52 }
0x4139   :  { %8635 = vrot.lane.b32.xlu1 %v15201_v3, %s15735_s10 }
0x413d   :  { %8633 = vrot.lane.b32.xlu1 %v15201_v3, %s15736_s5 }
0x41b5   :  { %v8386_v22 = vpop.xlane.xlu1 %8385 }
0x41b6   :  { %v8388_v24 = vsub.f32 %v8378_v14, %v8386_v22 }
0x41b8   :  { %v8391_v25 = vmul.f32 1.442695, %v8388_v24 }
0x41b9   :  { %v8636_v43 = vpop.permute.xlu1 %8635 }
0x41ba   :  { %13859 = vpow2.f32 %v8391_v25 }
0x41bd   :  { %v8634_v36 = vpop.permute.xlu1 %8633 }
0x41c4   :  { %v13860_v6 = vpop.eup %13859 }
0x41c5   :  { %v8396_v8 = vsel %vm298_vm2, %v13860_v6, 0.0 }
0x41c6   :  { %8397 = vadd.xlane.f32.xlu0 %v8396_v8 }
0x41dc   :  { %8479 = vrot.lane.b32.xlu0 %v15201_v3, %s15738_s7 }
0x41fb   :  { %8382 = vmax.xlane.f32.xlu0 %v8381_v0 }
0x4211   :  { %8403 = vrot.lane.b32.xlu0 %v15205_v58, %s15738_s7 }
0x4215   :  { %8555 = vrot.lane.b32.xlu0 %v15205_v58, %s15736_s5 }
0x4253   :  { %v8398_v26 = vpop.xlane.xlu0 %8397 }
0x4254   :  { %13861 = vrcp.f32 %v8398_v26 }
0x4257   :  { %v8480_v33 = vpop.permute.xlu0 %8479 }
0x4258   :  { %13241 = vmatpush3.msra.mxu1 %v8480_v33 }
0x4259   :  { %13250 = vmatprep.subr.mxu1 %v13937_v42 }
0x425e   :  { %v13862_v28 = vpop.eup %13861 }
0x425f   :  { %v8402_v44 = vmul.f32 %v13862_v28, %v13860_v6 }
0x4261   :  { %13243 = vmatmul.mubr.msk.f32.vlgmr.msra.gmra.mrb[98].mxu1 %vm298_vm2, %v8402_v44 }
0x4262   :  { %13251 = vmatpush3.xpose.msk.msra.mxu1 %vm298_vm2, %v8636_v43  ;;  %13252 = vmatprep.mubr.msk.f32.mxu1 %vm13938_vm1, %v13937_v42 }
0x4263   :  { %13260 = vmatprep.subr.mxu1 %v13937_v42 }
0x4265   :  { %13253 = vmatmul.mubr.msk.f32.vlgmr.msra.gmra.mrb[100].mxu1 %vm298_vm2, %v8634_v36 }
0x4266   :  { %13262 = vmatprep.mubr.msk.f32.mxu1 %vm13938_vm1, %v13937_v42 }
0x4288   :  { %v8383_v38 = vpop.xlane.xlu0 %8382 }
0x4289   :  { %v8387_v15 = vsub.f32 %v8301_v1, %v8383_v38 }
0x428b   :  { %v8389_v18 = vmul.f32 1.442695, %v8387_v15 }
0x428c   :  { %v8404_v40 = vpop.permute.xlu0 %8403 }
0x428d   :  { %13863 = vpow2.f32 %v8389_v18  ;;  %13236 = vmatpush3.msra.mxu0 %v8404_v40 }
0x428e   :  { %13245 = vmatprep.subr.mxu0 %v13937_v42 }
0x4290   :  { %v8556_v12 = vpop.permute.xlu0 %8555 }
0x4297   :  { %v13864_v9 = vpop.eup %13863 }
0x4298   :  { %v8393_v23 = vsel %vm298_vm2, %v13864_v9, 0.0 }
0x4299   :  { %8394 = vadd.xlane.f32.xlu1 %v8393_v23 }
0x42aa   :  { %8557 = vrot.lane.b32.xlu1 %v15205_v58, %s15735_s10 }
0x4326   :  { %v8395_v45 = vpop.xlane.xlu1 %8394 }
0x4327   :  { %13865 = vrcp.f32 %v8395_v45 }
0x432a   :  { %v8558_v47 = vpop.permute.xlu1 %8557 }
0x4331   :  { %v13866_v5 = vpop.eup %13865 }
0x4332   :  { %v8401_v46 = vmul.f32 %v13866_v5, %v13864_v9 }
0x4334   :  { %13238 = vmatmul.mubr.msk.f32.vlgmr.msra.gmra.mrb[66].mxu0 %vm298_vm2, %v8401_v46  ;;  %v15250_v50 = vpop.f32.mrb[98].mxu1 }
0x4335   :  { %13246 = vmatpush3.xpose.msk.msra.mxu0 %vm298_vm2, %v8558_v47  ;;  %v13244_v32 = vpop.f32.mrb[99].mxu1  ;;  %13247 = vmatprep.mubr.msk.f32.mxu0 %vm13938_vm1, %v13937_v42 }
0x4336   :  { %13255 = vmatprep.subr.mxu0 %v13937_v42  ;;  %v12196_v32 = vld [vmem:[%s15667_s13 + $0x28] sm:$0xff] }
0x4338   :  { %13248 = vmatmul.mubr.msk.f32.vlgmr.msra.gmra.mrb[68].mxu0 %vm298_vm2, %v8556_v12  ;;  %v8707_v10 = vpop.f32.mrb[100].mxu1  ;;  %v12195_v12 = vld [vmem:[%s15667_s13 + $0x20] sm:$0xff] }
0x4339   :  { %v8708_v17 = vadd.f32 %v8707_v10, %v14747_v35  ;;  %v13254_v51 = vpop.f32.mrb[101].mxu1  ;;  %13257 = vmatprep.mubr.msk.f32.mxu0 %vm13938_vm1, %v13937_v42 }
0x433b   :  { %v8714_v57 = vsel %vm298_vm2, %v8708_v17, -inf }
0x433c   :  { %8715 = vmax.xlane.f32.xlu1 %v8714_v57 }
0x434d   :  { %9049 = vrot.lane.b32.xlu1 %v15205_v58, %s15737_s27 }
0x4351   :  { %9047 = vrot.lane.b32.xlu1 %v15205_v58, %s15740_s8 }
0x4355   :  { %9125 = vrot.lane.b32.xlu1 %v15201_v3, %s15740_s8 }
0x43c9   :  { %v8716_v53 = vpop.xlane.xlu1 %8715 }
0x43ca   :  { %v8718_v54 = vsub.f32 %v8708_v17, %v8716_v53 }
0x43cc   :  { %v8721_v34 = vmul.f32 1.442695, %v8718_v54 }
0x43cd   :  { %v9050_v21 = vpop.permute.xlu1 %9049 }
0x43ce   :  { %13867 = vpow2.f32 %v8721_v34 }
0x43d1   :  { %v9048_v24 = vpop.permute.xlu1 %9047 }
0x43d5   :  { %v9126_v6 = vpop.permute.xlu1 %9125 }
0x43d8   :  { %v13868_v55 = vpop.eup %13867 }
0x43d9   :  { %v8726_v56 = vsel %vm298_vm2, %v13868_v55, 0.0 }
0x43da   :  { %8727 = vadd.xlane.f32.xlu0 %v8726_v56 }
0x43f0   :  { %8809 = vrot.lane.b32.xlu0 %v15201_v3, %s15739_s29 }
0x43f4   :  { %9127 = vrot.lane.b32.xlu0 %v15201_v3, %s15737_s27 }
0x4407   :  { %v15272_v41 = vpop.f32.mrb[66].mxu0 }
0x4408   :  { %v13239_v39 = vpop.f32.mrb[67].mxu0 }
0x440b   :  { %v8629_v4 = vpop.f32.mrb[68].mxu0 }
0x440c   :  { %v13249_v61 = vpop.f32.mrb[69].mxu0  ;;  %v8630_v7 = vadd.f32 %v8629_v4, %v14761_v49 }
0x440e   :  { %v8711_v37 = vsel %vm298_vm2, %v8630_v7, -inf }
0x4413   :  { %8712 = vmax.xlane.f32.xlu0 %v8711_v37 }
0x4429   :  { %8733 = vrot.lane.b32.xlu0 %v15205_v58, %s15739_s29 }
0x442d   :  { %9225 = vrot.lane.b32.xlu0 %v15205_v58, %s15741_s0 }
0x4431   :  { %9462 = vrot.lane.b32.xlu0 %v15205_v58, %s15742_s30 }
0x4435   :  { %9540 = vrot.lane.b32.xlu0 %v15201_v3, %s15742_s30 }
0x4439   :  { %9460 = vrot.lane.b32.xlu0 %v15205_v58, %s15743_s25 }
0x443d   :  { %9538 = vrot.lane.b32.xlu0 %v15201_v3, %s15743_s25 }
0x4467   :  { %v8728_v11 = vpop.xlane.xlu0 %8727 }
0x4468   :  { %13869 = vrcp.f32 %v8728_v11 }
0x446b   :  { %v8810_v14 = vpop.permute.xlu0 %8809 }
0x446c   :  { %13261 = vmatpush3.msra.mxu1 %v8810_v14 }
0x446d   :  { %13275 = vmatprep.subr.mxu1 %v13937_v42 }
0x446f   :  { %v9128_v25 = vpop.permute.xlu0 %9127 }
0x4472   :  { %v13870_v52 = vpop.eup %13869 }
0x4473   :  { %v8732_v22 = vmul.f32 %v13870_v52, %v13868_v55 }
0x4475   :  { %13263 = vmatmul.mubr.msk.f32.vlgmr.msra.gmra.mrb[102].mxu1 %vm298_vm2, %v8732_v22 }
0x4476   :  { %13276 = vmatpush3.xpose.msk.msra.mxu1 %vm298_vm2, %v9050_v21  ;;  %13277 = vmatprep.mubr.msk.f32.mxu1 %vm13938_vm1, %v13937_v42 }
0x4477   :  { %13280 = vmatprep.subr.mxu1 %v13937_v42 }
0x4479   :  { %13278 = vmatmul.mubr.msk.f32.vlgmr.msra.gmra.mrb[104].mxu1 %vm298_vm2, %v9048_v24 }
0x447a   :  { %13281 = vmatpush3.xpose.msk.msra.mxu1 %vm298_vm2, %v9128_v25  ;;  %13282 = vmatprep.mubr.msk.f32.mxu1 %vm13938_vm1, %v13937_v42 }
0x447b   :  { %13290 = vmatprep.subr.mxu1 %v13937_v42 }
0x447d   :  { %13283 = vmatmul.mubr.msk.f32.vlgmr.msra.gmra.mrb[106].mxu1 %vm298_vm2, %v9126_v6 }
0x447e   :  { %13292 = vmatprep.mubr.msk.f32.mxu1 %vm13938_vm1, %v13937_v42 }
0x44a0   :  { %v8713_v8 = vpop.xlane.xlu0 %8712 }
0x44a1   :  { %v8717_v1 = vsub.f32 %v8630_v7, %v8713_v8  ;;  %v12197_v7 = vld [vmem:[%s15667_s13 + $0x30] sm:$0xff] }
0x44a3   :  { %v8719_v0 = vmul.f32 1.442695, %v8717_v1 }
0x44a4   :  { %v8734_v26 = vpop.permute.xlu0 %8733 }
0x44a5   :  { %13871 = vpow2.f32 %v8719_v0  ;;  %13256 = vmatpush3.msra.mxu0 %v8734_v26 }
0x44a6   :  { %13265 = vmatprep.subr.mxu0 %v12196_v32 }
0x44a8   :  { %v9226_v37 = vpop.permute.xlu0 %9225 }
0x44ac   :  { %v9463_v21 = vpop.permute.xlu0 %9462 }
0x44af   :  { %v13872_v33 = vpop.eup %13871 }
0x44b0   :  { %v8723_v28 = vsel %vm298_vm2, %v13872_v33, 0.0 }
0x44b1   :  { %8724 = vadd.xlane.f32.xlu1 %v8723_v28 }
0x453e   :  { %v8725_v43 = vpop.xlane.xlu1 %8724 }
0x453f   :  { %13873 = vrcp.f32 %v8725_v43 }
0x4548   :  { %v8881_v44 = vpop.f32.mrb[102].mxu1 }
0x4549   :  { %v13874_v36 = vpop.eup %13873  ;;  %v13264_v38 = vpop.f32.mrb[103].mxu1 }
0x454a   :  { %v8731_v15 = vmul.f32 %v13874_v36, %v13872_v33 }
0x454c   :  { %13258 = vmatmul.mubr.msk.f32.vlgmr.msra.gmra.mrb[70].mxu0 %vm298_vm2, %v8731_v15  ;;  %v9121_v18 = vpop.f32.mrb[104].mxu1 }
0x454d   :  { %v9122_v40 = vadd.f32 %v9121_v18, %v14761_v49  ;;  %v13279_v9 = vpop.f32.mrb[105].mxu1  ;;  %13266 = vmatpush3.msra.mxu0 %v12196_v32 }
0x454e   :  { %13270 = vmatprep.subr.mxu0 %v12195_v12 }
0x454f   :  { %v9203_v23 = vsel %vm298_vm2, %v9122_v40, -inf }
0x4550   :  { %9204 = vmax.xlane.f32.xlu1 %v9203_v23  ;;  %v9199_v45 = vpop.f32.mrb[106].mxu1 }
0x4551   :  { %v9200_v5 = vadd.f32 %v9199_v45, %v14747_v35  ;;  %v13284_v46 = vpop.f32.mrb[107].mxu1 }
0x4553   :  { %v9206_v47 = vsel %vm298_vm2, %v9200_v5, -inf }
0x4554   :  { %9207 = vmax.xlane.f32.xlu1 %v9206_v47 }
0x45dd   :  { %v9205_v10 = vpop.xlane.xlu1 %9204 }
0x45de   :  { %v9209_v17 = vsub.f32 %v9122_v40, %v9205_v10 }
0x45e0   :  { %v9211_v51 = vmul.f32 1.442695, %v9209_v17 }
0x45e1   :  { %v9208_v57 = vpop.xlane.xlu1 %9207 }
0x45e2   :  { %13875 = vpow2.f32 %v9211_v51  ;;  %v9210_v53 = vsub.f32 %v9200_v5, %v9208_v57 }
0x45e4   :  { %v9213_v54 = vmul.f32 1.442695, %v9210_v53  ;;  %v12198_v53 = vld [vmem:[%s15667_s13 + $0x38] sm:$0xff]  ;;  %s15752_s13 = sld [smem:[#allocation16_spill]] }
0x45e6   :  { %13877 = vpow2.f32 %v9213_v54 }
0x45ec   :  { %v13876_v34 = vpop.eup %13875 }
0x45ed   :  { %v9215_v55 = vsel %vm298_vm2, %v13876_v34, 0.0 }
0x45ee   :  { %9216 = vadd.xlane.f32.xlu1 %v9215_v55 }
0x45f0   :  { %v13878_v56 = vpop.eup %13877 }
0x45f1   :  { %v9218_v39 = vsel %vm298_vm2, %v13878_v56, 0.0 }
0x45f2   :  { %9219 = vadd.xlane.f32.xlu1 %v9218_v39 }
0x4603   :  { %9301 = vrot.lane.b32.xlu1 %v15201_v3, %s15741_s0 }
0x461f   :  { %v8805_v4 = vpop.f32.mrb[70].mxu0 }
0x4620   :  { %v13259_v61 = vpop.f32.mrb[71].mxu0  ;;  %13267 = vmatprep.mubr.msk.f32.mxu0 %vm298_vm2, %v8805_v4 }
0x4621   :  { %13268 = vmatmul.mubr.msk.f32.vlgmr.msra.gmra.mrb[72].mxu0 %vm298_vm2, %v8881_v44 }
0x4622   :  { %13272 = vmatprep.mubr.msk.f32.mxu0 %vm298_vm2, %v15272_v41  ;;  %13271 = vmatpush3.msra.mxu0 %v12195_v12 }
0x4623   :  { %13285 = vmatprep.subr.mxu0 %v13937_v42 }
0x4629   :  { %13273 = vmatmul.mubr.msk.f32.vlgmr.msra.gmra.mrb[72].mxu0 %vm298_vm2, %v15250_v50  ;;  %v9541_v50 = vpop.permute.xlu0 %9540 }
0x462a   :  { %13286 = vmatpush3.msra.mxu0 %v9226_v37  ;;  %13287 = vmatprep.mubr.msk.f32.mxu0 %vm13938_vm1, %v13937_v42 }
0x462b   :  { %13295 = vmatprep.subr.mxu0 %v12197_v7 }
0x462d   :  { %v9461_v6 = vpop.permute.xlu0 %9460 }
0x4631   :  { %v9539_v33 = vpop.permute.xlu0 %9538 }
0x467b   :  { %v9217_v11 = vpop.xlane.xlu1 %9216 }
0x467c   :  { %13879 = vrcp.f32 %v9217_v11 }
0x467f   :  { %v9220_v14 = vpop.xlane.xlu1 %9219 }
0x4680   :  { %13881 = vrcp.f32 %v9220_v14 }
0x4683   :  { %v9302_v41 = vpop.permute.xlu1 %9301 }
0x4684   :  { %13291 = vmatpush3.msra.mxu1 %v9302_v41 }
0x4685   :  { %13300 = vmatprep.subr.mxu1 %v13937_v42 }
0x4686   :  { %v13880_v52 = vpop.eup %13879 }
0x4687   :  { %v9223_v22 = vmul.f32 %v13880_v52, %v13876_v34 }
0x4689   :  { %13288 = vmatmul.mubr.msk.f32.vlgmr.msra.gmra.mrb[74].mxu0 %vm298_vm2, %v9223_v22 }
0x468a   :  { %v13882_v24 = vpop.eup %13881  ;;  %13296 = vmatpush3.msra.mxu0 %v12197_v7 }
0x468b   :  { %v9224_v25 = vmul.f32 %v13882_v24, %v13878_v56  ;;  %13305 = vmatprep.subr.mxu0 %v13937_v42 }
0x468d   :  { %13293 = vmatmul.mubr.msk.f32.vlgmr.msra.gmra.mrb[108].mxu1 %vm298_vm2, %v9224_v25 }
0x468e   :  { %13301 = vmatpush3.xpose.msk.msra.mxu1 %vm298_vm2, %v9463_v21  ;;  %13302 = vmatprep.mubr.msk.f32.mxu1 %vm13938_vm1, %v13937_v42 }
0x468f   :  { %13310 = vmatprep.subr.mxu1 %v13937_v42 }
0x4691   :  { %13303 = vmatmul.mubr.msk.f32.vlgmr.msra.gmra.mrb[110].mxu1 %vm298_vm2, %v9461_v6 }
0x4692   :  { %13312 = vmatprep.mubr.msk.f32.mxu1 %vm13938_vm1, %v13937_v42 }
0x475c   :  { %v9297_v8 = vpop.f32.mrb[74].mxu0 }
0x475d   :  { %v13289_v1 = vpop.f32.mrb[75].mxu0  ;;  %13297 = vmatprep.mubr.msk.f32.mxu0 %vm298_vm2, %v9297_v8 }
0x4760   :  { %v9373_v0 = vpop.f32.mrb[108].mxu1 }
0x4761   :  { %v13294_v26 = vpop.f32.mrb[109].mxu1  ;;  %13298 = vmatmul.mubr.msk.f32.vlgmr.msra.gmra.mrb[72].mxu0 %vm298_vm2, %v9373_v0  ;;  %v12232_v0 = vld [vmem:[%s15745_s15 + $0x28] sm:$0xff] }
0x4762   :  { %13306 = vmatpush3.xpose.msk.msra.mxu0 %vm298_vm2, %v9541_v50  ;;  %13307 = vmatprep.mubr.msk.f32.mxu0 %vm13938_vm1, %v13937_v42 }
0x4763   :  { %13315 = vmatprep.subr.mxu0 %v13937_v42 }
0x4764   :  { %v9534_v28 = vpop.f32.mrb[110].mxu1 }
0x4765   :  { %v9535_v43 = vadd.f32 %v9534_v28, %v14761_v49  ;;  %v13304_v44 = vpop.f32.mrb[111].mxu1  ;;  %13308 = vmatmul.mubr.msk.f32.vlgmr.msra.gmra.mrb[76].mxu0 %vm298_vm2, %v9539_v33  ;;  %v12233_v33 = vld [vmem:[%s15745_s15 + $0x30] sm:$0xff]  ;;  %v12234_v28 = vld [vmem:[%s15745_s15 + $0x38] sm:$0xff] }
0x4766   :  { %13317 = vmatprep.mubr.msk.f32.mxu0 %vm13938_vm1, %v13937_v42 }
0x4767   :  { %v9616_v36 = vsel %vm298_vm2, %v9535_v43, -inf }
0x4768   :  { %9617 = vmax.xlane.f32.xlu1 %v9616_v36 }
0x47f5   :  { %v9618_v38 = vpop.xlane.xlu1 %9617 }
0x47f6   :  { %v9622_v15 = vsub.f32 %v9535_v43, %v9618_v38  ;;  %v13601_v43 = vpack.c.bf16 %v12234_v28, %v12233_v33 }
0x47f8   :  { %v9624_v18 = vmul.f32 1.442695, %v9622_v15 }
0x47fa   :  { %13883 = vpow2.f32 %v9624_v18 }
0x4804   :  { %v13884_v49 = vpop.eup %13883 }
0x4805   :  { %v9628_v5 = vsel %vm298_vm2, %v13884_v49, 0.0 }
0x4838   :  { %v9612_v40 = vpop.f32.mrb[76].mxu0 }
0x4839   :  { %v9613_v9 = vadd.f32 %v9612_v40, %v14747_v35  ;;  %v13309_v23 = vpop.f32.mrb[77].mxu0 }
0x483a   :  { %v15398_v23 = vld [vmem:[%s15746_s16 + $0x8] sm:$0x7f]  ;;  %s13952_s16 = smov 32  }
0x483b   :  { %v9619_v45 = vsel %vm298_vm2, %v9613_v9, -inf }
0x483c   :  { %9620 = vmax.xlane.f32.xlu0 %v9619_v45  ;;  %v9904_v45 = vrot.slane %v15398_v23, %v14099_v29 }
0x4840   :  { %9629 = vadd.xlane.f32.xlu0 %v9628_v5 }
0x4856   :  { %9638 = vrot.lane.b32.xlu0 %v15205_v58, %s15744_s22 }
0x48c9   :  { %v9621_v46 = vpop.xlane.xlu0 %9620 }
0x48ca   :  { %v9623_v47 = vsub.f32 %v9613_v9, %v9621_v46 }
0x48cc   :  { %v9626_v32 = vmul.f32 1.442695, %v9623_v47 }
0x48cd   :  { %v9630_v12 = vpop.xlane.xlu0 %9629 }
0x48ce   :  { %13885 = vpow2.f32 %v9626_v32  ;;  %v9910_v32 = vrot.slane %v15398_v23, %v14105_v31 }
0x48cf   :  { %13887 = vrcp.f32 %v9630_v12 }
0x48d1   :  { %v9639_v10 = vpop.permute.xlu0 %9638 }
0x48d2   :  { %13311 = vmatpush3.msra.mxu1 %v9639_v10 }
0x48d8   :  { %v13886_v35 = vpop.eup %13885 }
0x48d9   :  { %v13888_v17 = vpop.eup %13887  ;;  %v9631_v51 = vsel %vm298_vm2, %v13886_v35, 0.0 }
0x48da   :  { %v9636_v57 = vmul.f32 %v13888_v17, %v13884_v49  ;;  %9632 = vadd.xlane.f32.xlu1 %v9631_v51 }
0x48dc   :  { %13313 = vmatmul.mubr.msk.f32.vlgmr.msra.gmra.mrb[112].mxu1 %vm298_vm2, %v9636_v57 }
0x48eb   :  { %9714 = vrot.lane.b32.xlu1 %v15201_v3, %s15744_s22 }
0x4967   :  { %v9633_v58 = vpop.xlane.xlu1 %9632 }
0x4968   :  { %13889 = vrcp.f32 %v9633_v58 }
0x496b   :  { %v9715_v54 = vpop.permute.xlu1 %9714 }
0x496c   :  { %13316 = vmatpush3.msra.mxu0 %v9715_v54 }
0x496d   :  { %13320 = vmatprep.subr.mxu0 %v12198_v53 }
0x4972   :  { %v13890_v34 = vpop.eup %13889 }
0x4973   :  { %v9637_v55 = vmul.f32 %v13890_v34, %v13886_v35 }
0x4975   :  { %13318 = vmatmul.mubr.msk.f32.vlgmr.msra.gmra.mrb[78].mxu0 %vm298_vm2, %v9637_v55 }
0x4976   :  { %13321 = vmatpush3.msra.mxu0 %v12198_v53 }
0x4977   :  { %13336 = vmatprep.subr.mxu0 %v13937_v42 }
0x49af   :  { %v9710_v56 = vpop.f32.mrb[112].mxu1 }
0x49b0   :  { %v13314_v39 = vpop.f32.mrb[113].mxu1  ;;  %13322 = vmatprep.mubr.msk.f32.mxu0 %vm298_vm2, %v9710_v56 }
0x4a48   :  { %v9786_v3 = vpop.f32.mrb[78].mxu0 }
0x4a49   :  { %v13319_v4 = vpop.f32.mrb[79].mxu0  ;;  %13323 = vmatmul.mubr.msk.f32.vlgmr.msra.gmra.mrb[72].mxu0 %vm298_vm2, %v9786_v3 }
0x4a4a   :  { %13338 = vmatprep.mubr.msk.f32.mxu0 %vm13938_vm1, %v13937_v42 }
0x4b1c   :  { %v13324_v61 = vpop.f32.mrb[72].mxu0 }
0x4b1d   :  { %v9874_v7 = vadd.f32 %v13324_v61, %v15193_v2  ;;  %v9862_v37 = vpop.f32.mrb[73].mxu0 }
0x4b1e   :  { %v9873_v11 = vadd.f32 %v9862_v37, %v15191_v60  ;;  %v12231_v60 = vld [vmem:[%s15745_s15 + $0x20] sm:$0xff] }
0x4b1f   :  { %v9878_v14 = vsel %vm153_vm0, %v9874_v7, 0.0  ;;  %v13597_v26 = vpack.c.bf16 %v12232_v0, %v12231_v60 }
0x4b20   :  { %9879 = vadd.xlane.f32.xlu0 %v9878_v14  ;;  %v9875_v41 = vsel %vm153_vm0, %v9873_v11, 0.0 }
0x4b21   :  { %9876 = vadd.xlane.f32.xlu1 %v9875_v41  ;;  %13598 = vmatprep.subr.bf16.mxu1 %v13597_v26 }
0x4b22   :  { %13600 = vmatpush3.bf16.msra.mxu1 %v13597_v26 }
0x4b23   :  { %13602 = vmatprep.subr.bf16.mxu1 %v13601_v43 }
0x4b26   :  { %13604 = vmatpush3.bf16.msra.mxu1 %v13601_v43 }
0x4b27   :  { %13341 = vmatprep.subr.mxu1 %v13937_v42 }
0x4bad   :  { %v9880_v21 = vpop.xlane.xlu0 %9879 }
0x4bae   :  { %v9882_v52 = vmul.f32 0.03125, %v9880_v21  ;;  %v9877_v22 = vpop.xlane.xlu1 %9876 }
0x4baf   :  { %v9881_v24 = vmul.f32 0.03125, %v9877_v22 }
0x4bb0   :  { %v9884_v50 = vsub.f32 %v9874_v7, %v9882_v52 }
0x4bb1   :  { %v9883_v25 = vsub.f32 %v9873_v11, %v9881_v24 }
0x4bb2   :  { %v9886_v6 = vmul.f32 %v9884_v50, %v9884_v50 }
0x4bb3   :  { %v9885_v8 = vmul.f32 %v9883_v25, %v9883_v25 }
0x4bb4   :  { %v9890_v1 = vsel %vm153_vm0, %v9886_v6, 0.0 }
0x4bb5   :  { %9891 = vadd.xlane.f32.xlu1 %v9890_v1  ;;  %v9887_v2 = vsel %vm153_vm0, %v9885_v8, 0.0 }
0x4bb6   :  { %9888 = vadd.xlane.f32.xlu0 %v9887_v2 }
0x4bc6   :  { %10004 = vrot.lane.b32.xlu1 %v14712_v13, %s15738_s7 }
0x4bcc   :  { %10081 = vrot.lane.b32.xlu0 %v14710_v63, %s15738_s7 }
0x4c42   :  { %v9892_v44 = vpop.xlane.xlu1 %9891 }
0x4c43   :  { %v9894_v36 = vmul.f32 0.03125, %v9892_v44  ;;  %v9889_v38 = vpop.xlane.xlu0 %9888 }
0x4c44   :  { %v9893_v15 = vmul.f32 0.03125, %v9889_v38 }
0x4c45   :  { %v9896_v18 = vadd.f32 1e-06, %v9894_v36 }
0x4c46   :  { %v9895_v40 = vadd.f32 1e-06, %v9893_v15  ;;  %v10005_v9 = vpop.permute.xlu1 %10004 }
0x4c47   :  { %13891 = vrsqrt.f32 %v9896_v18  ;;  %13337 = vmatpush3.xpose.msk.msra.mxu0 %vm298_vm2, %v10005_v9  ;;  %v10082_v51 = vpop.permute.xlu0 %10081 }
0x4c48   :  { %13893 = vrsqrt.f32 %v9895_v40  ;;  %13346 = vmatprep.subr.mxu0 %v13937_v42 }
0x4c51   :  { %v13892_v49 = vpop.eup %13891 }
0x4c52   :  { %v13894_v5 = vpop.eup %13893  ;;  %v9900_v46 = vmul.f32 %v13892_v49, %v9884_v50 }
0x4c53   :  { %v9899_v47 = vmul.f32 %v13894_v5, %v9883_v25 }
0x4c54   :  { %v9906_v12 = vmul.f32 %v9904_v45, %v9900_v46 }
0x4c55   :  { %v9905_v10 = vmul.f32 %v9904_v45, %v9899_v47 }
0x4c56   :  { %v15406_v17 = vadd.f32 %v9910_v32, %v9906_v12 }
0x4c57   :  { %v15404_v35 = vadd.f32 %v9910_v32, %v9905_v10 }
0x4c59   :  { %13333 = vmatprep.mubr.msk.f32.mxu1 %vm153_vm0, %v15404_v35 }
0x4c5a   :  { %13334 = vmatmul.mubr.msk.f32.vlgmr.msra.gmra.mrb[114].mxu1 %vm153_vm0, %v15406_v17 }
0x4c5b   :  { %13342 = vmatpush3.xpose.msk.msra.mxu1 %vm298_vm2, %v10082_v51  ;;  %13343 = vmatprep.mubr.msk.f32.mxu1 %vm13938_vm1, %v13937_v42 }
0x4c5c   :  { %13351 = vmatprep.subr.mxu1 %v13937_v42 }
0x4d2d   :  { %v15416_v29 = vpop.f32.mrb[114].mxu1 }
0x4d2e   :  { %v15418_v31 = vpop.f32.mrb[115].mxu1  ;;  %13344 = vmatmul.mubr.msk.f32.vlgmr.msra.gmra.mrb[116].mxu1 %vm298_vm2, %v15416_v29 }
0x4d2f   :  { %13339 = vmatmul.mubr.msk.f32.vlgmr.msra.gmra.mrb[80].mxu0 %vm298_vm2, %v15418_v31  ;;  %13353 = vmatprep.mubr.msk.f32.mxu1 %vm13938_vm1, %v13937_v42 }
0x4d30   :  { %13348 = vmatprep.mubr.msk.f32.mxu0 %vm13938_vm1, %v13937_v42 }
0x4e01   :  { %v10154_v57 = vpop.f32.mrb[116].mxu1 }
0x4e02   :  { %v10155_v58 = vadd.f32 %v10154_v57, %v14159_v62  ;;  %v10077_v53 = vpop.f32.mrb[80].mxu0  ;;  %v13345_v54 = vpop.f32.mrb[117].mxu1 }
0x4e03   :  { %v13340_v34 = vpop.f32.mrb[81].mxu0  ;;  %v10078_v7 = vadd.f32 %v10077_v53, %v14155_v59 }
0x4e04   :  { %v10161_v55 = vsel %vm298_vm2, %v10155_v58, -inf }
0x4e05   :  { %10162 = vmax.xlane.f32.xlu1 %v10161_v55  ;;  %v10158_v37 = vsel %vm298_vm2, %v10078_v7, -inf }
0x4e16   :  { %10412 = vrot.lane.b32.xlu1 %v14710_v63, %s15739_s29 }
0x4e1a   :  { %10410 = vrot.lane.b32.xlu1 %v15416_v29, %s15736_s5 }
0x4e92   :  { %v10163_v56 = vpop.xlane.xlu1 %10162 }
0x4e93   :  { %v10165_v39 = vsub.f32 %v10155_v58, %v10163_v56 }
0x4e95   :  { %v10168_v3 = vmul.f32 1.442695, %v10165_v39 }
0x4e96   :  { %v10413_v21 = vpop.permute.xlu1 %10412 }
0x4e97   :  { %13895 = vpow2.f32 %v10168_v3 }
0x4e9a   :  { %v10411_v22 = vpop.permute.xlu1 %10410 }
0x4ea1   :  { %v13896_v4 = vpop.eup %13895 }
0x4ea2   :  { %v10173_v61 = vsel %vm298_vm2, %v13896_v4, 0.0 }
0x4ea3   :  { %10174 = vadd.xlane.f32.xlu0 %v10173_v61 }
0x4eb9   :  { %10256 = vrot.lane.b32.xlu0 %v14710_v63, %s13952_s16 }
0x4ed8   :  { %10159 = vmax.xlane.f32.xlu0 %v10158_v37 }
0x4eee   :  { %10180 = vrot.lane.b32.xlu0 %v14712_v13, %s13952_s16 }
0x4ef2   :  { %10332 = vrot.lane.b32.xlu0 %v15418_v31, %s15736_s5  ;;  %s13953_s5 = smov 24  }
0x4f30   :  { %v10175_v11 = vpop.xlane.xlu0 %10174 }
0x4f31   :  { %13897 = vrcp.f32 %v10175_v11 }
0x4f34   :  { %v10257_v14 = vpop.permute.xlu0 %10256 }
0x4f35   :  { %13352 = vmatpush3.msra.mxu1 %v10257_v14 }
0x4f36   :  { %13361 = vmatprep.subr.mxu1 %v13937_v42 }
0x4f3b   :  { %v13898_v41 = vpop.eup %13897 }
0x4f3c   :  { %v10179_v52 = vmul.f32 %v13898_v41, %v13896_v4 }
0x4f3e   :  { %13354 = vmatmul.mubr.msk.f32.vlgmr.msra.gmra.mrb[118].mxu1 %vm298_vm2, %v10179_v52 }
0x4f3f   :  { %13362 = vmatpush3.xpose.msk.msra.mxu1 %vm298_vm2, %v10413_v21  ;;  %13363 = vmatprep.mubr.msk.f32.mxu1 %vm13938_vm1, %v13937_v42 }
0x4f40   :  { %13371 = vmatprep.subr.mxu1 %v13937_v42 }
0x4f42   :  { %13364 = vmatmul.mubr.msk.f32.vlgmr.msra.gmra.mrb[120].mxu1 %vm298_vm2, %v10411_v22 }
0x4f43   :  { %13373 = vmatprep.mubr.msk.f32.mxu1 %vm13938_vm1, %v13937_v42 }
0x4f65   :  { %v10160_v24 = vpop.xlane.xlu0 %10159 }
0x4f66   :  { %v10164_v50 = vsub.f32 %v10078_v7, %v10160_v24 }
0x4f68   :  { %v10166_v25 = vmul.f32 1.442695, %v10164_v50 }
0x4f69   :  { %v10181_v6 = vpop.permute.xlu0 %10180 }
0x4f6a   :  { %13899 = vpow2.f32 %v10166_v25  ;;  %13347 = vmatpush3.msra.mxu0 %v10181_v6 }
0x4f6b   :  { %13356 = vmatprep.subr.mxu0 %v13937_v42 }
0x4f6d   :  { %v10333_v43 = vpop.permute.xlu0 %10332 }
0x4f74   :  { %v13900_v8 = vpop.eup %13899 }
0x4f75   :  { %v10170_v1 = vsel %vm298_vm2, %v13900_v8, 0.0 }
0x4f76   :  { %10171 = vadd.xlane.f32.xlu1 %v10170_v1  ;;  %v12238_v1 = vld [vmem:[%s15747_s9 + $0x28] sm:$0xff] }
0x4f87   :  { %10334 = vrot.lane.b32.xlu1 %v14712_v13, %s15739_s29  ;;  %s13954_s29 = smov 16  }
0x5003   :  { %v10172_v2 = vpop.xlane.xlu1 %10171 }
0x5004   :  { %13901 = vrcp.f32 %v10172_v2  ;;  %v12237_v2 = vld [vmem:[%s15747_s9 + $0x20] sm:$0xff] }
0x5007   :  { %v10335_v26 = vpop.permute.xlu1 %10334 }
0x500e   :  { %v13902_v60 = vpop.eup %13901 }
0x500f   :  { %v10178_v0 = vmul.f32 %v13902_v60, %v13900_v8 }
0x5011   :  { %13349 = vmatmul.mubr.msk.f32.vlgmr.msra.gmra.mrb[82].mxu0 %vm298_vm2, %v10178_v0  ;;  %v15455_v33 = vpop.f32.mrb[118].mxu1 }
0x5012   :  { %13357 = vmatpush3.xpose.msk.msra.mxu0 %vm298_vm2, %v10335_v26  ;;  %v13355_v28 = vpop.f32.mrb[119].mxu1  ;;  %13358 = vmatprep.mubr.msk.f32.mxu0 %vm13938_vm1, %v13937_v42 }
0x5013   :  { %13366 = vmatprep.subr.mxu0 %v13937_v42 }
0x5015   :  { %13359 = vmatmul.mubr.msk.f32.vlgmr.msra.gmra.mrb[84].mxu0 %vm298_vm2, %v10333_v43  ;;  %v10484_v44 = vpop.f32.mrb[120].mxu1 }
0x5016   :  { %v10485_v36 = vadd.f32 %v10484_v44, %v14159_v62  ;;  %v13365_v38 = vpop.f32.mrb[121].mxu1  ;;  %13368 = vmatprep.mubr.msk.f32.mxu0 %vm13938_vm1, %v13937_v42 }
0x5018   :  { %v10491_v15 = vsel %vm298_vm2, %v10485_v36, -inf }
0x5019   :  { %10492 = vmax.xlane.f32.xlu1 %v10491_v15 }
0x502a   :  { %10826 = vrot.lane.b32.xlu1 %v14712_v13, %s15741_s0 }
0x502e   :  { %10824 = vrot.lane.b32.xlu1 %v15418_v31, %s15740_s8 }
0x5032   :  { %10902 = vrot.lane.b32.xlu1 %v15416_v29, %s15740_s8 }
0x50a6   :  { %v10493_v18 = vpop.xlane.xlu1 %10492 }
0x50a7   :  { %v10495_v40 = vsub.f32 %v10485_v36, %v10493_v18 }
0x50a9   :  { %v10498_v9 = vmul.f32 1.442695, %v10495_v40 }
0x50aa   :  { %v10827_v58 = vpop.permute.xlu1 %10826 }
0x50ab   :  { %13903 = vpow2.f32 %v10498_v9 }
0x50ae   :  { %v10825_v34 = vpop.permute.xlu1 %10824 }
0x50b5   :  { %v13904_v45 = vpop.eup %13903 }
0x50b6   :  { %v10503_v49 = vsel %vm298_vm2, %v13904_v45, 0.0 }
0x50b7   :  { %10504 = vadd.xlane.f32.xlu0 %v10503_v49 }
0x50cd   :  { %10586 = vrot.lane.b32.xlu0 %v14710_v63, %s13953_s5 }
0x50d1   :  { %10904 = vrot.lane.b32.xlu0 %v14710_v63, %s15741_s0 }
0x50e4   :  { %v15476_v5 = vpop.f32.mrb[82].mxu0 }
0x50e5   :  { %v13350_v46 = vpop.f32.mrb[83].mxu0 }
0x50e8   :  { %v10406_v47 = vpop.f32.mrb[84].mxu0 }
0x50e9   :  { %v13360_v32 = vpop.f32.mrb[85].mxu0  ;;  %v10407_v12 = vadd.f32 %v10406_v47, %v14155_v59 }
0x50eb   :  { %v10488_v10 = vsel %vm298_vm2, %v10407_v12, -inf }
0x50f0   :  { %10489 = vmax.xlane.f32.xlu0 %v10488_v10 }
0x5106   :  { %10510 = vrot.lane.b32.xlu0 %v14712_v13, %s13953_s5 }
0x510a   :  { %11002 = vrot.lane.b32.xlu0 %v14712_v13, %s13954_s29 }
0x510e   :  { %11239 = vrot.lane.b32.xlu0 %v14712_v13, %s15744_s22 }
0x5112   :  { %11317 = vrot.lane.b32.xlu0 %v14710_v63, %s15744_s22 }
0x5116   :  { %11237 = vrot.lane.b32.xlu0 %v15418_v31, %s15743_s25  ;;  %v10903_v31 = vpop.permute.xlu1 %10902 }
0x511a   :  { %11315 = vrot.lane.b32.xlu0 %v15416_v29, %s15743_s25 }
0x5144   :  { %v10505_v51 = vpop.xlane.xlu0 %10504 }
0x5145   :  { %13905 = vrcp.f32 %v10505_v51 }
0x5148   :  { %v10587_v57 = vpop.permute.xlu0 %10586 }
0x5149   :  { %13372 = vmatpush3.msra.mxu1 %v10587_v57 }
0x514a   :  { %13386 = vmatprep.subr.mxu1 %v13937_v42 }
0x514c   :  { %v10905_v29 = vpop.permute.xlu0 %10904 }
0x514f   :  { %v13906_v53 = vpop.eup %13905 }
0x5150   :  { %v10509_v54 = vmul.f32 %v13906_v53, %v13904_v45  ;;  %v12239_v45 = vld [vmem:[%s15747_s9 + $0x30] sm:$0xff] }
0x5152   :  { %13374 = vmatmul.mubr.msk.f32.vlgmr.msra.gmra.mrb[122].mxu1 %vm298_vm2, %v10509_v54 }
0x5153   :  { %13387 = vmatpush3.xpose.msk.msra.mxu1 %vm298_vm2, %v10827_v58  ;;  %13388 = vmatprep.mubr.msk.f32.mxu1 %vm13938_vm1, %v13937_v42 }
0x5154   :  { %13391 = vmatprep.subr.mxu1 %v13937_v42 }
0x5156   :  { %13389 = vmatmul.mubr.msk.f32.vlgmr.msra.gmra.mrb[124].mxu1 %vm298_vm2, %v10825_v34 }
0x5157   :  { %13392 = vmatpush3.xpose.msk.msra.mxu1 %vm298_vm2, %v10905_v29  ;;  %13393 = vmatprep.mubr.msk.f32.mxu1 %vm13938_vm1, %v13937_v42 }
0x5158   :  { %13401 = vmatprep.subr.mxu1 %v13937_v42 }
0x515a   :  { %13394 = vmatmul.mubr.msk.f32.vlgmr.msra.gmra.mrb[126].mxu1 %vm298_vm2, %v10903_v31 }
0x515b   :  { %13403 = vmatprep.mubr.msk.f32.mxu1 %vm13938_vm1, %v13937_v42 }
0x517d   :  { %v10490_v55 = vpop.xlane.xlu0 %10489 }
0x517e   :  { %v10494_v56 = vsub.f32 %v10407_v12, %v10490_v55 }
0x5180   :  { %v10496_v39 = vmul.f32 1.442695, %v10494_v56 }
0x5181   :  { %v10511_v3 = vpop.permute.xlu0 %10510 }
0x5182   :  { %13907 = vpow2.f32 %v10496_v39  ;;  %13367 = vmatpush3.msra.mxu0 %v10511_v3 }
0x5183   :  { %13376 = vmatprep.subr.mxu0 %v12238_v1 }
0x5185   :  { %v11003_v49 = vpop.permute.xlu0 %11002 }
0x5189   :  { %v11240_v32 = vpop.permute.xlu0 %11239 }
0x518c   :  { %v13908_v4 = vpop.eup %13907 }
0x518d   :  { %v10500_v61 = vsel %vm298_vm2, %v13908_v4, 0.0 }
0x518e   :  { %10501 = vadd.xlane.f32.xlu1 %v10500_v61 }
0x521b   :  { %v10502_v7 = vpop.xlane.xlu1 %10501 }
0x521c   :  { %13909 = vrcp.f32 %v10502_v7 }
0x5225   :  { %v10658_v37 = vpop.f32.mrb[122].mxu1 }
0x5226   :  { %v13910_v11 = vpop.eup %13909  ;;  %v13375_v14 = vpop.f32.mrb[123].mxu1 }
0x5227   :  { %v10508_v41 = vmul.f32 %v13910_v11, %v13908_v4 }
0x5229   :  { %13369 = vmatmul.mubr.msk.f32.vlgmr.msra.gmra.mrb[86].mxu0 %vm298_vm2, %v10508_v41  ;;  %v10898_v21 = vpop.f32.mrb[124].mxu1 }
0x522a   :  { %v10899_v52 = vadd.f32 %v10898_v21, %v14155_v59  ;;  %v13390_v22 = vpop.f32.mrb[125].mxu1  ;;  %13377 = vmatpush3.msra.mxu0 %v12238_v1 }
0x522b   :  { %13381 = vmatprep.subr.mxu0 %v12237_v2 }
0x522c   :  { %v10980_v24 = vsel %vm298_vm2, %v10899_v52, -inf }
0x522d   :  { %v10976_v50 = vpop.f32.mrb[126].mxu1  ;;  %10981 = vmax.xlane.f32.xlu1 %v10980_v24 }
0x522e   :  { %v10977_v25 = vadd.f32 %v10976_v50, %v14159_v62  ;;  %v13395_v6 = vpop.f32.mrb[127].mxu1 }
0x5230   :  { %v10983_v8 = vsel %vm298_vm2, %v10977_v25, -inf }
0x5231   :  { %10984 = vmax.xlane.f32.xlu1 %v10983_v8 }
0x52ba   :  { %v10982_v60 = vpop.xlane.xlu1 %10981 }
0x52bb   :  { %v10986_v0 = vsub.f32 %v10899_v52, %v10982_v60 }
0x52bd   :  { %v10988_v26 = vmul.f32 1.442695, %v10986_v0 }
0x52be   :  { %v10985_v28 = vpop.xlane.xlu1 %10984 }
0x52bf   :  { %13911 = vpow2.f32 %v10988_v26  ;;  %v10987_v43 = vsub.f32 %v10977_v25, %v10985_v28 }
0x52c1   :  { %v10990_v44 = vmul.f32 1.442695, %v10987_v43 }
0x52c3   :  { %13913 = vpow2.f32 %v10990_v44 }
0x52c9   :  { %v13912_v36 = vpop.eup %13911 }
0x52ca   :  { %v10992_v38 = vsel %vm298_vm2, %v13912_v36, 0.0 }
0x52cb   :  { %10993 = vadd.xlane.f32.xlu1 %v10992_v38 }
0x52cd   :  { %v13914_v15 = vpop.eup %13913 }
0x52ce   :  { %v10995_v18 = vsel %vm298_vm2, %v13914_v15, 0.0 }
0x52cf   :  { %10996 = vadd.xlane.f32.xlu1 %v10995_v18 }
0x52e0   :  { %11078 = vrot.lane.b32.xlu1 %v14710_v63, %s13954_s29 }
0x52fc   :  { %v10582_v40 = vpop.f32.mrb[86].mxu0 }
0x52fd   :  { %v13370_v9 = vpop.f32.mrb[87].mxu0  ;;  %13378 = vmatprep.mubr.msk.f32.mxu0 %vm298_vm2, %v10582_v40 }
0x52fe   :  { %13379 = vmatmul.mubr.msk.f32.vlgmr.msra.gmra.mrb[88].mxu0 %vm298_vm2, %v10658_v37 }
0x52ff   :  { %13383 = vmatprep.mubr.msk.f32.mxu0 %vm298_vm2, %v15476_v5  ;;  %13382 = vmatpush3.msra.mxu0 %v12237_v2 }
0x5300   :  { %13396 = vmatprep.subr.mxu0 %v13937_v42 }
0x5306   :  { %13384 = vmatmul.mubr.msk.f32.vlgmr.msra.gmra.mrb[88].mxu0 %vm298_vm2, %v15455_v33  ;;  %v11318_v33 = vpop.permute.xlu0 %11317 }
0x5307   :  { %13397 = vmatpush3.msra.mxu0 %v11003_v49  ;;  %13398 = vmatprep.mubr.msk.f32.mxu0 %vm13938_vm1, %v13937_v42 }
0x5308   :  { %13406 = vmatprep.subr.mxu0 %v12239_v45 }
0x530a   :  { %v11238_v58 = vpop.permute.xlu0 %11237 }
0x530e   :  { %v11316_v31 = vpop.permute.xlu0 %11315 }
0x5358   :  { %v10994_v46 = vpop.xlane.xlu1 %10993 }
0x5359   :  { %13915 = vrcp.f32 %v10994_v46 }
0x535c   :  { %v10997_v47 = vpop.xlane.xlu1 %10996 }
0x535d   :  { %13917 = vrcp.f32 %v10997_v47 }
0x5360   :  { %v11079_v5 = vpop.permute.xlu1 %11078 }
0x5361   :  { %13402 = vmatpush3.msra.mxu1 %v11079_v5 }
0x5362   :  { %13411 = vmatprep.subr.mxu1 %v13937_v42 }
0x5363   :  { %v13916_v12 = vpop.eup %13915 }
0x5364   :  { %v11000_v10 = vmul.f32 %v13916_v12, %v13912_v36 }
0x5366   :  { %13399 = vmatmul.mubr.msk.f32.vlgmr.msra.gmra.mrb[90].mxu0 %vm298_vm2, %v11000_v10 }
0x5367   :  { %v13918_v51 = vpop.eup %13917  ;;  %13407 = vmatpush3.msra.mxu0 %v12239_v45 }
0x5368   :  { %v11001_v57 = vmul.f32 %v13918_v51, %v13914_v15  ;;  %13416 = vmatprep.subr.mxu0 %v13937_v42  ;;  %v12274_v51 = vld [vmem:[%s15748_s11 + $0x28] sm:$0xff] }
0x536a   :  { %13404 = vmatmul.mubr.msk.f32.vlgmr.msra.gmra.mrb[128].mxu1 %vm298_vm2, %v11001_v57  ;;  %v12275_v57 = vld [vmem:[%s15748_s11 + $0x30] sm:$0xff] }
0x536b   :  { %13412 = vmatpush3.xpose.msk.msra.mxu1 %vm298_vm2, %v11240_v32  ;;  %13413 = vmatprep.mubr.msk.f32.mxu1 %vm13938_vm1, %v13937_v42 }
0x536c   :  { %13421 = vmatprep.subr.mxu1 %v13937_v42 }
0x536e   :  { %13414 = vmatmul.mubr.msk.f32.vlgmr.msra.gmra.mrb[130].mxu1 %vm298_vm2, %v11238_v58  ;;  %v12276_v58 = vld [vmem:[%s15748_s11 + $0x38] sm:$0xff] }
0x536f   :  { %13423 = vmatprep.mubr.msk.f32.mxu1 %vm13938_vm1, %v13937_v42 }
0x5439   :  { %v11074_v53 = vpop.f32.mrb[90].mxu0 }
0x543a   :  { %v13400_v54 = vpop.f32.mrb[91].mxu0  ;;  %13408 = vmatprep.mubr.msk.f32.mxu0 %vm298_vm2, %v11074_v53  ;;  %v13609_v53 = vpack.c.bf16 %v12276_v58, %v12275_v57 }
0x543b   :  { %v12281_v54 = vld [vmem:[%s15749_s26 + $0x40] sm:$0xff] }
0x543d   :  { %v11150_v34 = vpop.f32.mrb[128].mxu1 }
0x543e   :  { %v13405_v29 = vpop.f32.mrb[129].mxu1  ;;  %13409 = vmatmul.mubr.msk.f32.vlgmr.msra.gmra.mrb[88].mxu0 %vm298_vm2, %v11150_v34  ;;  %v12282_v34 = vld [vmem:[%s15749_s26 + $0x48] sm:$0xff] }
0x543f   :  { %13417 = vmatpush3.xpose.msk.msra.mxu0 %vm298_vm2, %v11318_v33  ;;  %13418 = vmatprep.mubr.msk.f32.mxu0 %vm13938_vm1, %v13937_v42  ;;  %v12283_v29 = vld [vmem:[%s15749_s26 + $0x50] sm:$0xff] }
0x5440   :  { %13426 = vmatprep.subr.mxu0 %v13937_v42 }
0x5441   :  { %v11311_v55 = vpop.f32.mrb[130].mxu1 }
0x5442   :  { %v11312_v56 = vadd.f32 %v11311_v55, %v14155_v59  ;;  %v13415_v39 = vpop.f32.mrb[131].mxu1  ;;  %13419 = vmatmul.mubr.msk.f32.vlgmr.msra.gmra.mrb[92].mxu0 %vm298_vm2, %v11316_v31  ;;  %v13613_v31 = vpack.c.bf16 %v12282_v34, %v12281_v54  ;;  %v12284_v55 = vld [vmem:[%s15749_s26 + $0x58] sm:$0xff] }
0x5443   :  { %13428 = vmatprep.mubr.msk.f32.mxu0 %vm13938_vm1, %v13937_v42  ;;  %v12285_v39 = vld [vmem:[%s15749_s26 + $0x60] sm:$0xff] }
0x5444   :  { %v11393_v3 = vsel %vm298_vm2, %v11312_v56, -inf }
0x5445   :  { %11394 = vmax.xlane.f32.xlu1 %v11393_v3  ;;  %v12286_v3 = vld [vmem:[%s15749_s26 + $0x68] sm:$0xff] }
0x54d2   :  { %v11395_v4 = vpop.xlane.xlu1 %11394 }
0x54d3   :  { %v11399_v61 = vsub.f32 %v11312_v56, %v11395_v4  ;;  %v13617_v56 = vpack.c.bf16 %v12284_v55, %v12283_v29  ;;  %v13621_v4 = vpack.c.bf16 %v12286_v3, %v12285_v39  ;;  %v11911_v39 = vrot.slane %v15398_v23, %v14369_v48 }
0x54d5   :  { %v11401_v7 = vmul.f32 1.442695, %v11399_v61 }
0x54d7   :  { %13919 = vpow2.f32 %v11401_v7 }
0x54e1   :  { %v13920_v59 = vpop.eup %13919 }
0x54e2   :  { %v11405_v21 = vsel %vm298_vm2, %v13920_v59, 0.0 }
0x5515   :  { %v11389_v37 = vpop.f32.mrb[92].mxu0 }
0x5516   :  { %v11390_v11 = vadd.f32 %v11389_v37, %v14159_v62  ;;  %v13420_v14 = vpop.f32.mrb[93].mxu0 }
0x5518   :  { %v11396_v41 = vsel %vm298_vm2, %v11390_v11, -inf }
0x5519   :  { %11397 = vmax.xlane.f32.xlu0 %v11396_v41 }
0x551d   :  { %11406 = vadd.xlane.f32.xlu0 %v11405_v21 }
0x5533   :  { %11415 = vrot.lane.b32.xlu0 %v14712_v13, %s13955_s12  ;;  %v12240_v13 = vld [vmem:[%s15747_s9 + $0x38] sm:$0xff] }
0x55a6   :  { %v11398_v42 = vpop.xlane.xlu0 %11397 }
0x55a7   :  { %v11400_v52 = vsub.f32 %v11390_v11, %v11398_v42 }
0x55a9   :  { %v11403_v22 = vmul.f32 1.442695, %v11400_v52 }
0x55aa   :  { %v11407_v24 = vpop.xlane.xlu0 %11406 }
0x55ab   :  { %13921 = vpow2.f32 %v11403_v22 }
0x55ac   :  { %13923 = vrcp.f32 %v11407_v24  ;;  %v11687_v24 = vrot.slane %v15398_v23, %v14394_v19  ;;  %v12278_v19 = vld [vmem:[%s15750_s14 + $0x1] ss:$0 sm:$0xff] }
0x55ae   :  { %v11416_v50 = vpop.permute.xlu0 %11415 }
0x55af   :  { %13422 = vmatpush3.msra.mxu1 %v11416_v50 }
0x55b5   :  { %v13922_v62 = vpop.eup %13921 }
0x55b6   :  { %v13924_v25 = vpop.eup %13923  ;;  %v11408_v6 = vsel %vm298_vm2, %v13922_v62, 0.0 }
0x55b7   :  { %v11413_v8 = vmul.f32 %v13924_v25, %v13920_v59  ;;  %11409 = vadd.xlane.f32.xlu1 %v11408_v6  ;;  %v11681_v59 = vrot.slane %v15398_v23, %v14391_v16  ;;  %v12288_v16 = vld [vmem:[%s15749_s26 + $0x78] sm:$0xff] }
0x55b9   :  { %13424 = vmatmul.mubr.msk.f32.vlgmr.msra.gmra.mrb[132].mxu1 %vm298_vm2, %v11413_v8  ;;  %v12287_v8 = vld [vmem:[%s15749_s26 + $0x70] sm:$0xff] }
0x55c8   :  { %11491 = vrot.lane.b32.xlu1 %v14710_v63, %s13955_s12  ;;  %s15751_s12 = sld [smem:[#allocation15_spill]] }
0x55ce   :  { %v11922_v57 = vld [vmem:[%s15751_s12 + $0x10] sm:$0xff]  ;;  %v11923_v58 = vld [vmem:[%s15751_s12 + $0x18] sm:$0xff] }
0x5644   :  { %v11410_v1 = vpop.xlane.xlu1 %11409 }
0x5645   :  { %13925 = vrcp.f32 %v11410_v1  ;;  %v13625_v1 = vpack.c.bf16 %v12288_v16, %v12287_v8 }
0x5648   :  { %v11492_v2 = vpop.permute.xlu1 %11491 }
0x5649   :  { %13427 = vmatpush3.msra.mxu0 %v11492_v2 }
0x564a   :  { %13431 = vmatprep.subr.mxu0 %v12240_v13 }
0x564f   :  { %v13926_v60 = vpop.eup %13925 }
0x5650   :  { %v11414_v0 = vmul.f32 %v13926_v60, %v13922_v62 }
0x5652   :  { %13429 = vmatmul.mubr.msk.f32.vlgmr.msra.gmra.mrb[94].mxu0 %vm298_vm2, %v11414_v0 }
0x5653   :  { %13432 = vmatpush3.msra.mxu0 %v12240_v13 }
0x5654   :  { %13614 = vmatprep.subr.bf16.mxu0 %v13613_v31 }
0x568c   :  { %v11487_v26 = vpop.f32.mrb[132].mxu1 }
0x568d   :  { %v13425_v28 = vpop.f32.mrb[133].mxu1  ;;  %13433 = vmatprep.mubr.msk.f32.mxu0 %vm298_vm2, %v11487_v26 }
0x5725   :  { %v11563_v43 = vpop.f32.mrb[94].mxu0 }
0x5726   :  { %v13430_v63 = vpop.f32.mrb[95].mxu0  ;;  %13434 = vmatmul.mubr.msk.f32.vlgmr.msra.gmra.mrb[88].mxu0 %vm298_vm2, %v11563_v43  ;;  %v11798_v43 = vrot.slane %v15398_v23, %v8011_v20 }
0x5727   :  { %13616 = vmatpush3.bf16.msra.mxu0 %v13613_v31 }
0x5728   :  { %13618 = vmatprep.subr.bf16.mxu0 %v13617_v56 }
0x572b   :  { %13620 = vmatpush3.bf16.msra.mxu0 %v13617_v56 }
0x572c   :  { %13622 = vmatprep.subr.bf16.mxu0 %v13621_v4 }
0x572f   :  { %13624 = vmatpush3.bf16.msra.mxu0 %v13621_v4 }
0x5730   :  { %13626 = vmatprep.subr.bf16.mxu0 %v13625_v1 }
0x5733   :  { %13628 = vmatpush3.bf16.msra.mxu0 %v13625_v1 }
0x57f9   :  { %v13435_v44 = vpop.f32.mrb[88].mxu0 }
0x57fa   :  { %v11651_v36 = vadd.f32 %v13435_v44, %v15406_v17  ;;  %v11639_v38 = vpop.f32.mrb[89].mxu0 }
0x57fb   :  { %v11650_v15 = vadd.f32 %v11639_v38, %v15404_v35  ;;  %v12273_v35 = vld [vmem:[%s15748_s11 + $0x20] sm:$0xff] }
0x57fc   :  { %v11655_v18 = vsel %vm153_vm0, %v11651_v36, 0.0  ;;  %v13605_v33 = vpack.c.bf16 %v12274_v51, %v12273_v35  ;;  %v11920_v35 = vld [vmem:[%s15751_s12] sm:$0xff]  ;;  %v11921_v51 = vld [vmem:[%s15751_s12 + $0x8] sm:$0xff] }
0x57fd   :  { %11656 = vadd.xlane.f32.xlu0 %v11655_v18  ;;  %v11652_v40 = vsel %vm153_vm0, %v11650_v15, 0.0 }
0x57fe   :  { %11653 = vadd.xlane.f32.xlu1 %v11652_v40  ;;  %13606 = vmatprep.subr.bf16.mxu1 %v13605_v33 }
0x57ff   :  { %13608 = vmatpush3.bf16.msra.mxu1 %v13605_v33  ;;  %v13629_v33 = vpack.c.bf16 %v11921_v51, %v11920_v35 }
0x5800   :  { %13610 = vmatprep.subr.bf16.mxu1 %v13609_v53 }
0x5803   :  { %13612 = vmatpush3.bf16.msra.mxu1 %v13609_v53  ;;  %v13633_v53 = vpack.c.bf16 %v11923_v58, %v11922_v57 }
0x5804   :  { %13630 = vmatprep.subr.bf16.mxu1 %v13629_v33 }
0x588a   :  { %v11657_v9 = vpop.xlane.xlu0 %11656 }
0x588b   :  { %v11659_v45 = vmul.f32 0.03125, %v11657_v9  ;;  %v11654_v49 = vpop.xlane.xlu1 %11653 }
0x588c   :  { %v11658_v46 = vmul.f32 0.03125, %v11654_v49 }
0x588d   :  { %v11661_v47 = vsub.f32 %v11651_v36, %v11659_v45 }
0x588e   :  { %v11660_v5 = vsub.f32 %v11650_v15, %v11658_v46 }
0x588f   :  { %v11663_v32 = vmul.f32 %v11661_v47, %v11661_v47 }
0x5890   :  { %v11662_v12 = vmul.f32 %v11660_v5, %v11660_v5 }
0x5891   :  { %v11667_v10 = vsel %vm153_vm0, %v11663_v32, 0.0 }
0x5892   :  { %11668 = vadd.xlane.f32.xlu1 %v11667_v10  ;;  %v11664_v17 = vsel %vm153_vm0, %v11662_v12, 0.0 }
0x5893   :  { %11665 = vadd.xlane.f32.xlu0 %v11664_v17 }
0x591f   :  { %v11669_v61 = vpop.xlane.xlu1 %11668 }
0x5920   :  { %v11671_v7 = vmul.f32 0.03125, %v11669_v61  ;;  %v11666_v37 = vpop.xlane.xlu0 %11665 }
0x5921   :  { %v11670_v11 = vmul.f32 0.03125, %v11666_v37  ;;  %v11917_v37 = vrot.slane %v15398_v23, %v8130_v30 }
0x5922   :  { %v11673_v14 = vadd.f32 1e-06, %v11671_v7 }
0x5923   :  { %v11672_v41 = vadd.f32 1e-06, %v11670_v11 }
0x5924   :  { %13927 = vrsqrt.f32 %v11673_v14 }
0x5925   :  { %13929 = vrsqrt.f32 %v11672_v41 }
0x592e   :  { %v13928_v21 = vpop.eup %13927 }
0x592f   :  { %v13930_v42 = vpop.eup %13929  ;;  %v11677_v52 = vmul.f32 %v13928_v21, %v11661_v47 }
0x5930   :  { %v11676_v22 = vmul.f32 %v13930_v42, %v11660_v5 }
0x5931   :  { %v11683_v50 = vmul.f32 %v11681_v59, %v11677_v52 }
0x5932   :  { %v11682_v62 = vmul.f32 %v11681_v59, %v11676_v22 }
0x5933   :  { %v11689_v6 = vadd.f32 %v11687_v24, %v11683_v50 }
0x5934   :  { %v11688_v25 = vadd.f32 %v11687_v24, %v11682_v62 }
0x5936   :  { %13444 = vmatprep.mubr.msk.f32.mxu1 %vm153_vm0, %v11688_v25 }
0x5937   :  { %13445 = vmatmul.mubr.msk.f32.vlgmr.msra.gmra.mrb[134].mxu1 %vm153_vm0, %v11689_v6 }
0x5938   :  { %13632 = vmatpush3.bf16.msra.mxu1 %v13629_v33 }
0x5939   :  { %13634 = vmatprep.subr.bf16.mxu1 %v13633_v53 }
0x593c   :  { %13636 = vmatpush3.bf16.msra.mxu1 %v13633_v53 }
0x5a0a   :  { %v13446_v13 = vpop.f32.mrb[134].mxu1 }
0x5a0b   :  { %v11781_v2 = vadd.f32 %v13446_v13, %v12278_v19  ;;  %v11775_v60 = vpop.f32.mrb[135].mxu1 }
0x5a0c   :  { %v11776_v0 = vadd.f32 %v12278_v19, %v11775_v60 }
0x5a0d   :  { %v11785_v28 = vmax.f32 %v11781_v2, 0.0 }
0x5a0e   :  { %v11784_v26 = vmax.f32 %v11776_v0, 0.0 }
0x5a10   :  { %13463 = vmatprep.mubr.msk.f32.mxu0 %vm2088_vm6, %v11784_v26 }
0x5a11   :  { %13464 = vmatmul.mubr.msk.f32.vlgmr.msra.gmra.mrb[96].mxu0 %vm2088_vm6, %v11785_v28 }
0x5ae4   :  { %v13465_v63 = vpop.f32.mrb[96].mxu0 }
0x5ae5   :  { %v11877_v44 = vadd.f32 %v13465_v63, %v11798_v43  ;;  %v11871_v36 = vpop.f32.mrb[97].mxu0 }
0x5ae6   :  { %v11872_v38 = vadd.f32 %v11871_v36, %v11798_v43 }
0x5ae7   :  { %v11881_v15 = vadd.f32 %v11877_v44, %v11689_v6 }
0x5ae8   :  { %v11880_v18 = vadd.f32 %v11872_v38, %v11688_v25 }
0x5ae9   :  { %v11885_v40 = vsel %vm153_vm0, %v11881_v15, 0.0 }
0x5aea   :  { %11886 = vadd.xlane.f32.xlu1 %v11885_v40  ;;  %v11882_v9 = vsel %vm153_vm0, %v11880_v18, 0.0 }
0x5aeb   :  { %11883 = vadd.xlane.f32.xlu0 %v11882_v9 }
0x5b77   :  { %v11887_v45 = vpop.xlane.xlu1 %11886 }
0x5b78   :  { %v11889_v49 = vmul.f32 0.03125, %v11887_v45  ;;  %v11884_v46 = vpop.xlane.xlu0 %11883 }
0x5b79   :  { %v11888_v47 = vmul.f32 0.03125, %v11884_v46 }
0x5b7a   :  { %v11891_v5 = vsub.f32 %v11881_v15, %v11889_v49 }
0x5b7b   :  { %v11890_v32 = vsub.f32 %v11880_v18, %v11888_v47 }
0x5b7c   :  { %v11893_v12 = vmul.f32 %v11891_v5, %v11891_v5 }
0x5b7d   :  { %v11892_v20 = vmul.f32 %v11890_v32, %v11890_v32 }
0x5b7e   :  { %v11897_v10 = vsel %vm153_vm0, %v11893_v12, 0.0 }
0x5b7f   :  { %11898 = vadd.xlane.f32.xlu1 %v11897_v10  ;;  %v11894_v17 = vsel %vm153_vm0, %v11892_v20, 0.0 }
0x5b80   :  { %11895 = vadd.xlane.f32.xlu0 %v11894_v17 }
0x5c0c   :  { %v11899_v54 = vpop.xlane.xlu1 %11898 }
0x5c0d   :  { %v11901_v34 = vmul.f32 0.03125, %v11899_v54  ;;  %v11896_v29 = vpop.xlane.xlu0 %11895 }
0x5c0e   :  { %v11900_v31 = vmul.f32 0.03125, %v11896_v29 }
0x5c0f   :  { %v11903_v55 = vadd.f32 1e-06, %v11901_v34 }
0x5c10   :  { %v11902_v56 = vadd.f32 1e-06, %v11900_v31 }
0x5c11   :  { %13931 = vrsqrt.f32 %v11903_v55 }
0x5c12   :  { %13933 = vrsqrt.f32 %v11902_v56 }
0x5c1b   :  { %v13932_v3 = vpop.eup %13931 }
0x5c1c   :  { %v13934_v4 = vpop.eup %13933  ;;  %v11907_v61 = vmul.f32 %v13932_v3, %v11891_v5 }
0x5c1d   :  { %v11906_v7 = vmul.f32 %v13934_v4, %v11890_v32 }
0x5c1e   :  { %v11913_v11 = vmul.f32 %v11911_v39, %v11907_v61 }
0x5c1f   :  { %v11912_v14 = vmul.f32 %v11911_v39, %v11906_v7 }
0x5c20   :  { %v11919_v59 = vadd.f32 %v11917_v37, %v11913_v11 }
0x5c21   :  { %v11918_v41 = vadd.f32 %v11917_v37, %v11912_v14 }
0x5c23   :  { %13474 = vmatprep.mubr.msk.f32.mxu1 %vm153_vm0, %v11918_v41 }
0x5c24   :  { %13475 = vmatmul.mubr.msk.f32.vlgmr.msra.gmra.mrb[136].mxu1 %vm153_vm0, %v11919_v59 }
0x5cf7   :  { %v13476_v21 = vpop.f32.mrb[136].mxu1 }
0x5cf8   :  { %v12006_v42 = vmul.f32 0.17677669, %v13476_v21  ;;  %v11996_v52 = vpop.f32.mrb[137].mxu1 }
0x5cf9   :  { %v12005_v48 = vmul.f32 0.17677669, %v11996_v52 }
0x5cfa   :  { %12008 = vst [vmem:[%s15752_s13 + $0x8] sm:$0xff] %v12006_v42 }
0x5cfb   :  { %12007 = vst [vmem:[%s15752_s13] sm:$0xff] %v12005_v48 }

</bundles_post_ra>
